<compile_context>
chip_gen: v7x
topology: tpu7x:2x2x1
jax: 0.10.0
libtpu: 0.0.40
codegen_flags: <defaults>
</compile_context>

<pallas_src>
import jax
import jax.numpy as jnp
from jax import lax
from jax.experimental import pallas as pl
from jax.experimental.pallas import tpu as pltpu

LANE = 128  # output channels padded to a multiple of this (lane-dense stores)


def _round_up(n, m):
    return ((n + m - 1) // m) * m


def _fold_bn(conv_b, gamma, beta, mean, var, eps=1e-5):
    """Fold conv bias + BatchNorm(eval) into per-channel scale/bias."""
    s = gamma / jnp.sqrt(var + eps)
    return s, (conv_b - mean) * s + beta


def _conv3x3_accumulate(acc_ref, patch_ref, src_ref, w_ref, Ho, Wo, C):
    """3x3 'same' conv from a zero-haloed VMEM source into acc_ref (f32).

    src_ref  : (Ho+2, Wo+2, C) bf16, 1-px zero halo.
    w_ref    : (3, 3*C, cp) bf16, rows ordered (dw, cin) within each dh.
    patch_ref: (Ho*Wo, >=3*C) bf16 scratch (K-packed im2col per dh).
    acc_ref  : (Ho*Wo, cp) f32 scratch; overwritten at dh == 0.
    """
    M = Ho * Wo
    for dh in range(3):
        # One shifted-slice copy per dw, then ONE wide dot per dh (K = 3*C).
        for dw in range(3):
            patch_ref[:, dw * C:(dw + 1) * C] = (
                src_ref[dh:dh + Ho, dw:dw + Wo, :].reshape(M, C))
        contrib = jnp.dot(patch_ref[:, :3 * C], w_ref[dh],
                          preferred_element_type=jnp.float32)
        if dh == 0:
            acc_ref[...] = contrib
        else:
            acc_ref[...] += contrib


def _upsample_kernel(x_ref, skip_ref, wt_ref, bt_ref, w1_ref, s1_ref, b1_ref,
                     w2_ref, s2_ref, b2_ref, o_ref,
                     cat_h, h1_h, up_buf, patch, acc):
    _, H, W, cin_p = x_ref.shape
    _, Ho, Wo, cp = o_ref.shape          # Ho = 2H, Wo = 2W
    Cs = skip_ref.shape[-1]              # real skip channels (= out_ch)
    ccat = cat_h.shape[-1]               # 2 * cp

    # --- zero the haloed scratches (borders + never-written lanes stay 0) ---
    cat_h[...] = jnp.zeros_like(cat_h)
    h1_h[...] = jnp.zeros_like(h1_h)

    # --- ConvTranspose2d(k=2, s=2): one MXU dot for all four (di,dj) taps ---
    x2 = x_ref[0].reshape(H * W, cin_p)
    y = jnp.dot(x2, wt_ref[...], preferred_element_type=jnp.float32)
    y = (y + bt_ref[...]).astype(jnp.bfloat16)          # (H*W, 4*cp), (di,dj,co)
    # Lane-slice per di; up_buf (H,2,W,2*cp) is a free row-major view of
    # the interleaved (2H, 2W, cp) upsampled image.
    up_buf[:, 0, :, :] = y[:, :2 * cp].reshape(H, W, 2 * cp)
    up_buf[:, 1, :, :] = y[:, 2 * cp:].reshape(H, W, 2 * cp)

    # --- fused channel concat, written straight into the zero-haloed CBR1
    #     input: skip -> lanes [0,cp), upsampled -> lanes [cp,2cp). ----------
    cat_h[1:1 + Ho, 1:1 + Wo, :Cs] = skip_ref[0]
    cat_h[1:1 + Ho, 1:1 + Wo, cp:ccat] = up_buf[...].reshape(Ho, Wo, cp)

    # --- CBR1: 3x3 conv (+ folded BN + ReLU) over the fused concat ----------
    _conv3x3_accumulate(acc, patch, cat_h, w1_ref, Ho, Wo, ccat)
    h1 = jnp.maximum(acc[...] * s1_ref[...] + b1_ref[...], 0.0)
    h1_h[1:1 + Ho, 1:1 + Wo, :] = h1.reshape(Ho, Wo, cp).astype(jnp.bfloat16)

    # --- CBR2 ----------------------------------------------------------------
    _conv3x3_accumulate(acc, patch, h1_h, w2_ref, Ho, Wo, cp)
    y2 = jnp.maximum(acc[...] * s2_ref[...] + b2_ref[...], 0.0)
    o_ref[0] = y2.reshape(Ho, Wo, cp).astype(o_ref.dtype)


def upsample_forward(x_nchw, skip_nchw, p):
    N, in_ch, H, W = x_nchw.shape
    out_ch = p["bt"].shape[0]
    Ho, Wo = 2 * H, 2 * W
    cp = _round_up(out_ch, LANE)           # lane-dense channel padding
    cin_p = _round_up(in_ch, 16)           # bf16 sublane packing for MXU K

    # NCHW -> NHWC (channels on lanes); bf16 MXU inputs.
    x = jnp.transpose(x_nchw, (0, 2, 3, 1)).astype(jnp.bfloat16)
    if cin_p != in_ch:
        x = jnp.pad(x, ((0, 0), (0, 0), (0, 0), (0, cin_p - in_ch)))
    skip = jnp.transpose(skip_nchw, (0, 2, 3, 1)).astype(jnp.bfloat16)

    # ConvTranspose2d weight (in_ch, out_ch, 2, 2) -> (cin_p, 4*cp),
    # columns ordered (di, dj, co); bias tiled over the 4 taps.
    wt = jnp.transpose(p["wt"], (0, 2, 3, 1))                   # (ci, di, dj, co)
    wt = jnp.pad(wt, ((0, cin_p - in_ch), (0, 0), (0, 0), (0, cp - out_ch)))
    wt = wt.reshape(cin_p, 4 * cp).astype(jnp.bfloat16)
    bt = jnp.tile(jnp.pad(p["bt"], (0, cp - out_ch)), 4)
    bt = bt.reshape(1, 4 * cp).astype(jnp.float32)

    # CBR1 weight (out_ch, 2*out_ch, 3, 3): the concat is fused, so input
    # channels [0:out_ch] go to lanes [0,cp) (skip) and [out_ch:2*out_ch] to
    # lanes [cp,2cp) (upsampled).  Packed per-dh with rows ordered (dw, cin).
    w1t = jnp.transpose(p["w1"], (2, 3, 1, 0))                  # (kh, kw, ci, co)
    w1p = jnp.zeros((3, 3, 2 * cp, cp), jnp.float32)
    w1p = w1p.at[:, :, :out_ch, :out_ch].set(w1t[:, :, :out_ch, :])
    w1p = w1p.at[:, :, cp:cp + out_ch, :out_ch].set(w1t[:, :, out_ch:, :])
    w1p = w1p.reshape(3, 6 * cp, cp).astype(jnp.bfloat16)
    s1, b1 = _fold_bn(p["b1"], p["g1"], p["be1"], p["m1"], p["v1"])
    s1 = jnp.pad(s1, (0, cp - out_ch)).reshape(1, cp).astype(jnp.float32)
    b1 = jnp.pad(b1, (0, cp - out_ch)).reshape(1, cp).astype(jnp.float32)

    # CBR2 weight (out_ch, out_ch, 3, 3) -> (3, 3*cp, cp).
    w2t = jnp.transpose(p["w2"], (2, 3, 1, 0))
    w2p = jnp.zeros((3, 3, cp, cp), jnp.float32)
    w2p = w2p.at[:, :, :out_ch, :out_ch].set(w2t)
    w2p = w2p.reshape(3, 3 * cp, cp).astype(jnp.bfloat16)
    s2, b2 = _fold_bn(p["b2"], p["g2"], p["be2"], p["m2"], p["v2"])
    s2 = jnp.pad(s2, (0, cp - out_ch)).reshape(1, cp).astype(jnp.float32)
    b2 = jnp.pad(b2, (0, cp - out_ch)).reshape(1, cp).astype(jnp.float32)

    # Advisory cost estimate for XLA's scheduler.
    flops = N * (2 * H * W * cin_p * 4 * cp
                 + 2 * Ho * Wo * (9 * 2 * cp) * cp
                 + 2 * Ho * Wo * (9 * cp) * cp)
    bytes_accessed = (x.size * 2 + skip.size * 2
                      + wt.size * 2 + bt.size * 4
                      + w1p.size * 2 + w2p.size * 2
                      + (s1.size + b1.size + s2.size + b2.size) * 4
                      + N * Ho * Wo * cp * 2)

    out = pl.pallas_call(
        _upsample_kernel,
        out_shape=jax.ShapeDtypeStruct((N, Ho, Wo, cp), jnp.bfloat16),
        grid_spec=pltpu.PrefetchScalarGridSpec(
            num_scalar_prefetch=0,
            grid=(N,),
            in_specs=[
                pl.BlockSpec((1, H, W, cin_p), lambda n: (n, 0, 0, 0)),
                pl.BlockSpec((1, Ho, Wo, out_ch), lambda n: (n, 0, 0, 0)),
                pl.BlockSpec((cin_p, 4 * cp), lambda n: (0, 0)),
                pl.BlockSpec((1, 4 * cp), lambda n: (0, 0)),
                pl.BlockSpec((3, 6 * cp, cp), lambda n: (0, 0, 0)),
                pl.BlockSpec((1, cp), lambda n: (0, 0)),
                pl.BlockSpec((1, cp), lambda n: (0, 0)),
                pl.BlockSpec((3, 3 * cp, cp), lambda n: (0, 0, 0)),
                pl.BlockSpec((1, cp), lambda n: (0, 0)),
                pl.BlockSpec((1, cp), lambda n: (0, 0)),
            ],
            out_specs=pl.BlockSpec((1, Ho, Wo, cp), lambda n: (n, 0, 0, 0)),
            scratch_shapes=[
                pltpu.VMEM((Ho + 2, Wo + 2, 2 * cp), jnp.bfloat16),  # cat_h
                pltpu.VMEM((Ho + 2, Wo + 2, cp), jnp.bfloat16),      # h1_h
                pltpu.VMEM((H, 2, W, 2 * cp), jnp.bfloat16),         # up_buf
                pltpu.VMEM((Ho * Wo, 6 * cp), jnp.bfloat16),         # patch
                pltpu.VMEM((Ho * Wo, cp), jnp.float32),              # acc
            ],
        ),
        compiler_params=pltpu.CompilerParams(
            dimension_semantics=("parallel",),
            vmem_limit_bytes=48 * 1024 * 1024,
        ),
        cost_estimate=pl.CostEstimate(flops=flops, transcendentals=0,
                                      bytes_accessed=bytes_accessed),
    )(x, skip, wt, bt, w1p, s1, b1, w2p, s2, b2)

    # Drop padded channels, NHWC -> NCHW, f32 for the consumer.
    return jnp.transpose(out[:, :, :, :out_ch].astype(jnp.float32), (0, 3, 1, 2))


# ----------------------------------------------------------------------------
# Parameters + pure-JAX reference (for a tolerance check; bf16 MXU path).
# ----------------------------------------------------------------------------
def init_params(key, in_ch, out_ch):
    ks = jax.random.split(key, 8)
    return {
        "wt": 0.1 * jax.random.normal(ks[0], (in_ch, out_ch, 2, 2), jnp.float32),
        "bt": 0.1 * jax.random.normal(ks[1], (out_ch,), jnp.float32),
        "w1": 0.1 * jax.random.normal(ks[2], (out_ch, 2 * out_ch, 3, 3), jnp.float32),
        "b1": 0.1 * jax.random.normal(ks[3], (out_ch,), jnp.float32),
        "g1": jnp.ones((out_ch,), jnp.float32) * 1.1,
        "be1": jnp.full((out_ch,), 0.05, jnp.float32),
        "m1": jnp.full((out_ch,), 0.02, jnp.float32),
        "v1": jnp.ones((out_ch,), jnp.float32) * 0.9,
        "w2": 0.1 * jax.random.normal(ks[4], (out_ch, out_ch, 3, 3), jnp.float32),
        "b2": 0.1 * jax.random.normal(ks[5], (out_ch,), jnp.float32),
        "g2": jnp.ones((out_ch,), jnp.float32) * 0.95,
        "be2": jnp.full((out_ch,), -0.03, jnp.float32),
        "m2": jnp.full((out_ch,), 0.01, jnp.float32),
        "v2": jnp.ones((out_ch,), jnp.float32) * 1.05,
    }


def _ref_forward(x, skip, p, eps=1e-5):
    def conv_transpose(x, w, b):  # kernel=2, stride=2 (no overlap)
        y = jnp.einsum("nchw,codk->nohwdk", x, w)
        n, o, h, ww = y.shape[:4]
        y = jnp.transpose(y, (0, 1, 2, 4, 3, 5)).reshape(n, o, 2 * h, 2 * ww)
        return y + b[None, :, None, None]

    def cbr(x, w, b, g, be, m, v):
        y = lax.conv_general_dilated(x, w, (1, 1), ((1, 1), (1, 1)),
                                     dimension_numbers=("NCHW", "OIHW", "NCHW"))
        y = y + b[None, :, None, None]
        y = (y - m[None, :, None, None]) / jnp.sqrt(v[None, :, None, None] + eps)
        y = y * g[None, :, None, None] + be[None, :, None, None]
        return jnp.maximum(y, 0.0)

    up = conv_transpose(x, p["wt"], p["bt"])
    h = jnp.concatenate([skip, up], axis=1)
    h = cbr(h, p["w1"], p["b1"], p["g1"], p["be1"], p["m1"], p["v1"])
    return cbr(h, p["w2"], p["b2"], p["g2"], p["be2"], p["m2"], p["v2"])


if __name__ == "__main__":
    in_ch, out_ch = 8, 4
    N, H, W = 2, 8, 8  # x is low-res; skip is at 2H x 2W

    key = jax.random.PRNGKey(0)
    kx, ks, kp = jax.random.split(key, 3)
    x = jax.random.normal(kx, (N, in_ch, H, W), jnp.float32)             # NCHW
    skip = jax.random.normal(ks, (N, out_ch, 2 * H, 2 * W), jnp.float32)  # NCHW
    params = init_params(kp, in_ch, out_ch)

    out = jax.jit(upsample_forward)(x, skip, params)
    out = jax.block_until_ready(out)
    assert out.shape == (N, out_ch, 2 * H, 2 * W), out.shape
    assert bool(jnp.all(jnp.isfinite(out))), "non-finite output"

    # bf16 MXU path vs f32 reference: loose tolerance.
    ref = _ref_forward(x, skip, params)
    err = float(jnp.max(jnp.abs(out - ref)))
    assert err < 8e-2, f"max abs error vs reference: {err}"
    print("KERNEL_OK")
</pallas_src>

<mosaic_0001>
module attributes {stable_mosaic.version = 11 : i64} {
  func.func @_upsample_kernel(%arg0: i32, %arg1: memref<1x8x8x16xbf16, #tpu.memory_space<vmem>>, %arg2: memref<1x16x16x4xbf16, #tpu.memory_space<vmem>>, %arg3: memref<16x512xbf16, #tpu.memory_space<vmem>>, %arg4: memref<1x512xf32, #tpu.memory_space<vmem>>, %arg5: memref<3x768x128xbf16, #tpu.memory_space<vmem>>, %arg6: memref<1x128xf32, #tpu.memory_space<vmem>>, %arg7: memref<1x128xf32, #tpu.memory_space<vmem>>, %arg8: memref<3x384x128xbf16, #tpu.memory_space<vmem>>, %arg9: memref<1x128xf32, #tpu.memory_space<vmem>>, %arg10: memref<1x128xf32, #tpu.memory_space<vmem>>, %arg11: memref<1x16x16x128xbf16, #tpu.memory_space<vmem>>, %arg12: memref<18x18x256xbf16, #tpu.memory_space<vmem>>, %arg13: memref<18x18x128xbf16, #tpu.memory_space<vmem>>, %arg14: memref<8x2x8x256xbf16, #tpu.memory_space<vmem>>, %arg15: memref<256x768xbf16, #tpu.memory_space<vmem>>, %arg16: memref<256x128xf32, #tpu.memory_space<vmem>>) attributes {dimension_semantics = [#tpu.dimension_semantics<parallel>], iteration_bounds = array<i64: 2>, scalar_prefetch = 0 : i64, scratch_operands = 5 : i64, tpu.core_type = #tpu.core_type<tc>, window_params = [{transform_indices = @transform_0, window_bounds = array<i64: 1, 8, 8, 16>}, {transform_indices = @transform_1, window_bounds = array<i64: 1, 16, 16, 4>}, {pipeline_mode = #tpu.pipeline_mode<synchronous>, transform_indices = @transform_2, window_bounds = array<i64: 16, 512>}, {pipeline_mode = #tpu.pipeline_mode<synchronous>, transform_indices = @transform_3, window_bounds = array<i64: 1, 512>}, {pipeline_mode = #tpu.pipeline_mode<synchronous>, transform_indices = @transform_4, window_bounds = array<i64: 3, 768, 128>}, {pipeline_mode = #tpu.pipeline_mode<synchronous>, transform_indices = @transform_5, window_bounds = array<i64: 1, 128>}, {pipeline_mode = #tpu.pipeline_mode<synchronous>, transform_indices = @transform_6, window_bounds = array<i64: 1, 128>}, {pipeline_mode = #tpu.pipeline_mode<synchronous>, transform_indices = @transform_7, window_bounds = array<i64: 3, 384, 128>}, {pipeline_mode = #tpu.pipeline_mode<synchronous>, transform_indices = @transform_8, window_bounds = array<i64: 1, 128>}, {pipeline_mode = #tpu.pipeline_mode<synchronous>, transform_indices = @transform_9, window_bounds = array<i64: 1, 128>}, {transform_indices = @transform_10, window_bounds = array<i64: 1, 16, 16, 128>}]} {
    %cst = arith.constant 0.000000e+00 : bf16
    %0 = vector.broadcast %cst : bf16 to vector<18x18x256xbf16>
    %c0 = arith.constant 0 : index
    %c0_0 = arith.constant 0 : index
    %c0_1 = arith.constant 0 : index
    %1 = vector.load %arg12[%c0, %c0_0, %c0_1] : memref<18x18x256xbf16, #tpu.memory_space<vmem>>, vector<18x18x256xbf16>
    tpu.vector_store %arg12[%c0, %c0_0, %c0_1], %0 {strides = array<i32>} : memref<18x18x256xbf16, #tpu.memory_space<vmem>>, vector<18x18x256xbf16>,
    %cst_2 = arith.constant 0.000000e+00 : bf16
    %2 = vector.broadcast %cst_2 : bf16 to vector<18x18x128xbf16>
    %c0_3 = arith.constant 0 : index
    %c0_4 = arith.constant 0 : index
    %c0_5 = arith.constant 0 : index
    %3 = vector.load %arg13[%c0_3, %c0_4, %c0_5] : memref<18x18x128xbf16, #tpu.memory_space<vmem>>, vector<18x18x128xbf16>
    tpu.vector_store %arg13[%c0_3, %c0_4, %c0_5], %2 {strides = array<i32>} : memref<18x18x128xbf16, #tpu.memory_space<vmem>>, vector<18x18x128xbf16>,
    %c0_6 = arith.constant 0 : index
    %c0_7 = arith.constant 0 : index
    %c0_8 = arith.constant 0 : index
    %c0_9 = arith.constant 0 : index
    %4 = vector.load %arg1[%c0_6, %c0_7, %c0_8, %c0_9] : memref<1x8x8x16xbf16, #tpu.memory_space<vmem>>, vector<1x8x8x16xbf16>
    %5 = vector.shape_cast %4 : vector<1x8x8x16xbf16> to vector<8x8x16xbf16>
    %6 = vector.shape_cast %5 : vector<8x8x16xbf16> to vector<64x16xbf16>
    %c0_10 = arith.constant 0 : index
    %c0_11 = arith.constant 0 : index
    %7 = vector.load %arg3[%c0_10, %c0_11] : memref<16x512xbf16, #tpu.memory_space<vmem>>, vector<16x512xbf16>
    %cst_12 = arith.constant dense<0.000000e+00> : vector<64x512xf32>
    %8 = tpu.matmul %6, %7, %cst_12 {dimension_numbers = #tpu.dot_dimension_numbers<[1], [0], [0], [1], [0, 0, 1, 1], [], []>} : vector<64x16xbf16>, vector<16x512xbf16>, vector<64x512xf32> -> vector<64x512xf32>
    %c0_13 = arith.constant 0 : index
    %c0_14 = arith.constant 0 : index
    %9 = vector.load %arg4[%c0_13, %c0_14] : memref<1x512xf32, #tpu.memory_space<vmem>>, vector<1x512xf32>
    %10 = vector.broadcast %9 : vector<1x512xf32> to vector<64x512xf32>
    %11 = arith.addf %8, %10 : vector<64x512xf32>
    %12 = arith.truncf %11 : vector<64x512xf32> to vector<64x512xbf16>
    %13 = vector.extract_strided_slice %12 {offsets = [0, 0], sizes = [64, 256], strides = [1, 1]} : vector<64x512xbf16> to vector<64x256xbf16>
    %14 = vector.shape_cast %13 : vector<64x256xbf16> to vector<8x8x256xbf16>
    %c0_15 = arith.constant 0 : index
    %c0_16 = arith.constant 0 : index
    %c0_17 = arith.constant 0 : index
    %c0_18 = arith.constant 0 : index
    %15 = vector.load %arg14[%c0_15, %c0_16, %c0_17, %c0_18] : memref<8x2x8x256xbf16, #tpu.memory_space<vmem>>, vector<8x1x8x256xbf16>
    %16 = vector.shape_cast %15 : vector<8x1x8x256xbf16> to vector<8x8x256xbf16>
    %17 = vector.shape_cast %14 : vector<8x8x256xbf16> to vector<8x1x8x256xbf16>
    tpu.vector_store %arg14[%c0_15, %c0_16, %c0_17, %c0_18], %17 {strides = array<i32>} : memref<8x2x8x256xbf16, #tpu.memory_space<vmem>>, vector<8x1x8x256xbf16>,
    %18 = vector.extract_strided_slice %12 {offsets = [0, 256], sizes = [64, 256], strides = [1, 1]} : vector<64x512xbf16> to vector<64x256xbf16>
    %19 = vector.shape_cast %18 : vector<64x256xbf16> to vector<8x8x256xbf16>
    %c0_19 = arith.constant 0 : index
    %c1 = arith.constant 1 : index
    %c0_20 = arith.constant 0 : index
    %c0_21 = arith.constant 0 : index
    %20 = vector.load %arg14[%c0_19, %c1, %c0_20, %c0_21] : memref<8x2x8x256xbf16, #tpu.memory_space<vmem>>, vector<8x1x8x256xbf16>
    %21 = vector.shape_cast %20 : vector<8x1x8x256xbf16> to vector<8x8x256xbf16>
    %22 = vector.shape_cast %19 : vector<8x8x256xbf16> to vector<8x1x8x256xbf16>
    tpu.vector_store %arg14[%c0_19, %c1, %c0_20, %c0_21], %22 {strides = array<i32>} : memref<8x2x8x256xbf16, #tpu.memory_space<vmem>>, vector<8x1x8x256xbf16>,
    %c0_22 = arith.constant 0 : index
    %c0_23 = arith.constant 0 : index
    %c0_24 = arith.constant 0 : index
    %c0_25 = arith.constant 0 : index
    %23 = vector.load %arg2[%c0_22, %c0_23, %c0_24, %c0_25] : memref<1x16x16x4xbf16, #tpu.memory_space<vmem>>, vector<1x16x16x4xbf16>
    %24 = vector.shape_cast %23 : vector<1x16x16x4xbf16> to vector<16x16x4xbf16>
    %c1_26 = arith.constant 1 : index
    %c1_27 = arith.constant 1 : index
    %c0_28 = arith.constant 0 : index
    %25 = vector.load %arg12[%c1_26, %c1_27, %c0_28] : memref<18x18x256xbf16, #tpu.memory_space<vmem>>, vector<16x16x4xbf16>
    tpu.vector_store %arg12[%c1_26, %c1_27, %c0_28], %24 {strides = array<i32>} : memref<18x18x256xbf16, #tpu.memory_space<vmem>>, vector<16x16x4xbf16>,
    %c0_29 = arith.constant 0 : index
    %c0_30 = arith.constant 0 : index
    %c0_31 = arith.constant 0 : index
    %c0_32 = arith.constant 0 : index
    %26 = vector.load %arg14[%c0_29, %c0_30, %c0_31, %c0_32] : memref<8x2x8x256xbf16, #tpu.memory_space<vmem>>, vector<8x2x8x256xbf16>
    %27 = vector.shape_cast %26 : vector<8x2x8x256xbf16> to vector<16x16x128xbf16>
    %c1_33 = arith.constant 1 : index
    %c1_34 = arith.constant 1 : index
    %c128 = arith.constant 128 : index
    %28 = vector.load %arg12[%c1_33, %c1_34, %c128] : memref<18x18x256xbf16, #tpu.memory_space<vmem>>, vector<16x16x128xbf16>
    tpu.vector_store %arg12[%c1_33, %c1_34, %c128], %27 {strides = array<i32>} : memref<18x18x256xbf16, #tpu.memory_space<vmem>>, vector<16x16x128xbf16>,
    %c0_35 = arith.constant 0 : index
    %c0_36 = arith.constant 0 : index
    %c0_37 = arith.constant 0 : index
    %29 = vector.load %arg12[%c0_35, %c0_36, %c0_37] : memref<18x18x256xbf16, #tpu.memory_space<vmem>>, vector<16x16x256xbf16>
    %30 = vector.shape_cast %29 : vector<16x16x256xbf16> to vector<256x256xbf16>
    %c0_38 = arith.constant 0 : index
    %c0_39 = arith.constant 0 : index
    %31 = vector.load %arg15[%c0_38, %c0_39] : memref<256x768xbf16, #tpu.memory_space<vmem>>, vector<256x256xbf16>
    tpu.vector_store %arg15[%c0_38, %c0_39], %30 {strides = array<i32>} : memref<256x768xbf16, #tpu.memory_space<vmem>>, vector<256x256xbf16>,
    %c0_40 = arith.constant 0 : index
    %c1_41 = arith.constant 1 : index
    %c0_42 = arith.constant 0 : index
    %32 = vector.load %arg12[%c0_40, %c1_41, %c0_42] : memref<18x18x256xbf16, #tpu.memory_space<vmem>>, vector<16x16x256xbf16>
    %33 = vector.shape_cast %32 : vector<16x16x256xbf16> to vector<256x256xbf16>
    %c0_43 = arith.constant 0 : index
    %c256 = arith.constant 256 : index
    %34 = vector.load %arg15[%c0_43, %c256] : memref<256x768xbf16, #tpu.memory_space<vmem>>, vector<256x256xbf16>
    tpu.vector_store %arg15[%c0_43, %c256], %33 {strides = array<i32>} : memref<256x768xbf16, #tpu.memory_space<vmem>>, vector<256x256xbf16>,
    %c0_44 = arith.constant 0 : index
    %c2 = arith.constant 2 : index
    %c0_45 = arith.constant 0 : index
    %35 = vector.load %arg12[%c0_44, %c2, %c0_45] : memref<18x18x256xbf16, #tpu.memory_space<vmem>>, vector<16x16x256xbf16>
    %36 = vector.shape_cast %35 : vector<16x16x256xbf16> to vector<256x256xbf16>
    %c0_46 = arith.constant 0 : index
    %c512 = arith.constant 512 : index
    %37 = vector.load %arg15[%c0_46, %c512] : memref<256x768xbf16, #tpu.memory_space<vmem>>, vector<256x256xbf16>
    tpu.vector_store %arg15[%c0_46, %c512], %36 {strides = array<i32>} : memref<256x768xbf16, #tpu.memory_space<vmem>>, vector<256x256xbf16>,
    %c0_47 = arith.constant 0 : index
    %c0_48 = arith.constant 0 : index
    %38 = vector.load %arg15[%c0_47, %c0_48] : memref<256x768xbf16, #tpu.memory_space<vmem>>, vector<256x768xbf16>
    %c0_49 = arith.constant 0 : index
    %c0_50 = arith.constant 0 : index
    %c0_51 = arith.constant 0 : index
    %39 = vector.load %arg5[%c0_49, %c0_50, %c0_51] : memref<3x768x128xbf16, #tpu.memory_space<vmem>>, vector<1x768x128xbf16>
    %40 = vector.shape_cast %39 : vector<1x768x128xbf16> to vector<768x128xbf16>
    %cst_52 = arith.constant dense<0.000000e+00> : vector<256x128xf32>
    %41 = tpu.matmul %38, %40, %cst_52 {dimension_numbers = #tpu.dot_dimension_numbers<[1], [0], [0], [1], [0, 0, 1, 1], [], []>} : vector<256x768xbf16>, vector<768x128xbf16>, vector<256x128xf32> -> vector<256x128xf32>
    %c0_53 = arith.constant 0 : index
    %c0_54 = arith.constant 0 : index
    %42 = vector.load %arg16[%c0_53, %c0_54] : memref<256x128xf32, #tpu.memory_space<vmem>>, vector<256x128xf32>
    tpu.vector_store %arg16[%c0_53, %c0_54], %41 {strides = array<i32>} : memref<256x128xf32, #tpu.memory_space<vmem>>, vector<256x128xf32>,
    %c1_55 = arith.constant 1 : index
    %c0_56 = arith.constant 0 : index
    %c0_57 = arith.constant 0 : index
    %43 = vector.load %arg12[%c1_55, %c0_56, %c0_57] : memref<18x18x256xbf16, #tpu.memory_space<vmem>>, vector<16x16x256xbf16>
    %44 = vector.shape_cast %43 : vector<16x16x256xbf16> to vector<256x256xbf16>
    %c0_58 = arith.constant 0 : index
    %c0_59 = arith.constant 0 : index
    %45 = vector.load %arg15[%c0_58, %c0_59] : memref<256x768xbf16, #tpu.memory_space<vmem>>, vector<256x256xbf16>
    tpu.vector_store %arg15[%c0_58, %c0_59], %44 {strides = array<i32>} : memref<256x768xbf16, #tpu.memory_space<vmem>>, vector<256x256xbf16>,
    %c1_60 = arith.constant 1 : index
    %c1_61 = arith.constant 1 : index
    %c0_62 = arith.constant 0 : index
    %46 = vector.load %arg12[%c1_60, %c1_61, %c0_62] : memref<18x18x256xbf16, #tpu.memory_space<vmem>>, vector<16x16x256xbf16>
    %47 = vector.shape_cast %46 : vector<16x16x256xbf16> to vector<256x256xbf16>
    %c0_63 = arith.constant 0 : index
    %c256_64 = arith.constant 256 : index
    %48 = vector.load %arg15[%c0_63, %c256_64] : memref<256x768xbf16, #tpu.memory_space<vmem>>, vector<256x256xbf16>
    tpu.vector_store %arg15[%c0_63, %c256_64], %47 {strides = array<i32>} : memref<256x768xbf16, #tpu.memory_space<vmem>>, vector<256x256xbf16>,
    %c1_65 = arith.constant 1 : index
    %c2_66 = arith.constant 2 : index
    %c0_67 = arith.constant 0 : index
    %49 = vector.load %arg12[%c1_65, %c2_66, %c0_67] : memref<18x18x256xbf16, #tpu.memory_space<vmem>>, vector<16x16x256xbf16>
    %50 = vector.shape_cast %49 : vector<16x16x256xbf16> to vector<256x256xbf16>
    %c0_68 = arith.constant 0 : index
    %c512_69 = arith.constant 512 : index
    %51 = vector.load %arg15[%c0_68, %c512_69] : memref<256x768xbf16, #tpu.memory_space<vmem>>, vector<256x256xbf16>
    tpu.vector_store %arg15[%c0_68, %c512_69], %50 {strides = array<i32>} : memref<256x768xbf16, #tpu.memory_space<vmem>>, vector<256x256xbf16>,
    %c0_70 = arith.constant 0 : index
    %c0_71 = arith.constant 0 : index
    %52 = vector.load %arg15[%c0_70, %c0_71] : memref<256x768xbf16, #tpu.memory_space<vmem>>, vector<256x768xbf16>
    %c1_72 = arith.constant 1 : index
    %c0_73 = arith.constant 0 : index
    %c0_74 = arith.constant 0 : index
    %53 = vector.load %arg5[%c1_72, %c0_73, %c0_74] : memref<3x768x128xbf16, #tpu.memory_space<vmem>>, vector<1x768x128xbf16>
    %54 = vector.shape_cast %53 : vector<1x768x128xbf16> to vector<768x128xbf16>
    %cst_75 = arith.constant dense<0.000000e+00> : vector<256x128xf32>
    %55 = tpu.matmul %52, %54, %cst_75 {dimension_numbers = #tpu.dot_dimension_numbers<[1], [0], [0], [1], [0, 0, 1, 1], [], []>} : vector<256x768xbf16>, vector<768x128xbf16>, vector<256x128xf32> -> vector<256x128xf32>
    %c0_76 = arith.constant 0 : index
    %c0_77 = arith.constant 0 : index
    %56 = vector.load %arg16[%c0_76, %c0_77] : memref<256x128xf32, #tpu.memory_space<vmem>>, vector<256x128xf32>
    %57 = arith.addf %56, %55 : vector<256x128xf32>
    %c0_78 = arith.constant 0 : index
    %c0_79 = arith.constant 0 : index
    %58 = vector.load %arg16[%c0_78, %c0_79] : memref<256x128xf32, #tpu.memory_space<vmem>>, vector<256x128xf32>
    tpu.vector_store %arg16[%c0_78, %c0_79], %57 {strides = array<i32>} : memref<256x128xf32, #tpu.memory_space<vmem>>, vector<256x128xf32>,
    %c2_80 = arith.constant 2 : index
    %c0_81 = arith.constant 0 : index
    %c0_82 = arith.constant 0 : index
    %59 = vector.load %arg12[%c2_80, %c0_81, %c0_82] : memref<18x18x256xbf16, #tpu.memory_space<vmem>>, vector<16x16x256xbf16>
    %60 = vector.shape_cast %59 : vector<16x16x256xbf16> to vector<256x256xbf16>
    %c0_83 = arith.constant 0 : index
    %c0_84 = arith.constant 0 : index
    %61 = vector.load %arg15[%c0_83, %c0_84] : memref<256x768xbf16, #tpu.memory_space<vmem>>, vector<256x256xbf16>
    tpu.vector_store %arg15[%c0_83, %c0_84], %60 {strides = array<i32>} : memref<256x768xbf16, #tpu.memory_space<vmem>>, vector<256x256xbf16>,
    %c2_85 = arith.constant 2 : index
    %c1_86 = arith.constant 1 : index
    %c0_87 = arith.constant 0 : index
    %62 = vector.load %arg12[%c2_85, %c1_86, %c0_87] : memref<18x18x256xbf16, #tpu.memory_space<vmem>>, vector<16x16x256xbf16>
    %63 = vector.shape_cast %62 : vector<16x16x256xbf16> to vector<256x256xbf16>
    %c0_88 = arith.constant 0 : index
    %c256_89 = arith.constant 256 : index
    %64 = vector.load %arg15[%c0_88, %c256_89] : memref<256x768xbf16, #tpu.memory_space<vmem>>, vector<256x256xbf16>
    tpu.vector_store %arg15[%c0_88, %c256_89], %63 {strides = array<i32>} : memref<256x768xbf16, #tpu.memory_space<vmem>>, vector<256x256xbf16>,
    %c2_90 = arith.constant 2 : index
    %c2_91 = arith.constant 2 : index
    %c0_92 = arith.constant 0 : index
    %65 = vector.load %arg12[%c2_90, %c2_91, %c0_92] : memref<18x18x256xbf16, #tpu.memory_space<vmem>>, vector<16x16x256xbf16>
    %66 = vector.shape_cast %65 : vector<16x16x256xbf16> to vector<256x256xbf16>
    %c0_93 = arith.constant 0 : index
    %c512_94 = arith.constant 512 : index
    %67 = vector.load %arg15[%c0_93, %c512_94] : memref<256x768xbf16, #tpu.memory_space<vmem>>, vector<256x256xbf16>
    tpu.vector_store %arg15[%c0_93, %c512_94], %66 {strides = array<i32>} : memref<256x768xbf16, #tpu.memory_space<vmem>>, vector<256x256xbf16>,
    %c0_95 = arith.constant 0 : index
    %c0_96 = arith.constant 0 : index
    %68 = vector.load %arg15[%c0_95, %c0_96] : memref<256x768xbf16, #tpu.memory_space<vmem>>, vector<256x768xbf16>
    %c2_97 = arith.constant 2 : index
    %c0_98 = arith.constant 0 : index
    %c0_99 = arith.constant 0 : index
    %69 = vector.load %arg5[%c2_97, %c0_98, %c0_99] : memref<3x768x128xbf16, #tpu.memory_space<vmem>>, vector<1x768x128xbf16>
    %70 = vector.shape_cast %69 : vector<1x768x128xbf16> to vector<768x128xbf16>
    %cst_100 = arith.constant dense<0.000000e+00> : vector<256x128xf32>
    %71 = tpu.matmul %68, %70, %cst_100 {dimension_numbers = #tpu.dot_dimension_numbers<[1], [0], [0], [1], [0, 0, 1, 1], [], []>} : vector<256x768xbf16>, vector<768x128xbf16>, vector<256x128xf32> -> vector<256x128xf32>
    %c0_101 = arith.constant 0 : index
    %c0_102 = arith.constant 0 : index
    %72 = vector.load %arg16[%c0_101, %c0_102] : memref<256x128xf32, #tpu.memory_space<vmem>>, vector<256x128xf32>
    %73 = arith.addf %72, %71 : vector<256x128xf32>
    %c0_103 = arith.constant 0 : index
    %c0_104 = arith.constant 0 : index
    %74 = vector.load %arg16[%c0_103, %c0_104] : memref<256x128xf32, #tpu.memory_space<vmem>>, vector<256x128xf32>
    tpu.vector_store %arg16[%c0_103, %c0_104], %73 {strides = array<i32>} : memref<256x128xf32, #tpu.memory_space<vmem>>, vector<256x128xf32>,
    %c0_105 = arith.constant 0 : index
    %c0_106 = arith.constant 0 : index
    %75 = vector.load %arg16[%c0_105, %c0_106] : memref<256x128xf32, #tpu.memory_space<vmem>>, vector<256x128xf32>
    %c0_107 = arith.constant 0 : index
    %c0_108 = arith.constant 0 : index
    %76 = vector.load %arg6[%c0_107, %c0_108] : memref<1x128xf32, #tpu.memory_space<vmem>>, vector<1x128xf32>
    %77 = vector.broadcast %76 : vector<1x128xf32> to vector<256x128xf32>
    %78 = arith.mulf %75, %77 : vector<256x128xf32>
    %c0_109 = arith.constant 0 : index
    %c0_110 = arith.constant 0 : index
    %79 = vector.load %arg7[%c0_109, %c0_110] : memref<1x128xf32, #tpu.memory_space<vmem>>, vector<1x128xf32>
    %80 = vector.broadcast %79 : vector<1x128xf32> to vector<256x128xf32>
    %81 = arith.addf %78, %80 : vector<256x128xf32>
    %cst_111 = arith.constant 0.000000e+00 : f32
    %82 = vector.broadcast %cst_111 : f32 to vector<256x128xf32>
    %83 = arith.maximumf %81, %82 : vector<256x128xf32>
    %84 = vector.shape_cast %83 : vector<256x128xf32> to vector<16x16x128xf32>
    %85 = arith.truncf %84 : vector<16x16x128xf32> to vector<16x16x128xbf16>
    %c1_112 = arith.constant 1 : index
    %c1_113 = arith.constant 1 : index
    %c0_114 = arith.constant 0 : index
    %86 = vector.load %arg13[%c1_112, %c1_113, %c0_114] : memref<18x18x128xbf16, #tpu.memory_space<vmem>>, vector<16x16x128xbf16>
    tpu.vector_store %arg13[%c1_112, %c1_113, %c0_114], %85 {strides = array<i32>} : memref<18x18x128xbf16, #tpu.memory_space<vmem>>, vector<16x16x128xbf16>,
    %c0_115 = arith.constant 0 : index
    %c0_116 = arith.constant 0 : index
    %c0_117 = arith.constant 0 : index
    %87 = vector.load %arg13[%c0_115, %c0_116, %c0_117] : memref<18x18x128xbf16, #tpu.memory_space<vmem>>, vector<16x16x128xbf16>
    %88 = vector.shape_cast %87 : vector<16x16x128xbf16> to vector<256x128xbf16>
    %c0_118 = arith.constant 0 : index
    %c0_119 = arith.constant 0 : index
    %89 = vector.load %arg15[%c0_118, %c0_119] : memref<256x768xbf16, #tpu.memory_space<vmem>>, vector<256x128xbf16>
    tpu.vector_store %arg15[%c0_118, %c0_119], %88 {strides = array<i32>} : memref<256x768xbf16, #tpu.memory_space<vmem>>, vector<256x128xbf16>,
    %c0_120 = arith.constant 0 : index
    %c1_121 = arith.constant 1 : index
    %c0_122 = arith.constant 0 : index
    %90 = vector.load %arg13[%c0_120, %c1_121, %c0_122] : memref<18x18x128xbf16, #tpu.memory_space<vmem>>, vector<16x16x128xbf16>
    %91 = vector.shape_cast %90 : vector<16x16x128xbf16> to vector<256x128xbf16>
    %c0_123 = arith.constant 0 : index
    %c128_124 = arith.constant 128 : index
    %92 = vector.load %arg15[%c0_123, %c128_124] : memref<256x768xbf16, #tpu.memory_space<vmem>>, vector<256x128xbf16>
    tpu.vector_store %arg15[%c0_123, %c128_124], %91 {strides = array<i32>} : memref<256x768xbf16, #tpu.memory_space<vmem>>, vector<256x128xbf16>,
    %c0_125 = arith.constant 0 : index
    %c2_126 = arith.constant 2 : index
    %c0_127 = arith.constant 0 : index
    %93 = vector.load %arg13[%c0_125, %c2_126, %c0_127] : memref<18x18x128xbf16, #tpu.memory_space<vmem>>, vector<16x16x128xbf16>
    %94 = vector.shape_cast %93 : vector<16x16x128xbf16> to vector<256x128xbf16>
    %c0_128 = arith.constant 0 : index
    %c256_129 = arith.constant 256 : index
    %95 = vector.load %arg15[%c0_128, %c256_129] : memref<256x768xbf16, #tpu.memory_space<vmem>>, vector<256x128xbf16>
    tpu.vector_store %arg15[%c0_128, %c256_129], %94 {strides = array<i32>} : memref<256x768xbf16, #tpu.memory_space<vmem>>, vector<256x128xbf16>,
    %c0_130 = arith.constant 0 : index
    %c0_131 = arith.constant 0 : index
    %96 = vector.load %arg15[%c0_130, %c0_131] : memref<256x768xbf16, #tpu.memory_space<vmem>>, vector<256x384xbf16>
    %c0_132 = arith.constant 0 : index
    %c0_133 = arith.constant 0 : index
    %c0_134 = arith.constant 0 : index
    %97 = vector.load %arg8[%c0_132, %c0_133, %c0_134] : memref<3x384x128xbf16, #tpu.memory_space<vmem>>, vector<1x384x128xbf16>
    %98 = vector.shape_cast %97 : vector<1x384x128xbf16> to vector<384x128xbf16>
    %cst_135 = arith.constant dense<0.000000e+00> : vector<256x128xf32>
    %99 = tpu.matmul %96, %98, %cst_135 {dimension_numbers = #tpu.dot_dimension_numbers<[1], [0], [0], [1], [0, 0, 1, 1], [], []>} : vector<256x384xbf16>, vector<384x128xbf16>, vector<256x128xf32> -> vector<256x128xf32>
    %c0_136 = arith.constant 0 : index
    %c0_137 = arith.constant 0 : index
    %100 = vector.load %arg16[%c0_136, %c0_137] : memref<256x128xf32, #tpu.memory_space<vmem>>, vector<256x128xf32>
    tpu.vector_store %arg16[%c0_136, %c0_137], %99 {strides = array<i32>} : memref<256x128xf32, #tpu.memory_space<vmem>>, vector<256x128xf32>,
    %c1_138 = arith.constant 1 : index
    %c0_139 = arith.constant 0 : index
    %c0_140 = arith.constant 0 : index
    %101 = vector.load %arg13[%c1_138, %c0_139, %c0_140] : memref<18x18x128xbf16, #tpu.memory_space<vmem>>, vector<16x16x128xbf16>
    %102 = vector.shape_cast %101 : vector<16x16x128xbf16> to vector<256x128xbf16>
    %c0_141 = arith.constant 0 : index
    %c0_142 = arith.constant 0 : index
    %103 = vector.load %arg15[%c0_141, %c0_142] : memref<256x768xbf16, #tpu.memory_space<vmem>>, vector<256x128xbf16>
    tpu.vector_store %arg15[%c0_141, %c0_142], %102 {strides = array<i32>} : memref<256x768xbf16, #tpu.memory_space<vmem>>, vector<256x128xbf16>,
    %c1_143 = arith.constant 1 : index
    %c1_144 = arith.constant 1 : index
    %c0_145 = arith.constant 0 : index
    %104 = vector.load %arg13[%c1_143, %c1_144, %c0_145] : memref<18x18x128xbf16, #tpu.memory_space<vmem>>, vector<16x16x128xbf16>
    %105 = vector.shape_cast %104 : vector<16x16x128xbf16> to vector<256x128xbf16>
    %c0_146 = arith.constant 0 : index
    %c128_147 = arith.constant 128 : index
    %106 = vector.load %arg15[%c0_146, %c128_147] : memref<256x768xbf16, #tpu.memory_space<vmem>>, vector<256x128xbf16>
    tpu.vector_store %arg15[%c0_146, %c128_147], %105 {strides = array<i32>} : memref<256x768xbf16, #tpu.memory_space<vmem>>, vector<256x128xbf16>,
    %c1_148 = arith.constant 1 : index
    %c2_149 = arith.constant 2 : index
    %c0_150 = arith.constant 0 : index
    %107 = vector.load %arg13[%c1_148, %c2_149, %c0_150] : memref<18x18x128xbf16, #tpu.memory_space<vmem>>, vector<16x16x128xbf16>
    %108 = vector.shape_cast %107 : vector<16x16x128xbf16> to vector<256x128xbf16>
    %c0_151 = arith.constant 0 : index
    %c256_152 = arith.constant 256 : index
    %109 = vector.load %arg15[%c0_151, %c256_152] : memref<256x768xbf16, #tpu.memory_space<vmem>>, vector<256x128xbf16>
    tpu.vector_store %arg15[%c0_151, %c256_152], %108 {strides = array<i32>} : memref<256x768xbf16, #tpu.memory_space<vmem>>, vector<256x128xbf16>,
    %c0_153 = arith.constant 0 : index
    %c0_154 = arith.constant 0 : index
    %110 = vector.load %arg15[%c0_153, %c0_154] : memref<256x768xbf16, #tpu.memory_space<vmem>>, vector<256x384xbf16>
    %c1_155 = arith.constant 1 : index
    %c0_156 = arith.constant 0 : index
    %c0_157 = arith.constant 0 : index
    %111 = vector.load %arg8[%c1_155, %c0_156, %c0_157] : memref<3x384x128xbf16, #tpu.memory_space<vmem>>, vector<1x384x128xbf16>
    %112 = vector.shape_cast %111 : vector<1x384x128xbf16> to vector<384x128xbf16>
    %cst_158 = arith.constant dense<0.000000e+00> : vector<256x128xf32>
    %113 = tpu.matmul %110, %112, %cst_158 {dimension_numbers = #tpu.dot_dimension_numbers<[1], [0], [0], [1], [0, 0, 1, 1], [], []>} : vector<256x384xbf16>, vector<384x128xbf16>, vector<256x128xf32> -> vector<256x128xf32>
    %c0_159 = arith.constant 0 : index
    %c0_160 = arith.constant 0 : index
    %114 = vector.load %arg16[%c0_159, %c0_160] : memref<256x128xf32, #tpu.memory_space<vmem>>, vector<256x128xf32>
    %115 = arith.addf %114, %113 : vector<256x128xf32>
    %c0_161 = arith.constant 0 : index
    %c0_162 = arith.constant 0 : index
    %116 = vector.load %arg16[%c0_161, %c0_162] : memref<256x128xf32, #tpu.memory_space<vmem>>, vector<256x128xf32>
    tpu.vector_store %arg16[%c0_161, %c0_162], %115 {strides = array<i32>} : memref<256x128xf32, #tpu.memory_space<vmem>>, vector<256x128xf32>,
    %c2_163 = arith.constant 2 : index
    %c0_164 = arith.constant 0 : index
    %c0_165 = arith.constant 0 : index
    %117 = vector.load %arg13[%c2_163, %c0_164, %c0_165] : memref<18x18x128xbf16, #tpu.memory_space<vmem>>, vector<16x16x128xbf16>
    %118 = vector.shape_cast %117 : vector<16x16x128xbf16> to vector<256x128xbf16>
    %c0_166 = arith.constant 0 : index
    %c0_167 = arith.constant 0 : index
    %119 = vector.load %arg15[%c0_166, %c0_167] : memref<256x768xbf16, #tpu.memory_space<vmem>>, vector<256x128xbf16>
    tpu.vector_store %arg15[%c0_166, %c0_167], %118 {strides = array<i32>} : memref<256x768xbf16, #tpu.memory_space<vmem>>, vector<256x128xbf16>,
    %c2_168 = arith.constant 2 : index
    %c1_169 = arith.constant 1 : index
    %c0_170 = arith.constant 0 : index
    %120 = vector.load %arg13[%c2_168, %c1_169, %c0_170] : memref<18x18x128xbf16, #tpu.memory_space<vmem>>, vector<16x16x128xbf16>
    %121 = vector.shape_cast %120 : vector<16x16x128xbf16> to vector<256x128xbf16>
    %c0_171 = arith.constant 0 : index
    %c128_172 = arith.constant 128 : index
    %122 = vector.load %arg15[%c0_171, %c128_172] : memref<256x768xbf16, #tpu.memory_space<vmem>>, vector<256x128xbf16>
    tpu.vector_store %arg15[%c0_171, %c128_172], %121 {strides = array<i32>} : memref<256x768xbf16, #tpu.memory_space<vmem>>, vector<256x128xbf16>,
    %c2_173 = arith.constant 2 : index
    %c2_174 = arith.constant 2 : index
    %c0_175 = arith.constant 0 : index
    %123 = vector.load %arg13[%c2_173, %c2_174, %c0_175] : memref<18x18x128xbf16, #tpu.memory_space<vmem>>, vector<16x16x128xbf16>
    %124 = vector.shape_cast %123 : vector<16x16x128xbf16> to vector<256x128xbf16>
    %c0_176 = arith.constant 0 : index
    %c256_177 = arith.constant 256 : index
    %125 = vector.load %arg15[%c0_176, %c256_177] : memref<256x768xbf16, #tpu.memory_space<vmem>>, vector<256x128xbf16>
    tpu.vector_store %arg15[%c0_176, %c256_177], %124 {strides = array<i32>} : memref<256x768xbf16, #tpu.memory_space<vmem>>, vector<256x128xbf16>,
    %c0_178 = arith.constant 0 : index
    %c0_179 = arith.constant 0 : index
    %126 = vector.load %arg15[%c0_178, %c0_179] : memref<256x768xbf16, #tpu.memory_space<vmem>>, vector<256x384xbf16>
    %c2_180 = arith.constant 2 : index
    %c0_181 = arith.constant 0 : index
    %c0_182 = arith.constant 0 : index
    %127 = vector.load %arg8[%c2_180, %c0_181, %c0_182] : memref<3x384x128xbf16, #tpu.memory_space<vmem>>, vector<1x384x128xbf16>
    %128 = vector.shape_cast %127 : vector<1x384x128xbf16> to vector<384x128xbf16>
    %cst_183 = arith.constant dense<0.000000e+00> : vector<256x128xf32>
    %129 = tpu.matmul %126, %128, %cst_183 {dimension_numbers = #tpu.dot_dimension_numbers<[1], [0], [0], [1], [0, 0, 1, 1], [], []>} : vector<256x384xbf16>, vector<384x128xbf16>, vector<256x128xf32> -> vector<256x128xf32>
    %c0_184 = arith.constant 0 : index
    %c0_185 = arith.constant 0 : index
    %130 = vector.load %arg16[%c0_184, %c0_185] : memref<256x128xf32, #tpu.memory_space<vmem>>, vector<256x128xf32>
    %131 = arith.addf %130, %129 : vector<256x128xf32>
    %c0_186 = arith.constant 0 : index
    %c0_187 = arith.constant 0 : index
    %132 = vector.load %arg16[%c0_186, %c0_187] : memref<256x128xf32, #tpu.memory_space<vmem>>, vector<256x128xf32>
    tpu.vector_store %arg16[%c0_186, %c0_187], %131 {strides = array<i32>} : memref<256x128xf32, #tpu.memory_space<vmem>>, vector<256x128xf32>,
    %c0_188 = arith.constant 0 : index
    %c0_189 = arith.constant 0 : index
    %133 = vector.load %arg16[%c0_188, %c0_189] : memref<256x128xf32, #tpu.memory_space<vmem>>, vector<256x128xf32>
    %c0_190 = arith.constant 0 : index
    %c0_191 = arith.constant 0 : index
    %134 = vector.load %arg9[%c0_190, %c0_191] : memref<1x128xf32, #tpu.memory_space<vmem>>, vector<1x128xf32>
    %135 = vector.broadcast %134 : vector<1x128xf32> to vector<256x128xf32>
    %136 = arith.mulf %133, %135 : vector<256x128xf32>
    %c0_192 = arith.constant 0 : index
    %c0_193 = arith.constant 0 : index
    %137 = vector.load %arg10[%c0_192, %c0_193] : memref<1x128xf32, #tpu.memory_space<vmem>>, vector<1x128xf32>
    %138 = vector.broadcast %137 : vector<1x128xf32> to vector<256x128xf32>
    %139 = arith.addf %136, %138 : vector<256x128xf32>
    %cst_194 = arith.constant 0.000000e+00 : f32
    %140 = vector.broadcast %cst_194 : f32 to vector<256x128xf32>
    %141 = arith.maximumf %139, %140 : vector<256x128xf32>
    %142 = vector.shape_cast %141 : vector<256x128xf32> to vector<16x16x128xf32>
    %143 = arith.truncf %142 : vector<16x16x128xf32> to vector<16x16x128xbf16>
    %c0_195 = arith.constant 0 : index
    %c0_196 = arith.constant 0 : index
    %c0_197 = arith.constant 0 : index
    %c0_198 = arith.constant 0 : index
    %144 = vector.load %arg11[%c0_195, %c0_196, %c0_197, %c0_198] : memref<1x16x16x128xbf16, #tpu.memory_space<vmem>>, vector<1x16x16x128xbf16>
    %145 = vector.shape_cast %144 : vector<1x16x16x128xbf16> to vector<16x16x128xbf16>
    %146 = vector.shape_cast %143 : vector<16x16x128xbf16> to vector<1x16x16x128xbf16>
    tpu.vector_store %arg11[%c0_195, %c0_196, %c0_197, %c0_198], %146 {strides = array<i32>} : memref<1x16x16x128xbf16, #tpu.memory_space<vmem>>, vector<1x16x16x128xbf16>,
    return
  }
  func.func @transform_0(%arg0: i32) -> (i32, i32, i32, i32) {
    %c0_i32 = arith.constant 0 : i32
    %c0_i32_0 = arith.constant 0 : i32
    %c0_i32_1 = arith.constant 0 : i32
    %c0_i32_2 = arith.constant 0 : i32
    return %arg0, %c0_i32, %c0_i32_0, %c0_i32_1 : i32, i32, i32, i32
  }
  func.func @transform_1(%arg0: i32) -> (i32, i32, i32, i32) {
    %c0_i32 = arith.constant 0 : i32
    %c0_i32_0 = arith.constant 0 : i32
    %c0_i32_1 = arith.constant 0 : i32
    %c0_i32_2 = arith.constant 0 : i32
    return %arg0, %c0_i32, %c0_i32_0, %c0_i32_1 : i32, i32, i32, i32
  }
  func.func @transform_2(%arg0: i32) -> (i32, i32) {
    %c0_i32 = arith.constant 0 : i32
    %c0_i32_0 = arith.constant 0 : i32
    %c0_i32_1 = arith.constant 0 : i32
    return %c0_i32, %c0_i32_0 : i32, i32
  }
  func.func @transform_3(%arg0: i32) -> (i32, i32) {
    %c0_i32 = arith.constant 0 : i32
    %c0_i32_0 = arith.constant 0 : i32
    %c0_i32_1 = arith.constant 0 : i32
    return %c0_i32, %c0_i32_0 : i32, i32
  }
  func.func @transform_4(%arg0: i32) -> (i32, i32, i32) {
    %c0_i32 = arith.constant 0 : i32
    %c0_i32_0 = arith.constant 0 : i32
    %c0_i32_1 = arith.constant 0 : i32
    %c0_i32_2 = arith.constant 0 : i32
    return %c0_i32, %c0_i32_0, %c0_i32_1 : i32, i32, i32
  }
  func.func @transform_5(%arg0: i32) -> (i32, i32) {
    %c0_i32 = arith.constant 0 : i32
    %c0_i32_0 = arith.constant 0 : i32
    %c0_i32_1 = arith.constant 0 : i32
    return %c0_i32, %c0_i32_0 : i32, i32
  }
  func.func @transform_6(%arg0: i32) -> (i32, i32) {
    %c0_i32 = arith.constant 0 : i32
    %c0_i32_0 = arith.constant 0 : i32
    %c0_i32_1 = arith.constant 0 : i32
    return %c0_i32, %c0_i32_0 : i32, i32
  }
  func.func @transform_7(%arg0: i32) -> (i32, i32, i32) {
    %c0_i32 = arith.constant 0 : i32
    %c0_i32_0 = arith.constant 0 : i32
    %c0_i32_1 = arith.constant 0 : i32
    %c0_i32_2 = arith.constant 0 : i32
    return %c0_i32, %c0_i32_0, %c0_i32_1 : i32, i32, i32
  }
  func.func @transform_8(%arg0: i32) -> (i32, i32) {
    %c0_i32 = arith.constant 0 : i32
    %c0_i32_0 = arith.constant 0 : i32
    %c0_i32_1 = arith.constant 0 : i32
    return %c0_i32, %c0_i32_0 : i32, i32
  }
  func.func @transform_9(%arg0: i32) -> (i32, i32) {
    %c0_i32 = arith.constant 0 : i32
    %c0_i32_0 = arith.constant 0 : i32
    %c0_i32_1 = arith.constant 0 : i32
    return %c0_i32, %c0_i32_0 : i32, i32
  }
  func.func @transform_10(%arg0: i32) -> (i32, i32, i32, i32) {
    %c0_i32 = arith.constant 0 : i32
    %c0_i32_0 = arith.constant 0 : i32
    %c0_i32_1 = arith.constant 0 : i32
    %c0_i32_2 = arith.constant 0 : i32
    return %arg0, %c0_i32, %c0_i32_0, %c0_i32_1 : i32, i32, i32, i32
  }
}

</mosaic_0001>

<bundles_post_ra>
// kernel: tile.8
= control target key start
LH: loop header
LB: loop body
LE: loop exit
PB: predicated region body
PF: predicated region fallthrough
CT: control target
= control target key end

     0   :  { %s22_s0 = inlined_call_operand.vmem [shape: f32[128], index: 0, kind: input, shape index: {}]   ;;  %s23_s1 = inlined_call_operand.vmem [shape: f32[4,128], index: 1, kind: output, shape index: {}]  }
   0x1   :  { %v4_v0 = vld [vmem:[%s22_s0] ss:$0 sm:$0xff] }
   0x2   :  { %5 = vst [vmem:[%s23_s1] sm:$0xf] %v4_v0 }

// kernel: upsample_forward.1
= control target key start
LH: loop header
LB: loop body
LE: loop exit
PB: predicated region body
PF: predicated region fallthrough
CT: control target
= control target key end

     0   :  { %s17885_s13 = smov 0   ;;  %s22579_s0 = inlined_call_operand.vmem [shape: bf16[2,8,8,16], index: 0, kind: input, shape index: {}]   ;;  %s22580_s1 = inlined_call_operand.vmem [shape: bf16[2,16,16,4], index: 1, kind: input, shape index: {}]   ;;  %s22581_s2 = inlined_call_operand.vmem [shape: bf16[16,512], index: 2, kind: input, shape index: {}]   ;;  %s22582_s3 = inlined_call_operand.vmem [shape: f32[1,512], index: 3, kind: input, shape index: {}]   ;;  %s22583_s4 = inlined_call_operand.vmem [shape: bf16[3,768,128], index: 4, kind: input, shape index: {}]   ;;  %s22584_s5 = inlined_call_operand.vmem [shape: f32[1,128], index: 5, kind: input, shape index: {}]   ;;  %s22585_s6 = inlined_call_operand.vmem [shape: f32[1,128], index: 6, kind: input, shape index: {}]   ;;  %s22586_s7 = inlined_call_operand.vmem [shape: bf16[3,384,128], index: 7, kind: input, shape index: {}]   ;;  %s22587_s8 = inlined_call_operand.vmem [shape: f32[1,128], index: 8, kind: input, shape index: {}]   ;;  %s22588_s9 = inlined_call_operand.vmem [shape: f32[1,128], index: 9, kind: input, shape index: {}]   ;;  %s22589_s10 = inlined_call_operand.vmem [shape: bf16[2,16,16,128], index: 10, kind: output, shape index: {}]  }
   0x1 LB: > { %s14348_s14 = sadd.s32 4294967295, %s17827_s13   ;;  %p14352_p0 = scmp.ge.s32.totalorder %s17827_s13, 1  ;;  %s17827_s13 = sphi %s17885_s13, %s20_s13  }
   0x2   : > { %p322_p1 = scmp.lt.s32.totalorder %s17827_s13, 3 }
   0x4   : > { %p323_p2 = pnand %p14352_p0, %p322_p1 }
   0x6   : > { %326 = sbr.rel (%p323_p2) target bundleno = 1674 (0x68a), region = 60 }
   0xd   : > { %v17896_v0 = vld [vmem:[%s22581_s2 + $0x4] ss:$16 sps:$4 sm:$0xff]   ;;  %p17900_p3 = scmp.lt.s32.totalorder %s14348_s14, 1  ;;  %v17907_v1 = vld [vmem:[%s22581_s2 + $0xc] ss:$16 sps:$4 sm:$0xff]   ;;  %v17829_v2 = vmov 0  }
   0xe   : > { %608 = vmatprep.mubr.bf16.mxu0 %v17829_v2  ;;  %381 = vst [vmem:[#allocation2] sm:$0xff] %v17829_v2  ;;  %383 = vst [vmem:[#allocation2 + $0x10] sm:$0x11] %v17829_v2  ;;  %681 = vmatprep.mubr.bf16.mxu1 %v17829_v2  ;;  %v17468_v3 = vld [vmem:[%s22581_s2] ss:$16 sps:$4 sm:$0xff]   ;;  %vm563_vm0 = vcmask 130048  }
   0xf   : > { %384 = vst [vmem:[#allocation2 + $0x18] sm:$0xff] %v17829_v2  ;;  %385 = vst [vmem:[#allocation2 + $0x20] sm:$0xff] %v17829_v2  ;;  %576 = vmatprep.subr.bf16.mxu0 %v17896_v0  ;;  %v17469_v4 = vld [vmem:[%s22581_s2 + $0x8] ss:$16 sps:$4 sm:$0xff]   ;;  %s23015_s14 = smov (!%p17900_p3, %s14348_s14), 1  ;;  %v17474_v5 = vld [vmem:[%s22583_s4 + $0x40] sm:$0xff]   ;;  %649 = vmatprep.subr.bf16.mxu1 %v17907_v1 }
  0x10   : > { %386 = vst [vmem:[#allocation2 + $0x28] sm:$0x11] %v17829_v2  ;;  %387 = vst [vmem:[#allocation2 + $0x30] sm:$0xff] %v17829_v2  ;;  %577 = vmatpush1.bf16.msra.mxu0 %v17468_v3  ;;  %650 = vmatpush1.bf16.msra.mxu1 %v17469_v4  ;;  %s15525_s26 = sshll.u32 %s23015_s14, 5  ;;  %v17475_v6 = vld [vmem:[%s22583_s4] sm:$0xff]   ;;  %v17476_v8 = vld [vmem:[%s22583_s4 + $0x48] sm:$0xff]  }
  0x11   : > { %388 = vst [vmem:[#allocation2 + $0x38] sm:$0xff] %v17829_v2  ;;  %389 = vst [vmem:[#allocation2 + $0x40] sm:$0x11] %v17829_v2  ;;  %s18041_s11 = scalar_lea.vmem %s22579_s0, %s15525_s26  ;;  %15719 = vmatprep.subr.bf16.mxu0 %v17474_v5  ;;  %17279 = vmatprep.subr.bf16.mxu1 %v17474_v5  ;;  %v17477_v9 = vld [vmem:[%s22583_s4 + $0x8] sm:$0xff]   ;;  %v17478_v10 = vld [vmem:[%s22583_s4 + $0x50] sm:$0xff]   ;;  %s15526_s20 = sshll.u32 %s23015_s14, 7 }
  0x12   : > { %390 = vst [vmem:[#allocation2 + $0x48] sm:$0xff] %v17829_v2  ;;  %391 = vst [vmem:[#allocation2 + $0x50] sm:$0xff] %v17829_v2  ;;  %v17470_v7 = vld [vmem:[%s18041_s11] sm:$0xff]   ;;  %v17471_v11 = vld [vmem:[%s18041_s11 + $0x8] sm:$0xff]   ;;  %s18085_s29 = scalar_lea.vmem %s22580_s1, %s15526_s20  ;;  %vm867_vm1 = vsmask.f32 256  ;;  %s22475_s26 = scalar_lea.vmem %s22589_s10, %s15526_s20 }
  0x13   : > { %392 = vst [vmem:[#allocation2 + $0x58] sm:$0x11] %v17829_v2  ;;  %393 = vst [vmem:[#allocation2 + $0x60] sm:$0xff] %v17829_v2  ;;  %14367 = vmatmul.mubr.msk.bf16.vlgmr.msra.gmra.mrb[0].mxu0 %vm563_vm0, %v17470_v7  ;;  %14371 = vmatmul.mubr.msk.bf16.vlgmr.msra.gmra.mrb[0].mxu1 %vm563_vm0, %v17470_v7  ;;  %v17479_v12 = vld [vmem:[%s22583_s4 + $0x10] sm:$0xff]   ;;  %v17480_v13 = vld [vmem:[%s22583_s4 + $0x58] sm:$0xff]   ;;  %v22611_v23 = vmov 0 }
  0x14   : > { %394 = vst [vmem:[#allocation2 + $0x68] sm:$0xff] %v17829_v2  ;;  %395 = vst [vmem:[#allocation2 + $0x70] sm:$0x11] %v17829_v2  ;;  %618 = vmatprep.mubr.bf16.mxu0 %v17829_v2  ;;  %691 = vmatprep.mubr.bf16.mxu1 %v17829_v2  ;;  %v17481_v14 = vld [vmem:[%s22583_s4 + $0x18] sm:$0xff]   ;;  %v17472_v15 = vld [vmem:[%s18041_s11 + $0x10] sm:$0xff]   ;;  %vm1191_vm4 = vcmask 27648  }
  0x15   : > { %396 = vst [vmem:[#allocation2 + $0x78] sm:$0xff] %v17829_v2  ;;  %397 = vst [vmem:[#allocation2 + $0x80] sm:$0xff] %v17829_v2  ;;  %15720 = vmatpush3.bf16.msra.mxu0 %v17475_v6  ;;  %17287 = vmatpush3.bf16.msra.mxu1 %v17475_v6  ;;  %v17473_v16 = vld [vmem:[%s18041_s11 + $0x18] sm:$0xff]   ;;  %v17482_v17 = vld [vmem:[%s22583_s4 + $0x60] sm:$0xff]   ;;  %vm868_vm2 = vsmask.f32 4368 }
  0x16   : > { %398 = vst [vmem:[#allocation2 + $0x88] sm:$0x11] %v17829_v2  ;;  %399 = vst [vmem:[#allocation2 + $0x90] sm:$0xff] %v17829_v2  ;;  %15721 = vmatprep.subr.bf16.mxu0 %v17476_v8  ;;  %17280 = vmatprep.subr.bf16.mxu1 %v17476_v8  ;;  %v835_v18 = vld [vmem:[%s18085_s29] sm:$0xf]  ;;  %vm1199_vm7 = vcmask 24576  }
  0x17   : > { %400 = vst [vmem:[#allocation2 + $0x98] sm:$0xff] %v17829_v2  ;;  %401 = vst [vmem:[#allocation2 + $0xa0] sm:$0x11] %v17829_v2  ;;  %v836_v19 = vld [vmem:[%s18085_s29 + $0x4] sm:$0xf]  ;;  %v871_v20 = vshrl.u32 %v835_v18, 16 }
  0x18   : > { %402 = vst [vmem:[#allocation2 + $0xa8] sm:$0xff] %v17829_v2  ;;  %403 = vst [vmem:[#allocation2 + $0xb0] sm:$0xff] %v17829_v2  ;;  %v874_v21 = vshll.u32 %v835_v18, 16  ;;  %v879_v22 = vshrl.u32 %v836_v19, 16  ;;  %v882_v24 = vshll.u32 %v836_v19, 16  ;;  %v17483_v39 = vld [vmem:[%s22583_s4 + $0x20] sm:$0xff]  }
  0x19   : > { %404 = vst [vmem:[#allocation2 + $0xb8] sm:$0x11] %v17829_v2  ;;  %405 = vst [vmem:[#allocation2 + $0xc0] sm:$0xff] %v17829_v2  ;;  %15722 = vmatpush3.bf16.msra.mxu0 %v17477_v9  ;;  %17288 = vmatpush3.bf16.msra.mxu1 %v17477_v9  ;;  %vm1192_vm5 = vsmask.f32 7938  ;;  %v873_v25 = vrot.slane %v871_v20, 7 }
  0x1a   : > { %406 = vst [vmem:[#allocation2 + $0xc8] sm:$0xff] %v17829_v2  ;;  %407 = vst [vmem:[#allocation2 + $0xd0] sm:$0x11] %v17829_v2  ;;  %15723 = vmatprep.subr.bf16.mxu0 %v17478_v10  ;;  %17281 = vmatprep.subr.bf16.mxu1 %v17478_v10  ;;  %v881_v26 = vrot.slane %v879_v22, 7  ;;  %v1194_v28 = vld [vmem:[#allocation2 + $0x18] sm:$0xf] }
  0x1b   : > { %408 = vst [vmem:[#allocation2 + $0xd8] sm:$0xff] %v17829_v2  ;;  %409 = vst [vmem:[#allocation2 + $0xe0] sm:$0xff] %v17829_v2  ;;  %14368 = vmatmul.mubr.msk.bf16.gmra.mrb[4].mxu0 %vm563_vm0, %v17471_v11  ;;  %14372 = vmatmul.mubr.msk.bf16.gmra.mrb[4].mxu1 %vm563_vm0, %v17471_v11  ;;  %v1201_v29 = vld [vmem:[#allocation2 + $0x28] sm:$0x1]  ;;  %v876_v30 = vor.u32 %v874_v21, %v873_v25  ;;  %v877_v31 = vrot.slane %v873_v25, 4  ;;  %v17486_v8 = vld [vmem:[%s22583_s4 + $0x70] sm:$0xff]  }
  0x1c   : > { %410 = vst [vmem:[#allocation2 + $0xe8] sm:$0x11] %v17829_v2  ;;  %411 = vst [vmem:[#allocation2 + $0xf0] sm:$0xff] %v17829_v2  ;;  %628 = vmatprep.mubr.bf16.mxu0 %v17829_v2  ;;  %701 = vmatprep.mubr.bf16.mxu1 %v17829_v2  ;;  %v884_v32 = vor.u32 %v882_v24, %v881_v26  ;;  %v886_v33 = vrot.slane %v881_v26, 4  ;;  %v837_v34 = vld [vmem:[%s18085_s29 + $0x8] sm:$0xf] }
  0x1d   : > { %412 = vst [vmem:[#allocation2 + $0xf8] sm:$0xff] %v17829_v2  ;;  %413 = vst [vmem:[#allocation2 + $0x100] sm:$0x11] %v17829_v2  ;;  %15724 = vmatpush3.bf16.msra.mxu0 %v17479_v12  ;;  %17289 = vmatpush3.bf16.msra.mxu1 %v17479_v12  ;;  %v838_v35 = vld [vmem:[%s18085_s29 + $0xc] sm:$0xf]  ;;  %v888_v37 = vshrl.u32 %v837_v34, 16 }
  0x1e   : > { %414 = vst [vmem:[#allocation2 + $0x108] sm:$0xff] %v17829_v2  ;;  %415 = vst [vmem:[#allocation2 + $0x110] sm:$0xff] %v17829_v2  ;;  %15725 = vmatprep.subr.bf16.mxu0 %v17480_v13  ;;  %17282 = vmatprep.subr.bf16.mxu1 %v17480_v13  ;;  %v896_v38 = vshrl.u32 %v838_v35, 16  ;;  %v891_v44 = vshll.u32 %v837_v34, 16  ;;  %v899_v46 = vshll.u32 %v838_v35, 16  ;;  %v17484_v50 = vld [vmem:[%s22583_s4 + $0x68] sm:$0xff]  }
  0x1f   : > { %416 = vst [vmem:[#allocation2 + $0x118] sm:$0x11] %v17829_v2  ;;  %417 = vst [vmem:[#allocation2 + $0x120] sm:$0xff] %v17829_v2  ;;  %v890_v43 = vrot.slane %v888_v37, 7  ;;  %v839_v47 = vld [vmem:[%s18085_s29 + $0x10] sm:$0xf] }
  0x20   : > { %418 = vst [vmem:[#allocation2 + $0x128] sm:$0xff] %v17829_v2  ;;  %419 = vst [vmem:[#allocation2 + $0x130] sm:$0x11] %v17829_v2  ;;  %v898_v45 = vrot.slane %v896_v38, 7  ;;  %v840_v48 = vld [vmem:[%s18085_s29 + $0x14] sm:$0xf] }
  0x21   : > { %420 = vst [vmem:[#allocation2 + $0x138] sm:$0xff] %v17829_v2  ;;  %421 = vst [vmem:[#allocation2 + $0x140] sm:$0xff] %v17829_v2  ;;  %15726 = vmatpush3.bf16.msra.mxu0 %v17481_v14  ;;  %17290 = vmatpush3.bf16.msra.mxu1 %v17481_v14  ;;  %v905_v49 = vshrl.u32 %v839_v47, 16  ;;  %v893_v51 = vor.u32 %v891_v44, %v890_v43  ;;  %v894_v52 = vrot.slane %v890_v43, 4  ;;  %v17485_v53 = vld [vmem:[%s22583_s4 + $0x28] sm:$0xff]   ;;  %v908_v60 = vshll.u32 %v839_v47, 16 }
  0x22   : > { %422 = vst [vmem:[#allocation2 + $0x148] sm:$0x11] %v17829_v2  ;;  %423 = vst [vmem:[#allocation2 + $0x150] sm:$0xff] %v17829_v2  ;;  %15727 = vmatprep.subr.bf16.mxu0 %v17482_v17  ;;  %17283 = vmatprep.subr.bf16.mxu1 %v17482_v17  ;;  %v901_v54 = vor.u32 %v899_v46, %v898_v45  ;;  %v903_v55 = vrot.slane %v898_v45, 4  ;;  %v1204_v56 = vld [vmem:[#allocation2 + $0x30] sm:$0xf] }
  0x23   : > { %424 = vst [vmem:[#allocation2 + $0x158] sm:$0xff] %v17829_v2  ;;  %425 = vst [vmem:[#allocation2 + $0x160] sm:$0x11] %v17829_v2  ;;  %14369 = vmatmul.mubr.msk.bf16.gmra.mrb[8].mxu0 %vm563_vm0, %v17472_v15  ;;  %14373 = vmatmul.mubr.msk.bf16.gmra.mrb[8].mxu1 %vm563_vm0, %v17472_v15  ;;  %v907_v57 = vrot.slane %v905_v49, 7  ;;  %v1208_v59 = vld [vmem:[#allocation2 + $0x40] sm:$0x1] }
  0x24   : > { %426 = vst [vmem:[#allocation2 + $0x168] sm:$0xff] %v17829_v2  ;;  %427 = vst [vmem:[#allocation2 + $0x170] sm:$0xff] %v17829_v2  ;;  %638 = vmatprep.mubr.bf16.mxu0 %v17829_v2  ;;  %711 = vmatprep.mubr.bf16.mxu1 %v17829_v2  ;;  %v913_v61 = vshrl.u32 %v840_v48, 16  ;;  %v916_v0 = vshll.u32 %v840_v48, 16  ;;  %v1211_v4 = vld [vmem:[#allocation2 + $0x48] sm:$0xf] }
  0x25   : > { %428 = vst [vmem:[#allocation2 + $0x178] sm:$0x11] %v17829_v2  ;;  %429 = vst [vmem:[#allocation2 + $0x180] sm:$0xff] %v17829_v2  ;;  %15728 = vmatpush3.bf16.msra.mxu0 %v17483_v39  ;;  %17291 = vmatpush3.bf16.msra.mxu1 %v17483_v39  ;;  %v910_v1 = vor.u32 %v908_v60, %v907_v57  ;;  %v1215_v5 = vld [vmem:[#allocation2 + $0x58] sm:$0x1]  ;;  %v17487_v35 = vld [vmem:[%s22583_s4 + $0x30] sm:$0xff]  }
  0x26   : > { %430 = vst [vmem:[#allocation2 + $0x188] sm:$0xff] %v17829_v2  ;;  %431 = vst [vmem:[#allocation2 + $0x190] sm:$0x11] %v17829_v2  ;;  %15729 = vmatprep.subr.bf16.mxu0 %v17484_v50  ;;  %17284 = vmatprep.subr.bf16.mxu1 %v17484_v50  ;;  %v915_v3 = vrot.slane %v913_v61, 7  ;;  %v841_v6 = vld [vmem:[%s18085_s29 + $0x18] sm:$0xf] }
  0x27   : > { %432 = vst [vmem:[#allocation2 + $0x198] sm:$0xff] %v17829_v2  ;;  %434 = vst [vmem:[#allocation2 + $0x1a8] sm:$0x11] %v17829_v2  ;;  %v842_v7 = vld [vmem:[%s18085_s29 + $0x1c] sm:$0xf]  ;;  %v922_v12 = vshrl.u32 %v841_v6, 16 }
  0x28   : > { %435 = vst [vmem:[#allocation3] sm:$0xf] %v17829_v2  ;;  %436 = vst [vmem:[#allocation3 + $0x4] sm:$0xf] %v17829_v2  ;;  %v918_v9 = vor.u32 %v916_v0, %v915_v3  ;;  %v920_v10 = vrot.slane %v915_v3, 4  ;;  %v925_v13 = vshll.u32 %v841_v6, 16 }
  0x29   : > { %437 = vst [vmem:[#allocation3 + $0x8] sm:$0x1] %v17829_v2  ;;  %438 = vst [vmem:[#allocation3 + $0xc] sm:$0xf] %v17829_v2  ;;  %15730 = vmatpush3.bf16.msra.mxu0 %v17485_v53  ;;  %17292 = vmatpush3.bf16.msra.mxu1 %v17485_v53  ;;  %v930_v14 = vshrl.u32 %v842_v7, 16  ;;  %v933_v15 = vshll.u32 %v842_v7, 16 }
  0x2a   : > { %439 = vst [vmem:[#allocation3 + $0x10] sm:$0xf] %v17829_v2  ;;  %440 = vst [vmem:[#allocation3 + $0x14] sm:$0x1] %v17829_v2  ;;  %15731 = vmatprep.subr.bf16.mxu0 %v17486_v8  ;;  %17285 = vmatprep.subr.bf16.mxu1 %v17486_v8  ;;  %v924_v18 = vrot.slane %v922_v12, 7  ;;  %v17488_v50 = vld [vmem:[%s22583_s4 + $0x78] sm:$0xff]  }
  0x2b   : > { %441 = vst [vmem:[#allocation3 + $0x18] sm:$0xf] %v17829_v2  ;;  %442 = vst [vmem:[#allocation3 + $0x1c] sm:$0xf] %v17829_v2  ;;  %14370 = vmatmul.mubr.msk.bf16.gmra.mrb[12].mxu0 %vm563_vm0, %v17473_v16  ;;  %14374 = vmatmul.mubr.msk.bf16.gmra.mrb[12].mxu1 %vm563_vm0, %v17473_v16  ;;  %v932_v19 = vrot.slane %v930_v14, 7  ;;  %v18176_v6 = vld [vmem:[#allocation2] sm:$0xff] }
  0x2c   : > { %443 = vst [vmem:[#allocation3 + $0x20] sm:$0x1] %v17829_v2  ;;  %444 = vst [vmem:[#allocation3 + $0x24] sm:$0xf] %v17829_v2  ;;  %v927_v20 = vor.u32 %v925_v13, %v924_v18  ;;  %v928_v21 = vrot.slane %v924_v18, 4  ;;  %v14423_v7 = vcombine.low %v18176_v6, %v18176_v6  ;;  %v17490_v13 = vld [vmem:[%s22583_s4 + $0x140] sm:$0xff]  }
  0x2d   : > { %445 = vst [vmem:[#allocation3 + $0x28] sm:$0xf] %v17829_v2  ;;  %446 = vst [vmem:[#allocation3 + $0x2c] sm:$0x1] %v17829_v2  ;;  %v1218_v22 = vld [vmem:[#allocation2 + $0x60] sm:$0xf]  ;;  %v935_v25 = vor.u32 %v933_v15, %v932_v19  ;;  %15732 = vmatpush3.bf16.msra.mxu0 %v17487_v35  ;;  %17293 = vmatpush3.bf16.msra.mxu1 %v17487_v35 }
  0x2e   : > { %447 = vst [vmem:[#allocation3 + $0x30] sm:$0xf] %v17829_v2  ;;  %448 = vst [vmem:[#allocation3 + $0x34] sm:$0xf] %v17829_v2  ;;  %v1222_v24 = vld [vmem:[#allocation2 + $0x70] sm:$0x1]  ;;  %15733 = vmatprep.subr.bf16.mxu0 %v17488_v50  ;;  %17286 = vmatprep.subr.bf16.mxu1 %v17488_v50 }
  0x2f   : > { %449 = vst [vmem:[#allocation3 + $0x38] sm:$0x1] %v17829_v2  ;;  %450 = vst [vmem:[#allocation3 + $0x3c] sm:$0xf] %v17829_v2  ;;  %v937_v26 = vrot.slane %v932_v19, 4  ;;  %v17493_v35 = vld [vmem:[%s22583_s4 + $0x108] sm:$0xff]  }
  0x30   : > { %451 = vst [vmem:[#allocation3 + $0x40] sm:$0xf] %v17829_v2  ;;  %452 = vst [vmem:[#allocation3 + $0x44] sm:$0x1] %v17829_v2  ;;  %v1225_v39 = vld [vmem:[#allocation2 + $0x78] sm:$0xf] }
  0x31   : > { %453 = vst [vmem:[#allocation3 + $0x48] sm:$0xf] %v17829_v2  ;;  %454 = vst [vmem:[#allocation3 + $0x4c] sm:$0xf] %v17829_v2  ;;  %v1229_v48 = vld [vmem:[#allocation2 + $0x88] sm:$0x1] }
  0x32   : > { %455 = vst [vmem:[#allocation3 + $0x50] sm:$0x1] %v17829_v2  ;;  %456 = vst [vmem:[#allocation3 + $0x54] sm:$0xf] %v17829_v2  ;;  %v847_v49 = vld [vmem:[%s18085_s29 + $0x30] sm:$0xf] }
  0x33   : > { %457 = vst [vmem:[#allocation3 + $0x58] sm:$0xf] %v17829_v2  ;;  %458 = vst [vmem:[#allocation3 + $0x5c] sm:$0x1] %v17829_v2  ;;  %v973_v60 = vshrl.u32 %v847_v49, 16  ;;  %v17500_v50 = vld [vmem:[%s22583_s4 + $0xc0] sm:$0xff]  }
  0x34   : > { %459 = vst [vmem:[#allocation3 + $0x60] sm:$0xf] %v17829_v2  ;;  %460 = vst [vmem:[#allocation3 + $0x64] sm:$0xf] %v17829_v2  ;;  %v849_v12 = vld [vmem:[%s18085_s29 + $0x38] sm:$0xf] }
  0x35   : > { %461 = vst [vmem:[#allocation3 + $0x68] sm:$0x1] %v17829_v2  ;;  %462 = vst [vmem:[#allocation3 + $0x6c] sm:$0xf] %v17829_v2  ;;  %v990_v18 = vshrl.u32 %v849_v12, 16  ;;  %vm2804_vm9 = vcmask 1042432  }
  0x36   : > { %463 = vst [vmem:[#allocation3 + $0x70] sm:$0xf] %v17829_v2  ;;  %464 = vst [vmem:[#allocation3 + $0x74] sm:$0x1] %v17829_v2  ;;  %v501_v27 = vld [vmem:[%s22582_s3] sm:$0xf] }
  0x37   : > { %465 = vst [vmem:[#allocation3 + $0x78] sm:$0xf] %v17829_v2  ;;  %466 = vst [vmem:[#allocation3 + $0x7c] sm:$0xf] %v17829_v2  ;;  %vm2805_vm10 = vcmask 1046532   ;;  %vm1773_vm12 = vcmask 1043456  }
  0x38   : > { %467 = vst [vmem:[#allocation3 + $0x80] sm:$0x1] %v17829_v2  ;;  %468 = vst [vmem:[#allocation3 + $0x84] sm:$0xf] %v17829_v2  ;;  %vm1779_vm13 = vcmask 1040384  }
  0x39   : > { %469 = vst [vmem:[#allocation3 + $0x88] sm:$0xf] %v17829_v2  ;;  %470 = vst [vmem:[#allocation3 + $0x8c] sm:$0x1] %v17829_v2  ;;  %vm2161_vm0 = vsmask.f32 3328 }
  0x3a   : > { %471 = vst [vmem:[#allocation3 + $0x90] sm:$0xf] %v17829_v2  ;;  %472 = vst [vmem:[#allocation3 + $0x94] sm:$0xf] %v17829_v2 }
  0x3b   : > { %473 = vst [vmem:[#allocation3 + $0x98] sm:$0x1] %v17829_v2  ;;  %474 = vst [vmem:[#allocation3 + $0x9c] sm:$0xf] %v17829_v2 }
  0x3c   : > { %475 = vst [vmem:[#allocation3 + $0xa0] sm:$0xf] %v17829_v2  ;;  %476 = vst [vmem:[#allocation3 + $0xa4] sm:$0x1] %v17829_v2 }
  0x3d   : > { %477 = vst [vmem:[#allocation3 + $0xa8] sm:$0xf] %v17829_v2  ;;  %478 = vst [vmem:[#allocation3 + $0xac] sm:$0xf] %v17829_v2 }
  0x3e   : > { %479 = vst [vmem:[#allocation3 + $0xb0] sm:$0x1] %v17829_v2  ;;  %480 = vst [vmem:[#allocation3 + $0xb4] sm:$0xf] %v17829_v2 }
  0x3f   : > { %481 = vst [vmem:[#allocation3 + $0xb8] sm:$0xf] %v17829_v2  ;;  %482 = vst [vmem:[#allocation3 + $0xbc] sm:$0x1] %v17829_v2 }
  0x40   : > { %483 = vst [vmem:[#allocation3 + $0xc0] sm:$0xf] %v17829_v2  ;;  %484 = vst [vmem:[#allocation3 + $0xc4] sm:$0xf] %v17829_v2 }
  0x41   : > { %485 = vst [vmem:[#allocation3 + $0xc8] sm:$0x1] %v17829_v2  ;;  %486 = vst [vmem:[#allocation3 + $0xcc] sm:$0xf] %v17829_v2 }
  0x42   : > { %487 = vst [vmem:[#allocation3 + $0xd0] sm:$0xf] %v17829_v2  ;;  %488 = vst [vmem:[#allocation3 + $0xd4] sm:$0x1] %v17829_v2  ;;  %v911_v2 = vrot.slane %v907_v57, 4 }
  0x43   : > { %vm18093_vm3 = vmor %vm867_vm1, %vm868_vm2 }
  0x44   : > { %v22612_v23 = vsel %vm18093_vm3, 4294967295, %v22611_v23  ;;  %vm18099_vm6 = vmand %vm1191_vm4, %vm1192_vm5  ;;  %v885_v40 = vsel %vm18093_vm3, %v877_v31, %v884_v32  ;;  %v902_v62 = vsel %vm18093_vm3, %v894_v52, %v901_v54  ;;  %v919_v16 = vsel %vm18093_vm3, %v911_v2, %v918_v9 }
  0x45   : > { %22613 = vst [vmem:[#allocation7_spill] sm:$0xff] %v22612_v23  ;;  %vm18106_vm8 = vmand %vm1199_vm7, %vm867_vm1  ;;  %v1195_v41 = vsel %vm18099_vm6, %v876_v30, %v1194_v28  ;;  %v1205_v58 = vsel %vm18099_vm6, %v893_v51, %v1204_v56  ;;  %v1212_v11 = vsel %vm18099_vm6, %v910_v1, %v1211_v4  ;;  %v1219_v28 = vsel %vm18099_vm6, %v927_v20, %v1218_v22  ;;  %v844_v30 = vld [vmem:[%s18085_s29 + $0x24] sm:$0xf]  ;;  %v17489_v56 = vld [vmem:[%s22583_s4 + $0x38] sm:$0xff]  }
  0x46   : > { %v1202_v42 = vsel %vm18106_vm8, %v886_v33, %v1201_v29  ;;  %1196 = vst [vmem:[#allocation2 + $0x18] sm:$0xf] %v1195_v41  ;;  %1198 = vst.msk [vmem:[#allocation2 + $0x20] sm:$0xf] %vm1191_vm4, %v885_v40  ;;  %v1209_v63 = vsel %vm18106_vm8, %v903_v55, %v1208_v59  ;;  %v1216_v17 = vsel %vm18106_vm8, %v920_v10, %v1215_v5  ;;  %v843_v29 = vld [vmem:[%s18085_s29 + $0x20] sm:$0xf]  ;;  %15734 = vmatpush3.bf16.msra.mxu0 %v17489_v56 }
  0x47   : > { %1203 = vst [vmem:[#allocation2 + $0x28] sm:$0x1] %v1202_v42  ;;  %1206 = vst [vmem:[#allocation2 + $0x30] sm:$0xf] %v1205_v58  ;;  %v936_v31 = vsel %vm18093_vm3, %v928_v21, %v935_v25  ;;  %v1223_v32 = vsel %vm18106_vm8, %v937_v26, %v1222_v24  ;;  %v939_v33 = vshrl.u32 %v843_v29, 16  ;;  %v942_v34 = vshll.u32 %v843_v29, 16  ;;  %17294 = vmatpush3.bf16.msra.mxu1 %v17489_v56 }
  0x48   : > { %1207 = vst.msk [vmem:[#allocation2 + $0x38] sm:$0xf] %vm1191_vm4, %v902_v62  ;;  %1210 = vst [vmem:[#allocation2 + $0x40] sm:$0x1] %v1209_v63  ;;  %v947_v37 = vshrl.u32 %v844_v30, 16  ;;  %v950_v38 = vshll.u32 %v844_v30, 16  ;;  %v14424_v25 = vcombine.high %v18176_v6, %v18176_v6  ;;  %15943 = vmatprep.subr.bf16.mxu0 %v17490_v13  ;;  %15831 = vmatprep.subr.bf16.mxu1 %v17500_v50 }
  0x49   : > { %1213 = vst [vmem:[#allocation2 + $0x48] sm:$0xf] %v1212_v11  ;;  %1214 = vst.msk [vmem:[#allocation2 + $0x50] sm:$0xf] %vm1191_vm4, %v919_v16  ;;  %v941_v40 = vrot.slane %v939_v33, 7  ;;  %v975_v5 = vrot.slane %v973_v60, 7 }
  0x4a   : > { %1217 = vst [vmem:[#allocation2 + $0x58] sm:$0x1] %v1216_v17  ;;  %1220 = vst [vmem:[#allocation2 + $0x60] sm:$0xf] %v1219_v28  ;;  %v845_v41 = vld [vmem:[%s18085_s29 + $0x28] sm:$0xf]  ;;  %3591 = vmatprep.mubr.bf16.mxu0 %v14424_v25 }
  0x4b   : > { %1221 = vst.msk [vmem:[#allocation2 + $0x68] sm:$0xf] %vm1191_vm4, %v936_v31  ;;  %1224 = vst [vmem:[#allocation2 + $0x70] sm:$0x1] %v1223_v32  ;;  %v846_v42 = vld [vmem:[%s18085_s29 + $0x2c] sm:$0xf]  ;;  %v944_v46 = vor.u32 %v942_v34, %v941_v40  ;;  %3592 = vmatmul.mubr.bf16.vlgmr.msra.gmra.mrb[16].mxu0 %v14423_v7 }
  0x4c   : > { %v949_v43 = vrot.slane %v947_v37, 7  ;;  %v956_v44 = vshrl.u32 %v845_v41, 16  ;;  %v964_v45 = vshrl.u32 %v846_v42, 16  ;;  %v945_v47 = vrot.slane %v941_v40, 4  ;;  %v848_v55 = vld [vmem:[%s18085_s29 + $0x34] sm:$0xf]  ;;  %vm18346_vm11 = vmor %vm2804_vm9, %vm2805_vm10 }
  0x4d   : > { %v959_v54 = vshll.u32 %v845_v41, 16  ;;  %v1226_v57 = vsel %vm18099_vm6, %v944_v46, %v1225_v39  ;;  %v967_v59 = vshll.u32 %v846_v42, 16  ;;  %v1232_v1 = vld [vmem:[#allocation2 + $0x90] sm:$0xf]  ;;  %v1236_v4 = vld [vmem:[#allocation2 + $0xa0] sm:$0x1]  ;;  %vm18381_vm14 = vmand %vm1773_vm12, %vm1192_vm5 }
  0x4e   : > { %v952_v51 = vor.u32 %v950_v38, %v949_v43  ;;  %v954_v52 = vrot.slane %v949_v43, 4  ;;  %v958_v53 = vrot.slane %v956_v44, 7  ;;  %v966_v58 = vrot.slane %v964_v45, 7  ;;  %1227 = vst [vmem:[#allocation2 + $0x78] sm:$0xf] %v1226_v57  ;;  %v17491_v30 = vld [vmem:[%s22583_s4 + $0x100] sm:$0xff]   ;;  %vm18391_vm15 = vmand %vm1779_vm13, %vm867_vm1 }
  0x4f   : > { %v976_v9 = vshll.u32 %v847_v49, 16  ;;  %v981_v10 = vshrl.u32 %v848_v55, 16  ;;  %v984_v11 = vshll.u32 %v848_v55, 16  ;;  %v979_v16 = vrot.slane %v975_v5, 4  ;;  %v1239_v17 = vld [vmem:[#allocation2 + $0xa8] sm:$0xf]  ;;  %15944 = vmatpush3.bf16.msra.mxu0 %v17491_v30 }
  0x50   : > { %v953_v61 = vsel %vm18093_vm3, %v945_v47, %v952_v51  ;;  %v1230_v62 = vsel %vm18106_vm8, %v954_v52, %v1229_v48  ;;  %v961_v63 = vor.u32 %v959_v54, %v958_v53  ;;  %v962_v0 = vrot.slane %v958_v53, 4  ;;  %v1243_v21 = vld [vmem:[#allocation2 + $0xb8] sm:$0x1]  ;;  %v850_v22 = vld [vmem:[%s18085_s29 + $0x3c] sm:$0xf]  ;;  %v17492_v31 = vld [vmem:[%s22583_s4 + $0x148] sm:$0xff]  }
  0x51   : > { %1228 = vst.msk [vmem:[#allocation2 + $0x80] sm:$0xf] %vm1191_vm4, %v953_v61  ;;  %1231 = vst [vmem:[#allocation2 + $0x88] sm:$0x1] %v1230_v62  ;;  %v969_v2 = vor.u32 %v967_v59, %v966_v58  ;;  %v971_v3 = vrot.slane %v966_v58, 4  ;;  %v978_v19 = vor.u32 %v976_v9, %v975_v5  ;;  %v983_v20 = vrot.slane %v981_v10, 7  ;;  %15945 = vmatprep.subr.bf16.mxu0 %v17492_v31 }
  0x52   : > { %v1233_v8 = vsel %vm18099_vm6, %v961_v63, %v1232_v1  ;;  %v993_v24 = vshll.u32 %v849_v12, 16  ;;  %v992_v26 = vrot.slane %v990_v18, 7  ;;  %v998_v28 = vshrl.u32 %v850_v22, 16  ;;  %v1246_v40 = vld [vmem:[#allocation2 + $0xc0] sm:$0xf]  ;;  %v17496_v47 = vld [vmem:[%s22583_s4 + $0x150] sm:$0xff]  }
  0x53   : > { %v970_v14 = vsel %vm18093_vm3, %v962_v0, %v969_v2  ;;  %1234 = vst [vmem:[#allocation2 + $0x90] sm:$0xf] %v1233_v8  ;;  %v1237_v15 = vsel %vm18106_vm8, %v971_v3, %v1236_v4  ;;  %v1001_v29 = vshll.u32 %v850_v22, 16  ;;  %v986_v32 = vor.u32 %v984_v11, %v983_v20  ;;  %v1250_v43 = vld [vmem:[#allocation2 + $0xd0] sm:$0x1]  ;;  %15946 = vmatpush3.bf16.msra.mxu0 %v17493_v35  ;;  %v17503_v53 = vld [vmem:[%s22583_s4 + $0x158] sm:$0xff]  }
  0x54   : > { %1235 = vst.msk [vmem:[#allocation2 + $0x98] sm:$0xf] %vm1191_vm4, %v970_v14  ;;  %1238 = vst [vmem:[#allocation2 + $0xa0] sm:$0x1] %v1237_v15  ;;  %v988_v33 = vrot.slane %v983_v20, 4  ;;  %v1240_v34 = vsel %vm18099_vm6, %v978_v19, %v1239_v17  ;;  %v995_v37 = vor.u32 %v993_v24, %v992_v26  ;;  %v996_v38 = vrot.slane %v992_v26, 4  ;;  %15947 = vmatprep.subr.bf16.mxu0 %v17496_v47 }
  0x55   : > { %1241 = vst [vmem:[#allocation2 + $0xa8] sm:$0xf] %v1240_v34  ;;  %v1000_v39 = vrot.slane %v998_v28, 7  ;;  %v987_v41 = vsel %vm18093_vm3, %v979_v16, %v986_v32  ;;  %v17501_v51 = vld [vmem:[%s22583_s4 + $0x110] sm:$0xff]   ;;  %v851_v52 = vld [vmem:[%s18085_s29 + $0x40] sm:$0xf] }
  0x56   : > { %v1244_v42 = vsel %vm18106_vm8, %v988_v33, %v1243_v21  ;;  %1242 = vst.msk [vmem:[#allocation2 + $0xb0] sm:$0xf] %vm1191_vm4, %v987_v41  ;;  %v1247_v46 = vsel %vm18099_vm6, %v995_v37, %v1246_v40  ;;  %v852_v54 = vld [vmem:[%s18085_s29 + $0x44] sm:$0xf]  ;;  %v1007_v55 = vshrl.u32 %v851_v52, 16  ;;  %v1010_v56 = vshll.u32 %v851_v52, 16 }
  0x57   : > { %1245 = vst [vmem:[#allocation2 + $0xb8] sm:$0x1] %v1244_v42  ;;  %v1003_v44 = vor.u32 %v1001_v29, %v1000_v39  ;;  %v1005_v45 = vrot.slane %v1000_v39, 4  ;;  %1248 = vst [vmem:[#allocation2 + $0xc0] sm:$0xf] %v1247_v46  ;;  %v1015_v57 = vshrl.u32 %v852_v54, 16  ;;  %15948 = vmatpush3.bf16.msra.mxu0 %v17501_v51 }
  0x58   : > { %v1018_v58 = vshll.u32 %v852_v54, 16  ;;  %v1253_v59 = vld [vmem:[#allocation2 + $0xd8] sm:$0xf]  ;;  %v1009_v60 = vrot.slane %v1007_v55, 7  ;;  %v1257_v61 = vld [vmem:[#allocation2 + $0xe8] sm:$0x1]  ;;  %15949 = vmatprep.subr.bf16.mxu0 %v17503_v53 }
  0x59   : > { %v1004_v48 = vsel %vm18093_vm3, %v996_v38, %v1003_v44  ;;  %v1251_v49 = vsel %vm18106_vm8, %v1005_v45, %v1250_v43  ;;  %v17504_v62 = vld [vmem:[%s22583_s4 + $0x118] sm:$0xff]   ;;  %v1017_v63 = vrot.slane %v1015_v57, 7  ;;  %v17507_v4 = vld [vmem:[%s22583_s4 + $0x160] sm:$0xff]   ;;  %v855_v10 = vld [vmem:[%s18085_s29 + $0x50] sm:$0xf] }
  0x5a   : > { %1249 = vst.msk [vmem:[#allocation2 + $0xc8] sm:$0xf] %vm1191_vm4, %v1004_v48  ;;  %1252 = vst [vmem:[#allocation2 + $0xd0] sm:$0x1] %v1251_v49  ;;  %v1012_v0 = vor.u32 %v1010_v56, %v1009_v60  ;;  %v1013_v1 = vrot.slane %v1009_v60, 4  ;;  %v17509_v9 = vld [vmem:[%s22583_s4 + $0x120] sm:$0xff]  }
  0x5b   : > { %v1020_v2 = vor.u32 %v1018_v58, %v1017_v63  ;;  %v1022_v3 = vrot.slane %v1017_v63, 4  ;;  %15950 = vmatpush3.bf16.msra.mxu0 %v17504_v62  ;;  %v856_v11 = vld [vmem:[%s18085_s29 + $0x54] sm:$0xf]  ;;  %v1041_v12 = vshrl.u32 %v855_v10, 16  ;;  %v1044_v13 = vshll.u32 %v855_v10, 16  ;;  %v17510_v17 = vld [vmem:[%s22583_s4 + $0x168] sm:$0xff]  }
  0x5c   : > { %v1254_v5 = vsel %vm18099_vm6, %v1012_v0, %v1253_v59  ;;  %15951 = vmatprep.subr.bf16.mxu0 %v17507_v4  ;;  %v1049_v14 = vshrl.u32 %v856_v11, 16  ;;  %v1052_v15 = vshll.u32 %v856_v11, 16  ;;  %v1267_v16 = vld [vmem:[#allocation2 + $0x108] sm:$0xf]  ;;  %v1271_v20 = vld [vmem:[#allocation2 + $0x118] sm:$0x1] }
  0x5d   : > { %v1021_v7 = vsel %vm18093_vm3, %v1013_v1, %v1020_v2  ;;  %1255 = vst [vmem:[#allocation2 + $0xd8] sm:$0xf] %v1254_v5  ;;  %v1258_v8 = vsel %vm18106_vm8, %v1022_v3, %v1257_v61  ;;  %v1043_v18 = vrot.slane %v1041_v12, 7  ;;  %v17512_v21 = vld [vmem:[%s22583_s4 + $0x128] sm:$0xff]   ;;  %v17515_v38 = vld [vmem:[%s22583_s4 + $0x170] sm:$0xff]   ;;  %v17518_v58 = vld [vmem:[%s22583_s4 + $0x178] sm:$0xff]  }
  0x5e   : > { %1256 = vst.msk [vmem:[#allocation2 + $0xe0] sm:$0xf] %vm1191_vm4, %v1021_v7  ;;  %1259 = vst [vmem:[#allocation2 + $0xe8] sm:$0x1] %v1258_v8  ;;  %v1051_v19 = vrot.slane %v1049_v14, 7  ;;  %v17516_v40 = vld [vmem:[%s22583_s4 + $0x130] sm:$0xff]  }
  0x5f   : > { %15952 = vmatpush3.bf16.msra.mxu0 %v17509_v9  ;;  %v1046_v22 = vor.u32 %v1044_v13, %v1043_v18  ;;  %v1047_v24 = vrot.slane %v1043_v18, 4  ;;  %v853_v28 = vld [vmem:[%s18085_s29 + $0x48] sm:$0xf]  ;;  %v854_v29 = vld [vmem:[%s18085_s29 + $0x4c] sm:$0xf]  ;;  %v17519_v59 = vld [vmem:[%s22583_s4 + $0x138] sm:$0xff]  }
  0x60   : > { %v1054_v25 = vor.u32 %v1052_v15, %v1051_v19  ;;  %v1056_v26 = vrot.slane %v1051_v19, 4  ;;  %15953 = vmatprep.subr.bf16.mxu0 %v17510_v17  ;;  %v1024_v33 = vshrl.u32 %v853_v28, 16  ;;  %v1027_v34 = vshll.u32 %v853_v28, 16  ;;  %v857_v41 = vld [vmem:[%s18085_s29 + $0x58] sm:$0xf] }
  0x61   : > { %v1268_v31 = vsel %vm18099_vm6, %v1046_v22, %v1267_v16  ;;  %v1032_v35 = vshrl.u32 %v854_v29, 16  ;;  %v1035_v37 = vshll.u32 %v854_v29, 16  ;;  %v858_v42 = vld [vmem:[%s18085_s29 + $0x5c] sm:$0xf]  ;;  %v1260_v44 = vld [vmem:[#allocation2 + $0xf0] sm:$0xf] }
  0x62   : > { %v1055_v30 = vsel %vm18093_vm3, %v1047_v24, %v1054_v25  ;;  %v1272_v32 = vsel %vm18106_vm8, %v1056_v26, %v1271_v20  ;;  %1269 = vst [vmem:[#allocation2 + $0x108] sm:$0xf] %v1268_v31  ;;  %v1026_v39 = vrot.slane %v1024_v33, 7  ;;  %v1058_v45 = vshrl.u32 %v857_v41, 16  ;;  %v1264_v50 = vld [vmem:[#allocation2 + $0x100] sm:$0x1] }
  0x63   : > { %1270 = vst.msk [vmem:[#allocation2 + $0x110] sm:$0xf] %vm1191_vm4, %v1055_v30  ;;  %1273 = vst [vmem:[#allocation2 + $0x118] sm:$0x1] %v1272_v32  ;;  %15954 = vmatpush3.bf16.msra.mxu0 %v17512_v21  ;;  %v1034_v43 = vrot.slane %v1032_v35, 7  ;;  %v1061_v46 = vshll.u32 %v857_v41, 16 }
  0x64   : > { %15955 = vmatprep.subr.bf16.mxu0 %v17515_v38  ;;  %v1066_v47 = vshrl.u32 %v858_v42, 16  ;;  %v1029_v48 = vor.u32 %v1027_v34, %v1026_v39  ;;  %v1030_v49 = vrot.slane %v1026_v39, 4  ;;  %v1069_v51 = vshll.u32 %v858_v42, 16  ;;  %v1274_v57 = vld [vmem:[#allocation2 + $0x120] sm:$0xf] }
  0x65   : > { %v1037_v52 = vor.u32 %v1035_v37, %v1034_v43  ;;  %v1039_v53 = vrot.slane %v1034_v43, 4  ;;  %v1060_v54 = vrot.slane %v1058_v45, 7  ;;  %v1278_v0 = vld [vmem:[#allocation2 + $0x130] sm:$0x1]  ;;  %v859_v7 = vld [vmem:[%s18085_s29 + $0x60] sm:$0xf] }
  0x66   : > { %v1068_v55 = vrot.slane %v1066_v47, 7  ;;  %v1261_v56 = vsel %vm18099_vm6, %v1029_v48, %v1260_v44  ;;  %v860_v8 = vld [vmem:[%s18085_s29 + $0x64] sm:$0xf]  ;;  %v1075_v9 = vshrl.u32 %v859_v7, 16  ;;  %v1078_v10 = vshll.u32 %v859_v7, 16 }
  0x67   : > { %15956 = vmatpush3.bf16.msra.mxu0 %v17516_v40  ;;  %v1038_v60 = vsel %vm18093_vm3, %v1030_v49, %v1037_v52  ;;  %1262 = vst [vmem:[#allocation2 + $0xf0] sm:$0xf] %v1261_v56  ;;  %v1265_v61 = vsel %vm18106_vm8, %v1039_v53, %v1264_v50  ;;  %v1063_v62 = vor.u32 %v1061_v46, %v1060_v54  ;;  %v1064_v63 = vrot.slane %v1060_v54, 4  ;;  %v1281_v15 = vld [vmem:[#allocation2 + $0x138] sm:$0xf] }
  0x68   : > { %1263 = vst.msk [vmem:[#allocation2 + $0xf8] sm:$0xf] %vm1191_vm4, %v1038_v60  ;;  %1266 = vst [vmem:[#allocation2 + $0x100] sm:$0x1] %v1265_v61  ;;  %v1071_v1 = vor.u32 %v1069_v51, %v1068_v55  ;;  %v1073_v2 = vrot.slane %v1068_v55, 4  ;;  %15957 = vmatprep.subr.bf16.mxu0 %v17518_v58  ;;  %v1083_v11 = vshrl.u32 %v860_v8, 16 }
  0x69   : > { %v1275_v3 = vsel %vm18099_vm6, %v1063_v62, %v1274_v57  ;;  %v1086_v12 = vshll.u32 %v860_v8, 16  ;;  %v1077_v13 = vrot.slane %v1075_v9, 7  ;;  %v1285_v16 = vld [vmem:[#allocation2 + $0x148] sm:$0x1]  ;;  %v863_v17 = vld [vmem:[%s18085_s29 + $0x70] sm:$0xf] }
  0x6a   : > { %v1072_v4 = vsel %vm18093_vm3, %v1064_v63, %v1071_v1  ;;  %1276 = vst [vmem:[#allocation2 + $0x120] sm:$0xf] %v1275_v3  ;;  %v1279_v5 = vsel %vm18106_vm8, %v1073_v2, %v1278_v0  ;;  %v1085_v14 = vrot.slane %v1083_v11, 7  ;;  %v864_v18 = vld [vmem:[%s18085_s29 + $0x74] sm:$0xf]  ;;  %v1109_v24 = vshrl.u32 %v863_v17, 16 }
  0x6b   : > { %15958 = vmatpush3.bf16.msra.mxu0 %v17519_v59  ;;  %1277 = vst.msk [vmem:[#allocation2 + $0x128] sm:$0xf] %vm1191_vm4, %v1072_v4  ;;  %1280 = vst [vmem:[#allocation2 + $0x130] sm:$0x1] %v1279_v5  ;;  %v1080_v19 = vor.u32 %v1078_v10, %v1077_v13  ;;  %v1081_v20 = vrot.slane %v1077_v13, 4  ;;  %v1112_v25 = vshll.u32 %v863_v17, 16  ;;  %v503_v3 = vlaneseq }
  0x6c   : > { %v1088_v21 = vor.u32 %v1086_v12, %v1085_v14  ;;  %v1090_v22 = vrot.slane %v1085_v14, 4  ;;  %v1117_v26 = vshrl.u32 %v864_v18, 16  ;;  %v1120_v28 = vshll.u32 %v864_v18, 16  ;;  %v1295_v32 = vld [vmem:[#allocation2 + $0x168] sm:$0xf] }
  0x6d   : > { %v1282_v30 = vsel %vm18099_vm6, %v1080_v19, %v1281_v15  ;;  %v1111_v33 = vrot.slane %v1109_v24, 7  ;;  %v861_v35 = vld [vmem:[%s18085_s29 + $0x68] sm:$0xf]  ;;  %v862_v37 = vld [vmem:[%s18085_s29 + $0x6c] sm:$0xf]  ;;  %v504_v13 = vshrl.u32 %v503_v3, 7 }
  0x6e   : > { %v1089_v29 = vsel %vm18093_vm3, %v1081_v20, %v1088_v21  ;;  %v1286_v31 = vsel %vm18106_vm8, %v1090_v22, %v1285_v16  ;;  %1283 = vst [vmem:[#allocation2 + $0x138] sm:$0xf] %v1282_v30  ;;  %v1119_v34 = vrot.slane %v1117_v26, 7  ;;  %v1299_v38 = vld [vmem:[#allocation2 + $0x178] sm:$0x1]  ;;  %v1092_v39 = vshrl.u32 %v861_v35, 16 }
  0x6f   : > { %1284 = vst.msk [vmem:[#allocation2 + $0x140] sm:$0xf] %vm1191_vm4, %v1089_v29  ;;  %1287 = vst [vmem:[#allocation2 + $0x148] sm:$0x1] %v1286_v31  ;;  %v1095_v40 = vshll.u32 %v861_v35, 16  ;;  %v1100_v41 = vshrl.u32 %v862_v37, 16  ;;  %v1114_v43 = vor.u32 %v1112_v25, %v1111_v33 }
  0x70   : > { %v1103_v42 = vshll.u32 %v862_v37, 16  ;;  %v1115_v44 = vrot.slane %v1111_v33, 4  ;;  %v1122_v45 = vor.u32 %v1120_v28, %v1119_v34  ;;  %v1124_v46 = vrot.slane %v1119_v34, 4  ;;  %v1288_v52 = vld [vmem:[#allocation2 + $0x150] sm:$0xf] }
  0x71   : > { %v1094_v47 = vrot.slane %v1092_v39, 7  ;;  %v1102_v48 = vrot.slane %v1100_v41, 7  ;;  %v1296_v50 = vsel %vm18099_vm6, %v1114_v43, %v1295_v32  ;;  %v1292_v53 = vld [vmem:[#allocation2 + $0x160] sm:$0x1]  ;;  %v865_v58 = vld [vmem:[%s18085_s29 + $0x78] sm:$0xf] }
  0x72   : > { %v1123_v49 = vsel %vm18093_vm3, %v1115_v44, %v1122_v45  ;;  %v1300_v51 = vsel %vm18106_vm8, %v1124_v46, %v1299_v38  ;;  %1297 = vst [vmem:[#allocation2 + $0x168] sm:$0xf] %v1296_v50  ;;  %v866_v59 = vld [vmem:[%s18085_s29 + $0x7c] sm:$0xf]  ;;  %v1126_v60 = vshrl.u32 %v865_v58, 16  ;;  %v1129_v61 = vshll.u32 %v865_v58, 16 }
  0x73   : > { %1298 = vst.msk [vmem:[#allocation2 + $0x170] sm:$0xf] %vm1191_vm4, %v1123_v49  ;;  %1301 = vst [vmem:[#allocation2 + $0x178] sm:$0x1] %v1300_v51  ;;  %v1097_v54 = vor.u32 %v1095_v40, %v1094_v47  ;;  %v1098_v55 = vrot.slane %v1094_v47, 4  ;;  %v1105_v56 = vor.u32 %v1103_v42, %v1102_v48  ;;  %v1107_v57 = vrot.slane %v1102_v48, 4 }
  0x74   : > { %v1134_v62 = vshrl.u32 %v866_v59, 16  ;;  %v1137_v63 = vshll.u32 %v866_v59, 16  ;;  %v1128_v4 = vrot.slane %v1126_v60, 7  ;;  %v1302_v7 = vld [vmem:[#allocation2 + $0x180] sm:$0xf]  ;;  %v505_v17 = vsub.s32 0, %v504_v13 }
  0x75   : > { %v1106_v0 = vsel %vm18093_vm3, %v1098_v55, %v1105_v56  ;;  %v1289_v1 = vsel %vm18099_vm6, %v1097_v54, %v1288_v52  ;;  %v1293_v2 = vsel %vm18106_vm8, %v1107_v57, %v1292_v53  ;;  %v1306_v8 = vld [vmem:[#allocation2 + $0x190] sm:$0x1]  ;;  %v513_v18 = vsub.s32 2, %v504_v13  ;;  %v2708_v22 = vld [vmem:[#allocation2] sm:$0xee] }
  0x76   : > { %1290 = vst [vmem:[#allocation2 + $0x150] sm:$0xf] %v1289_v1  ;;  %1291 = vst.msk [vmem:[#allocation2 + $0x158] sm:$0xf] %vm1191_vm4, %v1106_v0  ;;  %v1136_v5 = vrot.slane %v1134_v62, 7  ;;  %v1131_v9 = vor.u32 %v1129_v61, %v1128_v4  ;;  %v1132_v10 = vrot.slane %v1128_v4, 4  ;;  %v18332_v28 = vrot.slane %v501_v27, %v505_v17 }
  0x77   : > { %1294 = vst [vmem:[#allocation2 + $0x160] sm:$0x1] %v1293_v2  ;;  %v509_v19 = vsub.s32 1, %v504_v13  ;;  %v517_v20 = vsub.s32 3, %v504_v13  ;;  %v2809_v21 = vrot.slane %v18176_v6, 5  ;;  %v14487_v36 = vrot.slane %v2708_v22, 9 }
  0x78   : > { %v1139_v11 = vor.u32 %v1137_v63, %v1136_v5  ;;  %v1141_v12 = vrot.slane %v1136_v5, 4  ;;  %v1303_v15 = vsel %vm18099_vm6, %v1131_v9, %v1302_v7  ;;  %v2710_v24 = vld [vmem:[#allocation2 + $0x10] sm:$0x11]  ;;  %v18334_v29 = vrot.slane %v501_v27, %v513_v18  ;;  %v1775_v3 = vld [vmem:[#allocation2 + $0x1c] sm:$0xf] }
  0x79   : > { %1304 = vst [vmem:[#allocation2 + $0x180] sm:$0xf] %v1303_v15  ;;  %v2811_v25 = vrot.slane %v2809_v21, 4  ;;  %v2812_v26 = vrot.slane %v2710_v24, 5  ;;  %v18336_v30 = vrot.slane %v501_v27, %v509_v19  ;;  %v18338_v31 = vrot.slane %v501_v27, %v517_v20  ;;  %v1781_v4 = vld [vmem:[#allocation2 + $0x2c] sm:$0x1] }
  0x7a   : > { %v1140_v14 = vsel %vm18093_vm3, %v1132_v10, %v1139_v11  ;;  %v1307_v16 = vsel %vm18106_vm8, %v1141_v12, %v1306_v8  ;;  %v18354_v47 = vsel %vm18346_vm11, %v14487_v36, %v2809_v21  ;;  %v17549_v19 = vld [vmem:[%s22583_s4 + $0x240] sm:$0xff]   ;;  %v22620_v20 = vmov 0 }
  0x7b   : > { %1305 = vst.msk [vmem:[#allocation2 + $0x188] sm:$0xf] %vm1191_vm4, %v1140_v14  ;;  %1308 = vst [vmem:[#allocation2 + $0x190] sm:$0x1] %v1307_v16  ;;  %v18358_v48 = vsel %vm18346_vm11, %v2811_v25, %v2812_v26  ;;  %v1784_v14 = vld [vmem:[#allocation2 + $0x34] sm:$0xf]  ;;  %16167 = vmatprep.subr.bf16.mxu0 %v17549_v19 }
  0x7c   : > { %v14503_v59 = vcombine.low %v18354_v47, %v18358_v48  ;;  %v14504_v60 = vcombine.high %v18354_v47, %v18358_v48  ;;  %v22621_v20 = vsel %vm18381_vm14, 4294967295, %v22620_v20  ;;  %v1788_v24 = vld [vmem:[#allocation2 + $0x44] sm:$0x1]  ;;  %vm2162_vm1 = vsmask.f32 7440 }
  0x7d   : > { %22622 = vst [vmem:[#allocation8_spill] sm:$0xff] %v22621_v20  ;;  %vm18841_vm2 = vmor %vm2161_vm0, %vm2162_vm1 }
  0xe6   : > { %v610_v6 = vpop.f32.mrb[0].mxu0  ;;  %v683_v32 = vpop.f32.mrb[0].mxu1 }
  0xe7   : > { %v611_v33 = vadd.f32 %v610_v6, %v18332_v28  ;;  %v684_v34 = vadd.f32 %v683_v32, %v18334_v29  ;;  %v612_v35 = vpop.f32.mrb[1].mxu0  ;;  %v685_v37 = vpop.f32.mrb[1].mxu1 }
  0xe8   : > { %v613_v38 = vadd.f32 %v612_v35, %v18336_v30  ;;  %v686_v39 = vadd.f32 %v685_v37, %v18338_v31  ;;  %v614_v40 = vpop.f32.mrb[2].mxu0  ;;  %v687_v41 = vpop.f32.mrb[2].mxu1  ;;  %v22623_v35 = vmov 0 }
  0xe9   : > { %v615_v43 = vadd.f32 %v614_v40, %v18332_v28  ;;  %v688_v44 = vadd.f32 %v687_v41, %v18334_v29  ;;  %v616_v45 = vpop.f32.mrb[3].mxu0  ;;  %v689_v46 = vpop.f32.mrb[3].mxu1  ;;  %v22624_v35 = vsel %vm18391_vm15, 4294967295, %v22623_v35 }
  0xea   : > { %v15703_v49 = vpack.i.bf16 %v613_v38, %v611_v33  ;;  %v15704_v50 = vpack.i.bf16 %v686_v39, %v684_v34  ;;  %v617_v51 = vadd.f32 %v616_v45, %v18336_v30  ;;  %v690_v52 = vadd.f32 %v689_v46, %v18338_v31  ;;  %22625 = vst [vmem:[#allocation9_spill] sm:$0xff] %v22624_v35 }
  0xec   : > { %v14391_v53 = vcombine.low %v15703_v49, %v15703_v49  ;;  %v14392_v54 = vcombine.high %v15703_v49, %v15703_v49  ;;  %v14393_v55 = vcombine.low %v15704_v50, %v15704_v50  ;;  %v14394_v56 = vcombine.high %v15704_v50, %v15704_v50 }
  0xed   : > { %v15705_v57 = vpack.i.bf16 %v617_v51, %v615_v43  ;;  %v15706_v58 = vpack.i.bf16 %v690_v52, %v688_v44  ;;  %v1791_v52 = vld [vmem:[#allocation2 + $0x4c] sm:$0xf] }
  0xee   : > { %v1454_v61 = vshrl.u32 %v14391_v53, 16  ;;  %v1457_v62 = vshll.u32 %v14391_v53, 16  ;;  %v1462_v63 = vshrl.u32 %v14392_v54, 16  ;;  %v1465_v0 = vshll.u32 %v14392_v54, 16  ;;  %v620_v1 = vpop.f32.mrb[4].mxu0  ;;  %v18366_v2 = vpop.f32.mrb[4].mxu1 }
  0xef   : > { %v1471_v5 = vshrl.u32 %v14393_v55, 16  ;;  %v1474_v7 = vshll.u32 %v14393_v55, 16  ;;  %v1479_v8 = vshrl.u32 %v14394_v56, 16  ;;  %v1482_v9 = vshll.u32 %v14394_v56, 16  ;;  %v18368_v10 = vpop.f32.mrb[5].mxu0  ;;  %v18370_v11 = vpop.f32.mrb[5].mxu1 }
  0xf0   : > { %v1456_v12 = vrot.slane %v1454_v61, 7  ;;  %v1464_v13 = vrot.slane %v1462_v63, 7  ;;  %v14395_v15 = vcombine.low %v15705_v57, %v15705_v57  ;;  %v18372_v16 = vcombine.high %v15705_v57, %v15705_v57  ;;  %v624_v17 = vpop.f32.mrb[6].mxu0  ;;  %v18374_v18 = vpop.f32.mrb[6].mxu1  ;;  %v1795_v61 = vld [vmem:[#allocation2 + $0x5c] sm:$0x1] }
  0xf1   : > { %v1473_v21 = vrot.slane %v1471_v5, 7  ;;  %v1481_v22 = vrot.slane %v1479_v8, 7  ;;  %v14397_v27 = vcombine.low %v15706_v58, %v15706_v58  ;;  %v14398_v36 = vcombine.high %v15706_v58, %v15706_v58  ;;  %v18385_v25 = vpop.f32.mrb[7].mxu0  ;;  %v18387_v26 = vpop.f32.mrb[7].mxu1 }
  0xf2   : > { %v1459_v6 = vor.u32 %v1457_v62, %v1456_v12  ;;  %v1460_v32 = vrot.slane %v1456_v12, 4  ;;  %v1467_v33 = vor.u32 %v1465_v0, %v1464_v13  ;;  %v1469_v34 = vrot.slane %v1464_v13, 4 }
  0xf3   : > { %v1476_v37 = vor.u32 %v1474_v7, %v1473_v21  ;;  %v1477_v38 = vrot.slane %v1473_v21, 4  ;;  %v1484_v39 = vor.u32 %v1482_v9, %v1481_v22  ;;  %v1486_v40 = vrot.slane %v1481_v22, 4 }
  0xf4   : > { %v1468_v41 = vsel %vm18093_vm3, %v1460_v32, %v1467_v33  ;;  %v1776_v43 = vsel %vm18381_vm14, %v1459_v6, %v1775_v3  ;;  %v1782_v44 = vsel %vm18391_vm15, %v1469_v34, %v1781_v4  ;;  %v1488_v45 = vshrl.u32 %v14395_v15, 16  ;;  %v1798_v3 = vld [vmem:[#allocation2 + $0x64] sm:$0xf]  ;;  %v1802_v33 = vld [vmem:[#allocation2 + $0x74] sm:$0x1] }
  0xf5   : > { %1777 = vst [vmem:[#allocation2 + $0x1c] sm:$0xf] %v1776_v43  ;;  %1778 = vst [vmem:[#allocation2 + $0x24] sm:$0xf] %v1468_v41  ;;  %v1485_v46 = vsel %vm18093_vm3, %v1477_v38, %v1484_v39  ;;  %v1785_v49 = vsel %vm18381_vm14, %v1476_v37, %v1784_v14  ;;  %v1789_v50 = vsel %vm18391_vm15, %v1486_v40, %v1788_v24  ;;  %v1491_v51 = vshll.u32 %v14395_v15, 16 }
  0xf6   : > { %1783 = vst [vmem:[#allocation2 + $0x2c] sm:$0x1] %v1782_v44  ;;  %1786 = vst [vmem:[#allocation2 + $0x34] sm:$0xf] %v1785_v49  ;;  %v1490_v53 = vrot.slane %v1488_v45, 7  ;;  %v1496_v54 = vshrl.u32 %v18372_v16, 16  ;;  %v621_v4 = vadd.f32 %v620_v1, %v18332_v28  ;;  %v623_v19 = vadd.f32 %v18368_v10, %v18336_v30 }
  0xf7   : > { %1787 = vst [vmem:[#allocation2 + $0x3c] sm:$0xf] %v1485_v46  ;;  %1790 = vst [vmem:[#allocation2 + $0x44] sm:$0x1] %v1789_v50  ;;  %v1499_v55 = vshll.u32 %v18372_v16, 16  ;;  %v1505_v56 = vshrl.u32 %v14397_v27, 16  ;;  %v694_v21 = vadd.f32 %v18366_v2, %v18334_v29  ;;  %v625_v1 = vadd.f32 %v624_v17, %v18332_v28 }
  0xf8   : > { %v18409_v57 = vpop.f32.mrb[8].mxu0  ;;  %v18411_v58 = vpop.f32.mrb[8].mxu1  ;;  %v1508_v62 = vshll.u32 %v14397_v27, 16  ;;  %v1513_v63 = vshrl.u32 %v14398_v36, 16  ;;  %v1516_v0 = vshll.u32 %v14398_v36, 16  ;;  %v1493_v8 = vor.u32 %v1491_v51, %v1490_v53 }
  0xf9   : > { %v18414_v5 = vpop.f32.mrb[9].mxu0  ;;  %v18416_v7 = vpop.f32.mrb[9].mxu1  ;;  %v1494_v9 = vrot.slane %v1490_v53, 4  ;;  %v1498_v12 = vrot.slane %v1496_v54, 7  ;;  %v1507_v13 = vrot.slane %v1505_v56, 7  ;;  %v15707_v38 = vpack.i.bf16 %v623_v19, %v621_v4 }
  0xfa   : > { %v18418_v14 = vpop.f32.mrb[10].mxu0  ;;  %v18420_v15 = vpop.f32.mrb[10].mxu1  ;;  %v1515_v16 = vrot.slane %v1513_v63, 7  ;;  %v1792_v6 = vsel %vm18381_vm14, %v1493_v8, %v1791_v52  ;;  %v696_v40 = vadd.f32 %v18370_v11, %v18338_v31  ;;  %v627_v49 = vadd.f32 %v18385_v25, %v18336_v30 }
  0xfb   : > { %v18427_v22 = vpop.f32.mrb[11].mxu0  ;;  %v18429_v24 = vpop.f32.mrb[11].mxu1  ;;  %v1501_v27 = vor.u32 %v1499_v55, %v1498_v12  ;;  %v1503_v36 = vrot.slane %v1498_v12, 4  ;;  %v1510_v32 = vor.u32 %v1508_v62, %v1507_v13  ;;  %1793 = vst [vmem:[#allocation2 + $0x4c] sm:$0xf] %v1792_v6  ;;  %v1511_v34 = vrot.slane %v1507_v13, 4 }
  0xfc   : > { %v1518_v37 = vor.u32 %v1516_v0, %v1515_v16  ;;  %v1520_v10 = vrot.slane %v1515_v16, 4  ;;  %v14399_v44 = vcombine.low %v15707_v38, %v15707_v38  ;;  %v14400_v45 = vcombine.high %v15707_v38, %v15707_v38  ;;  %v1891_v51 = vld [vmem:[#allocation2 + $0x18] sm:$0xff]  ;;  %v18451_v52 = vld [vmem:[#allocation2 + $0x20] sm:$0xff] }
  0xfd   : > { %v1502_v2 = vsel %vm18093_vm3, %v1494_v9, %v1501_v27  ;;  %v1796_v17 = vsel %vm18391_vm15, %v1503_v36, %v1795_v61  ;;  %v1799_v39 = vsel %vm18381_vm14, %v1510_v32, %v1798_v3  ;;  %v15708_v46 = vpack.i.bf16 %v696_v40, %v694_v21  ;;  %v1805_v13 = vld [vmem:[#allocation2 + $0x7c] sm:$0xf]  ;;  %v1809_v36 = vld [vmem:[#allocation2 + $0x8c] sm:$0x1] }
  0xfe   : > { %1794 = vst [vmem:[#allocation2 + $0x54] sm:$0xf] %v1502_v2  ;;  %1797 = vst [vmem:[#allocation2 + $0x5c] sm:$0x1] %v1796_v17  ;;  %v1519_v41 = vsel %vm18093_vm3, %v1511_v34, %v1518_v37  ;;  %v1803_v43 = vsel %vm18391_vm15, %v1520_v10, %v1802_v33  ;;  %v698_v11 = vadd.f32 %v18374_v18, %v18334_v29  ;;  %v18453_v53 = vpop.f32.mrb[12].mxu0  ;;  %v18455_v54 = vpop.f32.mrb[12].mxu1 }
  0xff   : > { %1800 = vst [vmem:[#allocation2 + $0x64] sm:$0xf] %v1799_v39  ;;  %1801 = vst [vmem:[#allocation2 + $0x6c] sm:$0xf] %v1519_v41  ;;  %v700_v50 = vadd.f32 %v18387_v26, %v18338_v31  ;;  %v1522_v55 = vshrl.u32 %v14399_v44, 16  ;;  %v1525_v56 = vshll.u32 %v14399_v44, 16  ;;  %v14401_v0 = vcombine.low %v15708_v46, %v15708_v46 }
 0x100   : > { %1804 = vst [vmem:[#allocation2 + $0x74] sm:$0x1] %v1803_v43  ;;  %v1530_v61 = vshrl.u32 %v14400_v45, 16  ;;  %v1533_v62 = vshll.u32 %v14400_v45, 16  ;;  %v18457_v63 = vpop.f32.mrb[13].mxu0  ;;  %v18459_v25 = vpop.f32.mrb[13].mxu1  ;;  %v14402_v18 = vcombine.high %v15708_v46, %v15708_v46  ;;  %v15709_v3 = vpack.i.bf16 %v627_v49, %v625_v1 }
 0x101   : > { %v15710_v4 = vpack.i.bf16 %v700_v50, %v698_v11  ;;  %v18461_v26 = vpop.f32.mrb[14].mxu0  ;;  %v18463_v8 = vpop.f32.mrb[14].mxu1  ;;  %v1524_v9 = vrot.slane %v1522_v55, 7  ;;  %v14426_v16 = vcombine.high %v1891_v51, %v18451_v52  ;;  %v14425_v19 = vcombine.low %v1891_v51, %v18451_v52  ;;  %v1812_v45 = vld [vmem:[#allocation2 + $0x94] sm:$0xf] }
 0x102   : > { %v1532_v12 = vrot.slane %v1530_v61, 7  ;;  %v18467_v21 = vpop.f32.mrb[15].mxu0  ;;  %v18469_v27 = vpop.f32.mrb[15].mxu1  ;;  %v1539_v6 = vshrl.u32 %v14401_v0, 16  ;;  %v1542_v32 = vshll.u32 %v14401_v0, 16  ;;  %v1547_v1 = vshrl.u32 %v14402_v18, 16 }
 0x103   : > { %v1550_v33 = vshll.u32 %v14402_v18, 16  ;;  %v1527_v34 = vor.u32 %v1525_v56, %v1524_v9  ;;  %v1528_v37 = vrot.slane %v1524_v9, 4  ;;  %3599 = vmatprep.mubr.bf16.mxu0 %v14426_v16  ;;  %v14403_v39 = vcombine.low %v15709_v3, %v15709_v3  ;;  %v1816_v46 = vld [vmem:[#allocation2 + $0xa4] sm:$0x1]  ;;  %v18477_v56 = vld [vmem:[#allocation2 + $0x30] sm:$0xff]  ;;  %v18479_v61 = vld [vmem:[#allocation2 + $0x38] sm:$0xff] }
 0x104   : > { %v1535_v10 = vor.u32 %v1533_v62, %v1532_v12  ;;  %v1537_v38 = vrot.slane %v1532_v12, 4  ;;  %v1541_v2 = vrot.slane %v1539_v6, 7  ;;  %v1549_v17 = vrot.slane %v1547_v1, 7  ;;  %3600 = vmatmul.mubr.bf16.gmra.mrb[20].mxu0 %v14425_v19 }
 0x105   : > { %v14404_v40 = vcombine.high %v15709_v3, %v15709_v3  ;;  %v1806_v43 = vsel %vm18381_vm14, %v1527_v34, %v1805_v13  ;;  %v14405_v49 = vcombine.low %v15710_v4, %v15710_v4  ;;  %v1556_v62 = vshrl.u32 %v14403_v39, 16  ;;  %v1819_v34 = vld [vmem:[#allocation2 + $0xac] sm:$0xf] }
 0x106   : > { %v1536_v41 = vsel %vm18093_vm3, %v1528_v37, %v1535_v10  ;;  %v1810_v44 = vsel %vm18391_vm15, %v1537_v38, %v1809_v36  ;;  %1807 = vst [vmem:[#allocation2 + $0x7c] sm:$0xf] %v1806_v43  ;;  %v1544_v11 = vor.u32 %v1542_v32, %v1541_v2  ;;  %v1545_v50 = vrot.slane %v1541_v2, 4  ;;  %v1897_v9 = vld [vmem:[#allocation2 + $0x60] sm:$0xff]  ;;  %v18481_v12 = vld [vmem:[#allocation2 + $0x68] sm:$0xff] }
 0x107   : > { %1808 = vst [vmem:[#allocation2 + $0x84] sm:$0xf] %v1536_v41  ;;  %1811 = vst [vmem:[#allocation2 + $0x8c] sm:$0x1] %v1810_v44  ;;  %v1552_v51 = vor.u32 %v1550_v33, %v1549_v17  ;;  %v1554_v55 = vrot.slane %v1549_v17, 4  ;;  %v1559_v0 = vshll.u32 %v14403_v39, 16  ;;  %v14406_v36 = vcombine.high %v15710_v4, %v15710_v4 }
 0x108   : > { %v1564_v18 = vshrl.u32 %v14404_v40, 16  ;;  %v1567_v3 = vshll.u32 %v14404_v40, 16  ;;  %v1813_v16 = vsel %vm18381_vm14, %v1544_v11, %v1812_v45  ;;  %v1558_v6 = vrot.slane %v1556_v62, 7  ;;  %v1823_v37 = vld [vmem:[#allocation2 + $0xbc] sm:$0x1]  ;;  %v17502_v44 = vld [vmem:[%s22583_s4 + $0x80] sm:$0xff]  }
 0x109   : > { %v1553_v13 = vsel %vm18093_vm3, %v1545_v50, %v1552_v51  ;;  %v1817_v19 = vsel %vm18391_vm15, %v1554_v55, %v1816_v46  ;;  %1814 = vst [vmem:[#allocation2 + $0x94] sm:$0xf] %v1813_v16  ;;  %v1573_v1 = vshrl.u32 %v14405_v49, 16  ;;  %v1576_v33 = vshll.u32 %v14405_v49, 16  ;;  %v1826_v43 = vld [vmem:[#allocation2 + $0xc4] sm:$0xf] }
 0x10a   : > { %1815 = vst [vmem:[#allocation2 + $0x9c] sm:$0xf] %v1553_v13  ;;  %1818 = vst [vmem:[#allocation2 + $0xa4] sm:$0x1] %v1817_v19  ;;  %v1566_v32 = vrot.slane %v1564_v18, 7  ;;  %v1581_v10 = vshrl.u32 %v14406_v36, 16  ;;  %v14428_v2 = vcombine.high %v18477_v56, %v18479_v61  ;;  %v14431_v17 = vcombine.low %v1897_v9, %v18481_v12 }
 0x10b   : > { %v1584_v38 = vshll.u32 %v14406_v36, 16  ;;  %v1561_v39 = vor.u32 %v1559_v0, %v1558_v6  ;;  %v1562_v40 = vrot.slane %v1558_v6, 4  ;;  %v18495_v45 = vld [vmem:[#allocation2 + $0x48] sm:$0xff]  ;;  %v1575_v46 = vrot.slane %v1573_v1, 7  ;;  %v18500_v51 = vld [vmem:[#allocation2 + $0x50] sm:$0xff] }
 0x10c   : > { %v1569_v41 = vor.u32 %v1567_v3, %v1566_v32  ;;  %v1571_v4 = vrot.slane %v1566_v32, 4  ;;  %v1583_v49 = vrot.slane %v1581_v10, 7  ;;  %3607 = vmatprep.mubr.bf16.mxu0 %v14428_v2  ;;  %v14432_v11 = vcombine.high %v1897_v9, %v18481_v12  ;;  %v1830_v18 = vld [vmem:[#allocation2 + $0xd4] sm:$0x1]  ;;  %v18510_v9 = vld [vmem:[#allocation2 + $0x18] sm:$0xee] }
 0x10d   : > { %v631_v50 = vadd.f32 %v18409_v57, %v18332_v28  ;;  %v1820_v62 = vsel %vm18381_vm14, %v1561_v39, %v1819_v34  ;;  %v633_v13 = vadd.f32 %v18414_v5, %v18336_v30  ;;  %v1578_v57 = vor.u32 %v1576_v33, %v1575_v46  ;;  %v1899_v6 = vld [vmem:[#allocation2 + $0x78] sm:$0xff]  ;;  %v17511_v1 = vld [vmem:[%s22583_s4 + $0xc8] sm:$0xff]  }
 0x10e   : > { %v1570_v55 = vsel %vm18093_vm3, %v1562_v40, %v1569_v41  ;;  %v1824_v0 = vsel %vm18391_vm15, %v1571_v4, %v1823_v37  ;;  %v17505_v3 = vld [vmem:[#allocation2 + $0x7c] ss:$8 sps:$4 sm:$0xff]   ;;  %1821 = vst [vmem:[#allocation2 + $0xac] sm:$0xf] %v1820_v62  ;;  %v1579_v16 = vrot.slane %v1575_v46, 4  ;;  %v1586_v19 = vor.u32 %v1584_v38, %v1583_v49  ;;  %3623 = vmatprep.mubr.bf16.mxu1 %v14432_v11 }
 0x10f   : > { %1822 = vst [vmem:[#allocation2 + $0xb4] sm:$0xf] %v1570_v55  ;;  %1825 = vst [vmem:[#allocation2 + $0xbc] sm:$0x1] %v1824_v0  ;;  %v1588_v36 = vrot.slane %v1583_v49, 4  ;;  %v1900_v32 = vld [vmem:[#allocation2 + $0x80] sm:$0xff]  ;;  %3624 = vmatmul.mubr.bf16.vlgmr.msra.gmra.mrb[16].mxu1 %v14431_v17  ;;  %v15711_v34 = vpack.i.bf16 %v633_v13, %v631_v50  ;;  %v14427_v5 = vcombine.low %v18477_v56, %v18479_v61 }
 0x110   : > { %v635_v37 = vadd.f32 %v18418_v14, %v18332_v28  ;;  %v14430_v33 = vcombine.high %v18495_v45, %v18500_v51  ;;  %v1587_v10 = vsel %vm18093_vm3, %v1579_v16, %v1586_v19  ;;  %v1827_v38 = vsel %vm18381_vm14, %v1578_v57, %v1826_v43  ;;  %15832 = vmatpush3.bf16.msra.mxu1 %v17502_v44  ;;  %v18527_v17 = vld [vmem:[#allocation2 + $0x90] sm:$0xff]  ;;  %v17514_v14 = vld [vmem:[%s22583_s4 + $0x88] sm:$0xff]  }
 0x111   : > { %v1831_v2 = vsel %vm18391_vm15, %v1588_v36, %v1830_v18  ;;  %3631 = vmatprep.mubr.bf16.mxu1 %v17505_v3  ;;  %v14488_v56 = vrot.slane %v18510_v9, 9  ;;  %1828 = vst [vmem:[#allocation2 + $0xc4] sm:$0xf] %v1827_v38  ;;  %1829 = vst [vmem:[#allocation2 + $0xcc] sm:$0xf] %v1587_v10  ;;  %v14407_v39 = vcombine.low %v15711_v34, %v15711_v34  ;;  %3608 = vmatmul.mubr.bf16.gmra.mrb[24].mxu0 %v14427_v5  ;;  %v18535_v43 = vld [vmem:[#allocation2 + $0x98] sm:$0xff] }
 0x112   : > { %1832 = vst [vmem:[#allocation2 + $0xd4] sm:$0x1] %v1831_v2  ;;  %v14408_v40 = vcombine.high %v15711_v34, %v15711_v34  ;;  %v637_v41 = vadd.f32 %v18427_v22, %v18336_v30  ;;  %v14433_v4 = vcombine.low %v1899_v6, %v1900_v32  ;;  %v17520_v44 = vld [vmem:[%s22583_s4 + $0xd0] sm:$0xff]   ;;  %3615 = vmatprep.mubr.bf16.mxu0 %v14430_v33  ;;  %v2816_v22 = vrot.slane %v18451_v52, 5  ;;  %v1833_v6 = vld [vmem:[#allocation2 + $0xdc] sm:$0xf] }
 0x113   : > { %15833 = vmatprep.subr.bf16.mxu1 %v17511_v1  ;;  %v14436_v46 = vcombine.high %v18527_v17, %v18535_v43  ;;  %v704_v49 = vadd.f32 %v18411_v58, %v18334_v29  ;;  %v706_v11 = vadd.f32 %v18416_v7, %v18338_v31  ;;  %v1590_v50 = vshrl.u32 %v14407_v39, 16  ;;  %v17522_v58 = vld [vmem:[%s22583_s4 + $0x90] sm:$0xff]   ;;  %v1837_v32 = vld [vmem:[#allocation2 + $0xec] sm:$0x1] }
 0x114   : > { %v1593_v55 = vshll.u32 %v14407_v39, 16  ;;  %v1598_v62 = vshrl.u32 %v14408_v40, 16  ;;  %v1601_v0 = vshll.u32 %v14408_v40, 16  ;;  %v15713_v18 = vpack.i.bf16 %v637_v41, %v635_v37  ;;  %15834 = vmatpush3.bf16.msra.mxu1 %v17514_v14 }
 0x115   : > { %v15712_v3 = vpack.i.bf16 %v706_v11, %v704_v49  ;;  %v14429_v13 = vcombine.low %v18495_v45, %v18500_v51  ;;  %v708_v57 = vadd.f32 %v18420_v15, %v18334_v29  ;;  %v1592_v7 = vrot.slane %v1590_v50, 7  ;;  %15835 = vmatprep.subr.bf16.mxu1 %v17520_v44  ;;  %v17525_v45 = vld [vmem:[%s22583_s4 + $0xd8] sm:$0xff]   ;;  %v18564_v41 = vld [vmem:[#allocation2 + $0xa8] sm:$0xff] }
 0x116   : > { %v1600_v16 = vrot.slane %v1598_v62, 7  ;;  %v710_v19 = vadd.f32 %v18429_v24, %v18338_v31  ;;  %v14435_v36 = vcombine.low %v18527_v17, %v18535_v43  ;;  %v14411_v15 = vcombine.low %v15713_v18, %v15713_v18  ;;  %v17527_v24 = vld [vmem:[%s22583_s4 + $0x98] sm:$0xff]   ;;  %v18566_v44 = vld [vmem:[#allocation2 + $0xb0] sm:$0xff] }
 0x117   : > { %v14412_v1 = vcombine.high %v15713_v18, %v15713_v18  ;;  %v14409_v34 = vcombine.low %v15712_v3, %v15712_v3  ;;  %v14410_v5 = vcombine.high %v15712_v3, %v15712_v3  ;;  %v1595_v37 = vor.u32 %v1593_v55, %v1592_v7  ;;  %3632 = vmatmul.mubr.bf16.gmra.mrb[20].mxu1 %v14433_v4  ;;  %v1847_v3 = vld [vmem:[#allocation2 + $0x10c] sm:$0xf] }
 0x118   : > { %v1596_v33 = vrot.slane %v1592_v7, 4  ;;  %v1603_v10 = vor.u32 %v1601_v0, %v1600_v16  ;;  %v1605_v38 = vrot.slane %v1600_v16, 4  ;;  %v1624_v2 = vshrl.u32 %v14411_v15, 16  ;;  %3639 = vmatprep.mubr.bf16.mxu1 %v14436_v46  ;;  %15836 = vmatpush3.bf16.msra.mxu1 %v17522_v58  ;;  %v17529_v46 = vld [vmem:[%s22583_s4 + $0xe0] sm:$0xff]   ;;  %v1851_v58 = vld [vmem:[#allocation2 + $0x11c] sm:$0x1] }
 0x119   : > { %v1627_v14 = vshll.u32 %v14411_v15, 16  ;;  %v1632_v39 = vshrl.u32 %v14412_v1, 16  ;;  %v1635_v40 = vshll.u32 %v14412_v1, 16  ;;  %v1834_v4 = vsel %vm18381_vm14, %v1595_v37, %v1833_v6  ;;  %3616 = vmatmul.mubr.bf16.gmra.mrb[28].mxu0 %v14429_v13  ;;  %15837 = vmatprep.subr.bf16.mxu1 %v17525_v45  ;;  %v1840_v37 = vld [vmem:[#allocation2 + $0xf4] sm:$0xf] }
 0x11a   : > { %v1604_v49 = vsel %vm18093_vm3, %v1596_v33, %v1603_v10  ;;  %v1838_v11 = vsel %vm18391_vm15, %v1605_v38, %v1837_v32  ;;  %v1607_v50 = vshrl.u32 %v14409_v34, 16  ;;  %1835 = vst [vmem:[#allocation2 + $0xdc] sm:$0xf] %v1834_v4  ;;  %v1626_v55 = vrot.slane %v1624_v2, 7  ;;  %3913 = vmatprep.mubr.bf16.mxu0 %v14504_v60  ;;  %v1844_v38 = vld [vmem:[#allocation2 + $0x104] sm:$0x1] }
 0x11b   : > { %1836 = vst [vmem:[#allocation2 + $0xe4] sm:$0xf] %v1604_v49  ;;  %1839 = vst [vmem:[#allocation2 + $0xec] sm:$0x1] %v1838_v11  ;;  %v1634_v62 = vrot.slane %v1632_v39, 7  ;;  %v1610_v0 = vshll.u32 %v14409_v34, 16  ;;  %v15714_v16 = vpack.i.bf16 %v710_v19, %v708_v57  ;;  %v14438_v45 = vcombine.high %v18564_v41, %v18566_v44 }
 0x11c   : > { %v1615_v18 = vshrl.u32 %v14410_v5, 16  ;;  %v1609_v7 = vrot.slane %v1607_v50, 7  ;;  %v1618_v13 = vshll.u32 %v14410_v5, 16  ;;  %v1629_v6 = vor.u32 %v1627_v14, %v1626_v55  ;;  %15838 = vmatpush3.bf16.msra.mxu1 %v17527_v24  ;;  %v17530_v34 = vld [vmem:[%s22583_s4 + $0xa0] sm:$0xff]   ;;  %v17534_v57 = vld [vmem:[%s22583_s4 + $0xe8] sm:$0xff]  }
 0x11d   : > { %v1630_v32 = vrot.slane %v1626_v55, 4  ;;  %v1637_v15 = vor.u32 %v1635_v40, %v1634_v62  ;;  %v1639_v1 = vrot.slane %v1634_v62, 4  ;;  %v14413_v2 = vcombine.low %v15714_v16, %v15714_v16  ;;  %15839 = vmatprep.subr.bf16.mxu1 %v17529_v46  ;;  %v2713_v39 = vld [vmem:[#allocation2 + $0x28] sm:$0x11]  ;;  %v17550_v49 = vld [vmem:[%s22583_s4 + $0x200] sm:$0xff]  }
 0x11e   : > { %v1612_v33 = vor.u32 %v1610_v0, %v1609_v7  ;;  %v1613_v60 = vrot.slane %v1609_v7, 4  ;;  %v1617_v10 = vrot.slane %v1615_v18, 7  ;;  %v1848_v5 = vsel %vm18381_vm14, %v1629_v6, %v1847_v3  ;;  %v17535_v40 = vld [vmem:[%s22583_s4 + $0xa8] sm:$0xff]   ;;  %v1854_v3 = vld [vmem:[#allocation2 + $0x124] sm:$0xf] }
 0x11f   : > { %v1638_v19 = vsel %vm18093_vm3, %v1630_v32, %v1637_v15  ;;  %v1852_v24 = vsel %vm18391_vm15, %v1639_v1, %v1851_v58  ;;  %v14414_v14 = vcombine.high %v15714_v16, %v15714_v16  ;;  %1849 = vst [vmem:[#allocation2 + $0x10c] sm:$0xf] %v1848_v5  ;;  %v1641_v46 = vshrl.u32 %v14413_v2, 16  ;;  %3640 = vmatmul.mubr.bf16.gmra.mrb[24].mxu1 %v14435_v36  ;;  %v17553_v55 = vld [vmem:[%s22583_s4 + $0x248] sm:$0xff]   ;;  %v2714_v58 = vld [vmem:[#allocation2 + $0x30] sm:$0xee] }
 0x120   : > { %1850 = vst [vmem:[#allocation2 + $0x114] sm:$0xf] %v1638_v19  ;;  %1853 = vst [vmem:[#allocation2 + $0x11c] sm:$0x1] %v1852_v24  ;;  %v1620_v4 = vor.u32 %v1618_v13, %v1617_v10  ;;  %v1622_v11 = vrot.slane %v1617_v10, 4  ;;  %v1841_v50 = vsel %vm18381_vm14, %v1612_v33, %v1840_v37  ;;  %v1644_v62 = vshll.u32 %v14413_v2, 16  ;;  %3647 = vmatprep.mubr.bf16.mxu1 %v14438_v45 }
 0x121   : > { %1842 = vst [vmem:[#allocation2 + $0xf4] sm:$0xf] %v1841_v50  ;;  %v1649_v0 = vshrl.u32 %v14414_v14, 16  ;;  %v1652_v18 = vshll.u32 %v14414_v14, 16  ;;  %15840 = vmatpush3.bf16.msra.mxu1 %v17530_v34  ;;  %v1643_v17 = vrot.slane %v1641_v46, 7  ;;  %3914 = vmatmul.mubr.bf16.vlgmr.msra.gmra.mrb[32].mxu0 %v14503_v59  ;;  %v2818_v16 = vrot.slane %v2816_v22, 4 }
 0x122   : > { %v1621_v7 = vsel %vm18093_vm3, %v1613_v60, %v1620_v4  ;;  %v1845_v13 = vsel %vm18391_vm15, %v1622_v11, %v1844_v38  ;;  %v1858_v36 = vld [vmem:[#allocation2 + $0x134] sm:$0x1]  ;;  %v18617_v6 = vld [vmem:[#allocation2 + $0xc0] sm:$0xff]  ;;  %15841 = vmatprep.subr.bf16.mxu1 %v17534_v57  ;;  %v2817_v47 = vsel %vm18346_vm11, %v14488_v56, %v2816_v22  ;;  %v2819_v48 = vrot.slane %v2713_v39, 5  ;;  %16168 = vmatpush3.bf16.msra.mxu0 %v17550_v49  ;;  %v17554_v1 = vld [vmem:[%s22583_s4 + $0x208] sm:$0xff]  }
 0x123   : > { %v17538_v45 = vld [vmem:[%s22583_s4 + $0xf0] sm:$0xff]   ;;  %1843 = vst [vmem:[#allocation2 + $0xfc] sm:$0xf] %v1621_v7  ;;  %1846 = vst [vmem:[#allocation2 + $0x104] sm:$0x1] %v1845_v13  ;;  %v1651_v32 = vrot.slane %v1649_v0, 7  ;;  %v14437_v59 = vcombine.low %v18564_v41, %v18566_v44  ;;  %v1646_v37 = vor.u32 %v1644_v62, %v1643_v17  ;;  %16169 = vmatprep.subr.bf16.mxu0 %v17553_v55 }
 0x124   : > { %v2716_v15 = vld [vmem:[#allocation2 + $0x40] sm:$0x11]  ;;  %v1647_v34 = vrot.slane %v1643_v17, 4  ;;  %v18633_v33 = vld [vmem:[#allocation2 + $0xc8] sm:$0xff]  ;;  %v14489_v52 = vrot.slane %v2714_v58, 9  ;;  %v2823_v9 = vrot.slane %v18479_v61, 5  ;;  %v2820_v22 = vsel %vm18346_vm11, %v2818_v16, %v2819_v48 }
 0x125   : > { %v1654_v60 = vor.u32 %v1652_v18, %v1651_v32  ;;  %v1656_v56 = vrot.slane %v1651_v32, 4  ;;  %v14440_v41 = vcombine.high %v18617_v6, %v18633_v33  ;;  %v2717_v10 = vld [vmem:[#allocation2 + $0x48] sm:$0xee]  ;;  %15842 = vmatpush3.bf16.msra.mxu1 %v17535_v40  ;;  %v17540_v38 = vld [vmem:[%s22583_s4 + $0xb0] sm:$0xff]   ;;  %v1855_v2 = vsel %vm18381_vm14, %v1646_v37, %v1854_v3  ;;  %v18645_v5 = vld [vmem:[#allocation2 + $0xd8] sm:$0xff] }
 0x126   : > { %v14506_v57 = vcombine.high %v2817_v47, %v2820_v22  ;;  %v14505_v61 = vcombine.low %v2817_v47, %v2820_v22  ;;  %v2826_v19 = vrot.slane %v2716_v15, 5  ;;  %15843 = vmatprep.subr.bf16.mxu1 %v17538_v45  ;;  %1856 = vst [vmem:[#allocation2 + $0x124] sm:$0xf] %v1855_v2  ;;  %v18653_v39 = vsel %vm18346_vm11, %v14489_v52, %v2823_v9  ;;  %v2719_v49 = vld [vmem:[#allocation2 + $0x58] sm:$0x11]  ;;  %v17555_v11 = vld [vmem:[%s22583_s4 + $0x250] sm:$0xff]  }
 0x127   : > { %v1655_v24 = vsel %vm18093_vm3, %v1647_v34, %v1654_v60  ;;  %v1859_v14 = vsel %vm18391_vm15, %v1656_v56, %v1858_v36  ;;  %v2825_v40 = vrot.slane %v2823_v9, 4  ;;  %v17544_v4 = vld [vmem:[%s22583_s4 + $0xf8] sm:$0xff]   ;;  %16170 = vmatpush3.bf16.msra.mxu0 %v17554_v1  ;;  %3648 = vmatmul.mubr.bf16.gmra.mrb[28].mxu1 %v14437_v59  ;;  %v14439_v50 = vcombine.low %v18617_v6, %v18633_v33  ;;  %v18663_v46 = vld [vmem:[#allocation2 + $0xe0] sm:$0xff] }
 0x128   : > { %1857 = vst [vmem:[#allocation2 + $0x12c] sm:$0xf] %v1655_v24  ;;  %1860 = vst [vmem:[#allocation2 + $0x134] sm:$0x1] %v1859_v14  ;;  %3921 = vmatprep.mubr.bf16.mxu0 %v14506_v57  ;;  %v641_v55 = vadd.f32 %v18453_v53, %v18332_v28  ;;  %v643_v62 = vadd.f32 %v18457_v63, %v18336_v30  ;;  %v14490_v0 = vrot.slane %v2717_v10, 9  ;;  %3655 = vmatprep.mubr.bf16.mxu1 %v14440_v41  ;;  %v17545_v53 = vld [vmem:[%s22583_s4 + $0xb8] sm:$0xff]  }
 0x129   : > { %v18671_v18 = vsel %vm18346_vm11, %v2825_v40, %v2826_v19  ;;  %v14442_v3 = vcombine.high %v18645_v5, %v18663_v46  ;;  %v645_v58 = vadd.f32 %v18461_v26, %v18332_v28  ;;  %v2830_v7 = vrot.slane %v18500_v51, 5  ;;  %15844 = vmatpush3.bf16.msra.mxu1 %v17540_v38  ;;  %v17557_v63 = vld [vmem:[%s22583_s4 + $0x210] sm:$0xff]   ;;  %3922 = vmatmul.mubr.bf16.gmra.mrb[36].mxu0 %v14505_v61  ;;  %v17547_v51 = vld [vmem:[%s22583_s4 + $0x1c0] sm:$0xff]   ;;  %v17559_v16 = vld [vmem:[%s22583_s4 + $0x258] sm:$0xff]  }
 0x12a   : > { %v14508_v13 = vcombine.high %v18653_v39, %v18671_v18  ;;  %v15715_v17 = vpack.i.bf16 %v643_v62, %v641_v55  ;;  %v2833_v36 = vrot.slane %v2719_v49, 5  ;;  %v647_v28 = vadd.f32 %v18467_v21, %v18336_v30  ;;  %v18688_v26 = vld [vmem:[#allocation2 + $0xf0] sm:$0xff]  ;;  %15845 = vmatprep.subr.bf16.mxu1 %v17544_v4  ;;  %16171 = vmatprep.subr.bf16.mxu0 %v17555_v11  ;;  %v18704_v59 = vld [vmem:[#allocation2 + $0xf8] sm:$0xff]  ;;  %v17561_v22 = vld [vmem:[%s22583_s4 + $0x260] sm:$0xff]  }
 0x12b   : > { %v14507_v6 = vcombine.low %v18653_v39, %v18671_v18  ;;  %v18700_v45 = vsel %vm18346_vm11, %v14490_v0, %v2830_v7  ;;  %v2832_v32 = vrot.slane %v2830_v7, 4  ;;  %v14441_v30 = vcombine.low %v18645_v5, %v18663_v46  ;;  %v17560_v1 = vld [vmem:[%s22583_s4 + $0x218] sm:$0xff]   ;;  %16172 = vmatpush3.bf16.msra.mxu0 %v17557_v63  ;;  %v1865_v10 = vld [vmem:[#allocation2 + $0x14c] sm:$0x1]  ;;  %v2720_v14 = vld [vmem:[#allocation2 + $0x60] sm:$0xee] }
 0x12c   : > { %3929 = vmatprep.mubr.bf16.mxu0 %v14508_v13  ;;  %v14415_v21 = vcombine.low %v15715_v17, %v15715_v17  ;;  %v14416_v47 = vcombine.high %v15715_v17, %v15715_v17  ;;  %v15717_v48 = vpack.i.bf16 %v647_v28, %v645_v58  ;;  %v714_v15 = vadd.f32 %v18455_v54, %v18334_v29  ;;  %v1861_v41 = vld [vmem:[#allocation2 + $0x13c] sm:$0xf]  ;;  %v1875_v0 = vld [vmem:[#allocation2 + $0x16c] sm:$0xf] }
 0x12d   : > { %v18713_v37 = vsel %vm18346_vm11, %v2832_v32, %v2833_v36  ;;  %v14444_v34 = vcombine.high %v18688_v26, %v18704_v59  ;;  %v716_v52 = vadd.f32 %v18459_v25, %v18338_v31  ;;  %15846 = vmatpush3.bf16.msra.mxu1 %v17545_v53  ;;  %16173 = vmatprep.subr.bf16.mxu0 %v17559_v16  ;;  %v2837_v39 = vrot.slane %v18481_v12, 5  ;;  %v17563_v12 = vld [vmem:[%s22583_s4 + $0x268] sm:$0xff]   ;;  %v1879_v58 = vld [vmem:[#allocation2 + $0x17c] sm:$0x1]  ;;  %v2722_v36 = vld [vmem:[#allocation2 + $0x70] sm:$0x11] }
 0x12e   : > { %v1658_v9 = vshrl.u32 %v14415_v21, 16  ;;  %v1661_v60 = vshll.u32 %v14415_v21, 16  ;;  %v1666_v56 = vshrl.u32 %v14416_v47, 16  ;;  %v1669_v54 = vshll.u32 %v14416_v47, 16  ;;  %16055 = vmatprep.subr.bf16.mxu1 %v17547_v51  ;;  %v18741_v51 = vld [vmem:[#allocation2 + $0x80] sm:$0xff]  ;;  %v17564_v16 = vld [vmem:[%s22583_s4 + $0x228] sm:$0xff]  }
 0x12f   : > { %v14419_v38 = vcombine.low %v15717_v48, %v15717_v48  ;;  %v14420_v2 = vcombine.high %v15717_v48, %v15717_v48  ;;  %v15716_v57 = vpack.i.bf16 %v716_v52, %v714_v15  ;;  %v18724_v25 = vadd.f32 %v18463_v8, %v18334_v29  ;;  %3656 = vmatmul.mubr.bf16.gmra.mrb[32].mxu1 %v14439_v50  ;;  %v17562_v29 = vld [vmem:[%s22583_s4 + $0x220] sm:$0xff]  }
 0x130   : > { %v1660_v61 = vrot.slane %v1658_v9, 7  ;;  %v1668_v19 = vrot.slane %v1666_v56, 7  ;;  %v14510_v24 = vcombine.high %v18700_v45, %v18713_v37  ;;  %3663 = vmatprep.mubr.bf16.mxu1 %v14442_v3  ;;  %16174 = vmatpush3.bf16.msra.mxu0 %v17560_v1  ;;  %v14491_v28 = vrot.slane %v2720_v14, 9  ;;  %v17565_v9 = vld [vmem:[%s22583_s4 + $0x270] sm:$0xff]  }
 0x131   : > { %v1692_v40 = vshrl.u32 %v14419_v38, 16  ;;  %v1695_v49 = vshll.u32 %v14419_v38, 16  ;;  %v1700_v4 = vshrl.u32 %v14420_v2, 16  ;;  %v1703_v11 = vshll.u32 %v14420_v2, 16  ;;  %3930 = vmatmul.mubr.bf16.gmra.mrb[40].mxu0 %v14507_v6  ;;  %16175 = vmatprep.subr.bf16.mxu0 %v17561_v22  ;;  %v1868_v38 = vld [vmem:[#allocation2 + $0x154] sm:$0xf] }
 0x132   : > { %v1663_v8 = vor.u32 %v1661_v60, %v1660_v61  ;;  %v1664_v50 = vrot.slane %v1660_v61, 4  ;;  %v1671_v55 = vor.u32 %v1669_v54, %v1668_v19  ;;  %v1673_v62 = vrot.slane %v1668_v19, 4  ;;  %3937 = vmatprep.mubr.bf16.mxu0 %v14510_v24  ;;  %v2723_v61 = vld [vmem:[#allocation2 + $0x78] sm:$0xee]  ;;  %v1872_v19 = vld [vmem:[#allocation2 + $0x164] sm:$0x1] }
 0x133   : > { %v1694_v18 = vrot.slane %v1692_v40, 7  ;;  %v1702_v3 = vrot.slane %v1700_v4, 7  ;;  %v14417_v7 = vcombine.low %v15716_v57, %v15716_v57  ;;  %v14418_v53 = vcombine.high %v15716_v57, %v15716_v57  ;;  %v2725_v40 = vld [vmem:[#allocation2 + $0x88] sm:$0x11] }
 0x134   : > { %v1672_v63 = vsel %vm18093_vm3, %v1664_v50, %v1671_v55  ;;  %v1862_v13 = vsel %vm18381_vm14, %v1663_v8, %v1861_v41  ;;  %v1866_v17 = vsel %vm18391_vm15, %v1673_v62, %v1865_v10  ;;  %16176 = vmatpush3.bf16.msra.mxu0 %v17562_v29  ;;  %v2839_v22 = vrot.slane %v2837_v39, 4  ;;  %v1911_v4 = vld [vmem:[#allocation2 + $0x108] sm:$0xff] }
 0x135   : > { %1863 = vst [vmem:[#allocation2 + $0x13c] sm:$0xf] %v1862_v13  ;;  %1864 = vst [vmem:[#allocation2 + $0x144] sm:$0xf] %v1672_v63  ;;  %v1697_v6 = vor.u32 %v1695_v49, %v1694_v18  ;;  %v1698_v32 = vrot.slane %v1694_v18, 4  ;;  %v1705_v21 = vor.u32 %v1703_v11, %v1702_v3  ;;  %v1707_v47 = vrot.slane %v1702_v3, 4  ;;  %16177 = vmatprep.subr.bf16.mxu0 %v17563_v12 }
 0x136   : > { %1867 = vst [vmem:[#allocation2 + $0x14c] sm:$0x1] %v1866_v17  ;;  %v1675_v48 = vshrl.u32 %v14417_v7, 16  ;;  %v1678_v15 = vshll.u32 %v14417_v7, 16  ;;  %v1683_v1 = vshrl.u32 %v14418_v53, 16  ;;  %v1686_v52 = vshll.u32 %v14418_v53, 16 }
 0x137   : > { %v1706_v60 = vsel %vm18093_vm3, %v1698_v32, %v1705_v21  ;;  %v1876_v56 = vsel %vm18381_vm14, %v1697_v6, %v1875_v0  ;;  %v1880_v54 = vsel %vm18391_vm15, %v1707_v47, %v1879_v58  ;;  %3664 = vmatmul.mubr.bf16.gmra.mrb[36].mxu1 %v14441_v30  ;;  %v14509_v2 = vcombine.low %v18700_v45, %v18713_v37  ;;  %v17567_v45 = vld [vmem:[%s22583_s4 + $0x230] sm:$0xff]   ;;  %v17570_v3 = vld [vmem:[%s22583_s4 + $0x238] sm:$0xff]  }
 0x138   : > { %1877 = vst [vmem:[#allocation2 + $0x16c] sm:$0xf] %v1876_v56  ;;  %1878 = vst [vmem:[#allocation2 + $0x174] sm:$0xf] %v1706_v60  ;;  %v1677_v41 = vrot.slane %v1675_v48, 7  ;;  %v1685_v10 = vrot.slane %v1683_v1, 7  ;;  %v720_v57 = vadd.f32 %v18469_v27, %v18338_v31  ;;  %3671 = vmatprep.mubr.bf16.mxu1 %v14444_v34  ;;  %v2838_v24 = vsel %vm18346_vm11, %v14491_v28, %v2837_v39 }
 0x139   : > { %1881 = vst [vmem:[#allocation2 + $0x17c] sm:$0x1] %v1880_v54  ;;  %v2840_v5 = vrot.slane %v2722_v36, 5  ;;  %v2844_v30 = vrot.slane %v18741_v51, 5  ;;  %16178 = vmatpush3.bf16.msra.mxu0 %v17564_v16  ;;  %v17569_v34 = vld [vmem:[%s22583_s4 + $0x278] sm:$0xff]   ;;  %v14492_v11 = vrot.slane %v2723_v61, 9  ;;  %v14443_v58 = vcombine.low %v18688_v26, %v18704_v59 }
 0x13a   : > { %v1680_v37 = vor.u32 %v1678_v15, %v1677_v41  ;;  %v1681_v14 = vrot.slane %v1677_v41, 4  ;;  %v1688_v31 = vor.u32 %v1686_v52, %v1685_v10  ;;  %v1690_v27 = vrot.slane %v1685_v10, 4  ;;  %3938 = vmatmul.mubr.bf16.gmra.mrb[44].mxu0 %v14509_v2  ;;  %16179 = vmatprep.subr.bf16.mxu0 %v17565_v9  ;;  %v18783_v18 = vld [vmem:[#allocation2 + $0x110] sm:$0xff]  ;;  %v2728_v16 = vld [vmem:[#allocation2 + $0xa0] sm:$0x11]  ;;  %v18803_v61 = vld [vmem:[#allocation2 + $0x128] sm:$0xff] }
 0x13b   : > { %v2841_v39 = vsel %vm18346_vm11, %v2839_v22, %v2840_v5  ;;  %v15718_v49 = vpack.i.bf16 %v720_v57, %v18724_v25  ;;  %v2846_v29 = vrot.slane %v2844_v30, 4  ;;  %v2847_v25 = vrot.slane %v2725_v40, 5  ;;  %v2726_v53 = vld [vmem:[#allocation2 + $0x90] sm:$0xee]  ;;  %v1882_v48 = vld [vmem:[#allocation2 + $0x184] sm:$0xf] }
 0x13c   : > { %v1689_v8 = vsel %vm18093_vm3, %v1681_v14, %v1688_v31  ;;  %v1869_v50 = vsel %vm18381_vm14, %v1680_v37, %v1868_v38  ;;  %v1873_v55 = vsel %vm18391_vm15, %v1690_v27, %v1872_v19  ;;  %v14512_v62 = vcombine.high %v2838_v24, %v2841_v39  ;;  %v1913_v41 = vld [vmem:[#allocation2 + $0x120] sm:$0xff]  ;;  %v2729_v14 = vld [vmem:[#allocation2 + $0xa8] sm:$0xee]  ;;  %v2731_v31 = vld [vmem:[#allocation2 + $0xb8] sm:$0x11] }
 0x13d   : > { %1870 = vst [vmem:[#allocation2 + $0x154] sm:$0xf] %v1869_v50  ;;  %1871 = vst [vmem:[#allocation2 + $0x15c] sm:$0xf] %v1689_v8  ;;  %v14421_v0 = vcombine.low %v15718_v49, %v15718_v49  ;;  %v14422_v12 = vcombine.high %v15718_v49, %v15718_v49  ;;  %16180 = vmatpush3.bf16.msra.mxu0 %v17567_v45  ;;  %v14446_v7 = vcombine.high %v1911_v4, %v18783_v18  ;;  %v1915_v27 = vld [vmem:[#allocation2 + $0x138] sm:$0xff] }
 0x13e   : > { %1874 = vst [vmem:[#allocation2 + $0x164] sm:$0x1] %v1873_v55  ;;  %3945 = vmatprep.mubr.bf16.mxu0 %v14512_v62  ;;  %v2851_v63 = vrot.slane %v18535_v43, 5  ;;  %16181 = vmatprep.subr.bf16.mxu0 %v17569_v34  ;;  %v14511_v6 = vcombine.low %v2838_v24, %v2841_v39  ;;  %v2845_v32 = vsel %vm18346_vm11, %v14492_v11, %v2844_v30  ;;  %v1886_v43 = vld [vmem:[#allocation2 + $0x194] sm:$0x1]  ;;  %v14493_v1 = vrot.slane %v2726_v53, 9 }
 0x13f   : > { %v1709_v13 = vshrl.u32 %v14421_v0, 16  ;;  %v1712_v17 = vshll.u32 %v14421_v0, 16  ;;  %v1717_v36 = vshrl.u32 %v14422_v12, 16  ;;  %v1720_v28 = vshll.u32 %v14422_v12, 16  ;;  %3672 = vmatmul.mubr.bf16.gmra.mrb[40].mxu1 %v14443_v58  ;;  %v18811_v34 = vld [vmem:[#allocation2 + $0x140] sm:$0xff] }
 0x140   : > { %v2848_v21 = vsel %vm18346_vm11, %v2846_v29, %v2847_v25  ;;  %3679 = vmatprep.mubr.bf16.mxu1 %v14446_v7  ;;  %v2853_v52 = vrot.slane %v2851_v63, 4  ;;  %v2854_v9 = vrot.slane %v2728_v16, 5  ;;  %v14445_v57 = vcombine.low %v1911_v4, %v18783_v18  ;;  %v2732_v8 = vld [vmem:[#allocation2 + $0xc0] sm:$0xee]  ;;  %v2734_v50 = vld [vmem:[#allocation2 + $0xd0] sm:$0x11] }
 0x141   : > { %v1711_v26 = vrot.slane %v1709_v13, 7  ;;  %v1719_v47 = vrot.slane %v1717_v36, 7  ;;  %v14514_v15 = vcombine.high %v2845_v32, %v2848_v21  ;;  %16182 = vmatpush3.bf16.msra.mxu0 %v17570_v3  ;;  %v2852_v19 = vsel %vm18346_vm11, %v14493_v1, %v2851_v63  ;;  %v17814_v0 = vld [vmem:[#allocation2] sm:$0xff] }
 0x142   : > { %3946 = vmatmul.mubr.bf16.gmra.mrb[48].mxu0 %v14511_v6  ;;  %v2855_v24 = vsel %vm18346_vm11, %v2853_v52, %v2854_v9  ;;  %v2858_v5 = vrot.slane %v18566_v44, 5  ;;  %v14448_v30 = vcombine.high %v1913_v41, %v18803_v61  ;;  %v14513_v45 = vcombine.low %v2845_v32, %v2848_v21  ;;  %v2115_v6 = vld [vmem:[#allocation2 + $0x10] sm:$0x11] }
 0x143   : > { %v1714_v60 = vor.u32 %v1712_v17, %v1711_v26  ;;  %v1715_v56 = vrot.slane %v1711_v26, 4  ;;  %v1722_v54 = vor.u32 %v1720_v28, %v1719_v47  ;;  %v1724_v22 = vrot.slane %v1719_v47, 4  ;;  %3953 = vmatprep.mubr.bf16.mxu0 %v14514_v15  ;;  %v2735_v28 = vld [vmem:[#allocation2 + $0xd8] sm:$0xee]  ;;  %v2737_v47 = vld [vmem:[#allocation2 + $0xe8] sm:$0x11] }
 0x144   : > { %v14516_v37 = vcombine.high %v2852_v19, %v2855_v24  ;;  %v2860_v40 = vrot.slane %v2858_v5, 4  ;;  %v14494_v39 = vrot.slane %v2729_v14, 9  ;;  %v2861_v49 = vrot.slane %v2731_v31, 5  ;;  %v1917_v58 = vld [vmem:[#allocation2 + $0x150] sm:$0xff]  ;;  %v18820_v13 = vld [vmem:[#allocation2 + $0x158] sm:$0xff]  ;;  %v2117_v15 = vld [vmem:[#allocation2 + $0x20] sm:$0xff] }
 0x145   : > { %v1723_v10 = vsel %vm18093_vm3, %v1715_v56, %v1722_v54  ;;  %v1883_v38 = vsel %vm18381_vm14, %v1714_v60, %v1882_v48  ;;  %v1887_v2 = vsel %vm18391_vm15, %v1724_v22, %v1886_v43  ;;  %v14450_v4 = vcombine.high %v1915_v27, %v18811_v34  ;;  %v2116_v48 = vld [vmem:[#allocation2 + $0x18] sm:$0xff]  ;;  %v18837_v14 = vld [vmem:[#allocation2 + $0x170] sm:$0xff] }
 0x146   : > { %1884 = vst [vmem:[#allocation2 + $0x184] sm:$0xf] %v1883_v38  ;;  %1885 = vst [vmem:[#allocation2 + $0x18c] sm:$0xf] %v1723_v10  ;;  %v14447_v44 = vcombine.low %v1913_v41, %v18803_v61  ;;  %v2862_v11 = vsel %vm18346_vm11, %v2860_v40, %v2861_v49  ;;  %v2865_v29 = vrot.slane %v18633_v33, 5  ;;  %v14515_v55 = vcombine.low %v2852_v19, %v2855_v24 }
 0x147   : > { %1888 = vst [vmem:[#allocation2 + $0x194] sm:$0x1] %v1887_v2  ;;  %3680 = vmatmul.mubr.bf16.gmra.mrb[44].mxu1 %v14445_v57  ;;  %v2859_v62 = vsel %vm18346_vm11, %v14494_v39, %v2858_v5  ;;  %v2165_v12 = vshrl.u32 %v17814_v0, 16  ;;  %v2168_v25 = vshll.u32 %v17814_v0, 16  ;;  %v14495_v7 = vrot.slane %v2732_v8, 9  ;;  %v1919_v2 = vld [vmem:[#allocation2 + $0x168] sm:$0xff] }
 0x148   : > { %3687 = vmatprep.mubr.bf16.mxu1 %v14448_v30  ;;  %v14518_v3 = vcombine.high %v2859_v62, %v2862_v11  ;;  %v2867_v53 = vrot.slane %v2865_v29, 4  ;;  %v2868_v63 = vrot.slane %v2734_v50, 5  ;;  %v14452_v36 = vcombine.high %v1917_v58, %v18820_v13  ;;  %v2738_v24 = vld [vmem:[#allocation2 + $0xf0] sm:$0xee]  ;;  %v2120_v8 = vld [vmem:[#allocation2 + $0x38] sm:$0xff] }
 0x149   : > { %v2167_v33 = vrot.slane %v2165_v12, 4  ;;  %v2170_v17 = vrot.slane %v2168_v25, 5  ;;  %v2872_v16 = vrot.slane %v18663_v46, 5  ;;  %v14449_v32 = vcombine.low %v1915_v27, %v18811_v34  ;;  %v2118_v12 = vld [vmem:[#allocation2 + $0x28] sm:$0x11]  ;;  %v18854_v25 = vpop.f32.mrb[16].mxu0 }
 0x14a   : > { %3954 = vmatmul.mubr.bf16.gmra.mrb[52].mxu0 %v14513_v45  ;;  %v2866_v21 = vsel %vm18346_vm11, %v14495_v7, %v2865_v29  ;;  %v2869_v26 = vsel %vm18346_vm11, %v2867_v53, %v2868_v63  ;;  %v14517_v43 = vcombine.low %v2859_v62, %v2862_v11  ;;  %v14496_v1 = vrot.slane %v2735_v28, 9  ;;  %v2740_v45 = vld [vmem:[#allocation2 + $0x100] sm:$0x11]  ;;  %v2119_v29 = vld [vmem:[#allocation2 + $0x30] sm:$0xff]  ;;  %v2741_v7 = vld [vmem:[#allocation2 + $0x108] sm:$0xee] }
 0x14b   : > { %3961 = vmatprep.mubr.bf16.mxu0 %v14516_v37  ;;  %v2171_v52 = vor.u32 %v2170_v17, %v2167_v33  ;;  %v2184_v9 = vshll.u32 %v2115_v6, 16  ;;  %v14520_v60 = vcombine.high %v2866_v21, %v2869_v26  ;;  %v2874_v46 = vrot.slane %v2872_v16, 4  ;;  %v2743_v53 = vld [vmem:[#allocation2 + $0x118] sm:$0x11]  ;;  %v18857_v33 = vpop.f32.mrb[17].mxu0 }
 0x14c   : > { %v2875_v56 = vrot.slane %v2737_v47, 5  ;;  %v2189_v54 = vshrl.u32 %v2116_v48, 16  ;;  %v2192_v22 = vshll.u32 %v2116_v48, 16  ;;  %v2198_v41 = vshll.u32 %v2117_v15, 16  ;;  %v18859_v6 = vpop.f32.mrb[18].mxu0 }
 0x14d   : > { %v2202_v10 = vshrl.u32 %v2117_v15, 16  ;;  %v14451_v38 = vcombine.low %v1917_v58, %v18820_v13  ;;  %v18832_v57 = vsel %vm18346_vm11, %v14496_v1, %v2872_v16  ;;  %v2172_v19 = vrot.slane %v2171_v52, 4 }
 0x14e   : > { %v2876_v5 = vsel %vm18346_vm11, %v2874_v46, %v2875_v56  ;;  %v2186_v30 = vrot.slane %v2184_v9, 5  ;;  %v2879_v37 = vrot.slane %v18704_v59, 5  ;;  %v2191_v31 = vrot.slane %v2189_v54, 4 }
 0x14f   : > { %3688 = vmatmul.mubr.bf16.gmra.mrb[48].mxu1 %v14447_v44  ;;  %v2194_v27 = vrot.slane %v2192_v22, 5  ;;  %v2200_v40 = vrot.slane %v2198_v41, 5  ;;  %v2204_v39 = vrot.slane %v2202_v10, 4  ;;  %v14454_v49 = vcombine.high %v1919_v2, %v18837_v14 }
 0x150   : > { %3695 = vmatprep.mubr.bf16.mxu1 %v14450_v4  ;;  %v22626_v4 = vmov 0  ;;  %v14519_v44 = vcombine.low %v2866_v21, %v2869_v26  ;;  %v18847_v11 = vsel %vm18841_vm2, %v2172_v19, %v2170_v17  ;;  %v14497_v59 = vrot.slane %v2738_v24, 9  ;;  %v18864_v26 = vpop.f32.mrb[19].mxu0  ;;  %v2123_v24 = vld [vmem:[#allocation2 + $0x50] sm:$0xff] }
 0x151   : > { %v22627_v4 = vsel %vm18841_vm2, 4294967295, %v22626_v4  ;;  %v14522_v50 = vcombine.high %v18832_v57, %v2876_v5  ;;  %v2881_v62 = vrot.slane %v2879_v37, 4  ;;  %v2882_v0 = vrot.slane %v2740_v45, 5 }
 0x152   : > { %3962 = vmatmul.mubr.bf16.gmra.mrb[56].mxu0 %v14515_v55  ;;  %22628 = vst [vmem:[#allocation10_spill] sm:$0xff] %v22627_v4  ;;  %v18852_v55 = vsel %vm18841_vm2, %v2172_v19, %v2186_v30  ;;  %v2205_v58 = vor.u32 %v2204_v39, %v2200_v40  ;;  %v2886_v63 = vrot.slane %v18783_v18, 5  ;;  %v2213_v17 = vshrl.u32 %v2119_v29, 16  ;;  %v2122_v19 = vld [vmem:[#allocation2 + $0x48] sm:$0xff]  ;;  %v2744_v39 = vld [vmem:[#allocation2 + $0x120] sm:$0xee] }
 0x153   : > { %3969 = vmatprep.mubr.bf16.mxu0 %v14518_v3  ;;  %v2195_v3 = vor.u32 %v2194_v27, %v2191_v31  ;;  %v2222_v28 = vshll.u32 %v2120_v8, 16  ;;  %v2226_v16 = vshrl.u32 %v2120_v8, 16  ;;  %v14456_v21 = vcombine.high %v18847_v11, %v18852_v55  ;;  %v17548_v8 = vld [vmem:[%s22583_s4 + $0x180] sm:$0xff]  }
 0x154   : > { %v18868_v47 = vsel %vm18346_vm11, %v14497_v59, %v2879_v37  ;;  %v18872_v18 = vsel %vm18346_vm11, %v2881_v62, %v2882_v0  ;;  %v2208_v48 = vshll.u32 %v2118_v12, 16  ;;  %v14498_v15 = vrot.slane %v2741_v7, 9  ;;  %v17551_v12 = vld [vmem:[%s22583_s4 + $0x1c8] sm:$0xff]  }
 0x155   : > { %v18874_v1 = vrot.slane %v2205_v58, 4  ;;  %v2888_v52 = vrot.slane %v2886_v63, 4  ;;  %v2889_v9 = vrot.slane %v2743_v53, 5  ;;  %v2215_v46 = vrot.slane %v2213_v17, 4  ;;  %v2126_v58 = vld [vmem:[#allocation2 + $0x68] sm:$0xff] }
 0x156   : > { %v2224_v54 = vrot.slane %v2222_v28, 5  ;;  %v2228_v22 = vrot.slane %v2226_v16, 4  ;;  %v14521_v41 = vcombine.low %v18832_v57, %v2876_v5  ;;  %v14455_v10 = vcombine.low %v18847_v11, %v18852_v55 }
 0x157   : > { %3696 = vmatmul.mubr.bf16.gmra.mrb[52].mxu1 %v14449_v32  ;;  %v14453_v32 = vcombine.low %v1919_v2, %v18837_v14  ;;  %v2210_v2 = vrot.slane %v2208_v48, 5  ;;  %v18887_v45 = vsel %vm18346_vm11, %v14498_v15, %v2886_v63  ;;  %v18891_v57 = vsel %vm18346_vm11, %v2888_v52, %v2889_v9  ;;  %v17586_v52 = vld [vmem:[%s22583_s4 + $0x340] sm:$0xff]  }
 0x158   : > { %3703 = vmatprep.mubr.bf16.mxu1 %v14452_v36  ;;  %v2216_v36 = vshll.u32 %v2119_v29, 16  ;;  %v2229_v27 = vor.u32 %v2228_v22, %v2224_v54  ;;  %v2240_v11 = vshll.u32 %v2122_v19, 16  ;;  %v2246_v59 = vshll.u32 %v2123_v24, 16  ;;  %16391 = vmatprep.subr.bf16.mxu0 %v17586_v52  ;;  %v2752_v52 = vld [vmem:[#allocation2 + $0x160] sm:$0x11] }
 0x159   : > { %v18896_v37 = vsel %vm18841_vm2, %v18874_v1, %v2210_v2  ;;  %v2250_v29 = vshrl.u32 %v2123_v24, 16  ;;  %v14526_v62 = vcombine.high %v18887_v45, %v18891_v57  ;;  %v2270_v15 = vshll.u32 %v2126_v58, 16 }
 0x15a   : > { %3970 = vmatmul.mubr.bf16.gmra.mrb[60].mxu0 %v14517_v43  ;;  %v2196_v43 = vrot.slane %v2195_v3, 4  ;;  %v2218_v56 = vrot.slane %v2216_v36, 5  ;;  %v2125_v3 = vld [vmem:[#allocation2 + $0x60] sm:$0xff]  ;;  %v18911_v53 = vrot.slane %v2229_v27, 4  ;;  %v2124_v36 = vld [vmem:[#allocation2 + $0x58] sm:$0x11] }
 0x15b   : > { %3977 = vmatprep.mubr.bf16.mxu0 %v14520_v60  ;;  %v2121_v60 = vld [vmem:[#allocation2 + $0x40] sm:$0x11]  ;;  %v2242_v16 = vrot.slane %v2240_v11, 5  ;;  %v2264_v48 = vshll.u32 %v2125_v3, 16  ;;  %v2900_v2 = vrot.slane %v18811_v34, 5 }
 0x15c   : > { %v18883_v30 = vsel %vm18841_vm2, %v2196_v43, %v2200_v40  ;;  %v2232_v5 = vshll.u32 %v2121_v60, 16  ;;  %v2219_v31 = vor.u32 %v2218_v56, %v2215_v46  ;;  %v2893_v40 = vrot.slane %v18803_v61, 5  ;;  %v17556_v60 = vld [vmem:[%s22583_s4 + $0x1d0] sm:$0xff]  }
 0x15d   : > { %v14458_v55 = vcombine.high %v18883_v30, %v18896_v37  ;;  %v14499_v61 = vrot.slane %v2744_v39, 9  ;;  %v2274_v43 = vshrl.u32 %v2126_v58, 16  ;;  %v14457_v39 = vcombine.low %v18883_v30, %v18896_v37 }
 0x15e   : > { %v2234_v0 = vrot.slane %v2232_v5, 5  ;;  %v2220_v7 = vrot.slane %v2219_v31, 4  ;;  %v2895_v63 = vrot.slane %v2893_v40, 4  ;;  %v2266_v5 = vrot.slane %v2264_v48, 5  ;;  %v2750_v48 = vld [vmem:[#allocation2 + $0x150] sm:$0xee] }
 0x15f   : > { %3704 = vmatmul.mubr.bf16.gmra.mrb[56].mxu1 %v14451_v38  ;;  %v14524_v38 = vcombine.high %v18868_v47, %v18872_v18  ;;  %v18921_v9 = vsel %vm18346_vm11, %v14499_v61, %v2893_v40  ;;  %v2272_v31 = vrot.slane %v2270_v15, 5  ;;  %v2276_v27 = vrot.slane %v2274_v43, 4  ;;  %v2749_v40 = vld [vmem:[#allocation2 + $0x148] sm:$0x11] }
 0x160   : > { %3711 = vmatprep.mubr.bf16.mxu1 %v14454_v49  ;;  %v2746_v49 = vld [vmem:[#allocation2 + $0x130] sm:$0x11]  ;;  %v18928_v46 = vsel %vm18841_vm2, %v2220_v7, %v2224_v54  ;;  %v18933_v56 = vsel %vm18841_vm2, %v18911_v53, %v2234_v0  ;;  %v2294_v58 = vshll.u32 %v18741_v51, 16  ;;  %v2298_v7 = vshrl.u32 %v18741_v51, 16  ;;  %v17573_v43 = vld [vmem:[%s22583_s4 + $0x1e8] sm:$0xff]  }
 0x161   : > { %v2896_v17 = vrot.slane %v2746_v49, 5  ;;  %v17558_v54 = vld [vmem:[%s22583_s4 + $0x190] sm:$0xff]   ;;  %v17566_v49 = vld [vmem:[%s22583_s4 + $0x1d8] sm:$0xff]   ;;  %v14460_v34 = vcombine.high %v18928_v46, %v18933_v56  ;;  %v2907_v15 = vrot.slane %v18820_v13, 5  ;;  %v14501_v13 = vrot.slane %v2750_v48, 9 }
 0x162   : > { %3978 = vmatmul.mubr.bf16.gmra.mrb[64].mxu0 %v14519_v44  ;;  %v2237_v44 = vshrl.u32 %v2122_v19, 16  ;;  %v2747_v19 = vld [vmem:[#allocation2 + $0x138] sm:$0xee]  ;;  %v2127_v0 = vld [vmem:[#allocation2 + $0x70] sm:$0x11] }
 0x163   : > { %3985 = vmatprep.mubr.bf16.mxu0 %v14522_v50  ;;  %v14523_v50 = vcombine.low %v18868_v47, %v18872_v18  ;;  %v17552_v47 = vld [vmem:[%s22583_s4 + $0x188] sm:$0xff]   ;;  %v2261_v18 = vshrl.u32 %v2125_v3, 16  ;;  %v18937_v22 = vsel %vm18346_vm11, %v2895_v63, %v2896_v17  ;;  %v17571_v63 = vld [vmem:[%s22583_s4 + $0x1e0] sm:$0xff]   ;;  %v14459_v17 = vcombine.low %v18928_v46, %v18933_v56  ;;  %v17577_v48 = vld [vmem:[%s22583_s4 + $0x1f8] sm:$0xff]  }
 0x164   : > { %v2239_v28 = vrot.slane %v2237_v44, 4  ;;  %v14525_v44 = vcombine.low %v18887_v45, %v18891_v57  ;;  %v14528_v11 = vcombine.high %v18921_v9, %v18937_v22  ;;  %v17568_v45 = vld [vmem:[%s22583_s4 + $0x198] sm:$0xff]  }
 0x165   : > { %v2263_v24 = vrot.slane %v2261_v18, 4 }
 0x167   : > { %3712 = vmatmul.mubr.bf16.gmra.mrb[60].mxu1 %v14453_v32  ;;  %v2248_v32 = vrot.slane %v2246_v59, 5  ;;  %v2128_v59 = vld [vmem:[#allocation2 + $0x78] sm:$0xff]  ;;  %v2267_v61 = vor.u32 %v2266_v5, %v2263_v24 }
 0x168   : > { %3752 = vmatprep.mubr.bf16.mxu1 %v14456_v21  ;;  %v2252_v21 = vrot.slane %v2250_v29, 4  ;;  %v2285_v57 = vshrl.u32 %v2128_v59, 16  ;;  %v2288_v3 = vshll.u32 %v2128_v59, 16  ;;  %v2132_v24 = vld [vmem:[#allocation2 + $0x98] sm:$0xff]  ;;  %v17575_v59 = vld [vmem:[%s22583_s4 + $0x1f0] sm:$0xff]  }
 0x16a   : > { %3986 = vmatmul.mubr.bf16.gmra.mrb[68].mxu0 %v14521_v41  ;;  %v2243_v41 = vor.u32 %v2242_v16, %v2239_v28  ;;  %v2280_v16 = vshll.u32 %v2127_v0, 16  ;;  %v2290_v56 = vrot.slane %v2288_v3, 5 }
 0x16b   : > { %3993 = vmatprep.mubr.bf16.mxu0 %v14524_v38  ;;  %v2256_v38 = vshll.u32 %v2124_v36, 16 }
 0x16c   : > { %v2244_v29 = vrot.slane %v2243_v41, 4  ;;  %v2296_v41 = vrot.slane %v2294_v58, 5 }
 0x16d   : > { %v2258_v37 = vrot.slane %v2256_v38, 5 }
 0x16e   : > { %v18968_v36 = vsel %vm18841_vm2, %v2244_v29, %v2248_v32  ;;  %v2755_v29 = vld [vmem:[#allocation2 + $0x178] sm:$0x11] }
 0x16f   : > { %3753 = vmatmul.mubr.bf16.vlgmr.msra.gmra.mrb[64].mxu1 %v14455_v10  ;;  %v2253_v10 = vor.u32 %v2252_v21, %v2248_v32  ;;  %v17572_v21 = vld [vmem:[%s22583_s4 + $0x1a0] sm:$0xff]   ;;  %v2268_v32 = vrot.slane %v2267_v61, 4  ;;  %v19018_v61 = vsel %vm18346_vm11, %v14501_v13, %v2907_v15 }
 0x170   : > { %16056 = vmatpush3.bf16.msra.mxu1 %v17548_v8  ;;  %3760 = vmatprep.mubr.bf16.mxu1 %v14458_v55  ;;  %v2902_v55 = vrot.slane %v2900_v2, 4 }
 0x171   : > { %16057 = vmatprep.subr.bf16.mxu1 %v17551_v12  ;;  %v18954_v8 = vrot.slane %v2253_v10, 4  ;;  %v2277_v12 = vor.u32 %v2276_v27, %v2272_v31  ;;  %v2300_v10 = vrot.slane %v2298_v7, 4  ;;  %v19000_v27 = vsel %vm18841_vm2, %v2268_v32, %v2272_v31 }
 0x172   : > { %3994 = vmatmul.mubr.bf16.gmra.mrb[72].mxu0 %v14523_v50  ;;  %v14500_v50 = vrot.slane %v2747_v19, 9  ;;  %v2131_v19 = vld [vmem:[#allocation2 + $0x90] sm:$0xff]  ;;  %v2914_v31 = vrot.slane %v18837_v14, 5 }
 0x173   : > { %4001 = vmatprep.mubr.bf16.mxu0 %v14526_v62  ;;  %v2903_v62 = vrot.slane %v2749_v40, 5  ;;  %v18973_v28 = vsel %vm18841_vm2, %v18954_v8, %v2258_v37  ;;  %v18986_v18 = vrot.slane %v2277_v12, 4  ;;  %v2910_v40 = vrot.slane %v2752_v52, 5 }
 0x174   : > { %16058 = vmatpush3.bf16.msra.mxu1 %v17552_v47  ;;  %v18977_v51 = vsel %vm18346_vm11, %v14500_v50, %v2900_v2  ;;  %v14462_v38 = vcombine.high %v18968_v36, %v18973_v28  ;;  %v14527_v2 = vcombine.low %v18921_v9, %v18937_v22  ;;  %v2130_v22 = vld [vmem:[#allocation2 + $0x88] sm:$0x11]  ;;  %v2309_v37 = vshrl.u32 %v2131_v19, 16 }
 0x175   : > { %16059 = vmatprep.subr.bf16.mxu1 %v17556_v60  ;;  %v18984_v47 = vsel %vm18346_vm11, %v2902_v55, %v2903_v62  ;;  %v2287_v60 = vrot.slane %v2285_v57, 4  ;;  %v2312_v50 = vshll.u32 %v2131_v19, 16  ;;  %v2318_v55 = vshll.u32 %v2132_v24, 16 }
 0x176   : > { %v14530_v5 = vcombine.high %v18977_v51, %v18984_v47  ;;  %v2322_v62 = vshrl.u32 %v2132_v24, 16  ;;  %v14461_v0 = vcombine.low %v18968_v36, %v18973_v28  ;;  %v2916_v7 = vrot.slane %v2914_v31, 4  ;;  %v17582_v24 = vld [vmem:[%s22583_s4 + $0x2c0] sm:$0xff]  }
 0x177   : > { %3761 = vmatmul.mubr.bf16.gmra.mrb[68].mxu1 %v14457_v39  ;;  %v2909_v39 = vrot.slane %v2907_v15, 4  ;;  %v2311_v28 = vrot.slane %v2309_v37, 4  ;;  %v14529_v15 = vcombine.low %v18977_v51, %v18984_v47  ;;  %v17578_v47 = vld [vmem:[%s22583_s4 + $0x1b8] sm:$0xff]  }
 0x178   : > { %3768 = vmatprep.mubr.bf16.mxu1 %v14460_v34  ;;  %16060 = vmatpush3.bf16.msra.mxu1 %v17558_v54  ;;  %v2282_v54 = vrot.slane %v2280_v16, 5  ;;  %v2291_v34 = vor.u32 %v2290_v56, %v2287_v60  ;;  %v2314_v16 = vrot.slane %v2312_v50, 5  ;;  %v2324_v32 = vrot.slane %v2322_v62, 4  ;;  %v2134_v56 = vld [vmem:[#allocation2 + $0xa8] sm:$0xff] }
 0x179   : > { %16061 = vmatprep.subr.bf16.mxu1 %v17566_v49  ;;  %v17574_v49 = vld [vmem:[%s22583_s4 + $0x1a8] sm:$0xff]   ;;  %v19024_v12 = vsel %vm18346_vm11, %v2909_v39, %v2910_v40  ;;  %v2333_v39 = vshrl.u32 %v2134_v56, 16  ;;  %v2336_v40 = vshll.u32 %v2134_v56, 16 }
 0x17a   : > { %4002 = vmatmul.mubr.bf16.gmra.mrb[76].mxu0 %v14525_v44  ;;  %v19008_v9 = vsel %vm18841_vm2, %v18986_v18, %v2282_v54  ;;  %v2301_v44 = vor.u32 %v2300_v10, %v2296_v41  ;;  %v19026_v3 = vrot.slane %v2291_v34, 4  ;;  %v14532_v52 = vcombine.high %v19018_v61, %v19024_v12  ;;  %v2135_v10 = vld [vmem:[#allocation2 + $0xb0] sm:$0xff] }
 0x17b   : > { %4009 = vmatprep.mubr.bf16.mxu0 %v14528_v11  ;;  %v2753_v11 = vld [vmem:[#allocation2 + $0x168] sm:$0xee]  ;;  %v14464_v14 = vcombine.high %v19000_v27, %v19008_v9  ;;  %v2315_v13 = vor.u32 %v2314_v16, %v2311_v28  ;;  %v14463_v34 = vcombine.low %v19000_v27, %v19008_v9  ;;  %v2338_v9 = vrot.slane %v2336_v40, 5 }
 0x17c   : > { %16062 = vmatpush3.bf16.msra.mxu1 %v17568_v45  ;;  %v2304_v45 = vshll.u32 %v2130_v22, 16  ;;  %v14502_v57 = vrot.slane %v2753_v11, 9  ;;  %v2302_v58 = vrot.slane %v2301_v44, 4  ;;  %v2346_v22 = vshrl.u32 %v2135_v10, 16 }
 0x17d   : > { %16063 = vmatprep.subr.bf16.mxu1 %v17571_v63  ;;  %v2917_v63 = vrot.slane %v2755_v29, 5  ;;  %v14531_v11 = vcombine.low %v19018_v61, %v19024_v12  ;;  %v2138_v29 = vld [vmem:[#allocation2 + $0xc8] sm:$0xff]  ;;  %v2316_v37 = vrot.slane %v2315_v13, 4  ;;  %v2139_v13 = vld [vmem:[#allocation2 + $0xd0] sm:$0x11] }
 0x17e   : > { %v2306_v60 = vrot.slane %v2304_v45, 5 }
 0x17f   : > { %3769 = vmatmul.mubr.bf16.gmra.mrb[72].mxu1 %v14459_v17  ;;  %v17576_v17 = vld [vmem:[%s22583_s4 + $0x1b0] sm:$0xff]   ;;  %v19047_v51 = vsel %vm18346_vm11, %v2916_v7, %v2917_v63  ;;  %v2370_v7 = vshrl.u32 %v2138_v29, 16 }
 0x180   : > { %3776 = vmatprep.mubr.bf16.mxu1 %v14462_v38  ;;  %16064 = vmatpush3.bf16.msra.mxu1 %v17572_v21  ;;  %v2320_v21 = vrot.slane %v2318_v55, 5  ;;  %v2297_v38 = vsel %vm18841_vm2, %v19026_v3, %v2296_v41  ;;  %v2307_v54 = vsel %vm18841_vm2, %v2302_v58, %v2306_v60  ;;  %v2366_v58 = vshll.u32 %v2138_v29, 16 }
 0x181   : > { %16065 = vmatprep.subr.bf16.mxu1 %v17573_v43  ;;  %v2133_v43 = vld [vmem:[#allocation2 + $0xa0] sm:$0x11]  ;;  %v14466_v44 = vcombine.high %v2297_v38, %v2307_v54  ;;  %v2372_v56 = vrot.slane %v2370_v7, 4  ;;  %v2143_v7 = vld [vmem:[#allocation2 + $0xf0] sm:$0xff] }
 0x182   : > { %4010 = vmatmul.mubr.bf16.gmra.mrb[80].mxu0 %v14527_v2  ;;  %v19043_v2 = vsel %vm18346_vm11, %v14502_v57, %v2914_v31  ;;  %v2325_v19 = vor.u32 %v2324_v32, %v2320_v21  ;;  %v2328_v41 = vshll.u32 %v2133_v43, 16  ;;  %v2348_v57 = vrot.slane %v2346_v22, 4 }
 0x183   : > { %4017 = vmatprep.mubr.bf16.mxu0 %v14530_v5  ;;  %v4300_v5 = vld [vmem:[#allocation2 + $0x28] sm:$0x11]  ;;  %v14534_v31 = vcombine.high %v19043_v2, %v19047_v51  ;;  %v19067_v28 = vsel %vm18841_vm2, %v2316_v37, %v2320_v21  ;;  %v2368_v60 = vrot.slane %v2366_v58, 5 }
 0x184   : > { %16066 = vmatpush3.bf16.msra.mxu1 %v17574_v49  ;;  %v2342_v49 = vshll.u32 %v2135_v10, 16  ;;  %v19063_v50 = vrot.slane %v2325_v19, 4  ;;  %v2330_v55 = vrot.slane %v2328_v41, 5  ;;  %v4366_v62 = vshll.u32 %v4300_v5, 16  ;;  %v2140_v41 = vld [vmem:[#allocation2 + $0xd8] sm:$0xff] }
 0x185   : > { %16067 = vmatprep.subr.bf16.mxu1 %v17575_v59  ;;  %v2137_v59 = vld [vmem:[#allocation2 + $0xc0] sm:$0xff]  ;;  %v14465_v10 = vcombine.low %v2297_v38, %v2307_v54  ;;  %v14533_v5 = vcombine.low %v19043_v2, %v19047_v51  ;;  %v2373_v22 = vor.u32 %v2372_v56, %v2368_v60  ;;  %v2405_v56 = vshrl.u32 %v2143_v7, 16 }
 0x186   : > { %v2344_v45 = vrot.slane %v2342_v49, 5  ;;  %v2357_v61 = vshrl.u32 %v2137_v59, 16  ;;  %v2360_v12 = vshll.u32 %v2137_v59, 16  ;;  %v4368_v63 = vrot.slane %v4366_v62, 5 }
 0x187   : > { %3777 = vmatmul.mubr.bf16.gmra.mrb[76].mxu1 %v14461_v0  ;;  %v2136_v0 = vld [vmem:[#allocation2 + $0xb8] sm:$0x11]  ;;  %v2331_v16 = vsel %vm18841_vm2, %v19063_v50, %v2330_v55  ;;  %v19094_v62 = vrot.slane %v2373_v22, 4 }
 0x188   : > { %3784 = vmatprep.mubr.bf16.mxu1 %v14464_v14  ;;  %16068 = vmatpush3.bf16.msra.mxu1 %v17576_v17  ;;  %v2335_v14 = vrot.slane %v2333_v39, 4  ;;  %v2352_v17 = vshll.u32 %v2136_v0, 16  ;;  %v2359_v43 = vrot.slane %v2357_v61, 4  ;;  %v14468_v21 = vcombine.high %v19067_v28, %v2331_v16 }
 0x189   : > { %16069 = vmatprep.subr.bf16.mxu1 %v17577_v48  ;;  %v2349_v48 = vor.u32 %v2348_v57, %v2344_v45  ;;  %v14467_v29 = vcombine.low %v19067_v28, %v2331_v16  ;;  %v19102_v16 = vadd.f32 %v18857_v33, %v18854_v25 }
 0x18a   : > { %4018 = vmatmul.mubr.bf16.gmra.mrb[84].mxu0 %v14529_v15  ;;  %v2339_v32 = vor.u32 %v2338_v9, %v2335_v14  ;;  %v4303_v15 = vld [vmem:[#allocation2 + $0x40] sm:$0x11]  ;;  %v2354_v49 = vrot.slane %v2352_v17, 5  ;;  %v4306_v14 = vld [vmem:[#allocation2 + $0x58] sm:$0x11] }
 0x18b   : > { %4025 = vmatprep.mubr.bf16.mxu0 %v14532_v52  ;;  %v2362_v52 = vrot.slane %v2360_v12, 5  ;;  %v4390_v19 = vshll.u32 %v4303_v15, 16  ;;  %v19078_v40 = vrot.slane %v2349_v48, 4  ;;  %v2142_v9 = vld [vmem:[#allocation2 + $0xe8] sm:$0x11]  ;;  %v4414_v17 = vshll.u32 %v4306_v14, 16 }
 0x18c   : > { %16070 = vmatpush3.bf16.msra.mxu1 %v17578_v47  ;;  %v4369_v47 = vsel %vm18841_vm2, %v18874_v1, %v4368_v63  ;;  %v2340_v39 = vrot.slane %v2339_v32, 4  ;;  %v2376_v1 = vshll.u32 %v2139_v13, 16  ;;  %v17587_v32 = vld [vmem:[%s22583_s4 + $0x300] sm:$0xff]  }
 0x18d   : > { %16279 = vmatprep.subr.bf16.mxu1 %v17582_v24  ;;  %v2141_v24 = vld [vmem:[#allocation2 + $0xe0] sm:$0xff]  ;;  %v14616_v38 = vcombine.high %v18883_v30, %v4369_v47  ;;  %v2363_v54 = vor.u32 %v2362_v52, %v2359_v43  ;;  %v4392_v59 = vrot.slane %v4390_v19, 5  ;;  %v2355_v51 = vsel %vm18841_vm2, %v19078_v40, %v2354_v49  ;;  %v17596_v43 = vld [vmem:[%s22583_s4 + $0x348] sm:$0xff]  }
 0x18e   : > { %v19084_v2 = vsel %vm18841_vm2, %v2340_v39, %v2344_v45  ;;  %v2378_v0 = vrot.slane %v2376_v1, 5  ;;  %v14615_v63 = vcombine.low %v18883_v30, %v4369_v47  ;;  %v2400_v30 = vshll.u32 %v2142_v9, 16  ;;  %v2146_v9 = vld [vmem:[#allocation2 + $0x108] sm:$0xff] }
 0x18f   : > { %3785 = vmatmul.mubr.bf16.gmra.mrb[80].mxu1 %v14463_v34  ;;  %v2381_v34 = vshrl.u32 %v2140_v41, 16  ;;  %v19092_v37 = vsel %vm18841_vm2, %v18911_v53, %v4392_v59  ;;  %v2364_v55 = vrot.slane %v2363_v54, 4  ;;  %v14470_v58 = vcombine.high %v19084_v2, %v2355_v51  ;;  %v2144_v53 = vld [vmem:[#allocation2 + $0xf8] sm:$0xff] }
 0x190   : > { %3792 = vmatprep.mubr.bf16.mxu1 %v14466_v44  ;;  %v2384_v44 = vshll.u32 %v2140_v41, 16  ;;  %v14618_v48 = vcombine.high %v18928_v46, %v19092_v37  ;;  %v19119_v25 = vsel %vm18841_vm2, %v19094_v62, %v2378_v0  ;;  %v2408_v47 = vshll.u32 %v2143_v7, 16 }
 0x191   : > { %v2383_v57 = vrot.slane %v2381_v34, 4  ;;  %v19111_v15 = vsel %vm18841_vm2, %v2364_v55, %v2368_v60  ;;  %v4309_v60 = vld [vmem:[#allocation2 + $0x70] sm:$0x11]  ;;  %v2414_v13 = vshll.u32 %v2144_v53, 16  ;;  %v19126_v19 = vadd.f32 %v18864_v26, %v18859_v6 }
 0x192   : > { %4026 = vmatmul.mubr.bf16.gmra.mrb[88].mxu0 %v14531_v11  ;;  %v2390_v11 = vshll.u32 %v2141_v24, 16  ;;  %v2386_v61 = vrot.slane %v2384_v44, 5  ;;  %v14469_v41 = vcombine.low %v19084_v2, %v2355_v51  ;;  %v14472_v39 = vcombine.high %v19111_v15, %v19119_v25  ;;  %v17600_v6 = vld [vmem:[%s22583_s4 + $0x350] sm:$0xff]   ;;  %v2145_v44 = vld [vmem:[#allocation2 + $0x100] sm:$0x11] }
 0x193   : > { %4033 = vmatprep.mubr.bf16.mxu0 %v14534_v31  ;;  %v2394_v31 = vshrl.u32 %v2141_v24, 16  ;;  %v4416_v24 = vrot.slane %v4414_v17, 5  ;;  %v2402_v49 = vrot.slane %v2400_v30, 5  ;;  %v4438_v34 = vshll.u32 %v4309_v60, 16  ;;  %v17602_v55 = vld [vmem:[%s22583_s4 + $0x310] sm:$0xff]  }
 0x194   : > { %v19096_v12 = vrot.slane %v2390_v11, 5  ;;  %v2387_v33 = vor.u32 %v2386_v61, %v2383_v57  ;;  %v2407_v11 = vrot.slane %v2405_v56, 4  ;;  %v19144_v59 = vrot.slane %v2414_v13, 5  ;;  %v2147_v57 = vld [vmem:[#allocation2 + $0x110] sm:$0xff]  ;;  %v17607_v61 = vld [vmem:[%s22583_s4 + $0x358] sm:$0xff]   ;;  %v17609_v13 = vld [vmem:[%s22583_s4 + $0x360] sm:$0xff]  }
 0x195   : > { %v2396_v45 = vrot.slane %v2394_v31, 4  ;;  %v4417_v26 = vsel %vm18841_vm2, %v18954_v8, %v4416_v24  ;;  %v2410_v31 = vrot.slane %v2408_v47, 5  ;;  %v14617_v51 = vcombine.low %v18928_v46, %v19092_v37  ;;  %v4312_v17 = vld [vmem:[#allocation2 + $0x88] sm:$0x11]  ;;  %v2149_v47 = vld [vmem:[#allocation2 + $0x120] sm:$0xff] }
 0x196   : > { %v2388_v22 = vrot.slane %v2387_v33, 4  ;;  %v14620_v8 = vcombine.high %v18968_v36, %v4417_v26  ;;  %v2424_v46 = vshll.u32 %v2145_v44, 16  ;;  %v2442_v30 = vshrl.u32 %v2147_v57, 16  ;;  %v4315_v44 = vld [vmem:[#allocation2 + $0xa0] sm:$0x11] }
 0x197   : > { %3793 = vmatmul.mubr.bf16.gmra.mrb[84].mxu1 %v14465_v10  ;;  %v2397_v52 = vor.u32 %v2396_v45, %v19096_v12  ;;  %v19122_v10 = vld [vmem:[#allocation2 + $0x80] sm:$0xff]  ;;  %v4440_v45 = vrot.slane %v4438_v34, 5  ;;  %v2411_v7 = vor.u32 %v2410_v31, %v2407_v11  ;;  %v14471_v33 = vcombine.low %v19111_v15, %v19119_v25 }
 0x198   : > { %3800 = vmatprep.mubr.bf16.mxu1 %v14468_v21  ;;  %v2418_v21 = vshrl.u32 %v2144_v53, 16  ;;  %v4456_v54 = vshrl.u32 %v19122_v10, 16  ;;  %v19158_v37 = vsel %vm18841_vm2, %v2388_v22, %v19096_v12  ;;  %v2429_v53 = vshrl.u32 %v2146_v9, 16  ;;  %v17608_v12 = vld [vmem:[%s22583_s4 + $0x318] sm:$0xff]   ;;  %v17610_v34 = vld [vmem:[%s22583_s4 + $0x320] sm:$0xff]  }
 0x199   : > { %v19142_v1 = vrot.slane %v2397_v52, 4  ;;  %v14619_v52 = vcombine.low %v18968_v36, %v4417_v26  ;;  %v19175_v56 = vsel %vm18841_vm2, %v18986_v18, %v4440_v45  ;;  %v2426_v60 = vrot.slane %v2424_v46, 5 }
 0x19a   : > { %4034 = vmatmul.mubr.bf16.gmra.mrb[92].mxu0 %v14533_v5  ;;  %v17597_v5 = vld [vmem:[%s22583_s4 + $0x308] sm:$0xff]   ;;  %v4458_v14 = vrot.slane %v4456_v54, 4  ;;  %v4462_v25 = vshll.u32 %v4312_v17, 16  ;;  %v2431_v36 = vrot.slane %v2429_v53, 4  ;;  %v2444_v18 = vrot.slane %v2442_v30, 4 }
 0x19b   : > { %5932 = vmatprep.mubr.bf16.mxu0 %v14616_v38  ;;  %v4452_v38 = vshll.u32 %v19122_v10, 16  ;;  %v2453_v26 = vshrl.u32 %v2149_v47, 16  ;;  %v2456_v22 = vshll.u32 %v2149_v47, 16  ;;  %v19218_v17 = vld [vmem:[#allocation2 + $0x188] sm:$0xff] }
 0x19d   : > { %v4454_v0 = vrot.slane %v4452_v38, 5  ;;  %v14622_v38 = vcombine.high %v19000_v27, %v19175_v56 }
 0x19f   : > { %3801 = vmatmul.mubr.bf16.gmra.mrb[88].mxu1 %v14467_v29  ;;  %v2420_v29 = vrot.slane %v2418_v21, 4 }
 0x1a0   : > { %3808 = vmatprep.mubr.bf16.mxu1 %v14470_v58  ;;  %v19163_v58 = vsel %vm18841_vm2, %v19142_v1, %v2402_v49 }
 0x1a1   : > { %v14474_v21 = vcombine.high %v19158_v37, %v19163_v58 }
 0x1a2   : > { %5933 = vmatmul.mubr.bf16.vlgmr.msra.gmra.mrb[96].mxu0 %v14615_v63  ;;  %v2421_v63 = vor.u32 %v2420_v29, %v19144_v59  ;;  %v17614_v29 = vld [vmem:[%s22583_s4 + $0x368] sm:$0xff]  }
 0x1a3   : > { %5940 = vmatprep.mubr.bf16.mxu0 %v14618_v48  ;;  %16392 = vmatpush3.bf16.msra.mxu0 %v17587_v32  ;;  %v2432_v32 = vshll.u32 %v2146_v9, 16  ;;  %v2438_v48 = vshll.u32 %v2147_v57, 16  ;;  %v19209_v9 = vsel %vm18841_vm2, %v19026_v3, %v4454_v0  ;;  %v17615_v3 = vld [vmem:[%s22583_s4 + $0x328] sm:$0xff]  }
 0x1a4   : > { %16393 = vmatprep.subr.bf16.mxu0 %v17596_v43  ;;  %v4459_v43 = vor.u32 %v4458_v14, %v4454_v0  ;;  %v19182_v24 = vrot.slane %v2421_v63, 4  ;;  %v4464_v14 = vrot.slane %v4462_v25, 5  ;;  %v19216_v63 = vld [vmem:[#allocation2 + $0x180] sm:$0xff] }
 0x1a5   : > { %v19184_v49 = vrot.slane %v2438_v48, 5 }
 0x1a6   : > { %v4460_v54 = vrot.slane %v4459_v43, 4 }
 0x1a7   : > { %3809 = vmatmul.mubr.bf16.gmra.mrb[92].mxu1 %v14469_v41  ;;  %16394 = vmatpush3.bf16.msra.mxu0 %v17597_v5  ;;  %v2412_v41 = vrot.slane %v2411_v7, 4  ;;  %v2150_v5 = vld [vmem:[#allocation2 + $0x128] sm:$0xff]  ;;  %v2458_v7 = vrot.slane %v2456_v22, 5 }
 0x1a8   : > { %3816 = vmatprep.mubr.bf16.mxu1 %v14472_v39  ;;  %16395 = vmatprep.subr.bf16.mxu0 %v17600_v6  ;;  %v2434_v39 = vrot.slane %v2432_v32, 5  ;;  %v2148_v6 = vld [vmem:[#allocation2 + $0x118] sm:$0x11]  ;;  %v2462_v11 = vshll.u32 %v2150_v5, 16  ;;  %v2466_v31 = vshrl.u32 %v2150_v5, 16  ;;  %v19214_v46 = vsel %vm18841_vm2, %v4460_v54, %v4464_v14  ;;  %v17616_v32 = vld [vmem:[%s22583_s4 + $0x370] sm:$0xff]  }
 0x1a9   : > { %v2448_v45 = vshll.u32 %v2148_v6, 16  ;;  %v17623_v54 = vld [vmem:[%s22583_s4 + $0x378] sm:$0xff]  }
 0x1aa   : > { %5941 = vmatmul.mubr.bf16.gmra.mrb[100].mxu0 %v14617_v51  ;;  %v14473_v51 = vcombine.low %v19158_v37, %v19163_v58  ;;  %v2435_v57 = vor.u32 %v2434_v39, %v2431_v36  ;;  %v2455_v58 = vrot.slane %v2453_v26, 4  ;;  %v2464_v0 = vrot.slane %v2462_v11, 5  ;;  %v17618_v36 = vld [vmem:[%s22583_s4 + $0x330] sm:$0xff]  }
 0x1ab   : > { %5948 = vmatprep.mubr.bf16.mxu0 %v14620_v8  ;;  %16396 = vmatpush3.bf16.msra.mxu0 %v17602_v55  ;;  %v19199_v55 = vsel %vm18841_vm2, %v2412_v41, %v19144_v59  ;;  %v19204_v8 = vsel %vm18841_vm2, %v19182_v24, %v2426_v60  ;;  %v4486_v59 = vshll.u32 %v4315_v44, 16  ;;  %v2468_v53 = vrot.slane %v2466_v31, 4 }
 0x1ac   : > { %16397 = vmatprep.subr.bf16.mxu0 %v17607_v61  ;;  %v2445_v61 = vor.u32 %v2444_v18, %v19184_v49  ;;  %v14476_v43 = vcombine.high %v19199_v55, %v19204_v8  ;;  %v2436_v60 = vrot.slane %v2435_v57, 4  ;;  %v14624_v41 = vcombine.high %v19209_v9, %v19214_v46 }
 0x1ad   : > { %v4488_v25 = vrot.slane %v4486_v59, 5  ;;  %v2459_v5 = vor.u32 %v2458_v7, %v2455_v58  ;;  %v2469_v39 = vor.u32 %v2468_v53, %v2464_v0  ;;  %v14475_v44 = vcombine.low %v19199_v55, %v19204_v8  ;;  %v2154_v8 = vld [vmem:[#allocation2 + $0x148] sm:$0x11]  ;;  %v2155_v7 = vld [vmem:[#allocation2 + $0x150] sm:$0xff] }
 0x1ae   : > { %v19234_v47 = vrot.slane %v2445_v61, 4  ;;  %v19247_v22 = vsel %vm18841_vm2, %v2436_v60, %v19184_v49  ;;  %v4321_v60 = vld [vmem:[#allocation2 + $0xd0] sm:$0x11] }
 0x1af   : > { %3817 = vmatmul.mubr.bf16.gmra.mrb[96].mxu1 %v14471_v33  ;;  %16398 = vmatpush3.bf16.msra.mxu0 %v17608_v12  ;;  %v2151_v12 = vld [vmem:[#allocation2 + $0x130] sm:$0x11]  ;;  %v2152_v33 = vld [vmem:[#allocation2 + $0x138] sm:$0xff]  ;;  %v4489_v11 = vsel %vm18841_vm2, %v19063_v50, %v4488_v25  ;;  %v2460_v31 = vrot.slane %v2459_v5, 4  ;;  %v19260_v49 = vrot.slane %v2469_v39, 4  ;;  %v14623_v50 = vcombine.low %v19209_v9, %v19214_v46 }
 0x1b0   : > { %3824 = vmatprep.mubr.bf16.mxu1 %v14474_v21  ;;  %16399 = vmatprep.subr.bf16.mxu0 %v17609_v13  ;;  %v2450_v13 = vrot.slane %v2448_v45, 5  ;;  %v2153_v21 = vld [vmem:[#allocation2 + $0x140] sm:$0xff]  ;;  %v2472_v18 = vshll.u32 %v2151_v12, 16  ;;  %v14626_v53 = vcombine.high %v19067_v28, %v4489_v11  ;;  %v2504_v46 = vshll.u32 %v2155_v7, 16 }
 0x1b1   : > { %v2486_v6 = vshll.u32 %v2153_v21, 16  ;;  %v2490_v26 = vshrl.u32 %v2153_v21, 16  ;;  %v4534_v5 = vshll.u32 %v4321_v60, 16 }
 0x1b2   : > { %5949 = vmatmul.mubr.bf16.gmra.mrb[104].mxu0 %v14619_v52  ;;  %v14621_v52 = vcombine.low %v19000_v27, %v19175_v56  ;;  %v4318_v27 = vld [vmem:[#allocation2 + $0xb8] sm:$0x11]  ;;  %v2477_v56 = vshrl.u32 %v2152_v33, 16  ;;  %v2474_v14 = vrot.slane %v2472_v18, 5 }
 0x1b3   : > { %5956 = vmatprep.mubr.bf16.mxu0 %v14622_v38  ;;  %16400 = vmatpush3.bf16.msra.mxu0 %v17610_v34  ;;  %v2480_v38 = vshll.u32 %v2152_v33, 16  ;;  %v2451_v34 = vsel %vm18841_vm2, %v19234_v47, %v2450_v13  ;;  %v2488_v59 = vrot.slane %v2486_v6, 5  ;;  %v2492_v58 = vrot.slane %v2490_v26, 4 }
 0x1b4   : > { %16401 = vmatprep.subr.bf16.mxu0 %v17614_v29  ;;  %v4510_v29 = vshll.u32 %v4318_v27, 16  ;;  %v2479_v57 = vrot.slane %v2477_v56, 4  ;;  %v14478_v45 = vcombine.high %v19247_v22, %v2451_v34  ;;  %v2475_v12 = vsel %vm18841_vm2, %v19260_v49, %v2474_v14 }
 0x1b5   : > { %v2482_v61 = vrot.slane %v2480_v38, 5  ;;  %v2501_v13 = vshrl.u32 %v2155_v7, 16  ;;  %v2493_v9 = vor.u32 %v2492_v58, %v2488_v59  ;;  %v14477_v25 = vcombine.low %v19247_v22, %v2451_v34 }
 0x1b6   : > { %v2506_v38 = vrot.slane %v2504_v46, 5  ;;  %v14625_v26 = vcombine.low %v19067_v28, %v4489_v11  ;;  %v4324_v11 = vld [vmem:[#allocation2 + $0xe8] sm:$0x11] }
 0x1b7   : > { %3825 = vmatmul.mubr.bf16.gmra.mrb[100].mxu1 %v14473_v51  ;;  %16402 = vmatpush3.bf16.msra.mxu0 %v17615_v3  ;;  %v17624_v51 = vld [vmem:[%s22583_s4 + $0x338] sm:$0xff]   ;;  %v2483_v33 = vor.u32 %v2482_v61, %v2479_v57  ;;  %v2503_v27 = vrot.slane %v2501_v13, 4  ;;  %v19278_v56 = vrot.slane %v2493_v9, 4 }
 0x1b8   : > { %3832 = vmatprep.mubr.bf16.mxu1 %v14476_v43  ;;  %16403 = vmatprep.subr.bf16.mxu0 %v17616_v32  ;;  %v2156_v3 = vld [vmem:[#allocation2 + $0x158] sm:$0xff]  ;;  %v19268_v32 = vsel %vm18841_vm2, %v2460_v31, %v2464_v0  ;;  %v4512_v43 = vrot.slane %v4510_v29, 5  ;;  %v2158_v31 = vld [vmem:[#allocation2 + $0x168] sm:$0xff] }
 0x1b9   : > { %v2510_v21 = vshll.u32 %v2156_v3, 16  ;;  %v2484_v39 = vrot.slane %v2483_v33, 4  ;;  %v2507_v57 = vor.u32 %v2506_v38, %v2503_v27  ;;  %v2160_v13 = vld [vmem:[#allocation2 + $0x178] sm:$0x11] }
 0x1ba   : > { %5957 = vmatmul.mubr.bf16.gmra.mrb[108].mxu0 %v14621_v52  ;;  %v2496_v52 = vshll.u32 %v2154_v8, 16  ;;  %v4513_v0 = vsel %vm18841_vm2, %v19078_v40, %v4512_v43  ;;  %v2159_v40 = vld [vmem:[#allocation2 + $0x170] sm:$0xff]  ;;  %v2528_v8 = vshll.u32 %v2158_v31, 16 }
 0x1bb   : > { %5964 = vmatprep.mubr.bf16.mxu0 %v14624_v41  ;;  %16404 = vmatpush3.bf16.msra.mxu0 %v17618_v36  ;;  %v2514_v41 = vshrl.u32 %v2156_v3, 16  ;;  %v14480_v36 = vcombine.high %v19268_v32, %v2475_v12  ;;  %v14628_v34 = vcombine.high %v19084_v2, %v4513_v0  ;;  %v19284_v29 = vsel %vm18841_vm2, %v2484_v39, %v2488_v59 }
 0x1bc   : > { %16405 = vmatprep.subr.bf16.mxu0 %v17623_v54  ;;  %v2498_v18 = vrot.slane %v2496_v52, 5  ;;  %v2512_v54 = vrot.slane %v2510_v21, 5  ;;  %v2534_v58 = vshll.u32 %v2159_v40, 16  ;;  %v2538_v7 = vshrl.u32 %v2159_v40, 16 }
 0x1bd   : > { %v2516_v6 = vrot.slane %v2514_v41, 4  ;;  %v14627_v3 = vcombine.low %v19084_v2, %v4513_v0  ;;  %v2508_v33 = vrot.slane %v2507_v57, 4  ;;  %v2530_v46 = vrot.slane %v2528_v8, 5 }
 0x1be   : > { %v2499_v14 = vsel %vm18841_vm2, %v19278_v56, %v2498_v18  ;;  %v2536_v21 = vrot.slane %v2534_v58, 5  ;;  %v2540_v41 = vrot.slane %v2538_v7, 4 }
 0x1bf   : > { %3833 = vmatmul.mubr.bf16.gmra.mrb[104].mxu1 %v14475_v44  ;;  %16406 = vmatpush3.bf16.msra.mxu0 %v17624_v51  ;;  %v2157_v44 = vld [vmem:[#allocation2 + $0x160] sm:$0x11]  ;;  %v4536_v51 = vrot.slane %v4534_v5, 5  ;;  %v2517_v61 = vor.u32 %v2516_v6, %v2512_v54  ;;  %v14482_v43 = vcombine.high %v19284_v29, %v2499_v14  ;;  %v19300_v0 = vsel %vm18841_vm2, %v2508_v33, %v2512_v54  ;;  %v4333_v33 = vld [vmem:[#allocation2 + $0x130] sm:$0x11] }
 0x1c0   : > { %3840 = vmatprep.mubr.bf16.mxu1 %v14478_v45  ;;  %v2520_v28 = vshll.u32 %v2157_v44, 16  ;;  %v2525_v45 = vshrl.u32 %v2158_v31, 16  ;;  %v2541_v39 = vor.u32 %v2540_v41, %v2536_v21  ;;  %v14481_v18 = vcombine.low %v19284_v29, %v2499_v14 }
 0x1c1   : > { %v4537_v59 = vsel %vm18841_vm2, %v19094_v62, %v4536_v51  ;;  %v19295_v52 = vrot.slane %v2517_v61, 4  ;;  %v2544_v62 = vshll.u32 %v2160_v13, 16 }
 0x1c2   : > { %5965 = vmatmul.mubr.bf16.gmra.mrb[112].mxu0 %v14623_v50  ;;  %v14479_v50 = vcombine.low %v19268_v32, %v2475_v12  ;;  %v2522_v60 = vrot.slane %v2520_v28, 5  ;;  %v2527_v9 = vrot.slane %v2525_v45, 4  ;;  %v14630_v2 = vcombine.high %v19111_v15, %v4537_v59  ;;  %v4330_v28 = vld [vmem:[#allocation2 + $0x118] sm:$0x11] }
 0x1c3   : > { %5972 = vmatprep.mubr.bf16.mxu0 %v14626_v53  ;;  %v4558_v53 = vshll.u32 %v4324_v11, 16  ;;  %v2546_v31 = vrot.slane %v2544_v62, 5  ;;  %v4606_v7 = vshll.u32 %v4330_v28, 16  ;;  %v17581_v62 = vld [vmem:[#allocation2 + $0x1c] ss:$8 sps:$4 sm:$0xff]   ;;  %v17591_v28 = vld [vmem:[%s22583_s4 + $0x2c8] sm:$0xff]  }
 0x1c4   : > { %v2523_v5 = vsel %vm18841_vm2, %v19295_v52, %v2522_v60 }
 0x1c5   : > { %v4560_v12 = vrot.slane %v4558_v53, 5  ;;  %v14484_v6 = vcombine.high %v19300_v0, %v2523_v5  ;;  %v14483_v8 = vcombine.low %v19300_v0, %v2523_v5  ;;  %v4608_v53 = vrot.slane %v4606_v7, 5 }
 0x1c7   : > { %3841 = vmatmul.mubr.bf16.gmra.mrb[108].mxu1 %v14477_v25  ;;  %v4327_v25 = vld [vmem:[#allocation2 + $0x100] sm:$0x11]  ;;  %v4561_v27 = vsel %vm18841_vm2, %v19142_v1, %v4560_v12 }
 0x1c8   : > { %3848 = vmatprep.mubr.bf16.mxu1 %v14480_v36  ;;  %v2531_v36 = vor.u32 %v2530_v46, %v2527_v9  ;;  %v4582_v38 = vshll.u32 %v4327_v25, 16  ;;  %v14632_v40 = vcombine.high %v19158_v37, %v4561_v27 }
 0x1ca   : > { %5973 = vmatmul.mubr.bf16.gmra.mrb[116].mxu0 %v14625_v26  ;;  %v14629_v26 = vcombine.low %v19111_v15, %v4537_v59  ;;  %v2532_v44 = vrot.slane %v2531_v36, 4  ;;  %v4584_v1 = vrot.slane %v4582_v38, 5 }
 0x1cb   : > { %5980 = vmatprep.mubr.bf16.mxu0 %v14628_v34  ;;  %v19311_v34 = vrot.slane %v2541_v39, 4 }
 0x1cc   : > { %v19318_v15 = vsel %vm18841_vm2, %v2532_v44, %v2536_v21  ;;  %v4585_v58 = vsel %vm18841_vm2, %v19182_v24, %v4584_v1 }
 0x1cd   : > { %v2547_v11 = vsel %vm18841_vm2, %v19311_v34, %v2546_v31  ;;  %v14634_v59 = vcombine.high %v19199_v55, %v4585_v58  ;;  %v14633_v39 = vcombine.low %v19199_v55, %v4585_v58  ;;  %v17583_v31 = vld [vmem:[%s22583_s4 + $0x280] sm:$0xff]  }
 0x1ce   : > { %v14485_v21 = vcombine.low %v19318_v15, %v2547_v11  ;;  %v17579_v55 = vld [vmem:[#allocation2 + $0x18] ss:$8 sps:$4 sm:$0xff]  }
 0x1cf   : > { %3849 = vmatmul.mubr.bf16.gmra.mrb[112].mxu1 %v14479_v50  ;;  %v14486_v50 = vcombine.high %v19318_v15, %v2547_v11 }
 0x1d0   : > { %3856 = vmatprep.mubr.bf16.mxu1 %v14482_v43 }
 0x1d2   : > { %5981 = vmatmul.mubr.bf16.gmra.mrb[120].mxu0 %v14627_v3  ;;  %v14631_v3 = vcombine.low %v19158_v37, %v4561_v27  ;;  %v4609_v37 = vsel %vm18841_vm2, %v19234_v47, %v4608_v53  ;;  %v4336_v47 = vld [vmem:[#allocation2 + $0x148] sm:$0x11] }
 0x1d3   : > { %5988 = vmatprep.mubr.bf16.mxu0 %v14630_v2  ;;  %v4630_v2 = vshll.u32 %v4333_v33, 16  ;;  %v14636_v27 = vcombine.high %v19247_v22, %v4609_v37  ;;  %v17593_v53 = vld [vmem:[%s22583_s4 + $0x288] sm:$0xff]  }
 0x1d5   : > { %v4632_v38 = vrot.slane %v4630_v2, 5 }
 0x1d7   : > { %3857 = vmatmul.mubr.bf16.gmra.mrb[116].mxu1 %v14481_v18  ;;  %v15741_v54 = vpop.f32.mrb[20].mxu0  ;;  %v4633_v1 = vsel %vm18841_vm2, %v19260_v49, %v4632_v38 }
 0x1d8   : > { %3864 = vmatprep.mubr.bf16.mxu1 %v14484_v6  ;;  %v15742_v51 = vpop.f32.mrb[21].mxu0 }
 0x1d9   : > { %v19314_v14 = vadd.f32 %v15742_v51, %v15741_v54  ;;  %v15744_v57 = vpop.f32.mrb[22].mxu0 }
 0x1da   : > { %5989 = vmatmul.mubr.bf16.gmra.mrb[124].mxu0 %v14629_v26  ;;  %v15745_v61 = vpop.f32.mrb[23].mxu0 }
 0x1db   : > { %5996 = vmatprep.mubr.bf16.mxu0 %v14632_v40  ;;  %v19323_v45 = vadd.f32 %v15745_v61, %v15744_v57  ;;  %v4654_v61 = vshll.u32 %v4336_v47, 16 }
 0x1dd   : > { %v4656_v33 = vrot.slane %v4654_v61, 5 }
 0x1df   : > { %3865 = vmatmul.mubr.bf16.gmra.mrb[120].mxu1 %v14483_v8  ;;  %v19359_v8 = vld [vmem:[#allocation2 + $0x34] ss:$8 sps:$4 sm:$0xff]  }
 0x1e0   : > { %3872 = vmatprep.mubr.bf16.mxu1 %v14486_v50 }
 0x1e2   : > { %5997 = vmatmul.mubr.bf16.gmra.mrb[128].mxu0 %v14631_v3  ;;  %v15759_v43 = vpop.f32.mrb[16].mxu1  ;;  %v14635_v3 = vcombine.low %v19247_v22, %v4609_v37  ;;  %v17601_v22 = vld [vmem:[%s22583_s4 + $0x2d0] sm:$0xff]  }
 0x1e3   : > { %6004 = vmatprep.mubr.bf16.mxu0 %v14634_v59  ;;  %v15760_v60 = vpop.f32.mrb[17].mxu1  ;;  %v14638_v59 = vcombine.high %v19268_v32, %v4633_v1  ;;  %v17604_v37 = vld [vmem:[%s22583_s4 + $0x290] sm:$0xff]  }
 0x1e4   : > { %v19332_v13 = vadd.f32 %v15760_v60, %v15759_v43  ;;  %v15762_v9 = vpop.f32.mrb[18].mxu1  ;;  %v15747_v46 = vpop.f32.mrb[24].mxu0  ;;  %v17661_v43 = vld [vmem:[%s22583_s4 + $0x440] sm:$0xff]  }
 0x1e5   : > { %v15763_v24 = vpop.f32.mrb[19].mxu1  ;;  %v15748_v41 = vpop.f32.mrb[25].mxu0  ;;  %16615 = vmatprep.subr.bf16.mxu0 %v17661_v43 }
 0x1e6   : > { %v19338_v12 = vadd.f32 %v15763_v24, %v15762_v9  ;;  %v19340_v25 = vadd.f32 %v15748_v41, %v15747_v46  ;;  %v15750_v5 = vpop.f32.mrb[26].mxu0  ;;  %v4339_v9 = vld [vmem:[#allocation2 + $0x160] sm:$0x11] }
 0x1e7   : > { %3873 = vmatmul.mubr.bf16.gmra.mrb[124].mxu1 %v14485_v21  ;;  %v15751_v36 = vpop.f32.mrb[27].mxu0 }
 0x1e8   : > { %5771 = vmatprep.mubr.bf16.mxu1 %v17581_v62  ;;  %v19343_v18 = vadd.f32 %v15751_v36, %v15750_v5  ;;  %v19384_v62 = vld [vmem:[#allocation2 + $0x30] ss:$8 sps:$4 sm:$0xff]   ;;  %v4657_v36 = vsel %vm18841_vm2, %v19278_v56, %v4656_v33 }
 0x1e9   : > { %v14640_v56 = vcombine.high %v19284_v29, %v4657_v36 }
 0x1ea   : > { %6005 = vmatmul.mubr.bf16.gmra.mrb[132].mxu0 %v14633_v39  ;;  %v15765_v6 = vpop.f32.mrb[20].mxu1  ;;  %v4678_v39 = vshll.u32 %v4339_v9, 16  ;;  %v4720_v9 = vshrl.u32 %v19218_v17, 16 }
 0x1eb   : > { %6012 = vmatprep.mubr.bf16.mxu0 %v14636_v27  ;;  %v15766_v26 = vpop.f32.mrb[21].mxu1  ;;  %v17617_v27 = vld [vmem:[%s22583_s4 + $0x2d8] sm:$0xff]  }
 0x1ec   : > { %v19346_v54 = vadd.f32 %v15766_v26, %v15765_v6  ;;  %v15768_v44 = vpop.f32.mrb[22].mxu1  ;;  %v15753_v40 = vpop.f32.mrb[28].mxu0  ;;  %v19396_v6 = vld [vmem:[#allocation2 + $0x4c] ss:$8 sps:$4 sm:$0xff]   ;;  %v14637_v26 = vcombine.low %v19268_v32, %v4633_v1  ;;  %v19412_v1 = vld [vmem:[#allocation2 + $0x48] ss:$8 sps:$4 sm:$0xff]  }
 0x1ed   : > { %v15769_v51 = vpop.f32.mrb[23].mxu1  ;;  %v15754_v57 = vpop.f32.mrb[29].mxu0 }
 0x1ee   : > { %v19357_v11 = vadd.f32 %v15769_v51, %v15768_v44  ;;  %v19361_v58 = vadd.f32 %v15754_v57, %v15753_v40  ;;  %v15756_v7 = vpop.f32.mrb[30].mxu0  ;;  %v4680_v40 = vrot.slane %v4678_v39, 5  ;;  %v17628_v51 = vld [vmem:[%s22583_s4 + $0x2e0] sm:$0xff]   ;;  %v14639_v39 = vcombine.low %v19284_v29, %v4657_v36  ;;  %v17646_v29 = vld [vmem:[%s22583_s4 + $0x2f0] sm:$0xff]  }
 0x1ef   : > { %5772 = vmatmul.mubr.bf16.vlgmr.msra.gmra.mrb[128].mxu1 %v17579_v55  ;;  %v15757_v50 = vpop.f32.mrb[31].mxu0  ;;  %v4342_v55 = vld [vmem:[#allocation2 + $0x178] sm:$0x11] }
 0x1f0   : > { %16280 = vmatpush3.bf16.msra.mxu1 %v17583_v31  ;;  %5779 = vmatprep.mubr.bf16.mxu1 %v19359_v8  ;;  %v19365_v49 = vadd.f32 %v15757_v50, %v15756_v7  ;;  %v17620_v31 = vld [vmem:[%s22583_s4 + $0x298] sm:$0xff]   ;;  %v4702_v50 = vshll.u32 %v4342_v55, 16  ;;  %v4681_v33 = vsel %vm18841_vm2, %v19295_v52, %v4680_v40 }
 0x1f1   : > { %16281 = vmatprep.subr.bf16.mxu1 %v17591_v28 }
 0x1f2   : > { %6013 = vmatmul.mubr.bf16.gmra.mrb[136].mxu0 %v14635_v3  ;;  %v15771_v60 = vpop.f32.mrb[24].mxu1  ;;  %v4707_v3 = vshrl.u32 %v19216_v63, 16 }
 0x1f3   : > { %6020 = vmatprep.mubr.bf16.mxu0 %v14638_v59  ;;  %v15772_v46 = vpop.f32.mrb[25].mxu1  ;;  %v17630_v59 = vld [vmem:[%s22583_s4 + $0x2a0] sm:$0xff]  }
 0x1f4   : > { %v19377_v24 = vadd.f32 %v15772_v46, %v15771_v60  ;;  %v15774_v21 = vpop.f32.mrb[26].mxu1  ;;  %v19379_v41 = vpop.f32.mrb[32].mxu0  ;;  %16282 = vmatpush3.bf16.msra.mxu1 %v17593_v53  ;;  %v4716_v60 = vshll.u32 %v19218_v17, 16  ;;  %v17638_v46 = vld [vmem:[%s22583_s4 + $0x2e8] sm:$0xff]  }
 0x1f5   : > { %22629 = vst [vmem:[#allocation11_spill] sm:$0xff] %v19379_v41  ;;  %v15775_v2 = vpop.f32.mrb[27].mxu1  ;;  %v19386_v5 = vpop.f32.mrb[33].mxu0  ;;  %16283 = vmatprep.subr.bf16.mxu1 %v17601_v22  ;;  %v4710_v22 = vshll.u32 %v19216_v63, 16  ;;  %v17667_v41 = vld [vmem:[%s22583_s4 + $0x450] sm:$0xff]  }
 0x1f6   : > { %22630 = vst [vmem:[#allocation12_spill] sm:$0xff] %v19386_v5  ;;  %v19394_v38 = vadd.f32 %v15775_v2, %v15774_v21  ;;  %v19398_v47 = vpop.f32.mrb[34].mxu0  ;;  %v4718_v55 = vrot.slane %v4716_v60, 5  ;;  %v19460_v60 = vld [vmem:[#allocation2 + $0x60] ss:$8 sps:$4 sm:$0xff]  }
 0x1f7   : > { %22631 = vst [vmem:[#allocation13_spill] sm:$0xff] %v19398_v47  ;;  %5780 = vmatmul.mubr.bf16.gmra.mrb[132].mxu1 %v19384_v62  ;;  %v19402_v44 = vpop.f32.mrb[35].mxu0  ;;  %v4712_v40 = vrot.slane %v4710_v22, 5 }
 0x1f8   : > { %22632 = vst [vmem:[#allocation14_spill] sm:$0xff] %v19402_v44  ;;  %5787 = vmatprep.mubr.bf16.mxu1 %v19396_v6  ;;  %16284 = vmatpush3.bf16.msra.mxu1 %v17604_v37  ;;  %v19435_v37 = vld [vmem:[#allocation2 + $0x64] ss:$8 sps:$4 sm:$0xff]   ;;  %v19532_v44 = vld [vmem:[#allocation2 + $0xa8] ss:$8 sps:$4 sm:$0xff]  }
 0x1f9   : > { %16285 = vmatprep.subr.bf16.mxu1 %v17617_v27  ;;  %v14642_v27 = vcombine.high %v19300_v0, %v4681_v33 }
 0x1fa   : > { %6021 = vmatmul.mubr.bf16.gmra.mrb[140].mxu0 %v14637_v26  ;;  %v15777_v32 = vpop.f32.mrb[28].mxu1  ;;  %v4704_v26 = vrot.slane %v4702_v50, 5 }
 0x1fb   : > { %6028 = vmatprep.mubr.bf16.mxu0 %v14640_v56  ;;  %v15778_v57 = vpop.f32.mrb[29].mxu1  ;;  %v17640_v56 = vld [vmem:[%s22583_s4 + $0x2a8] sm:$0xff]  }
 0x1fc   : > { %v19414_v61 = vadd.f32 %v15778_v57, %v15777_v32  ;;  %v15780_v28 = vpop.f32.mrb[30].mxu1  ;;  %v19416_v7 = vpop.f32.mrb[36].mxu0  ;;  %16286 = vmatpush3.bf16.msra.mxu1 %v17620_v31  ;;  %v4709_v31 = vrot.slane %v4707_v3, 4  ;;  %v4345_v32 = vld [vmem:[#allocation2 + $0x190] sm:$0x11] }
 0x1fd   : > { %v15781_v53 = vpop.f32.mrb[31].mxu1  ;;  %v19422_v43 = vpop.f32.mrb[37].mxu0  ;;  %16287 = vmatprep.subr.bf16.mxu1 %v17628_v51  ;;  %v4722_v51 = vrot.slane %v4720_v9, 4  ;;  %v17648_v3 = vld [vmem:[%s22583_s4 + $0x2b0] sm:$0xff]  }
 0x1fe   : > { %v19433_v21 = vadd.f32 %v15781_v53, %v15780_v28  ;;  %v19437_v2 = vpop.f32.mrb[38].mxu0  ;;  %v19451_v28 = vld [vmem:[#allocation2 + $0x78] sm:$0xff] }
 0x1ff   : > { %5788 = vmatmul.mubr.bf16.gmra.mrb[136].mxu1 %v19412_v1  ;;  %v19440_v52 = vpop.f32.mrb[39].mxu0  ;;  %v14592_v30 = vcombine.high %v19451_v28, %v19122_v10 }
 0x200   : > { %5795 = vmatprep.mubr.bf16.mxu1 %v19435_v37  ;;  %16288 = vmatpush3.bf16.msra.mxu1 %v17630_v59 }
 0x201   : > { %16289 = vmatprep.subr.bf16.mxu1 %v17638_v46  ;;  %v4705_v46 = vsel %vm18841_vm2, %v19311_v34, %v4704_v26  ;;  %v14641_v34 = vcombine.low %v19300_v0, %v4681_v33 }
 0x202   : > { %6029 = vmatmul.mubr.bf16.gmra.mrb[144].mxu0 %v14639_v39  ;;  %v15783_v36 = vpop.f32.mrb[32].mxu1  ;;  %v4713_v39 = vor.u32 %v4712_v40, %v4709_v31  ;;  %v14644_v26 = vcombine.high %v19318_v15, %v4705_v46  ;;  %v17656_v31 = vld [vmem:[%s22583_s4 + $0x2b8] sm:$0xff]  }
 0x203   : > { %6036 = vmatprep.mubr.bf16.mxu0 %v14642_v27  ;;  %v15784_v57 = vpop.f32.mrb[33].mxu1  ;;  %v4723_v27 = vor.u32 %v4722_v51, %v4718_v55 }
 0x204   : > { %v19453_v50 = vadd.f32 %v15784_v57, %v15783_v36  ;;  %v15786_v59 = vpop.f32.mrb[34].mxu1  ;;  %v19455_v53 = vpop.f32.mrb[40].mxu0  ;;  %16290 = vmatpush3.bf16.msra.mxu1 %v17640_v56  ;;  %v4726_v36 = vshll.u32 %v4345_v32, 16  ;;  %v17654_v56 = vld [vmem:[%s22583_s4 + $0x2f8] sm:$0xff]   ;;  %v4714_v40 = vrot.slane %v4713_v39, 4  ;;  %v17659_v32 = vld [vmem:[%s22583_s4 + $0x3c0] sm:$0xff]   ;;  %v14591_v39 = vcombine.low %v19451_v28, %v19122_v10 }
 0x205   : > { %v15787_v22 = vpop.f32.mrb[35].mxu1  ;;  %v19462_v9 = vpop.f32.mrb[41].mxu0  ;;  %16291 = vmatprep.subr.bf16.mxu1 %v17646_v29  ;;  %v4724_v51 = vrot.slane %v4723_v27, 4  ;;  %v14643_v10 = vcombine.low %v19318_v15, %v4705_v46  ;;  %v19519_v15 = vld [vmem:[#allocation2 + $0xac] ss:$8 sps:$4 sm:$0xff]  }
 0x206   : > { %v19470_v57 = vadd.f32 %v15787_v22, %v15786_v59  ;;  %v19474_v48 = vpop.f32.mrb[42].mxu0  ;;  %v4728_v29 = vrot.slane %v4726_v36, 5  ;;  %v4719_v36 = vsel %vm18841_vm2, %v4714_v40, %v4718_v55 }
 0x207   : > { %5796 = vmatmul.mubr.bf16.gmra.mrb[140].mxu1 %v19460_v60  ;;  %v19477_v35 = vpop.f32.mrb[43].mxu0 }
 0x208   : > { %5803 = vmatprep.mubr.bf16.mxu1 %v14592_v30  ;;  %16292 = vmatpush3.bf16.msra.mxu1 %v17648_v3 }
 0x209   : > { %16293 = vmatprep.subr.bf16.mxu1 %v17654_v56  ;;  %v4729_v56 = vsel %vm18841_vm2, %v4724_v51, %v4728_v29 }
 0x20a   : > { %6037 = vmatmul.mubr.bf16.gmra.mrb[148].mxu0 %v14641_v34  ;;  %v15789_v59 = vpop.f32.mrb[36].mxu1 }
 0x20b   : > { %6044 = vmatprep.mubr.bf16.mxu0 %v14644_v26  ;;  %v15790_v0 = vpop.f32.mrb[37].mxu1  ;;  %v19501_v26 = vld [vmem:[#allocation2 + $0x94] ss:$8 sps:$4 sm:$0xff]  }
 0x20c   : > { %v19487_v30 = vadd.f32 %v15790_v0, %v15789_v59  ;;  %v15792_v33 = vpop.f32.mrb[38].mxu1  ;;  %16294 = vmatpush3.bf16.msra.mxu1 %v17656_v31  ;;  %v14646_v0 = vcombine.high %v4719_v36, %v4729_v56 }
 0x20d   : > { %v19489_v3 = vpop.f32.mrb[44].mxu0  ;;  %v15793_v22 = vpop.f32.mrb[39].mxu1  ;;  %16503 = vmatprep.subr.bf16.mxu1 %v17659_v32 }
 0x20e   : > { %v19493_v27 = vpop.f32.mrb[45].mxu0  ;;  %v19499_v34 = vadd.f32 %v15793_v22, %v15792_v33  ;;  %v19513_v22 = vld [vmem:[#allocation2 + $0x90] ss:$8 sps:$4 sm:$0xff]  }
 0x20f   : > { %v19503_v59 = vpop.f32.mrb[46].mxu0  ;;  %5804 = vmatmul.mubr.bf16.gmra.mrb[144].mxu1 %v14591_v39 }
 0x210   : > { %v19505_v31 = vpop.f32.mrb[47].mxu0  ;;  %5811 = vmatprep.mubr.bf16.mxu1 %v19501_v26 }
 0x212   : > { %6045 = vmatmul.mubr.bf16.gmra.mrb[152].mxu0 %v14643_v10  ;;  %v15795_v55 = vpop.f32.mrb[40].mxu1 }
 0x213   : > { %6052 = vmatprep.mubr.bf16.mxu0 %v14646_v0  ;;  %v15796_v40 = vpop.f32.mrb[41].mxu1  ;;  %v14645_v0 = vcombine.low %v4719_v36, %v4729_v56  ;;  %v19538_v36 = vld [vmem:[#allocation2 + $0xc4] ss:$8 sps:$4 sm:$0xff]  }
 0x214   : > { %v19509_v51 = vadd.f32 %v15796_v40, %v15795_v55  ;;  %v15798_v29 = vpop.f32.mrb[42].mxu1 }
 0x215   : > { %v19511_v32 = vpop.f32.mrb[48].mxu0  ;;  %v15799_v33 = vpop.f32.mrb[43].mxu1 }
 0x216   : > { %22633 = vst [vmem:[#allocation15_spill] sm:$0xff] %v19509_v51  ;;  %v19515_v39 = vpop.f32.mrb[49].mxu0  ;;  %v19517_v23 = vadd.f32 %v15799_v33, %v15798_v29 }
 0x217   : > { %v19521_v46 = vpop.f32.mrb[50].mxu0  ;;  %5812 = vmatmul.mubr.bf16.gmra.mrb[148].mxu1 %v19513_v22 }
 0x218   : > { %22634 = vst [vmem:[#allocation16_spill] sm:$0xff] %v19517_v23  ;;  %22635 = vst [vmem:[#allocation17_spill] sm:$0xff] %v19521_v46  ;;  %v19524_v10 = vpop.f32.mrb[51].mxu0  ;;  %5819 = vmatprep.mubr.bf16.mxu1 %v19519_v15  ;;  %v19629_v23 = vld [vmem:[#allocation2 + $0xf0] ss:$8 sps:$4 sm:$0xff]  }
 0x219   : > { %22636 = vst [vmem:[#allocation18_spill] sm:$0xff] %v19524_v10  ;;  %v19674_v46 = vld [vmem:[#allocation2 + $0x13c] ss:$8 sps:$4 sm:$0xff]  }
 0x21a   : > { %6053 = vmatmul.mubr.bf16.gmra.mrb[156].mxu0 %v14645_v0  ;;  %v15801_v55 = vpop.f32.mrb[44].mxu1 }
 0x21b   : > { %8016 = vmatprep.mubr.bf16.mxu0 %v19359_v8  ;;  %v15802_v40 = vpop.f32.mrb[45].mxu1  ;;  %v17662_v8 = vld [vmem:[%s22583_s4 + $0x400] sm:$0xff]  }
 0x21c   : > { %v19528_v20 = vadd.f32 %v15802_v40, %v15801_v55  ;;  %v15804_v29 = vpop.f32.mrb[46].mxu1  ;;  %v17665_v55 = vld [vmem:[%s22583_s4 + $0x448] sm:$0xff]  }
 0x21d   : > { %v19530_v33 = vpop.f32.mrb[52].mxu0  ;;  %v15805_v4 = vpop.f32.mrb[47].mxu1  ;;  %v17666_v40 = vld [vmem:[%s22583_s4 + $0x408] sm:$0xff]  }
 0x21e   : > { %22637 = vst [vmem:[#allocation19_spill] sm:$0xff] %v19528_v20  ;;  %22638 = vst [vmem:[#allocation20_spill] sm:$0xff] %v19530_v33  ;;  %v19534_v47 = vpop.f32.mrb[53].mxu0  ;;  %v19536_v5 = vadd.f32 %v15805_v4, %v15804_v29 }
 0x21f   : > { %22639 = vst [vmem:[#allocation21_spill] sm:$0xff] %v19534_v47  ;;  %v19540_v56 = vpop.f32.mrb[54].mxu0  ;;  %5820 = vmatmul.mubr.bf16.gmra.mrb[152].mxu1 %v19532_v44  ;;  %v19570_v47 = vld [vmem:[#allocation2 + $0xdc] ss:$8 sps:$4 sm:$0xff]  }
 0x220   : > { %22640 = vst [vmem:[#allocation22_spill] sm:$0xff] %v19536_v5  ;;  %22641 = vst [vmem:[#allocation23_spill] sm:$0xff] %v19540_v56  ;;  %v19546_v0 = vpop.f32.mrb[55].mxu0  ;;  %5827 = vmatprep.mubr.bf16.mxu1 %v19538_v36  ;;  %v19564_v56 = vld [vmem:[#allocation2 + $0xc0] ss:$8 sps:$4 sm:$0xff]  }
 0x221   : > { %22642 = vst [vmem:[#allocation24_spill] sm:$0xff] %v19546_v0 }
 0x222   : > { %8017 = vmatmul.mubr.bf16.vlgmr.msra.gmra.mrb[160].mxu0 %v19384_v62  ;;  %v15807_v4 = vpop.f32.mrb[48].mxu1 }
 0x223   : > { %8024 = vmatprep.mubr.bf16.mxu0 %v19396_v6  ;;  %16616 = vmatpush3.bf16.msra.mxu0 %v17662_v8  ;;  %v15808_v29 = vpop.f32.mrb[49].mxu1 }
 0x224   : > { %16617 = vmatprep.subr.bf16.mxu0 %v17665_v55  ;;  %v19560_v5 = vadd.f32 %v15808_v29, %v15807_v4  ;;  %v15810_v20 = vpop.f32.mrb[50].mxu1  ;;  %v17670_v55 = vld [vmem:[%s22583_s4 + $0x410] sm:$0xff]   ;;  %v17672_v29 = vld [vmem:[%s22583_s4 + $0x458] sm:$0xff]  }
 0x225   : > { %v19562_v0 = vpop.f32.mrb[56].mxu0  ;;  %v15811_v62 = vpop.f32.mrb[51].mxu1 }
 0x226   : > { %22643 = vst [vmem:[#allocation25_spill] sm:$0xff] %v19560_v5  ;;  %22644 = vst [vmem:[#allocation26_spill] sm:$0xff] %v19562_v0  ;;  %v19566_v6 = vpop.f32.mrb[57].mxu0  ;;  %v19568_v8 = vadd.f32 %v15811_v62, %v15810_v20  ;;  %v19604_v0 = vld [vmem:[#allocation2 + $0xf4] ss:$8 sps:$4 sm:$0xff]  }
 0x227   : > { %22645 = vst [vmem:[#allocation27_spill] sm:$0xff] %v19566_v6  ;;  %v19572_v33 = vpop.f32.mrb[58].mxu0  ;;  %16618 = vmatpush3.bf16.msra.mxu0 %v17666_v40  ;;  %5828 = vmatmul.mubr.bf16.gmra.mrb[156].mxu1 %v19564_v56  ;;  %v17673_v40 = vld [vmem:[%s22583_s4 + $0x418] sm:$0xff]  }
 0x228   : > { %22646 = vst [vmem:[#allocation28_spill] sm:$0xff] %v19568_v8  ;;  %22647 = vst [vmem:[#allocation29_spill] sm:$0xff] %v19572_v33  ;;  %v19578_v4 = vpop.f32.mrb[59].mxu0  ;;  %16619 = vmatprep.subr.bf16.mxu0 %v17667_v41  ;;  %5835 = vmatprep.mubr.bf16.mxu1 %v19570_v47  ;;  %v17675_v41 = vld [vmem:[%s22583_s4 + $0x460] sm:$0xff]  }
 0x229   : > { %22648 = vst [vmem:[#allocation30_spill] sm:$0xff] %v19578_v4  ;;  %v19596_v33 = vld [vmem:[#allocation2 + $0xd8] ss:$8 sps:$4 sm:$0xff]  }
 0x22a   : > { %8025 = vmatmul.mubr.bf16.gmra.mrb[164].mxu0 %v19412_v1  ;;  %v15813_v20 = vpop.f32.mrb[52].mxu1 }
 0x22b   : > { %8032 = vmatprep.mubr.bf16.mxu0 %v19435_v37  ;;  %16620 = vmatpush3.bf16.msra.mxu0 %v17670_v55  ;;  %v15814_v62 = vpop.f32.mrb[53].mxu1  ;;  %v19600_v55 = vld [vmem:[#allocation2 + $0x80] sm:$0xff] }
 0x22c   : > { %16621 = vmatprep.subr.bf16.mxu0 %v17672_v29  ;;  %v19592_v8 = vadd.f32 %v15814_v62, %v15813_v20  ;;  %v15816_v5 = vpop.f32.mrb[54].mxu1  ;;  %v17676_v20 = vld [vmem:[%s22583_s4 + $0x420] sm:$0xff]  }
 0x22d   : > { %v19594_v4 = vpop.f32.mrb[60].mxu0  ;;  %v15817_v1 = vpop.f32.mrb[55].mxu1 }
 0x22e   : > { %22649 = vst [vmem:[#allocation31_spill] sm:$0xff] %v19592_v8  ;;  %22650 = vst [vmem:[#allocation32_spill] sm:$0xff] %v19594_v4  ;;  %v19598_v37 = vpop.f32.mrb[61].mxu0  ;;  %v19602_v6 = vadd.f32 %v15817_v1, %v15816_v5  ;;  %v17677_v8 = vld [vmem:[%s22583_s4 + $0x468] sm:$0xff]   ;;  %v14846_v5 = vcombine.high %v19451_v28, %v19600_v55 }
 0x22f   : > { %22651 = vst [vmem:[#allocation33_spill] sm:$0xff] %v19598_v37  ;;  %v19606_v29 = vpop.f32.mrb[62].mxu0  ;;  %16622 = vmatpush3.bf16.msra.mxu0 %v17673_v40  ;;  %5836 = vmatmul.mubr.bf16.gmra.mrb[160].mxu1 %v19596_v33  ;;  %v17678_v1 = vld [vmem:[%s22583_s4 + $0x428] sm:$0xff]  }
 0x230   : > { %22652 = vst [vmem:[#allocation34_spill] sm:$0xff] %v19602_v6  ;;  %22653 = vst [vmem:[#allocation35_spill] sm:$0xff] %v19606_v29  ;;  %v19612_v62 = vpop.f32.mrb[63].mxu0  ;;  %16623 = vmatprep.subr.bf16.mxu0 %v17675_v41  ;;  %5843 = vmatprep.mubr.bf16.mxu1 %v19604_v0  ;;  %v17679_v41 = vld [vmem:[%s22583_s4 + $0x470] sm:$0xff]  }
 0x231   : > { %22654 = vst [vmem:[#allocation36_spill] sm:$0xff] %v19612_v62 }
 0x232   : > { %8033 = vmatmul.mubr.bf16.gmra.mrb[168].mxu0 %v19460_v60  ;;  %v15819_v40 = vpop.f32.mrb[56].mxu1 }
 0x233   : > { %8040 = vmatprep.mubr.bf16.mxu0 %v14846_v5  ;;  %16624 = vmatpush3.bf16.msra.mxu0 %v17676_v20  ;;  %v15820_v6 = vpop.f32.mrb[57].mxu1  ;;  %v19633_v20 = vld [vmem:[#allocation2 + $0x10c] ss:$8 sps:$4 sm:$0xff]  }
 0x234   : > { %16625 = vmatprep.subr.bf16.mxu0 %v17677_v8  ;;  %v19627_v62 = vadd.f32 %v15820_v6, %v15819_v40  ;;  %v15822_v29 = vpop.f32.mrb[58].mxu1  ;;  %v17681_v8 = vld [vmem:[%s22583_s4 + $0x430] sm:$0xff]   ;;  %v14845_v40 = vcombine.low %v19451_v28, %v19600_v55 }
 0x235   : > { %v16007_v37 = vpop.f32.mrb[64].mxu0  ;;  %v15823_v4 = vpop.f32.mrb[59].mxu1 }
 0x236   : > { %22655 = vst [vmem:[#allocation37_spill] sm:$0xff] %v19627_v62  ;;  %v16008_v60 = vpop.f32.mrb[65].mxu0  ;;  %v19631_v5 = vadd.f32 %v15823_v4, %v15822_v29  ;;  %v17683_v4 = vld [vmem:[%s22583_s4 + $0x478] sm:$0xff]   ;;  %v19655_v62 = vld [vmem:[#allocation2 + $0x108] ss:$8 sps:$4 sm:$0xff]  }
 0x237   : > { %v19635_v51 = vadd.f32 %v16008_v60, %v16007_v37  ;;  %v16010_v10 = vpop.f32.mrb[66].mxu0  ;;  %16626 = vmatpush3.bf16.msra.mxu0 %v17678_v1  ;;  %5844 = vmatmul.mubr.bf16.gmra.mrb[164].mxu1 %v19629_v23  ;;  %v17684_v1 = vld [vmem:[%s22583_s4 + $0x438] sm:$0xff]  }
 0x238   : > { %22656 = vst [vmem:[#allocation38_spill] sm:$0xff] %v19631_v5  ;;  %v16011_v6 = vpop.f32.mrb[67].mxu0  ;;  %16627 = vmatprep.subr.bf16.mxu0 %v17679_v41  ;;  %5851 = vmatprep.mubr.bf16.mxu1 %v19633_v20 }
 0x239   : > { %22657 = vst [vmem:[#allocation39_spill] sm:$0xff] %v19635_v51  ;;  %v19647_v37 = vadd.f32 %v16011_v6, %v16010_v10 }
 0x23a   : > { %8041 = vmatmul.mubr.bf16.gmra.mrb[172].mxu0 %v14845_v40  ;;  %v15825_v29 = vpop.f32.mrb[60].mxu1  ;;  %v19659_v40 = vld [vmem:[#allocation2 + $0x124] ss:$8 sps:$4 sm:$0xff]  }
 0x23b   : > { %22658 = vst [vmem:[#allocation40_spill] sm:$0xff] %v19647_v37  ;;  %8048 = vmatprep.mubr.bf16.mxu0 %v19501_v26  ;;  %16628 = vmatpush3.bf16.msra.mxu0 %v17681_v8  ;;  %v15826_v60 = vpop.f32.mrb[61].mxu1 }
 0x23c   : > { %16629 = vmatprep.subr.bf16.mxu0 %v17683_v4  ;;  %v19653_v28 = vadd.f32 %v15826_v60, %v15825_v29  ;;  %v15828_v41 = vpop.f32.mrb[62].mxu1 }
 0x23d   : > { %v16013_v51 = vpop.f32.mrb[68].mxu0  ;;  %v15829_v5 = vpop.f32.mrb[63].mxu1 }
 0x23e   : > { %22659 = vst [vmem:[#allocation41_spill] sm:$0xff] %v19653_v28  ;;  %v16014_v10 = vpop.f32.mrb[69].mxu0  ;;  %v19657_v6 = vadd.f32 %v15829_v5, %v15828_v41 }
 0x23f   : > { %v19661_v26 = vadd.f32 %v16014_v10, %v16013_v51  ;;  %v16016_v8 = vpop.f32.mrb[70].mxu0  ;;  %16630 = vmatpush3.bf16.msra.mxu0 %v17684_v1  ;;  %5852 = vmatmul.mubr.bf16.gmra.mrb[168].mxu1 %v19655_v62  ;;  %v19669_v10 = vld [vmem:[#allocation2 + $0x120] ss:$8 sps:$4 sm:$0xff]  }
 0x240   : > { %22660 = vst [vmem:[#allocation42_spill] sm:$0xff] %v19657_v6  ;;  %v16017_v37 = vpop.f32.mrb[71].mxu0  ;;  %5859 = vmatprep.mubr.bf16.mxu1 %v19659_v40 }
 0x241   : > { %22661 = vst [vmem:[#allocation43_spill] sm:$0xff] %v19661_v26  ;;  %v19665_v4 = vadd.f32 %v16017_v37, %v16016_v8 }
 0x242   : > { %8049 = vmatmul.mubr.bf16.gmra.mrb[176].mxu0 %v19513_v22  ;;  %v15847_v29 = vpop.f32.mrb[64].mxu1 }
 0x243   : > { %22662 = vst [vmem:[#allocation44_spill] sm:$0xff] %v19665_v4  ;;  %8056 = vmatprep.mubr.bf16.mxu0 %v19519_v15  ;;  %v15848_v5 = vpop.f32.mrb[65].mxu1  ;;  %v19692_v4 = vld [vmem:[#allocation2 + $0x154] ss:$8 sps:$4 sm:$0xff]  }
 0x244   : > { %v15849_v60 = vadd.f32 %v15848_v5, %v15847_v29  ;;  %v15850_v41 = vpop.f32.mrb[66].mxu1 }
 0x245   : > { %v16019_v6 = vpop.f32.mrb[72].mxu0  ;;  %v15851_v51 = vpop.f32.mrb[67].mxu1 }
 0x246   : > { %v16020_v1 = vpop.f32.mrb[73].mxu0  ;;  %v19672_v26 = vadd.f32 %v15849_v60, %v19102_v16  ;;  %v15852_v28 = vadd.f32 %v15851_v51, %v15850_v41 }
 0x247   : > { %v19676_v37 = vadd.f32 %v16020_v1, %v16019_v6  ;;  %v16022_v22 = vpop.f32.mrb[74].mxu0  ;;  %5860 = vmatmul.mubr.bf16.gmra.mrb[172].mxu1 %v19669_v10  ;;  %v19687_v1 = vld [vmem:[#allocation2 + $0x138] ss:$8 sps:$4 sm:$0xff]  }
 0x248   : > { %v16023_v15 = vpop.f32.mrb[75].mxu0  ;;  %v19680_v8 = vadd.f32 %v15852_v28, %v19126_v19  ;;  %5867 = vmatprep.mubr.bf16.mxu1 %v19674_v46 }
 0x249   : > { %22663 = vst [vmem:[#allocation45_spill] sm:$0xff] %v19676_v37  ;;  %v19683_v29 = vadd.f32 %v16023_v15, %v16022_v22 }
 0x24a   : > { %8057 = vmatmul.mubr.bf16.gmra.mrb[180].mxu0 %v19532_v44  ;;  %v15853_v16 = vpop.f32.mrb[68].mxu1 }
 0x24b   : > { %22664 = vst [vmem:[#allocation46_spill] sm:$0xff] %v19683_v29  ;;  %8064 = vmatprep.mubr.bf16.mxu0 %v19538_v36  ;;  %v15854_v5 = vpop.f32.mrb[69].mxu1  ;;  %v19710_v29 = vld [vmem:[#allocation2 + $0x16c] ss:$8 sps:$4 sm:$0xff]  }
 0x24c   : > { %v15855_v60 = vadd.f32 %v15854_v5, %v15853_v16  ;;  %v15856_v6 = vpop.f32.mrb[70].mxu1 }
 0x24d   : > { %v16025_v41 = vpop.f32.mrb[76].mxu0  ;;  %v15857_v51 = vpop.f32.mrb[71].mxu1 }
 0x24e   : > { %v16026_v37 = vpop.f32.mrb[77].mxu0  ;;  %v19690_v19 = vadd.f32 %v15855_v60, %v19314_v14  ;;  %v15858_v28 = vadd.f32 %v15857_v51, %v15856_v6  ;;  %v19705_v51 = vld [vmem:[#allocation2 + $0x150] ss:$8 sps:$4 sm:$0xff]  }
 0x24f   : > { %v19694_v22 = vadd.f32 %v16026_v37, %v16025_v41  ;;  %v16028_v44 = vpop.f32.mrb[78].mxu0  ;;  %5868 = vmatmul.mubr.bf16.gmra.mrb[176].mxu1 %v19687_v1 }
 0x250   : > { %v16029_v36 = vpop.f32.mrb[79].mxu0  ;;  %v19698_v15 = vadd.f32 %v15858_v28, %v19323_v45  ;;  %5875 = vmatprep.mubr.bf16.mxu1 %v19692_v4 }
 0x251   : > { %22665 = vst [vmem:[#allocation47_spill] sm:$0xff] %v19694_v22  ;;  %v19701_v16 = vadd.f32 %v16029_v36, %v16028_v44 }
 0x252   : > { %22666 = vst [vmem:[#allocation48_spill] sm:$0xff] %v19698_v15  ;;  %8065 = vmatmul.mubr.bf16.gmra.mrb[184].mxu0 %v19564_v56  ;;  %v15859_v14 = vpop.f32.mrb[72].mxu1 }
 0x253   : > { %22667 = vst [vmem:[#allocation49_spill] sm:$0xff] %v19701_v16  ;;  %8072 = vmatprep.mubr.bf16.mxu0 %v19570_v47  ;;  %v15860_v5 = vpop.f32.mrb[73].mxu1 }
 0x254   : > { %v15861_v60 = vadd.f32 %v15860_v5, %v15859_v14  ;;  %v15862_v37 = vpop.f32.mrb[74].mxu1  ;;  %v4891_v5 = vld [vmem:[#allocation2 + $0x20] sm:$0xff] }
 0x255   : > { %v16031_v6 = vpop.f32.mrb[80].mxu0  ;;  %v15863_v41 = vpop.f32.mrb[75].mxu1 }
 0x256   : > { %v16032_v22 = vpop.f32.mrb[81].mxu0  ;;  %v19708_v45 = vadd.f32 %v15861_v60, %v19340_v25  ;;  %v15864_v28 = vadd.f32 %v15863_v41, %v15862_v37 }
 0x257   : > { %v19712_v44 = vadd.f32 %v16032_v22, %v16031_v6  ;;  %v16034_v56 = vpop.f32.mrb[82].mxu0  ;;  %5876 = vmatmul.mubr.bf16.gmra.mrb[180].mxu1 %v19705_v51  ;;  %v4988_v22 = vrot.slane %v4891_v5, 5 }
 0x258   : > { %22668 = vst [vmem:[#allocation50_spill] sm:$0xff] %v19708_v45  ;;  %v16035_v47 = vpop.f32.mrb[83].mxu0  ;;  %v19716_v36 = vadd.f32 %v15864_v28, %v19343_v18  ;;  %5883 = vmatprep.mubr.bf16.mxu1 %v19710_v29  ;;  %v19723_v45 = vld [vmem:[#allocation2 + $0x168] ss:$8 sps:$4 sm:$0xff]  }
 0x259   : > { %22669 = vst [vmem:[#allocation51_spill] sm:$0xff] %v19712_v44  ;;  %v19719_v14 = vadd.f32 %v16035_v47, %v16034_v56  ;;  %v4892_v44 = vld [vmem:[#allocation2 + $0x28] sm:$0x11]  ;;  %v4990_v5 = vrot.slane %v4988_v22, 4 }
 0x25a   : > { %22670 = vst [vmem:[#allocation52_spill] sm:$0xff] %v19716_v36  ;;  %8073 = vmatmul.mubr.bf16.gmra.mrb[188].mxu0 %v19596_v33  ;;  %v15865_v25 = vpop.f32.mrb[76].mxu1  ;;  %v22674_v36 = vcombine.high %v19216_v63, %v19218_v17 }
 0x25b   : > { %22671 = vst [vmem:[#allocation53_spill] sm:$0xff] %v19719_v14  ;;  %8080 = vmatprep.mubr.bf16.mxu0 %v19604_v0  ;;  %v15866_v60 = vpop.f32.mrb[77].mxu1  ;;  %v4890_v14 = vld [vmem:[#allocation2 + $0x18] sm:$0xee] }
 0x25c   : > { %v15867_v37 = vadd.f32 %v15866_v60, %v15865_v25  ;;  %v15868_v6 = vpop.f32.mrb[78].mxu1  ;;  %v4991_v25 = vrot.slane %v4892_v44, 5 }
 0x25d   : > { %v16037_v41 = vpop.f32.mrb[84].mxu0  ;;  %v15869_v16 = vpop.f32.mrb[79].mxu1 }
 0x25e   : > { %v16038_v18 = vpop.f32.mrb[85].mxu0  ;;  %v19726_v28 = vadd.f32 %v15867_v37, %v19361_v58  ;;  %v15870_v56 = vadd.f32 %v15869_v16, %v15868_v6  ;;  %v4894_v58 = vld [vmem:[#allocation2 + $0x38] sm:$0xff]  ;;  %v14647_v16 = vrot.slane %v4890_v14, 9  ;;  %v4992_v44 = vsel %vm18346_vm11, %v4990_v5, %v4991_v25  ;;  %v4895_v5 = vld [vmem:[#allocation2 + $0x40] sm:$0x11] }
 0x25f   : > { %v19728_v47 = vadd.f32 %v16038_v18, %v16037_v41  ;;  %v16040_v33 = vpop.f32.mrb[86].mxu0  ;;  %5884 = vmatmul.mubr.bf16.gmra.mrb[184].mxu1 %v19723_v45  ;;  %v19743_v41 = vrot.slane %v4894_v58, 5  ;;  %v22677_v25 = vcombine.low %v19216_v63, %v19218_v17 }
 0x260   : > { %v16041_v0 = vpop.f32.mrb[87].mxu0  ;;  %v19732_v60 = vadd.f32 %v15870_v56, %v19365_v49  ;;  %5891 = vmatprep.mubr.bf16.mxu1 %v22674_v36  ;;  %v4989_v36 = vsel %vm18346_vm11, %v14647_v16, %v4988_v22 }
 0x261   : > { %22672 = vst [vmem:[#allocation54_spill] sm:$0xff] %v19728_v47  ;;  %v19737_v15 = vadd.f32 %v16041_v0, %v16040_v33  ;;  %v14664_v0 = vcombine.high %v4989_v36, %v4992_v44 }
 0x262   : > { %22673 = vst [vmem:[#allocation55_spill] sm:$0xff] %v19732_v60  ;;  %8081 = vmatmul.mubr.bf16.gmra.mrb[192].mxu0 %v19629_v23  ;;  %v15871_v37 = vpop.f32.mrb[80].mxu1  ;;  %v4893_v60 = vld [vmem:[#allocation2 + $0x30] sm:$0xee] }
 0x263   : > { %22675 = vst [vmem:[#allocation56_spill] sm:$0xff] %v19737_v15  ;;  %8088 = vmatprep.mubr.bf16.mxu0 %v19633_v20  ;;  %v15872_v6 = vpop.f32.mrb[81].mxu1  ;;  %v14648_v16 = vrot.slane %v4893_v60, 9  ;;  %v14663_v60 = vcombine.low %v4989_v36, %v4992_v44  ;;  %v4898_v44 = vld [vmem:[#allocation2 + $0x58] sm:$0x11] }
 0x264   : > { %v15873_v49 = vadd.f32 %v15872_v6, %v15871_v37  ;;  %v15874_v18 = vpop.f32.mrb[82].mxu1  ;;  %v22598_v37 = vrot.slane %v19743_v41, 4  ;;  %v4998_v6 = vrot.slane %v4895_v5, 5 }
 0x265   : > { %v16043_v56 = vpop.f32.mrb[88].mxu0  ;;  %v15875_v47 = vpop.f32.mrb[83].mxu1 }
 0x266   : > { %v16044_v33 = vpop.f32.mrb[89].mxu0  ;;  %v19748_v23 = vadd.f32 %v15873_v49, %v19332_v13  ;;  %v15876_v14 = vadd.f32 %v15875_v47, %v15874_v18  ;;  %v4897_v47 = vld [vmem:[#allocation2 + $0x50] sm:$0xff]  ;;  %v4999_v63 = vsel %vm18346_vm11, %v22598_v37, %v4998_v6 }
 0x267   : > { %v19750_v20 = vadd.f32 %v16044_v33, %v16043_v56  ;;  %v16046_v15 = vpop.f32.mrb[90].mxu0  ;;  %5892 = vmatmul.mubr.bf16.gmra.mrb[188].mxu1 %v22677_v25  ;;  %v19767_v17 = vrot.slane %v4897_v47, 5 }
 0x268   : > { %v16047_v58 = vpop.f32.mrb[91].mxu0  ;;  %v19757_v22 = vadd.f32 %v15876_v14, %v19338_v12  ;;  %6093 = vmatprep.mubr.bf16.mxu1 %v14664_v0  ;;  %v17663_v0 = vld [vmem:[%s22583_s4 + $0x3c8] sm:$0xff]  }
 0x269   : > { %22676 = vst [vmem:[#allocation57_spill] sm:$0xff] %v19750_v20  ;;  %v19759_v13 = vadd.f32 %v16047_v58, %v16046_v15  ;;  %v17660_v15 = vld [vmem:[%s22583_s4 + $0x380] sm:$0xff]  }
 0x26a   : > { %8089 = vmatmul.mubr.bf16.gmra.mrb[196].mxu0 %v19655_v62  ;;  %v15877_v49 = vpop.f32.mrb[84].mxu1 }
 0x26b   : > { %22678 = vst [vmem:[#allocation58_spill] sm:$0xff] %v19759_v13  ;;  %8096 = vmatprep.mubr.bf16.mxu0 %v19659_v40  ;;  %v15878_v18 = vpop.f32.mrb[85].mxu1  ;;  %v4996_v40 = vsel %vm18346_vm11, %v14648_v16, %v19743_v41 }
 0x26c   : > { %v15879_v12 = vadd.f32 %v15878_v18, %v15877_v49  ;;  %v15880_v56 = vpop.f32.mrb[86].mxu1  ;;  %v14666_v58 = vcombine.high %v4996_v40, %v4999_v63  ;;  %v4896_v49 = vld [vmem:[#allocation2 + $0x48] sm:$0xee]  ;;  %v22599_v18 = vrot.slane %v19767_v17, 4 }
 0x26d   : > { %v16049_v62 = vpop.f32.mrb[92].mxu0  ;;  %v15881_v33 = vpop.f32.mrb[87].mxu1 }
 0x26e   : > { %v16050_v14 = vpop.f32.mrb[93].mxu0  ;;  %v19779_v5 = vadd.f32 %v15879_v12, %v19346_v54  ;;  %v15882_v25 = vadd.f32 %v15881_v33, %v15880_v56  ;;  %v17664_v54 = vld [vmem:[%s22583_s4 + $0x388] sm:$0xff]   ;;  %v14649_v56 = vrot.slane %v4896_v49, 9  ;;  %v14665_v49 = vcombine.low %v4996_v40, %v4999_v63  ;;  %v4901_v63 = vld [vmem:[#allocation2 + $0x70] sm:$0x11] }
 0x26f   : > { %v19781_v47 = vadd.f32 %v16050_v14, %v16049_v62  ;;  %v16052_v6 = vpop.f32.mrb[94].mxu0  ;;  %6094 = vmatmul.mubr.bf16.vlgmr.msra.gmra.mrb[192].mxu1 %v14663_v60  ;;  %v4900_v12 = vld [vmem:[#allocation2 + $0x68] sm:$0xff]  ;;  %v5005_v62 = vrot.slane %v4898_v44, 5  ;;  %v17669_v60 = vld [vmem:[%s22583_s4 + $0x3d0] sm:$0xff]  }
 0x270   : > { %22679 = vst [vmem:[#allocation59_spill] sm:$0xff] %v19779_v5  ;;  %v16053_v36 = vpop.f32.mrb[95].mxu0  ;;  %v19785_v16 = vadd.f32 %v15882_v25, %v19357_v11  ;;  %16504 = vmatpush3.bf16.msra.mxu1 %v17660_v15  ;;  %6101 = vmatprep.mubr.bf16.mxu1 %v14666_v58  ;;  %v19801_v14 = vrot.slane %v4900_v12, 5 }
 0x271   : > { %22680 = vst [vmem:[#allocation60_spill] sm:$0xff] %v19781_v47  ;;  %v19787_v37 = vadd.f32 %v16053_v36, %v16052_v6  ;;  %16505 = vmatprep.subr.bf16.mxu1 %v17663_v0  ;;  %v5006_v33 = vsel %vm18346_vm11, %v22599_v18, %v5005_v62  ;;  %v17671_v0 = vld [vmem:[%s22583_s4 + $0x390] sm:$0xff]   ;;  %v17680_v36 = vld [vmem:[%s22583_s4 + $0x3d8] sm:$0xff]   ;;  %v4899_v18 = vld [vmem:[#allocation2 + $0x60] sm:$0xee] }
 0x272   : > { %22681 = vst [vmem:[#allocation61_spill] sm:$0xff] %v19785_v16  ;;  %8097 = vmatmul.mubr.bf16.gmra.mrb[200].mxu0 %v19669_v10  ;;  %v15883_v11 = vpop.f32.mrb[88].mxu1 }
 0x273   : > { %22682 = vst [vmem:[#allocation62_spill] sm:$0xff] %v19787_v37  ;;  %8104 = vmatprep.mubr.bf16.mxu0 %v19674_v46  ;;  %v15884_v15 = vpop.f32.mrb[89].mxu1  ;;  %v5003_v46 = vsel %vm18346_vm11, %v14649_v56, %v19767_v17  ;;  %v22600_v56 = vrot.slane %v19801_v14, 4 }
 0x274   : > { %v15885_v25 = vadd.f32 %v15884_v15, %v15883_v11  ;;  %v15886_v10 = vpop.f32.mrb[90].mxu1  ;;  %16506 = vmatpush3.bf16.msra.mxu1 %v17664_v54  ;;  %v14668_v62 = vcombine.high %v5003_v46, %v5006_v33 }
 0x275   : > { %v16183_v58 = vpop.f32.mrb[96].mxu0  ;;  %v15887_v6 = vpop.f32.mrb[91].mxu1  ;;  %16507 = vmatprep.subr.bf16.mxu1 %v17669_v60 }
 0x276   : > { %v16184_v44 = vpop.f32.mrb[97].mxu0  ;;  %v19813_v12 = vadd.f32 %v15885_v25, %v19377_v24  ;;  %v15888_v54 = vadd.f32 %v15887_v6, %v15886_v10  ;;  %v17682_v24 = vld [vmem:[%s22583_s4 + $0x398] sm:$0xff]   ;;  %v14650_v25 = vrot.slane %v4899_v18, 9  ;;  %v5012_v10 = vrot.slane %v4901_v63, 5  ;;  %v17687_v63 = vld [vmem:[%s22583_s4 + $0x3e8] sm:$0xff]  }
 0x277   : > { %v19815_v11 = vadd.f32 %v16184_v44, %v16183_v58  ;;  %v16186_v15 = vpop.f32.mrb[98].mxu0  ;;  %6102 = vmatmul.mubr.bf16.gmra.mrb[196].mxu1 %v14665_v49  ;;  %v17685_v58 = vld [vmem:[%s22583_s4 + $0x3e0] sm:$0xff]   ;;  %v5016_v18 = vrot.slane %v19600_v55, 5 }
 0x278   : > { %22683 = vst [vmem:[#allocation63_spill] sm:$0xff] %v19813_v12  ;;  %v16187_v40 = vpop.f32.mrb[99].mxu0  ;;  %v19819_v60 = vadd.f32 %v15888_v54, %v19394_v38  ;;  %6109 = vmatprep.mubr.bf16.mxu1 %v14668_v62  ;;  %16508 = vmatpush3.bf16.msra.mxu1 %v17671_v0  ;;  %v19833_v38 = vadd.f32 %v19422_v43, %v19416_v7  ;;  %v4904_v54 = vld [vmem:[#allocation2 + $0x88] sm:$0x11] }
 0x279   : > { %v19821_v37 = vadd.f32 %v16187_v40, %v16186_v15  ;;  %16509 = vmatprep.subr.bf16.mxu1 %v17680_v36  ;;  %v19847_v7 = vadd.f32 %v19440_v52, %v19437_v2  ;;  %v14667_v62 = vcombine.low %v5003_v46, %v5006_v33  ;;  %v5010_v15 = vsel %vm18346_vm11, %v14650_v25, %v19801_v14  ;;  %v4902_v33 = vld [vmem:[#allocation2 + $0x78] sm:$0xee] }
 0x27a   : > { %22684 = vst [vmem:[#allocation64_spill] sm:$0xff] %v19819_v60  ;;  %8105 = vmatmul.mubr.bf16.gmra.mrb[204].mxu0 %v19687_v1  ;;  %v15889_v6 = vpop.f32.mrb[92].mxu1  ;;  %v19839_v1 = vsel %vm18346_vm11, %v22600_v56, %v5012_v10  ;;  %v4906_v46 = vld [vmem:[#allocation2 + $0x98] sm:$0xff]  ;;  %v5018_v25 = vrot.slane %v5016_v18, 4 }
 0x27b   : > { %8112 = vmatprep.mubr.bf16.mxu0 %v19692_v4  ;;  %v15890_v0 = vpop.f32.mrb[93].mxu1  ;;  %v17686_v4 = vld [vmem:[%s22583_s4 + $0x3a0] sm:$0xff]   ;;  %v14670_v10 = vcombine.high %v5010_v15, %v19839_v1 }
 0x27c   : > { %v15891_v49 = vadd.f32 %v15890_v0, %v15889_v6  ;;  %v15892_v44 = vpop.f32.mrb[94].mxu1  ;;  %16510 = vmatpush3.bf16.msra.mxu1 %v17682_v24  ;;  %v5019_v0 = vrot.slane %v4904_v54, 5 }
 0x27d   : > { %v16189_v36 = vpop.f32.mrb[100].mxu0  ;;  %v15893_v43 = vpop.f32.mrb[95].mxu1  ;;  %16511 = vmatprep.subr.bf16.mxu1 %v17685_v58 }
 0x27e   : > { %v16190_v55 = vpop.f32.mrb[101].mxu0  ;;  %v19856_v40 = vadd.f32 %v15891_v49, %v19414_v61  ;;  %v15894_v24 = vadd.f32 %v15893_v43, %v15892_v44  ;;  %v17688_v61 = vld [vmem:[%s22583_s4 + $0x3a8] sm:$0xff]   ;;  %v14651_v49 = vrot.slane %v4902_v33, 9  ;;  %v4905_v44 = vld [vmem:[#allocation2 + $0x90] sm:$0xee] }
 0x27f   : > { %v19859_v2 = vadd.f32 %v16190_v55, %v16189_v36  ;;  %v16192_v52 = vpop.f32.mrb[102].mxu0  ;;  %6110 = vmatmul.mubr.bf16.gmra.mrb[200].mxu1 %v14667_v62  ;;  %v19870_v36 = vrot.slane %v4906_v46, 5  ;;  %v4907_v43 = vld [vmem:[#allocation2 + $0xa0] sm:$0x11] }
 0x280   : > { %22685 = vst [vmem:[#allocation65_spill] sm:$0xff] %v19856_v40  ;;  %v16193_v6 = vpop.f32.mrb[103].mxu0  ;;  %v19862_v58 = vadd.f32 %v15894_v24, %v19433_v21  ;;  %6117 = vmatprep.mubr.bf16.mxu1 %v14670_v10  ;;  %16512 = vmatpush3.bf16.msra.mxu1 %v17686_v4  ;;  %v17689_v21 = vld [vmem:[%s22583_s4 + $0x3f0] sm:$0xff]   ;;  %v19878_v4 = vadd.f32 %v19462_v9, %v19455_v53 }
 0x281   : > { %v19864_v56 = vadd.f32 %v16193_v6, %v16192_v52  ;;  %16513 = vmatprep.subr.bf16.mxu1 %v17687_v63  ;;  %v14652_v63 = vrot.slane %v4905_v44, 9  ;;  %v17690_v52 = vld [vmem:[%s22583_s4 + $0x3b0] sm:$0xff]   ;;  %v14669_v53 = vcombine.low %v5010_v15, %v19839_v1  ;;  %v5017_v9 = vsel %vm18346_vm11, %v14651_v49, %v5016_v18  ;;  %v6347_v6 = vld [vmem:[#allocation2 + $0x180] sm:$0xff]  ;;  %v19901_v49 = vld [vmem:[#allocation2 + $0x188] sm:$0xff] }
 0x282   : > { %22686 = vst [vmem:[#allocation66_spill] sm:$0xff] %v19862_v58  ;;  %8113 = vmatmul.mubr.bf16.gmra.mrb[208].mxu0 %v19705_v51  ;;  %v15895_v54 = vpop.f32.mrb[96].mxu1  ;;  %v5020_v51 = vsel %vm18346_vm11, %v5018_v25, %v5019_v0  ;;  %v22601_v25 = vrot.slane %v19870_v36, 4  ;;  %v5026_v0 = vrot.slane %v4907_v43, 5  ;;  %v4909_v15 = vld [vmem:[#allocation2 + $0xb0] sm:$0xff] }
 0x283   : > { %8120 = vmatprep.mubr.bf16.mxu0 %v19710_v29  ;;  %v15896_v62 = vpop.f32.mrb[97].mxu1  ;;  %v19887_v29 = vadd.f32 %v19477_v35, %v19474_v48  ;;  %v14672_v48 = vcombine.high %v5017_v9, %v5020_v51  ;;  %v7143_v40 = vld [vmem:[#allocation2 + $0x70] sm:$0x11] }
 0x284   : > { %v15897_v55 = vadd.f32 %v15896_v62, %v15895_v54  ;;  %v15898_v24 = vpop.f32.mrb[98].mxu1  ;;  %16514 = vmatpush3.bf16.msra.mxu1 %v17688_v61  ;;  %v17691_v61 = vld [vmem:[%s22583_s4 + $0x3f8] sm:$0xff]   ;;  %v14868_v62 = vcombine.high %v6347_v6, %v19901_v49 }
 0x285   : > { %v16195_v10 = vpop.f32.mrb[104].mxu0  ;;  %v15899_v33 = vpop.f32.mrb[99].mxu1  ;;  %16515 = vmatprep.subr.bf16.mxu1 %v17689_v21 }
 0x286   : > { %v16196_v46 = vpop.f32.mrb[105].mxu0  ;;  %v19897_v44 = vadd.f32 %v15897_v55, %v19453_v50  ;;  %v15900_v35 = vadd.f32 %v15899_v33, %v15898_v24  ;;  %v17692_v50 = vld [vmem:[%s22583_s4 + $0x3b8] sm:$0xff]   ;;  %v19913_v55 = vrot.slane %v4909_v15, 5 }
 0x287   : > { %v19899_v54 = vadd.f32 %v16196_v46, %v16195_v10  ;;  %v16198_v1 = vpop.f32.mrb[106].mxu0  ;;  %6118 = vmatmul.mubr.bf16.gmra.mrb[204].mxu1 %v14669_v53  ;;  %v5027_v10 = vsel %vm18346_vm11, %v22601_v25, %v5026_v0 }
 0x288   : > { %22687 = vst [vmem:[#allocation67_spill] sm:$0xff] %v19897_v44  ;;  %v16199_v18 = vpop.f32.mrb[107].mxu0  ;;  %v19904_v43 = vadd.f32 %v15900_v35, %v19470_v57  ;;  %6125 = vmatprep.mubr.bf16.mxu1 %v14672_v48  ;;  %16516 = vmatpush3.bf16.msra.mxu1 %v17690_v52  ;;  %v5024_v57 = vsel %vm18346_vm11, %v14652_v63, %v19870_v36  ;;  %v22704_v44 = vld [vmem:[#allocation24_spill] sm:$0xff] }
 0x289   : > { %v19906_v21 = vadd.f32 %v16199_v18, %v16198_v1  ;;  %16517 = vmatprep.subr.bf16.mxu1 %v17691_v61  ;;  %v19924_v52 = vadd.f32 %v19493_v27, %v19489_v3  ;;  %v4908_v61 = vld [vmem:[#allocation2 + $0xa8] sm:$0xee]  ;;  %v19928_v35 = vadd.f32 %v19505_v31, %v19503_v59  ;;  %v14671_v48 = vcombine.low %v5017_v9, %v5020_v51  ;;  %v4910_v18 = vld [vmem:[#allocation2 + $0xb8] sm:$0x11]  ;;  %v7137_v51 = vld [vmem:[#allocation2 + $0x40] sm:$0x11] }
 0x28a   : > { %22688 = vst [vmem:[#allocation68_spill] sm:$0xff] %v19904_v43  ;;  %8121 = vmatmul.mubr.bf16.gmra.mrb[212].mxu0 %v19723_v45  ;;  %v15901_v24 = vpop.f32.mrb[100].mxu1  ;;  %v14674_v1 = vcombine.high %v5024_v57, %v5027_v10  ;;  %v14867_v59 = vcombine.low %v6347_v6, %v19901_v49  ;;  %v14653_v31 = vrot.slane %v4908_v61, 9  ;;  %v4912_v9 = vld [vmem:[#allocation2 + $0xc8] sm:$0xff]  ;;  %v7236_v6 = vrot.slane %v7137_v51, 5  ;;  %v22697_v43 = vld [vmem:[#allocation16_spill] sm:$0xff] }
 0x28b   : > { %8128 = vmatprep.mubr.bf16.mxu0 %v14868_v62  ;;  %v15902_v33 = vpop.f32.mrb[101].mxu1  ;;  %v4913_v61 = vld [vmem:[#allocation2 + $0xd0] sm:$0x11] }
 0x28c   : > { %v15903_v45 = vadd.f32 %v15902_v33, %v15901_v24  ;;  %v15904_v53 = vpop.f32.mrb[102].mxu1  ;;  %16518 = vmatpush3.bf16.msra.mxu1 %v17692_v50  ;;  %v17815_v33 = vld [vmem:[#allocation2] sm:$0xff] }
 0x28d   : > { %v16201_v46 = vpop.f32.mrb[108].mxu0  ;;  %v15905_v63 = vpop.f32.mrb[103].mxu1  ;;  %v14870_v50 = vcombine.high %v17815_v33, %v17815_v33 }
 0x28e   : > { %v16202_v15 = vpop.f32.mrb[109].mxu0  ;;  %v19932_v3 = vadd.f32 %v15903_v45, %v19487_v30  ;;  %v15906_v27 = vadd.f32 %v15905_v63, %v15904_v53  ;;  %v5033_v30 = vrot.slane %v4910_v18, 5  ;;  %v7135_v45 = vld [vmem:[#allocation2 + $0x30] sm:$0xee]  ;;  %v4911_v53 = vld [vmem:[#allocation2 + $0xc0] sm:$0xee] }
 0x28f   : > { %v19934_v62 = vadd.f32 %v16202_v15, %v16201_v46  ;;  %v16204_v24 = vpop.f32.mrb[110].mxu0  ;;  %6126 = vmatmul.mubr.bf16.gmra.mrb[208].mxu1 %v14671_v48  ;;  %v22691_v63 = vrot.slane %v19913_v55, 4  ;;  %v19948_v15 = vrot.slane %v4912_v9, 5  ;;  %v14903_v18 = vrot.slane %v7135_v45, 9  ;;  %v22693_v9 = vld [vmem:[#allocation17_spill] sm:$0xff] }
 0x290   : > { %22689 = vst [vmem:[#allocation69_spill] sm:$0xff] %v19932_v3  ;;  %v16205_v25 = vpop.f32.mrb[111].mxu0  ;;  %v19938_v47 = vadd.f32 %v15906_v27, %v19499_v34  ;;  %6133 = vmatprep.mubr.bf16.mxu1 %v14674_v1  ;;  %v19952_v34 = vadd.f32 %v19515_v39, %v19511_v32  ;;  %v5031_v1 = vsel %vm18346_vm11, %v14653_v31, %v19913_v55  ;;  %v14654_v31 = vrot.slane %v4911_v53, 9 }
 0x291   : > { %v19940_v0 = vadd.f32 %v16205_v25, %v16204_v24  ;;  %v19946_v48 = vsel %vm18346_vm11, %v22691_v63, %v5033_v30  ;;  %v22694_v63 = vld [vmem:[#allocation18_spill] sm:$0xff]  ;;  %v5040_v45 = vrot.slane %v4913_v61, 5 }
 0x292   : > { %22690 = vst [vmem:[#allocation70_spill] sm:$0xff] %v19938_v47  ;;  %8129 = vmatmul.mubr.bf16.gmra.mrb[216].mxu0 %v14867_v59  ;;  %v15907_v46 = vpop.f32.mrb[104].mxu1  ;;  %v14673_v59 = vcombine.low %v5024_v57, %v5027_v10  ;;  %v19963_v13 = vadd.f32 %v22694_v63, %v22693_v9  ;;  %v14676_v39 = vcombine.high %v5031_v1, %v19946_v48  ;;  %v4915_v63 = vld [vmem:[#allocation2 + $0xe0] sm:$0xff] }
 0x293   : > { %8136 = vmatprep.mubr.bf16.mxu0 %v14870_v50  ;;  %v15908_v25 = vpop.f32.mrb[105].mxu1  ;;  %v22692_v50 = vrot.slane %v19743_v41, 4  ;;  %v14869_v47 = vcombine.low %v17815_v33, %v17815_v33  ;;  %v7234_v9 = vsel %vm18346_vm11, %v14903_v18, %v19743_v41  ;;  %v19991_v18 = vrot.slane %v4915_v63, 5 }
 0x294   : > { %v15909_v27 = vadd.f32 %v15908_v25, %v15907_v46  ;;  %v15910_v24 = vpop.f32.mrb[106].mxu1  ;;  %v22695_v46 = vld [vmem:[#allocation15_spill] sm:$0xff] }
 0x295   : > { %v16207_v30 = vpop.f32.mrb[112].mxu0  ;;  %v7237_v51 = vsel %vm18346_vm11, %v22692_v50, %v7236_v6  ;;  %v15911_v32 = vpop.f32.mrb[107].mxu1  ;;  %v22602_v6 = vrot.slane %v19948_v15, 4 }
 0x296   : > { %v16208_v20 = vpop.f32.mrb[113].mxu0  ;;  %v19967_v25 = vadd.f32 %v15909_v27, %v22695_v46  ;;  %v15912_v57 = vadd.f32 %v15911_v32, %v15910_v24  ;;  %v14920_v61 = vcombine.high %v7234_v9, %v7237_v51  ;;  %v7138_v27 = vld [vmem:[#allocation2 + $0x48] sm:$0xee]  ;;  %v22701_v32 = vld [vmem:[#allocation21_spill] sm:$0xff]  ;;  %v14919_v60 = vcombine.low %v7234_v9, %v7237_v51 }
 0x297   : > { %v19969_v10 = vadd.f32 %v16208_v20, %v16207_v30  ;;  %v16210_v3 = vpop.f32.mrb[114].mxu0  ;;  %6134 = vmatmul.mubr.bf16.gmra.mrb[212].mxu1 %v14673_v59  ;;  %v7140_v20 = vld [vmem:[#allocation2 + $0x58] sm:$0x11]  ;;  %v19983_v59 = vsel %vm18346_vm11, %v14654_v31, %v19948_v15  ;;  %v19989_v41 = vsel %vm18346_vm11, %v22602_v6, %v5040_v45  ;;  %v22700_v30 = vld [vmem:[#allocation20_spill] sm:$0xff]  ;;  %v14904_v46 = vrot.slane %v7138_v27, 9 }
 0x298   : > { %22696 = vst [vmem:[#allocation17_spill] sm:$0xff] %v19967_v25  ;;  %v16211_v50 = vpop.f32.mrb[115].mxu0  ;;  %v19976_v33 = vadd.f32 %v15912_v57, %v22697_v43  ;;  %6141 = vmatprep.mubr.bf16.mxu1 %v14676_v39  ;;  %v4914_v43 = vld [vmem:[#allocation2 + $0xd8] sm:$0xee]  ;;  %v7243_v57 = vrot.slane %v7140_v20, 5  ;;  %v22703_v25 = vld [vmem:[#allocation23_spill] sm:$0xff]  ;;  %v14678_v63 = vcombine.high %v19983_v59, %v19989_v41 }
 0x299   : > { %v19978_v53 = vadd.f32 %v16211_v50, %v16210_v3  ;;  %v4916_v3 = vld [vmem:[#allocation2 + $0xe8] sm:$0x11]  ;;  %v20000_v45 = vadd.f32 %v22704_v44, %v22703_v25  ;;  %v14655_v20 = vrot.slane %v4914_v43, 9  ;;  %v22603_v25 = vrot.slane %v19991_v18, 4  ;;  %v22710_v43 = vld [vmem:[#allocation22_spill] sm:$0xff] }
 0x29a   : > { %22698 = vst [vmem:[#allocation18_spill] sm:$0xff] %v19976_v33  ;;  %8137 = vmatmul.mubr.bf16.gmra.mrb[220].mxu0 %v14869_v47  ;;  %v15913_v24 = vpop.f32.mrb[108].mxu1  ;;  %v19995_v47 = vadd.f32 %v22701_v32, %v22700_v30  ;;  %v22706_v30 = vrot.slane %v19767_v17, 4  ;;  %v22707_v32 = vld [vmem:[#allocation19_spill] sm:$0xff] }
 0x29b   : > { %22699 = vst [vmem:[#allocation15_spill] sm:$0xff] %v19978_v53  ;;  %8338 = vmatprep.mubr.bf16.mxu0 %v14920_v61  ;;  %v15914_v39 = vpop.f32.mrb[109].mxu1  ;;  %v14675_v61 = vcombine.low %v5031_v1, %v19946_v48  ;;  %22705 = vst [vmem:[#allocation20_spill] sm:$0xff] %v20000_v45  ;;  %v7241_v45 = vsel %vm18346_vm11, %v14904_v46, %v19767_v17  ;;  %v20027_v9 = vsel %vm18346_vm11, %v14655_v20, %v19991_v18  ;;  %v4919_v46 = vld [vmem:[#allocation2 + $0x100] sm:$0x11] }
 0x29c   : > { %22702 = vst [vmem:[#allocation16_spill] sm:$0xff] %v19995_v47  ;;  %v15915_v50 = vadd.f32 %v15914_v39, %v15913_v24  ;;  %v15916_v31 = vpop.f32.mrb[110].mxu1  ;;  %v7244_v27 = vsel %vm18346_vm11, %v22706_v30, %v7243_v57  ;;  %v5047_v24 = vrot.slane %v4916_v3, 5  ;;  %v4918_v57 = vld [vmem:[#allocation2 + $0xf8] sm:$0xff]  ;;  %v14677_v20 = vcombine.low %v19983_v59, %v19989_v41 }
 0x29d   : > { %v16213_v33 = vpop.f32.mrb[116].mxu0  ;;  %v15917_v6 = vpop.f32.mrb[111].mxu1  ;;  %v22721_v41 = vld [vmem:[#allocation25_spill] sm:$0xff] }
 0x29e   : > { %v16214_v58 = vpop.f32.mrb[117].mxu0  ;;  %v20009_v39 = vadd.f32 %v15915_v50, %v22707_v32  ;;  %v15918_v48 = vadd.f32 %v15917_v6, %v15916_v31  ;;  %v7141_v6 = vld [vmem:[#allocation2 + $0x60] sm:$0xee]  ;;  %v20033_v17 = vsel %vm18346_vm11, %v22603_v25, %v5047_v24 }
 0x29f   : > { %v20011_v1 = vadd.f32 %v16214_v58, %v16213_v33  ;;  %v16216_v44 = vpop.f32.mrb[118].mxu0  ;;  %6142 = vmatmul.mubr.bf16.gmra.mrb[216].mxu1 %v14675_v61  ;;  %v14922_v58 = vcombine.high %v7241_v45, %v7244_v27  ;;  %v7250_v33 = vrot.slane %v7143_v40, 5  ;;  %v20022_v31 = vld [vmem:[#allocation2 + $0x80] sm:$0xff]  ;;  %v20035_v61 = vrot.slane %v4918_v57, 5  ;;  %v22715_v40 = vld [vmem:[#allocation27_spill] sm:$0xff]  ;;  %v22718_v57 = vld [vmem:[#allocation29_spill] sm:$0xff] }
 0x2a0   : > { %22708 = vst [vmem:[#allocation21_spill] sm:$0xff] %v20009_v39  ;;  %v16217_v12 = vpop.f32.mrb[119].mxu0  ;;  %v20018_v3 = vadd.f32 %v15918_v48, %v22710_v43  ;;  %6149 = vmatprep.mubr.bf16.mxu1 %v14678_v63  ;;  %22713 = vst [vmem:[#allocation22_spill] sm:$0xff] %v20022_v31  ;;  %v14905_v32 = vrot.slane %v7141_v6, 9  ;;  %v22719_v25 = vld [vmem:[#allocation30_spill] sm:$0xff]  ;;  %v14680_v6 = vcombine.high %v20027_v9, %v20033_v17  ;;  %v7254_v59 = vrot.slane %v20022_v31, 5 }
 0x2a1   : > { %22709 = vst [vmem:[#allocation23_spill] sm:$0xff] %v20011_v1  ;;  %v20020_v50 = vadd.f32 %v16217_v12, %v16216_v44  ;;  %v4917_v12 = vld [vmem:[#allocation2 + $0xf0] sm:$0xee] }
 0x2a2   : > { %22711 = vst [vmem:[#allocation24_spill] sm:$0xff] %v20018_v3  ;;  %8339 = vmatmul.mubr.bf16.vlgmr.msra.gmra.mrb[224].mxu0 %v14919_v60  ;;  %v15919_v51 = vpop.f32.mrb[112].mxu1  ;;  %v22714_v60 = vld [vmem:[#allocation26_spill] sm:$0xff]  ;;  %v20051_v3 = vadd.f32 %v22719_v25, %v22718_v57  ;;  %v7146_v25 = vld [vmem:[#allocation2 + $0x88] sm:$0x11]  ;;  %v22724_v1 = vld [vmem:[#allocation28_spill] sm:$0xff] }
 0x2a3   : > { %22712 = vst [vmem:[#allocation19_spill] sm:$0xff] %v20020_v50  ;;  %8346 = vmatprep.mubr.bf16.mxu0 %v14922_v58  ;;  %v20039_v63 = vadd.f32 %v22715_v40, %v22714_v60  ;;  %v15920_v30 = vpop.f32.mrb[113].mxu1  ;;  %v22717_v58 = vrot.slane %v19801_v14, 4  ;;  %v14656_v40 = vrot.slane %v4917_v12, 9  ;;  %v7248_v12 = vsel %vm18346_vm11, %v14905_v32, %v19801_v14  ;;  %v22727_v32 = vld [vmem:[#allocation32_spill] sm:$0xff] }
 0x2a4   : > { %v15921_v48 = vadd.f32 %v15920_v30, %v15919_v51  ;;  %v15922_v44 = vpop.f32.mrb[114].mxu1  ;;  %22720 = vst [vmem:[#allocation27_spill] sm:$0xff] %v20051_v3  ;;  %v5054_v30 = vrot.slane %v4919_v46, 5  ;;  %v14921_v3 = vcombine.low %v7241_v45, %v7244_v27  ;;  %v4921_v46 = vld [vmem:[#allocation2 + $0x110] sm:$0xff]  ;;  %v4920_v27 = vld [vmem:[#allocation2 + $0x108] sm:$0xee] }
 0x2a5   : > { %22716 = vst [vmem:[#allocation26_spill] sm:$0xff] %v20039_v63  ;;  %v16219_v43 = vpop.f32.mrb[120].mxu0  ;;  %v20047_v24 = vsel %vm18346_vm11, %v22717_v58, %v7250_v33  ;;  %v15923_v60 = vpop.f32.mrb[115].mxu1  ;;  %v22604_v58 = vrot.slane %v20035_v61, 4  ;;  %v5052_v45 = vsel %vm18346_vm11, %v14656_v40, %v20035_v61  ;;  %v14679_v40 = vcombine.low %v20027_v9, %v20033_v17 }
 0x2a6   : > { %v16220_v51 = vpop.f32.mrb[121].mxu0  ;;  %v20057_v39 = vadd.f32 %v15921_v48, %v22721_v41  ;;  %v15924_v63 = vadd.f32 %v15923_v60, %v15922_v44  ;;  %v14924_v44 = vcombine.high %v7248_v12, %v20047_v24  ;;  %v7256_v60 = vrot.slane %v7254_v59, 4 }
 0x2a7   : > { %v20059_v50 = vadd.f32 %v16220_v51, %v16219_v43  ;;  %v16222_v33 = vpop.f32.mrb[122].mxu0  ;;  %6150 = vmatmul.mubr.bf16.gmra.mrb[220].mxu1 %v14677_v20  ;;  %v7144_v43 = vld [vmem:[#allocation2 + $0x78] sm:$0xee]  ;;  %v7257_v51 = vrot.slane %v7146_v25, 5  ;;  %v5055_v14 = vsel %vm18346_vm11, %v22604_v58, %v5054_v30 }
 0x2a8   : > { %22722 = vst [vmem:[#allocation29_spill] sm:$0xff] %v20057_v39  ;;  %v16223_v57 = vpop.f32.mrb[123].mxu0  ;;  %v20066_v16 = vadd.f32 %v15924_v63, %v22724_v1  ;;  %6157 = vmatprep.mubr.bf16.mxu1 %v14680_v6  ;;  %v4922_v1 = vld [vmem:[#allocation2 + $0x118] sm:$0x11]  ;;  %v20078_v63 = vrot.slane %v4921_v46, 5  ;;  %v22731_v39 = vld [vmem:[#allocation36_spill] sm:$0xff]  ;;  %v14682_v58 = vcombine.high %v5052_v45, %v5055_v14 }
 0x2a9   : > { %22723 = vst [vmem:[#allocation30_spill] sm:$0xff] %v20059_v50  ;;  %v20068_v48 = vadd.f32 %v16223_v57, %v16222_v33  ;;  %v22728_v6 = vld [vmem:[#allocation33_spill] sm:$0xff]  ;;  %v14906_v33 = vrot.slane %v7144_v43, 9  ;;  %v7258_v50 = vsel %vm18346_vm11, %v7256_v60, %v7257_v51  ;;  %v22733_v43 = vld [vmem:[#allocation31_spill] sm:$0xff] }
 0x2aa   : > { %22725 = vst [vmem:[#allocation25_spill] sm:$0xff] %v20066_v16  ;;  %8347 = vmatmul.mubr.bf16.gmra.mrb[228].mxu0 %v14921_v3  ;;  %v15925_v20 = vpop.f32.mrb[116].mxu1  ;;  %v20082_v3 = vadd.f32 %v22728_v6, %v22727_v32  ;;  %v22730_v16 = vld [vmem:[#allocation35_spill] sm:$0xff]  ;;  %v14657_v32 = vrot.slane %v4920_v27, 9  ;;  %v5061_v6 = vrot.slane %v4922_v1, 5  ;;  %v22605_v17 = vrot.slane %v20078_v63, 4 }
 0x2ab   : > { %22726 = vst [vmem:[#allocation28_spill] sm:$0xff] %v20068_v48  ;;  %8354 = vmatprep.mubr.bf16.mxu0 %v14924_v44  ;;  %v15926_v41 = vpop.f32.mrb[117].mxu1  ;;  %v20088_v48 = vadd.f32 %v22731_v39, %v22730_v16  ;;  %v7149_v16 = vld [vmem:[#allocation2 + $0xa0] sm:$0x11]  ;;  %v7255_v60 = vsel %vm18346_vm11, %v14906_v33, %v7254_v59  ;;  %v4924_v51 = vld [vmem:[#allocation2 + $0x128] sm:$0xff] }
 0x2ac   : > { %22729 = vst [vmem:[#allocation32_spill] sm:$0xff] %v20082_v3  ;;  %v15927_v25 = vadd.f32 %v15926_v41, %v15925_v20  ;;  %v15928_v57 = vpop.f32.mrb[118].mxu1  ;;  %v7147_v3 = vld [vmem:[#allocation2 + $0x90] sm:$0xee]  ;;  %v22736_v27 = vld [vmem:[#allocation34_spill] sm:$0xff]  ;;  %v20115_v59 = vsel %vm18346_vm11, %v22605_v17, %v5061_v6  ;;  %v20117_v33 = vrot.slane %v4924_v51, 5 }
 0x2ad   : > { %v16225_v44 = vpop.f32.mrb[124].mxu0  ;;  %22732 = vst [vmem:[#allocation33_spill] sm:$0xff] %v20088_v48  ;;  %v15929_v30 = vpop.f32.mrb[119].mxu1  ;;  %v14923_v48 = vcombine.low %v7248_v12, %v20047_v24  ;;  %v20109_v24 = vsel %vm18346_vm11, %v14657_v32, %v20078_v63  ;;  %v4925_v12 = vld [vmem:[#allocation2 + $0x130] sm:$0x11] }
 0x2ae   : > { %v16226_v46 = vpop.f32.mrb[125].mxu0  ;;  %v20093_v20 = vadd.f32 %v15927_v25, %v22733_v43  ;;  %v15930_v41 = vadd.f32 %v15929_v30, %v15928_v57  ;;  %v14926_v57 = vcombine.high %v7255_v60, %v7258_v50  ;;  %v7264_v30 = vrot.slane %v7149_v16, 5 }
 0x2af   : > { %v20095_v47 = vadd.f32 %v16226_v46, %v16225_v44  ;;  %v16228_v9 = vpop.f32.mrb[126].mxu0  ;;  %6158 = vmatmul.mubr.bf16.gmra.mrb[224].mxu1 %v14679_v40  ;;  %v14907_v44 = vrot.slane %v7147_v3, 9  ;;  %v14681_v43 = vcombine.low %v5052_v45, %v5055_v14  ;;  %v14684_v16 = vcombine.high %v20109_v24, %v20115_v59 }
 0x2b0   : > { %22734 = vst [vmem:[#allocation35_spill] sm:$0xff] %v20093_v20  ;;  %v16229_v39 = vpop.f32.mrb[127].mxu0  ;;  %v20102_v1 = vadd.f32 %v15930_v41, %v22736_v27  ;;  %6165 = vmatprep.mubr.bf16.mxu1 %v14682_v58  ;;  %v4923_v58 = vld [vmem:[#allocation2 + $0x120] sm:$0xee]  ;;  %v22606_v17 = vrot.slane %v20117_v33, 4  ;;  %v14925_v20 = vcombine.low %v7255_v60, %v7258_v50 }
 0x2b1   : > { %22735 = vst [vmem:[#allocation36_spill] sm:$0xff] %v20095_v47  ;;  %v20104_v25 = vadd.f32 %v16229_v39, %v16228_v9  ;;  %v20122_v32 = vsel %vm18346_vm11, %v14907_v44, %v19870_v36  ;;  %v22739_v39 = vrot.slane %v19870_v36, 4  ;;  %v14658_v27 = vrot.slane %v4923_v58, 9  ;;  %v7152_v47 = vld [vmem:[#allocation2 + $0xb8] sm:$0x11]  ;;  %v22743_v36 = vld [vmem:[#allocation38_spill] sm:$0xff] }
 0x2b2   : > { %22737 = vst [vmem:[#allocation31_spill] sm:$0xff] %v20102_v1  ;;  %8355 = vmatmul.mubr.bf16.gmra.mrb[232].mxu0 %v14923_v48  ;;  %v15931_v46 = vpop.f32.mrb[120].mxu1 }
 0x2b3   : > { %22738 = vst [vmem:[#allocation34_spill] sm:$0xff] %v20104_v25  ;;  %8362 = vmatprep.mubr.bf16.mxu0 %v14926_v57  ;;  %v15932_v3 = vpop.f32.mrb[121].mxu1  ;;  %v7265_v51 = vsel %vm18346_vm11, %v22739_v39, %v7264_v30  ;;  %v5068_v57 = vrot.slane %v4925_v12, 5  ;;  %v7150_v25 = vld [vmem:[#allocation2 + $0xa8] sm:$0xee]  ;;  %v4927_v12 = vld [vmem:[#allocation2 + $0x140] sm:$0xff] }
 0x2b4   : > { %v15933_v48 = vadd.f32 %v15932_v3, %v15931_v46  ;;  %v15934_v40 = vpop.f32.mrb[122].mxu1  ;;  %v22740_v46 = vld [vmem:[#allocation37_spill] sm:$0xff]  ;;  %v14928_v58 = vcombine.high %v20122_v32, %v7265_v51  ;;  %v14908_v60 = vrot.slane %v7150_v25, 9  ;;  %v7155_v25 = vld [vmem:[#allocation2 + $0xd0] sm:$0x11] }
 0x2b5   : > { %v16231_v41 = vpop.f32.mrb[128].mxu0  ;;  %v15935_v9 = vpop.f32.mrb[123].mxu1  ;;  %v20151_v50 = vsel %vm18346_vm11, %v22606_v17, %v5068_v57  ;;  %v7278_v31 = vrot.slane %v7155_v25, 5 }
 0x2b6   : > { %v16232_v6 = vpop.f32.mrb[129].mxu0  ;;  %v20131_v45 = vadd.f32 %v15933_v48, %v22740_v46  ;;  %v15936_v14 = vadd.f32 %v15935_v9, %v15934_v40  ;;  %v4926_v48 = vld [vmem:[#allocation2 + $0x138] sm:$0xee] }
 0x2b7   : > { %v20133_v3 = vadd.f32 %v16232_v6, %v16231_v41  ;;  %v16234_v44 = vpop.f32.mrb[130].mxu0  ;;  %6166 = vmatmul.mubr.bf16.gmra.mrb[228].mxu1 %v14681_v43  ;;  %v20145_v43 = vsel %vm18346_vm11, %v14658_v27, %v20117_v33  ;;  %v4928_v41 = vld [vmem:[#allocation2 + $0x148] sm:$0x11]  ;;  %v7153_v6 = vld [vmem:[#allocation2 + $0xc0] sm:$0xee] }
 0x2b8   : > { %22741 = vst [vmem:[#allocation37_spill] sm:$0xff] %v20131_v45  ;;  %v16235_v1 = vpop.f32.mrb[131].mxu0  ;;  %v20137_v5 = vadd.f32 %v15936_v14, %v22743_v36  ;;  %6173 = vmatprep.mubr.bf16.mxu1 %v14684_v16  ;;  %v20155_v16 = vrot.slane %v4927_v12, 5  ;;  %v14927_v14 = vcombine.low %v20122_v32, %v7265_v51  ;;  %v4930_v12 = vld [vmem:[#allocation2 + $0x158] sm:$0xff]  ;;  %v22750_v32 = vld [vmem:[#allocation14_spill] sm:$0xff] }
 0x2b9   : > { %22742 = vst [vmem:[#allocation71_spill] sm:$0xff] %v20133_v3  ;;  %v20139_v30 = vadd.f32 %v16235_v1, %v16234_v44  ;;  %v7271_v1 = vrot.slane %v7152_v47, 5  ;;  %v22746_v44 = vrot.slane %v19913_v55, 4  ;;  %v14659_v47 = vrot.slane %v4926_v48, 9  ;;  %v22751_v45 = vld [vmem:[#allocation41_spill] sm:$0xff] }
 0x2ba   : > { %22744 = vst [vmem:[#allocation38_spill] sm:$0xff] %v20137_v5  ;;  %8363 = vmatmul.mubr.bf16.gmra.mrb[236].mxu0 %v14925_v20  ;;  %v15937_v40 = vpop.f32.mrb[124].mxu1  ;;  %v14683_v20 = vcombine.low %v20109_v24, %v20115_v59  ;;  %v14686_v24 = vcombine.high %v20145_v43, %v20151_v50  ;;  %v22749_v5 = vld [vmem:[#allocation13_spill] sm:$0xff]  ;;  %v7269_v3 = vsel %vm18346_vm11, %v14908_v60, %v19913_v55  ;;  %v4931_v55 = vld [vmem:[#allocation2 + $0x160] sm:$0x11] }
 0x2bb   : > { %22745 = vst [vmem:[#allocation72_spill] sm:$0xff] %v20139_v30  ;;  %8370 = vmatprep.mubr.bf16.mxu0 %v14928_v58  ;;  %v15938_v9 = vpop.f32.mrb[125].mxu1  ;;  %v20162_v57 = vsel %vm18346_vm11, %v22746_v44, %v7271_v1  ;;  %v5075_v58 = vrot.slane %v4928_v41, 5  ;;  %v15964_v51 = vadd.f32 %v22750_v32, %v22749_v5  ;;  %v22752_v5 = vld [vmem:[#allocation42_spill] sm:$0xff] }
 0x2bc   : > { %v15939_v39 = vadd.f32 %v15938_v9, %v15937_v40  ;;  %v15940_v46 = vpop.f32.mrb[126].mxu1  ;;  %v22747_v40 = vld [vmem:[#allocation11_spill] sm:$0xff]  ;;  %v22748_v9 = vld [vmem:[#allocation12_spill] sm:$0xff]  ;;  %v14930_v53 = vcombine.high %v7269_v3, %v20162_v57 }
 0x2bd   : > { %v16237_v27 = vpop.f32.mrb[132].mxu0  ;;  %v15941_v36 = vpop.f32.mrb[127].mxu1  ;;  %v15961_v17 = vadd.f32 %v22748_v9, %v22747_v40  ;;  %v22609_v40 = vrot.slane %v20155_v16, 4  ;;  %v14909_v9 = vrot.slane %v7153_v6, 9  ;;  %v20191_v6 = vadd.f32 %v15964_v51, %v19680_v8 }
 0x2be   : > { %v16238_v59 = vpop.f32.mrb[133].mxu0  ;;  %v20171_v30 = vadd.f32 %v15939_v39, %v22751_v45  ;;  %v15942_v1 = vadd.f32 %v15941_v36, %v15940_v46  ;;  %v4929_v39 = vld [vmem:[#allocation2 + $0x150] sm:$0xee]  ;;  %v20185_v46 = vrot.slane %v4930_v12, 5  ;;  %v7158_v36 = vld [vmem:[#allocation2 + $0xe8] sm:$0x11] }
 0x2bf   : > { %v20173_v44 = vadd.f32 %v16238_v59, %v16237_v27  ;;  %v16240_v48 = vpop.f32.mrb[134].mxu0  ;;  %6174 = vmatmul.mubr.bf16.gmra.mrb[232].mxu1 %v14683_v20  ;;  %v20188_v27 = vadd.f32 %v15961_v17, %v19672_v26  ;;  %v7156_v20 = vld [vmem:[#allocation2 + $0xd8] sm:$0xee]  ;;  %22754 = vst [vmem:[#allocation12_spill] sm:$0xff] %v20191_v6  ;;  %v20202_v26 = vsel %vm18346_vm11, %v22609_v40, %v5075_v58  ;;  %v14660_v17 = vrot.slane %v4929_v39, 9 }
 0x2c0   : > { %v16241_v41 = vpop.f32.mrb[135].mxu0  ;;  %v20181_v32 = vadd.f32 %v15942_v1, %v22752_v5  ;;  %6181 = vmatprep.mubr.bf16.mxu1 %v14686_v24  ;;  %v20196_v24 = vsel %vm18346_vm11, %v14659_v47, %v20155_v16  ;;  %v22755_v12 = vrot.slane %v19948_v15, 4  ;;  %v5082_v1 = vrot.slane %v4931_v55, 5  ;;  %v4932_v58 = vld [vmem:[#allocation2 + $0x168] sm:$0xee] }
 0x2c1   : > { %v20183_v45 = vadd.f32 %v16241_v41, %v16240_v48  ;;  %22753 = vst [vmem:[#allocation11_spill] sm:$0xff] %v20188_v27  ;;  %v14685_v41 = vcombine.low %v20145_v43, %v20151_v50  ;;  %v14910_v5 = vrot.slane %v7156_v20, 9  ;;  %v7285_v39 = vrot.slane %v7158_v36, 5 }
 0x2c2   : > { %8371 = vmatmul.mubr.bf16.gmra.mrb[240].mxu0 %v14927_v14  ;;  %v16071_v60 = vpop.f32.mrb[128].mxu1  ;;  %v20213_v47 = vsel %vm18346_vm11, %v22755_v12, %v7278_v31  ;;  %v4933_v31 = vld [vmem:[#allocation2 + $0x170] sm:$0xff]  ;;  %v14929_v6 = vcombine.low %v7269_v3, %v20162_v57  ;;  %v20231_v50 = vsel %vm18346_vm11, %v14660_v17, %v20185_v46  ;;  %v14661_v20 = vrot.slane %v4932_v58, 9  ;;  %v7161_v3 = vld [vmem:[#allocation2 + $0x100] sm:$0x11] }
 0x2c3   : > { %8378 = vmatprep.mubr.bf16.mxu0 %v14930_v53  ;;  %v16072_v25 = vpop.f32.mrb[129].mxu1  ;;  %v20207_v53 = vsel %vm18346_vm11, %v14909_v9, %v19948_v15  ;;  %v7159_v12 = vld [vmem:[#allocation2 + $0xf0] sm:$0xee]  ;;  %v22760_v17 = vrot.slane %v19991_v18, 4  ;;  %v20259_v58 = vrot.slane %v4933_v31, 5  ;;  %v22764_v27 = vrot.slane %v20035_v61, 4 }
 0x2c4   : > { %v16073_v8 = vadd.f32 %v16072_v25, %v16071_v60  ;;  %v16074_v14 = vpop.f32.mrb[130].mxu1  ;;  %v14688_v25 = vcombine.high %v20196_v24, %v20202_v26  ;;  %v14932_v43 = vcombine.high %v20207_v53, %v20213_v47 }
 0x2c5   : > { %v16243_v59 = vpop.f32.mrb[136].mxu0  ;;  %v16075_v48 = vpop.f32.mrb[131].mxu1 }
 0x2c6   : > { %v16244_v9 = vpop.f32.mrb[137].mxu0  ;;  %v16076_v60 = vadd.f32 %v16075_v48, %v16074_v14  ;;  %v20223_v51 = vadd.f32 %v19815_v11, %v16073_v8  ;;  %v22757_v14 = vrot.slane %v20185_v46, 4  ;;  %v4934_v8 = vld [vmem:[#allocation2 + $0x178] sm:$0x11] }
 0x2c7   : > { %v20220_v15 = vadd.f32 %v16244_v9, %v16243_v59  ;;  %v16246_v40 = vpop.f32.mrb[138].mxu0  ;;  %6182 = vmatmul.mubr.bf16.gmra.mrb[236].mxu1 %v14685_v41  ;;  %v20246_v59 = vadd.f32 %v19833_v38, %v19690_v19  ;;  %v14687_v19 = vcombine.low %v20196_v24, %v20202_v26  ;;  %v6543_v38 = vld [vmem:[#allocation2 + $0x30] sm:$0xff]  ;;  %v20278_v26 = vsel %vm18346_vm11, %v14661_v20, %v20259_v58  ;;  %v7162_v20 = vld [vmem:[#allocation2 + $0x108] sm:$0xee] }
 0x2c8   : > { %22756 = vst [vmem:[#allocation13_spill] sm:$0xff] %v20223_v51  ;;  %v16247_v55 = vpop.f32.mrb[139].mxu0  ;;  %6189 = vmatprep.mubr.bf16.mxu1 %v14688_v25  ;;  %v20239_v11 = vsel %vm18346_vm11, %v22757_v14, %v5082_v1  ;;  %v20242_v57 = vadd.f32 %v19821_v37, %v16076_v60  ;;  %v20257_v1 = vsel %vm18346_vm11, %v22760_v17, %v7285_v39  ;;  %v14911_v37 = vrot.slane %v7159_v12, 9  ;;  %v6544_v25 = vld [vmem:[#allocation2 + $0x38] sm:$0xff]  ;;  %v4937_v14 = vld [vmem:[#allocation2 + $0x190] sm:$0x11] }
 0x2c9   : > { %v20233_v36 = vadd.f32 %v16247_v55, %v16246_v40  ;;  %22759 = vst [vmem:[#allocation41_spill] sm:$0xff] %v20246_v59  ;;  %v20251_v40 = vsel %vm18346_vm11, %v14910_v5, %v19991_v18  ;;  %v14690_v18 = vcombine.high %v20231_v50, %v20239_v11  ;;  %v14931_v5 = vcombine.low %v20207_v53, %v20213_v47 }
 0x2ca   : > { %22758 = vst [vmem:[#allocation14_spill] sm:$0xff] %v20242_v57  ;;  %8379 = vmatmul.mubr.bf16.gmra.mrb[244].mxu0 %v14929_v6  ;;  %v16077_v48 = vpop.f32.mrb[132].mxu1  ;;  %v22761_v6 = vld [vmem:[#allocation48_spill] sm:$0xff]  ;;  %v5089_v39 = vrot.slane %v4934_v8, 5  ;;  %v7292_v60 = vrot.slane %v7161_v3, 5  ;;  %v14934_v24 = vcombine.high %v20251_v40, %v20257_v1  ;;  %v20284_v3 = vsel %vm18346_vm11, %v14911_v37, %v20035_v61 }
 0x2cb   : > { %8386 = vmatprep.mubr.bf16.mxu0 %v14932_v43  ;;  %v20265_v41 = vadd.f32 %v19847_v7, %v22761_v6  ;;  %v16078_v9 = vpop.f32.mrb[133].mxu1  ;;  %v4935_v43 = vld [vmem:[#allocation2 + $0x180] sm:$0xee]  ;;  %v5093_v17 = vrot.slane %v19901_v49, 5  ;;  %v6595_v59 = vshll.u32 %v6543_v38, 16  ;;  %v6601_v51 = vshll.u32 %v6544_v25, 16 }
 0x2cc   : > { %v16079_v31 = vadd.f32 %v16078_v9, %v16077_v48  ;;  %v16080_v12 = vpop.f32.mrb[134].mxu1  ;;  %v6592_v48 = vshrl.u32 %v6543_v38, 16  ;;  %v20296_v37 = vsel %vm18346_vm11, %v22764_v27, %v7292_v60  ;;  %v14662_v49 = vrot.slane %v4935_v43, 9 }
 0x2cd   : > { %22762 = vst [vmem:[#allocation42_spill] sm:$0xff] %v20265_v41  ;;  %v16249_v55 = vpop.f32.mrb[140].mxu0  ;;  %v16081_v53 = vpop.f32.mrb[135].mxu1  ;;  %v7164_v41 = vld [vmem:[#allocation2 + $0x118] sm:$0x11]  ;;  %v22768_v61 = vrot.slane %v20259_v58, 4 }
 0x2ce   : > { %v16250_v47 = vpop.f32.mrb[141].mxu0  ;;  %v16082_v6 = vadd.f32 %v16081_v53, %v16080_v12  ;;  %v20290_v57 = vadd.f32 %v19859_v2, %v16079_v31  ;;  %v6605_v12 = vshrl.u32 %v6544_v25, 16  ;;  %v5096_v53 = vrot.slane %v4937_v14, 5  ;;  %v22766_v2 = vld [vmem:[#allocation50_spill] sm:$0xff] }
 0x2cf   : > { %v20287_v9 = vadd.f32 %v16250_v47, %v16249_v55  ;;  %v16252_v7 = vpop.f32.mrb[142].mxu0  ;;  %6190 = vmatmul.mubr.bf16.gmra.mrb[240].mxu1 %v14687_v19  ;;  %v6546_v47 = vld [vmem:[#allocation2 + $0x48] sm:$0xff]  ;;  %v20305_v19 = vadd.f32 %v19878_v4, %v22766_v2  ;;  %v20311_v27 = vsel %vm18346_vm11, %v22768_v61, %v5089_v39  ;;  %v5095_v60 = vrot.slane %v5093_v17, 4  ;;  %v22769_v4 = vld [vmem:[#allocation52_spill] sm:$0xff] }
 0x2d0   : > { %22763 = vst [vmem:[#allocation48_spill] sm:$0xff] %v20290_v57  ;;  %v16253_v8 = vpop.f32.mrb[143].mxu0  ;;  %6197 = vmatprep.mubr.bf16.mxu1 %v14690_v18  ;;  %v20301_v38 = vadd.f32 %v19864_v56, %v16082_v6  ;;  %v14912_v18 = vrot.slane %v7162_v20, 9  ;;  %v7299_v25 = vrot.slane %v7164_v41, 5  ;;  %v14933_v56 = vcombine.low %v20251_v40, %v20257_v1 }
 0x2d1   : > { %v20298_v55 = vadd.f32 %v16253_v8, %v16252_v7  ;;  %22767 = vst [vmem:[#allocation50_spill] sm:$0xff] %v20305_v19  ;;  %v6545_v7 = vld [vmem:[#allocation2 + $0x40] sm:$0x11]  ;;  %v6594_v43 = vrot.slane %v6592_v48, 4  ;;  %v6597_v14 = vrot.slane %v6595_v59, 5  ;;  %v20319_v6 = vrot.slane %v6601_v51, 5 }
 0x2d2   : > { %22765 = vst [vmem:[#allocation73_spill] sm:$0xff] %v20301_v38  ;;  %8387 = vmatmul.mubr.bf16.gmra.mrb[248].mxu0 %v14931_v5  ;;  %v16083_v31 = vpop.f32.mrb[136].mxu1  ;;  %v20317_v5 = vadd.f32 %v19887_v29, %v22769_v4  ;;  %v6607_v39 = vrot.slane %v6605_v12, 4  ;;  %v6616_v2 = vshrl.u32 %v6546_v47, 16  ;;  %v6619_v61 = vshll.u32 %v6546_v47, 16  ;;  %v6547_v29 = vld [vmem:[#allocation2 + $0x50] sm:$0xff] }
 0x2d3   : > { %8394 = vmatprep.mubr.bf16.mxu0 %v14934_v24  ;;  %v16084_v8 = vpop.f32.mrb[137].mxu1  ;;  %v14692_v24 = vcombine.high %v20278_v26, %v20311_v27  ;;  %v14936_v40 = vcombine.high %v20284_v3, %v20296_v37  ;;  %v20327_v59 = vsel %vm18346_vm11, %v14662_v49, %v5093_v17  ;;  %v20331_v48 = vsel %vm18346_vm11, %v5095_v60, %v5096_v53  ;;  %v7165_v38 = vld [vmem:[#allocation2 + $0x120] sm:$0xee]  ;;  %v7167_v53 = vld [vmem:[#allocation2 + $0x130] sm:$0x11] }
 0x2d4   : > { %22770 = vst [vmem:[#allocation52_spill] sm:$0xff] %v20317_v5  ;;  %v16085_v20 = vadd.f32 %v16084_v8, %v16083_v31  ;;  %v16086_v41 = vpop.f32.mrb[138].mxu1  ;;  %v20336_v12 = vsel %vm18346_vm11, %v14912_v18, %v20078_v63  ;;  %v22771_v47 = vrot.slane %v20078_v63, 4  ;;  %v6611_v17 = vshll.u32 %v6545_v7, 16 }
 0x2d5   : > { %v16255_v19 = vpop.f32.mrb[144].mxu0  ;;  %v16087_v1 = vpop.f32.mrb[139].mxu1  ;;  %v6598_v5 = vor.u32 %v6597_v14, %v6594_v43  ;;  %v22772_v18 = vcombine.low %v20231_v50, %v20239_v11  ;;  %v6608_v57 = vor.u32 %v6607_v39, %v20319_v6  ;;  %v6625_v7 = vshll.u32 %v6547_v29, 16 }
 0x2d6   : > { %v16256_v51 = vpop.f32.mrb[145].mxu0  ;;  %v20342_v31 = vsel %vm18346_vm11, %v22771_v47, %v7299_v25  ;;  %v16088_v49 = vadd.f32 %v16087_v1, %v16086_v41  ;;  %v20347_v60 = vadd.f32 %v19899_v54, %v16085_v20  ;;  %v6618_v25 = vrot.slane %v6616_v2, 4  ;;  %v6549_v20 = vld [vmem:[#allocation2 + $0x60] sm:$0xff] }
 0x2d7   : > { %v20344_v4 = vadd.f32 %v16256_v51, %v16255_v19  ;;  %v16258_v8 = vpop.f32.mrb[146].mxu0  ;;  %6198 = vmatmul.mubr.bf16.gmra.mrb[244].mxu1 %v22772_v18  ;;  %v6621_v47 = vrot.slane %v6619_v61, 5  ;;  %v6629_v41 = vshrl.u32 %v6547_v29, 16  ;;  %v20360_v54 = vadd.f32 %v19924_v52, %v19726_v28 }
 0x2d8   : > { %v16259_v63 = vpop.f32.mrb[147].mxu0  ;;  %6205 = vmatprep.mubr.bf16.mxu1 %v14692_v24  ;;  %v20356_v43 = vadd.f32 %v19906_v21, %v16088_v49  ;;  %v14913_v50 = vrot.slane %v7165_v38, 9  ;;  %v7306_v11 = vrot.slane %v7167_v53, 5  ;;  %v14935_v39 = vcombine.low %v20284_v3, %v20296_v37  ;;  %v22774_v24 = vld [vmem:[#allocation55_spill] sm:$0xff]  ;;  %v7168_v37 = vld [vmem:[#allocation2 + $0x138] sm:$0xee] }
 0x2d9   : > { %v20353_v19 = vadd.f32 %v16259_v63, %v16258_v8  ;;  %22773 = vst [vmem:[#allocation74_spill] sm:$0xff] %v20360_v54  ;;  %v14691_v2 = vcombine.low %v20278_v26, %v20311_v27  ;;  %v6599_v61 = vrot.slane %v6598_v5, 4  ;;  %v20368_v21 = vadd.f32 %v19928_v35, %v22774_v24 }
 0x2da   : > { %8395 = vmatmul.mubr.bf16.gmra.mrb[252].mxu0 %v14933_v56  ;;  %v16089_v14 = vpop.f32.mrb[140].mxu1  ;;  %v14694_v28 = vcombine.high %v20327_v59, %v20331_v48  ;;  %v14938_v52 = vcombine.high %v20336_v12, %v20342_v31  ;;  %v6609_v38 = vrot.slane %v6608_v57, 4  ;;  %v6548_v56 = vld [vmem:[#allocation2 + $0x58] sm:$0x11]  ;;  %v6622_v3 = vor.u32 %v6621_v47, %v6618_v25 }
 0x2db   : > { %8402 = vmatprep.mubr.bf16.mxu0 %v14936_v40  ;;  %22775 = vst [vmem:[#allocation55_spill] sm:$0xff] %v20368_v21  ;;  %v16090_v29 = vpop.f32.mrb[141].mxu1  ;;  %v6613_v27 = vrot.slane %v6611_v17, 5  ;;  %v6627_v5 = vrot.slane %v6625_v7, 5  ;;  %v6631_v51 = vrot.slane %v6629_v41, 4  ;;  %v20377_v8 = vsel %vm18346_vm11, %v14913_v50, %v20117_v33 }
 0x2dc   : > { %v16091_v40 = vadd.f32 %v16090_v29, %v16089_v14  ;;  %v16092_v1 = vpop.f32.mrb[142].mxu1  ;;  %v22776_v53 = vrot.slane %v20117_v33, 4  ;;  %v6640_v18 = vshrl.u32 %v6549_v20, 16  ;;  %v6643_v63 = vshll.u32 %v6549_v20, 16  ;;  %v6550_v14 = vld [vmem:[#allocation2 + $0x68] sm:$0xff] }
 0x2dd   : > { %v16261_v26 = vpop.f32.mrb[148].mxu0  ;;  %v16093_v49 = vpop.f32.mrb[143].mxu1  ;;  %v20390_v41 = vsel %vm18841_vm2, %v6599_v61, %v20319_v6  ;;  %v6623_v20 = vrot.slane %v6622_v3, 4  ;;  %v6635_v24 = vshll.u32 %v6548_v56, 16  ;;  %v14914_v29 = vrot.slane %v7168_v37, 9  ;;  %v6552_v37 = vld [vmem:[#allocation2 + $0x78] sm:$0xff] }
 0x2de   : > { %v16262_v35 = vpop.f32.mrb[149].mxu0  ;;  %v20383_v57 = vsel %vm18346_vm11, %v22776_v53, %v7306_v11  ;;  %v16094_v25 = vadd.f32 %v16093_v49, %v16092_v1  ;;  %v20393_v50 = vadd.f32 %v19934_v62, %v16091_v40  ;;  %v20397_v11 = vsel %vm18841_vm2, %v6609_v38, %v6613_v27  ;;  %v7170_v49 = vld [vmem:[#allocation2 + $0x148] sm:$0x11] }
 0x2df   : > { %v20385_v47 = vadd.f32 %v16262_v35, %v16261_v26  ;;  %v16264_v17 = vpop.f32.mrb[150].mxu0  ;;  %6206 = vmatmul.mubr.bf16.gmra.mrb[248].mxu1 %v14691_v2  ;;  %v6632_v26 = vor.u32 %v6631_v51, %v6627_v5  ;;  %v20406_v62 = vadd.f32 %v19952_v34, %v19748_v23  ;;  %v6642_v2 = vrot.slane %v6640_v18, 4 }
 0x2e0   : > { %22778 = vst [vmem:[#allocation10_spill] sm:$0xff] %v20393_v50  ;;  %v16265_v33 = vpop.f32.mrb[151].mxu0  ;;  %6213 = vmatprep.mubr.bf16.mxu1 %v14694_v28  ;;  %v20402_v6 = vadd.f32 %v19940_v0, %v16094_v25  ;;  %v6645_v61 = vrot.slane %v6643_v63, 5  ;;  %v6649_v38 = vshll.u32 %v6550_v14, 16  ;;  %v6653_v40 = vshrl.u32 %v6550_v14, 16 }
 0x2e1   : > { %v20399_v1 = vadd.f32 %v16265_v33, %v16264_v17  ;;  %22780 = vst [vmem:[#allocation76_spill] sm:$0xff] %v20406_v62  ;;  %v14937_v28 = vcombine.low %v20336_v12, %v20342_v31  ;;  %v14693_v56 = vcombine.low %v20327_v59, %v20331_v48  ;;  %v20414_v0 = vadd.f32 %v19963_v13, %v19757_v22  ;;  %v6551_v31 = vld [vmem:[#allocation2 + $0x70] sm:$0x11]  ;;  %v7171_v13 = vld [vmem:[#allocation2 + $0x150] sm:$0xee] }
 0x2e2   : > { %22779 = vst [vmem:[#allocation75_spill] sm:$0xff] %v20402_v6  ;;  %8403 = vmatmul.mubr.bf16.gmra.mrb[0].mxu0 %v14935_v39  ;;  %v16095_v3 = vpop.f32.mrb[144].mxu1  ;;  %v14872_v34 = vcombine.high %v20390_v41, %v20397_v11  ;;  %v14940_v39 = vcombine.high %v20377_v8, %v20383_v57  ;;  %v20422_v27 = vsel %vm18841_vm2, %v6623_v20, %v6627_v5  ;;  %v7313_v12 = vrot.slane %v7170_v49, 5  ;;  %v7173_v49 = vld [vmem:[#allocation2 + $0x160] sm:$0x11] }
 0x2e3   : > { %8410 = vmatprep.mubr.bf16.mxu0 %v14938_v52  ;;  %22781 = vst [vmem:[#allocation77_spill] sm:$0xff] %v20414_v0  ;;  %v16096_v23 = vpop.f32.mrb[145].mxu1  ;;  %v6633_v51 = vrot.slane %v6632_v26, 4  ;;  %v6637_v35 = vrot.slane %v6635_v24, 5  ;;  %v20427_v22 = vsel %vm18346_vm11, %v14914_v29, %v20155_v16  ;;  %v6646_v63 = vor.u32 %v6645_v61, %v6642_v2  ;;  %v22784_v61 = vld [vmem:[#allocation22_spill] sm:$0xff] }
 0x2e4   : > { %v16097_v52 = vadd.f32 %v16096_v23, %v16095_v3  ;;  %v16098_v59 = vpop.f32.mrb[146].mxu1  ;;  %v6651_v25 = vrot.slane %v6649_v38, 5  ;;  %v6655_v17 = vrot.slane %v6653_v40, 4  ;;  %v6664_v5 = vshrl.u32 %v6552_v37, 16 }
 0x2e5   : > { %v16267_v48 = vpop.f32.mrb[152].mxu0  ;;  %v16099_v53 = vpop.f32.mrb[147].mxu1  ;;  %v6667_v3 = vshll.u32 %v6552_v37, 16  ;;  %v22783_v29 = vrot.slane %v20155_v16, 4  ;;  %v6659_v2 = vshll.u32 %v6551_v31, 16  ;;  %v6673_v38 = vshll.u32 %v22784_v61, 16 }
 0x2e6   : > { %v16268_v18 = vpop.f32.mrb[153].mxu0  ;;  %v16100_v14 = vadd.f32 %v16099_v53, %v16098_v59  ;;  %v20432_v24 = vadd.f32 %v19969_v10, %v16097_v52  ;;  %v6677_v40 = vshrl.u32 %v22784_v61, 16  ;;  %v14915_v37 = vrot.slane %v7171_v13, 9  ;;  %v22788_v52 = vld [vmem:[#allocation16_spill] sm:$0xff]  ;;  %v22790_v13 = vld [vmem:[#allocation61_spill] sm:$0xff] }
 0x2e7   : > { %v20429_v33 = vadd.f32 %v16268_v18, %v16267_v48  ;;  %v16270_v20 = vpop.f32.mrb[154].mxu0  ;;  %6214 = vmatmul.mubr.bf16.gmra.mrb[252].mxu1 %v14693_v56  ;;  %v20438_v23 = vsel %vm18346_vm11, %v22783_v29, %v7313_v12  ;;  %v22785_v48 = vld [vmem:[#allocation15_spill] sm:$0xff]  ;;  %v20453_v16 = vsel %vm18841_vm2, %v6633_v51, %v6637_v35  ;;  %v6647_v12 = vrot.slane %v6646_v63, 4 }
 0x2e8   : > { %22782 = vst [vmem:[#allocation78_spill] sm:$0xff] %v20432_v24  ;;  %v16271_v26 = vpop.f32.mrb[155].mxu0  ;;  %8177 = vmatprep.mubr.bf16.mxu1 %v14872_v34  ;;  %v20445_v10 = vadd.f32 %v22785_v48, %v16100_v14  ;;  %v22787_v56 = vld [vmem:[#allocation59_spill] sm:$0xff]  ;;  %v6656_v31 = vor.u32 %v6655_v17, %v6651_v25  ;;  %v7320_v18 = vrot.slane %v7173_v49, 5  ;;  %v6666_v34 = vrot.slane %v6664_v5, 4 }
 0x2e9   : > { %v20442_v59 = vadd.f32 %v16271_v26, %v16270_v20  ;;  %v20449_v53 = vadd.f32 %v22788_v52, %v22787_v56  ;;  %v6669_v20 = vrot.slane %v6667_v3, 5  ;;  %v22791_v26 = vld [vmem:[#allocation20_spill] sm:$0xff]  ;;  %v14871_v61 = vcombine.low %v20390_v41, %v20397_v11  ;;  %v6554_v51 = vld [vmem:[#allocation2 + $0x88] sm:$0x11] }
 0x2ea   : > { %22786 = vst [vmem:[#allocation22_spill] sm:$0xff] %v20445_v10  ;;  %8411 = vmatmul.mubr.bf16.gmra.mrb[4].mxu0 %v14937_v28  ;;  %v16101_v29 = vpop.f32.mrb[148].mxu1  ;;  %v20457_v14 = vadd.f32 %v22791_v26, %v22790_v13  ;;  %v14939_v28 = vcombine.low %v20377_v8, %v20383_v57  ;;  %v20463_v35 = vrot.slane %v6673_v38, 5  ;;  %v6679_v63 = vrot.slane %v6677_v40, 4  ;;  %v6555_v52 = vld [vmem:[#allocation2 + $0x90] sm:$0xff]  ;;  %v6556_v13 = vld [vmem:[#allocation2 + $0x98] sm:$0xff] }
 0x2eb   : > { %22789 = vst [vmem:[#allocation15_spill] sm:$0xff] %v20449_v53  ;;  %8418 = vmatprep.mubr.bf16.mxu0 %v14940_v39  ;;  %v16102_v48 = vpop.f32.mrb[149].mxu1  ;;  %v14874_v5 = vcombine.high %v20422_v27, %v20453_v16  ;;  %v14942_v3 = vcombine.high %v20427_v22, %v20438_v23  ;;  %v6661_v56 = vrot.slane %v6659_v2, 5  ;;  %v20471_v8 = vsel %vm18841_vm2, %v6647_v12, %v6651_v25  ;;  %v7174_v2 = vld [vmem:[#allocation2 + $0x168] sm:$0xee] }
 0x2ec   : > { %22792 = vst [vmem:[#allocation59_spill] sm:$0xff] %v20457_v14  ;;  %v16103_v17 = vadd.f32 %v16102_v48, %v16101_v29  ;;  %v16104_v49 = vpop.f32.mrb[150].mxu1  ;;  %v6657_v57 = vrot.slane %v6656_v31, 4  ;;  %v20476_v38 = vsel %vm18346_vm11, %v14915_v37, %v20185_v46  ;;  %v22793_v40 = vrot.slane %v20185_v46, 4  ;;  %v7176_v31 = vld [vmem:[#allocation2 + $0x178] sm:$0x11] }
 0x2ed   : > { %v16273_v39 = vpop.f32.mrb[156].mxu0  ;;  %v16105_v41 = vpop.f32.mrb[151].mxu1  ;;  %v6670_v25 = vor.u32 %v6669_v20, %v6666_v34  ;;  %v6683_v12 = vshll.u32 %v6554_v51, 16  ;;  %v6680_v37 = vor.u32 %v6679_v63, %v20463_v35  ;;  %v6688_v0 = vshrl.u32 %v6555_v52, 16  ;;  %v22794_v46 = vld [vmem:[#allocation23_spill] sm:$0xff] }
 0x2ee   : > { %v16274_v11 = vpop.f32.mrb[157].mxu0  ;;  %v20482_v29 = vsel %vm18346_vm11, %v22793_v40, %v7320_v18  ;;  %v16106_v26 = vadd.f32 %v16105_v41, %v16104_v49  ;;  %v6691_v10 = vshll.u32 %v6555_v52, 16  ;;  %v20488_v62 = vadd.f32 %v22794_v46, %v16103_v17  ;;  %v22798_v63 = vld [vmem:[#allocation63_spill] sm:$0xff]  ;;  %v22799_v52 = vld [vmem:[#allocation26_spill] sm:$0xff] }
 0x2ef   : > { %v20484_v48 = vadd.f32 %v16274_v11, %v16273_v39  ;;  %v16276_v14 = vpop.f32.mrb[158].mxu0  ;;  %8178 = vmatmul.mubr.bf16.vlgmr.msra.gmra.mrb[0].mxu1 %v14871_v61  ;;  %v14916_v40 = vrot.slane %v7174_v2, 9  ;;  %v6697_v49 = vshll.u32 %v6556_v13, 16  ;;  %v6701_v39 = vshrl.u32 %v6556_v13, 16  ;;  %v22796_v61 = vld [vmem:[#allocation19_spill] sm:$0xff] }
 0x2f0   : > { %v16277_v53 = vpop.f32.mrb[159].mxu0  ;;  %22795 = vst [vmem:[#allocation16_spill] sm:$0xff] %v20488_v62  ;;  %8185 = vmatprep.mubr.bf16.mxu1 %v14874_v5  ;;  %v20494_v34 = vsel %vm18841_vm2, %v6657_v57, %v6661_v56  ;;  %v7327_v20 = vrot.slane %v7176_v31, 5  ;;  %v20497_v51 = vadd.f32 %v22796_v61, %v16106_v26  ;;  %v20501_v41 = vadd.f32 %v22799_v52, %v22798_v63  ;;  %v6557_v5 = vld [vmem:[#allocation2 + $0xa0] sm:$0x11]  ;;  %v22801_v56 = vld [vmem:[#allocation64_spill] sm:$0xff] }
 0x2f1   : > { %v20490_v18 = vadd.f32 %v16277_v53, %v16276_v14  ;;  %v14873_v53 = vcombine.low %v20422_v27, %v20453_v16  ;;  %v14941_v17 = vcombine.low %v20427_v22, %v20438_v23  ;;  %v22802_v11 = vld [vmem:[#allocation27_spill] sm:$0xff]  ;;  %v14944_v13 = vcombine.high %v20476_v38, %v20482_v29 }
 0x2f2   : > { %8419 = vmatmul.mubr.bf16.gmra.mrb[8].mxu0 %v14939_v28  ;;  %22797 = vst [vmem:[#allocation61_spill] sm:$0xff] %v20497_v51  ;;  %22800 = vst [vmem:[#allocation20_spill] sm:$0xff] %v20501_v41  ;;  %v16107_v14 = vpop.f32.mrb[152].mxu1  ;;  %v6671_v28 = vrot.slane %v6670_v25, 4  ;;  %v20509_v57 = vadd.f32 %v22802_v11, %v22801_v56  ;;  %v6681_v26 = vrot.slane %v6680_v37, 4  ;;  %v6690_v31 = vrot.slane %v6688_v0, 4 }
 0x2f3   : > { %8426 = vmatprep.mubr.bf16.mxu0 %v14942_v3  ;;  %v16108_v2 = vpop.f32.mrb[153].mxu1  ;;  %v6693_v46 = vrot.slane %v6691_v10, 5  ;;  %v14876_v22 = vcombine.high %v20471_v8, %v20494_v34  ;;  %v20515_v23 = vrot.slane %v6697_v49, 5  ;;  %v6703_v3 = vrot.slane %v6701_v39, 4  ;;  %v6558_v25 = vld [vmem:[#allocation2 + $0xa8] sm:$0xff] }
 0x2f4   : > { %22803 = vst [vmem:[#allocation23_spill] sm:$0xff] %v20509_v57  ;;  %v16109_v61 = vadd.f32 %v16108_v2, %v16107_v14  ;;  %v16110_v27 = vpop.f32.mrb[154].mxu1  ;;  %v6685_v56 = vrot.slane %v6683_v12, 5  ;;  %v20520_v11 = vsel %vm18346_vm11, %v14916_v40, %v20259_v58  ;;  %v22804_v0 = vrot.slane %v20259_v58, 4  ;;  %v7177_v2 = vld [vmem:[#allocation2 + $0x180] sm:$0xee] }
 0x2f5   : > { %v16407_v16 = vpop.f32.mrb[160].mxu0  ;;  %v16111_v63 = vpop.f32.mrb[155].mxu1  ;;  %v6707_v37 = vshll.u32 %v6557_v5, 16  ;;  %v20533_v12 = vsel %vm18841_vm2, %v6671_v28, %v20463_v35  ;;  %v6559_v57 = vld [vmem:[#allocation2 + $0xb0] sm:$0xff]  ;;  %v22806_v40 = vld [vmem:[#allocation30_spill] sm:$0xff]  ;;  %v6694_v5 = vor.u32 %v6693_v46, %v6690_v31  ;;  %v6704_v35 = vor.u32 %v6703_v3, %v20515_v23  ;;  %v20545_v28 = vld [vmem:[#allocation2 + $0x188] sm:$0xff] }
 0x2f6   : > { %v16408_v52 = vpop.f32.mrb[161].mxu0  ;;  %v20526_v10 = vsel %vm18346_vm11, %v22804_v0, %v7327_v20  ;;  %v16112_v14 = vadd.f32 %v16111_v63, %v16110_v27  ;;  %v20536_v41 = vadd.f32 %v22806_v40, %v16109_v61  ;;  %v20540_v20 = vsel %vm18841_vm2, %v6681_v26, %v6685_v56  ;;  %v22811_v61 = vld [vmem:[#allocation65_spill] sm:$0xff]  ;;  %v7179_v26 = vld [vmem:[#allocation2 + $0x190] sm:$0x11] }
 0x2f7   : > { %v20528_v49 = vadd.f32 %v16408_v52, %v16407_v16  ;;  %v16410_v39 = vpop.f32.mrb[162].mxu0  ;;  %8186 = vmatmul.mubr.bf16.gmra.mrb[4].mxu1 %v14873_v53  ;;  %v6712_v27 = vshrl.u32 %v6558_v25, 16  ;;  %v6715_v16 = vshll.u32 %v6558_v25, 16  ;;  %v22809_v52 = vld [vmem:[#allocation28_spill] sm:$0xff]  ;;  %v14917_v56 = vrot.slane %v7177_v2, 9 }
 0x2f8   : > { %22807 = vst [vmem:[#allocation63_spill] sm:$0xff] %v20536_v41  ;;  %v16411_v58 = vpop.f32.mrb[163].mxu0  ;;  %8193 = vmatprep.mubr.bf16.mxu1 %v14876_v22  ;;  %v20548_v0 = vadd.f32 %v22809_v52, %v16112_v14  ;;  %v22812_v53 = vld [vmem:[#allocation32_spill] sm:$0xff]  ;;  %v7331_v31 = vrot.slane %v20545_v28, 5  ;;  %v6721_v46 = vshll.u32 %v6559_v57, 16  ;;  %v6725_v22 = vshrl.u32 %v6559_v57, 16 }
 0x2f9   : > { %22805 = vst [vmem:[#allocation19_spill] sm:$0xff] %v20528_v49  ;;  %v20542_v63 = vadd.f32 %v16411_v58, %v16410_v39  ;;  %v20552_v40 = vadd.f32 %v22812_v53, %v22811_v61  ;;  %v14875_v25 = vcombine.low %v20471_v8, %v20494_v34  ;;  %v14943_v39 = vcombine.low %v20476_v38, %v20482_v29  ;;  %v22814_v58 = vld [vmem:[#allocation66_spill] sm:$0xff]  ;;  %v22815_v52 = vld [vmem:[#allocation33_spill] sm:$0xff] }
 0x2fa   : > { %22810 = vst [vmem:[#allocation64_spill] sm:$0xff] %v20548_v0  ;;  %8427 = vmatmul.mubr.bf16.gmra.mrb[12].mxu0 %v14941_v17  ;;  %v16113_v3 = vpop.f32.mrb[156].mxu1  ;;  %v14946_v14 = vcombine.high %v20520_v11, %v20526_v10  ;;  %v20563_v17 = vadd.f32 %v22815_v52, %v22814_v58  ;;  %v14878_v61 = vcombine.high %v20533_v12, %v20540_v20  ;;  %v6695_v57 = vrot.slane %v6694_v5, 4  ;;  %v6560_v53 = vld [vmem:[#allocation2 + $0xb8] sm:$0x11]  ;;  %v6561_v0 = vld [vmem:[#allocation2 + $0xc0] sm:$0xff] }
 0x2fb   : > { %22808 = vst [vmem:[#allocation26_spill] sm:$0xff] %v20542_v63  ;;  %22813 = vst [vmem:[#allocation27_spill] sm:$0xff] %v20552_v40  ;;  %8434 = vmatprep.mubr.bf16.mxu0 %v14944_v13  ;;  %v16114_v2 = vpop.f32.mrb[157].mxu1  ;;  %v6714_v63 = vrot.slane %v6712_v27, 4  ;;  %v6717_v8 = vrot.slane %v6715_v16, 5  ;;  %v6705_v38 = vrot.slane %v6704_v35, 4  ;;  %v20569_v58 = vsel %vm18346_vm11, %v14917_v56, %v7331_v31 }
 0x2fc   : > { %22816 = vst [vmem:[#allocation30_spill] sm:$0xff] %v20563_v17  ;;  %v16115_v34 = vadd.f32 %v16114_v2, %v16113_v3  ;;  %v16116_v49 = vpop.f32.mrb[158].mxu1  ;;  %v6709_v29 = vrot.slane %v6707_v37, 5  ;;  %v7334_v13 = vrot.slane %v7179_v26, 5  ;;  %v7333_v52 = vrot.slane %v7331_v31, 4  ;;  %v6562_v2 = vld [vmem:[#allocation2 + $0xc8] sm:$0xff] }
 0x2fd   : > { %v16413_v40 = vpop.f32.mrb[164].mxu0  ;;  %v16117_v41 = vpop.f32.mrb[159].mxu1  ;;  %v20571_v17 = vrot.slane %v6721_v46, 5  ;;  %v6727_v5 = vrot.slane %v6725_v22, 4  ;;  %v6731_v3 = vshll.u32 %v6560_v53, 16  ;;  %v22818_v35 = vld [vmem:[#allocation36_spill] sm:$0xff]  ;;  %v20581_v56 = vsel %vm18841_vm2, %v6695_v57, %v20515_v23 }
 0x2fe   : > { %v16414_v51 = vpop.f32.mrb[165].mxu0  ;;  %v16118_v62 = vadd.f32 %v16117_v41, %v16116_v49  ;;  %v20576_v37 = vadd.f32 %v22818_v35, %v16115_v34  ;;  %v6718_v31 = vor.u32 %v6717_v8, %v6714_v63  ;;  %v6736_v46 = vshrl.u32 %v6561_v0, 16  ;;  %v22821_v49 = vld [vmem:[#allocation34_spill] sm:$0xff]  ;;  %v22823_v22 = vld [vmem:[#allocation67_spill] sm:$0xff]  ;;  %v6563_v34 = vld [vmem:[#allocation2 + $0xd0] sm:$0x11] }
 0x2ff   : > { %v20573_v27 = vadd.f32 %v16414_v51, %v16413_v40  ;;  %v16416_v16 = vpop.f32.mrb[166].mxu0  ;;  %8194 = vmatmul.mubr.bf16.gmra.mrb[8].mxu1 %v14875_v25  ;;  %v6739_v24 = vshll.u32 %v6561_v0, 16  ;;  %v20587_v51 = vsel %vm18841_vm2, %v6705_v38, %v6709_v29  ;;  %v22824_v25 = vld [vmem:[#allocation39_spill] sm:$0xff]  ;;  %v20598_v23 = vsel %vm18346_vm11, %v7333_v52, %v7334_v13  ;;  %v22826_v38 = vld [vmem:[#allocation68_spill] sm:$0xff]  ;;  %v6564_v52 = vld [vmem:[#allocation2 + $0xd8] sm:$0xff] }
 0x300   : > { %22819 = vst [vmem:[#allocation65_spill] sm:$0xff] %v20576_v37  ;;  %v16417_v26 = vpop.f32.mrb[167].mxu0  ;;  %8201 = vmatprep.mubr.bf16.mxu1 %v14878_v61  ;;  %v20590_v40 = vadd.f32 %v22821_v49, %v16118_v62  ;;  %v20594_v53 = vadd.f32 %v22824_v25, %v22823_v22  ;;  %v6728_v63 = vor.u32 %v6727_v5, %v20571_v17  ;;  %v6745_v0 = vshll.u32 %v6562_v2, 16  ;;  %v22827_v29 = vld [vmem:[#allocation40_spill] sm:$0xff]  ;;  %v20607_v49 = vld [vmem:[#allocation2] sm:$0xff] }
 0x301   : > { %22817 = vst [vmem:[#allocation28_spill] sm:$0xff] %v20573_v27  ;;  %v20583_v41 = vadd.f32 %v16417_v26, %v16416_v16  ;;  %v6749_v61 = vshrl.u32 %v6562_v2, 16  ;;  %v14945_v8 = vcombine.low %v20520_v11, %v20526_v10  ;;  %v6733_v62 = vrot.slane %v6731_v3, 5 }
 0x302   : > { %22822 = vst [vmem:[#allocation66_spill] sm:$0xff] %v20590_v40  ;;  %22825 = vst [vmem:[#allocation33_spill] sm:$0xff] %v20594_v53  ;;  %8435 = vmatmul.mubr.bf16.gmra.mrb[16].mxu0 %v14943_v39  ;;  %v16119_v57 = vpop.f32.mrb[160].mxu1  ;;  %v20605_v16 = vadd.f32 %v22827_v29, %v22826_v38  ;;  %v6719_v35 = vrot.slane %v6718_v31, 4  ;;  %v6738_v26 = vrot.slane %v6736_v46, 4  ;;  %v6741_v13 = vrot.slane %v6739_v24, 5 }
 0x303   : > { %22820 = vst [vmem:[#allocation32_spill] sm:$0xff] %v20583_v41  ;;  %8442 = vmatprep.mubr.bf16.mxu0 %v14946_v14  ;;  %v16120_v39 = vpop.f32.mrb[161].mxu1  ;;  %v7338_v5 = vrot.slane %v20607_v49, 5  ;;  %v14877_v2 = vcombine.low %v20533_v12, %v20540_v20  ;;  %v14880_v3 = vcombine.high %v20581_v56, %v20587_v51  ;;  %v14948_v22 = vcombine.high %v20569_v58, %v20598_v23  ;;  %v7180_v31 = vld [vmem:[#allocation2 + $0x198] sm:$0xee]  ;;  %v6565_v20 = vld [vmem:[#allocation2 + $0xe0] sm:$0xff] }
 0x304   : > { %22828 = vst [vmem:[#allocation36_spill] sm:$0xff] %v20605_v16  ;;  %v16121_v11 = vadd.f32 %v16120_v39, %v16119_v57  ;;  %v16122_v10 = vpop.f32.mrb[162].mxu1  ;;  %v7182_v46 = vld [vmem:[#allocation2 + $0x1a8] sm:$0x11]  ;;  %v6729_v38 = vrot.slane %v6728_v63, 4  ;;  %v6747_v29 = vrot.slane %v6745_v0, 5  ;;  %v6742_v21 = vor.u32 %v6741_v13, %v6738_v26 }
 0x305   : > { %v16419_v14 = vpop.f32.mrb[168].mxu0  ;;  %v16123_v24 = vpop.f32.mrb[163].mxu1  ;;  %v6751_v41 = vrot.slane %v6749_v61, 4  ;;  %v6755_v27 = vshll.u32 %v6563_v34, 16  ;;  %v6760_v57 = vshrl.u32 %v6564_v52, 16  ;;  %v22830_v39 = vld [vmem:[#allocation71_spill] sm:$0xff]  ;;  %v20633_v26 = vsel %vm18841_vm2, %v6719_v35, %v20571_v17 }
 0x306   : > { %v16420_v25 = vpop.f32.mrb[169].mxu0  ;;  %v16124_v16 = vadd.f32 %v16123_v24, %v16122_v10  ;;  %v20619_v40 = vadd.f32 %v22830_v39, %v16121_v11  ;;  %v14918_v6 = vrot.slane %v7180_v31, 9  ;;  %v7340_v54 = vrot.slane %v7338_v5, 4  ;;  %v22832_v61 = vld [vmem:[#allocation72_spill] sm:$0xff]  ;;  %v22833_v10 = vld [vmem:[#allocation69_spill] sm:$0xff] }
 0x307   : > { %v20616_v53 = vadd.f32 %v16420_v25, %v16419_v14  ;;  %v16422_v12 = vpop.f32.mrb[170].mxu0  ;;  %8202 = vmatmul.mubr.bf16.gmra.mrb[12].mxu1 %v14877_v2  ;;  %v7341_v50 = vrot.slane %v7182_v46, 5  ;;  %v6763_v0 = vshll.u32 %v6564_v52, 16  ;;  %v22834_v14 = vld [vmem:[#allocation43_spill] sm:$0xff]  ;;  %v6752_v11 = vor.u32 %v6751_v41, %v6747_v29  ;;  %v22836_v13 = vld [vmem:[#allocation44_spill] sm:$0xff] }
 0x308   : > { %v16423_v37 = vpop.f32.mrb[171].mxu0  ;;  %8209 = vmatprep.mubr.bf16.mxu1 %v14880_v3  ;;  %v20624_v34 = vadd.f32 %v22832_v61, %v16124_v16  ;;  %v20628_v24 = vadd.f32 %v22834_v14, %v22833_v10  ;;  %v6769_v25 = vshll.u32 %v6565_v20, 16  ;;  %v6773_v2 = vshrl.u32 %v6565_v20, 16  ;;  %v22835_v16 = vld [vmem:[#allocation70_spill] sm:$0xff]  ;;  %v6566_v31 = vld [vmem:[#allocation2 + $0xe8] sm:$0x11] }
 0x309   : > { %22829 = vst [vmem:[#allocation34_spill] sm:$0xff] %v20616_v53  ;;  %v20621_v63 = vadd.f32 %v16423_v37, %v16422_v12  ;;  %v20637_v37 = vsel %vm18841_vm2, %v6729_v38, %v6733_v62  ;;  %v20641_v52 = vadd.f32 %v22836_v13, %v22835_v16  ;;  %v14879_v41 = vcombine.low %v20581_v56, %v20587_v51  ;;  %v6567_v61 = vld [vmem:[#allocation2 + $0xf0] sm:$0xff] }
 0x30a   : > { %8443 = vmatmul.mubr.bf16.gmra.mrb[20].mxu0 %v14945_v8  ;;  %v16125_v39 = vpop.f32.mrb[164].mxu1  ;;  %v6743_v3 = vrot.slane %v6742_v21, 4  ;;  %v20651_v17 = vsel %vm18346_vm11, %v7340_v54, %v7341_v50  ;;  %v6757_v38 = vrot.slane %v6755_v27, 5  ;;  %v6762_v12 = vrot.slane %v6760_v57, 4  ;;  %v6568_v50 = vld [vmem:[#allocation2 + $0xf8] sm:$0xff] }
 0x30b   : > { %22831 = vst [vmem:[#allocation67_spill] sm:$0xff] %v20621_v63  ;;  %8450 = vmatprep.mubr.bf16.mxu0 %v14948_v22  ;;  %v16126_v8 = vpop.f32.mrb[165].mxu1  ;;  %v20647_v22 = vsel %vm18346_vm11, %v14918_v6, %v7338_v5  ;;  %v6765_v20 = vrot.slane %v6763_v0, 5  ;;  %v14882_v21 = vcombine.high %v20633_v26, %v20637_v37  ;;  %v6753_v51 = vrot.slane %v6752_v11, 4 }
 0x30c   : > { %v16127_v62 = vadd.f32 %v16126_v8, %v16125_v39  ;;  %v16128_v35 = vpop.f32.mrb[166].mxu1  ;;  %v20655_v14 = vrot.slane %v6769_v25, 5  ;;  %v6775_v6 = vrot.slane %v6773_v2, 4  ;;  %v14950_v27 = vcombine.high %v20647_v22, %v20651_v17 }
 0x30d   : > { %v16425_v46 = vpop.f32.mrb[172].mxu0  ;;  %v16129_v10 = vpop.f32.mrb[167].mxu1  ;;  %v14947_v0 = vcombine.low %v20569_v58, %v20598_v23  ;;  %v20668_v11 = vsel %vm18841_vm2, %v6743_v3, %v6747_v29  ;;  %v6779_v25 = vshll.u32 %v6566_v31, 16  ;;  %v6784_v2 = vshrl.u32 %v6567_v61, 16 }
 0x30e   : > { %v16426_v56 = vpop.f32.mrb[173].mxu0  ;;  %v16130_v5 = vadd.f32 %v16129_v10, %v16128_v35  ;;  %v20662_v57 = vadd.f32 %v20173_v44, %v16127_v62  ;;  %v6766_v8 = vor.u32 %v6765_v20, %v6762_v12  ;;  %v22839_v44 = vld [vmem:[#allocation17_spill] sm:$0xff]  ;;  %v20681_v58 = vsel %vm18841_vm2, %v6753_v51, %v6757_v38  ;;  %v22841_v12 = vld [vmem:[#allocation18_spill] sm:$0xff] }
 0x30f   : > { %v20657_v16 = vadd.f32 %v16426_v56, %v16425_v46  ;;  %v16428_v54 = vpop.f32.mrb[174].mxu0  ;;  %8210 = vmatmul.mubr.bf16.gmra.mrb[16].mxu1 %v14879_v41  ;;  %v22840_v62 = vld [vmem:[#allocation45_spill] sm:$0xff]  ;;  %v6776_v23 = vor.u32 %v6775_v6, %v20655_v14  ;;  %v6787_v29 = vshll.u32 %v6567_v61, 16  ;;  %v6793_v41 = vshll.u32 %v6568_v50, 16  ;;  %v22842_v20 = vld [vmem:[#allocation46_spill] sm:$0xff] }
 0x310   : > { %v16429_v39 = vpop.f32.mrb[175].mxu0  ;;  %8217 = vmatprep.mubr.bf16.mxu1 %v14882_v21  ;;  %v20673_v35 = vadd.f32 %v20183_v45, %v16130_v5  ;;  %v20677_v46 = vadd.f32 %v22840_v62, %v22839_v44  ;;  %v6797_v31 = vshrl.u32 %v6568_v50, 16  ;;  %v20686_v45 = vadd.f32 %v22842_v20, %v22841_v12  ;;  %v6570_v5 = vld [vmem:[#allocation2 + $0x108] sm:$0xff] }
 0x311   : > { %22837 = vst [vmem:[#allocation39_spill] sm:$0xff] %v20657_v16  ;;  %v20670_v13 = vadd.f32 %v16429_v39, %v16428_v54  ;;  %v14881_v10 = vcombine.low %v20633_v26, %v20637_v37  ;;  %v6781_v56 = vrot.slane %v6779_v25, 5  ;;  %v14884_v61 = vcombine.high %v20668_v11, %v20681_v58 }
 0x312   : > { %8451 = vmatmul.mubr.bf16.gmra.mrb[24].mxu0 %v14947_v0  ;;  %v16131_v3 = vpop.f32.mrb[168].mxu1  ;;  %v6767_v6 = vrot.slane %v6766_v8, 4  ;;  %v6569_v0 = vld [vmem:[#allocation2 + $0x100] sm:$0x11]  ;;  %v6786_v50 = vrot.slane %v6784_v2, 4  ;;  %v6777_v44 = vrot.slane %v6776_v23, 4  ;;  %v14949_v26 = vcombine.low %v20647_v22, %v20651_v17 }
 0x313   : > { %22838 = vst [vmem:[#allocation68_spill] sm:$0xff] %v20670_v13  ;;  %8458 = vmatprep.mubr.bf16.mxu0 %v14950_v27  ;;  %v16132_v21 = vpop.f32.mrb[169].mxu1  ;;  %v6789_v62 = vrot.slane %v6787_v29, 5  ;;  %v6795_v12 = vrot.slane %v6793_v41, 5  ;;  %v6799_v20 = vrot.slane %v6797_v31, 4  ;;  %v6808_v2 = vshrl.u32 %v6570_v5, 16 }
 0x314   : > { %v16133_v54 = vadd.f32 %v16132_v21, %v16131_v3  ;;  %v16134_v38 = vpop.f32.mrb[170].mxu1  ;;  %v6571_v21 = vld [vmem:[#allocation2 + $0x110] sm:$0xff]  ;;  %v6811_v16 = vshll.u32 %v6570_v5, 16  ;;  %v6803_v29 = vshll.u32 %v6569_v0, 16  ;;  %v22845_v22 = vld [vmem:[#allocation21_spill] sm:$0xff]  ;;  %v22846_v17 = vld [vmem:[#allocation47_spill] sm:$0xff]  ;;  %v20715_v5 = vsel %vm18841_vm2, %v6777_v44, %v6781_v56 }
 0x315   : > { %v16431_v51 = vpop.f32.mrb[176].mxu0  ;;  %v16135_v27 = vpop.f32.mrb[171].mxu1  ;;  %v6790_v31 = vor.u32 %v6789_v62, %v6786_v50  ;;  %v6810_v50 = vrot.slane %v6808_v2, 4 }
 0x316   : > { %v16432_v39 = vpop.f32.mrb[177].mxu0  ;;  %v16136_v37 = vadd.f32 %v16135_v27, %v16134_v38  ;;  %v20697_v13 = vadd.f32 %v20220_v15, %v16133_v54  ;;  %v20706_v38 = vadd.f32 %v22846_v17, %v22845_v22  ;;  %v6821_v27 = vshrl.u32 %v6571_v21, 16  ;;  %v22847_v54 = vld [vmem:[#allocation24_spill] sm:$0xff] }
 0x317   : > { %v20694_v25 = vadd.f32 %v16432_v39, %v16431_v51  ;;  %v16434_v3 = vpop.f32.mrb[178].mxu0  ;;  %8218 = vmatmul.mubr.bf16.gmra.mrb[20].mxu1 %v14881_v10  ;;  %v6817_v51 = vshll.u32 %v6571_v21, 16  ;;  %v20711_v10 = vsel %vm18841_vm2, %v6767_v6, %v20655_v14  ;;  %v6813_v62 = vrot.slane %v6811_v16, 5  ;;  %v6573_v6 = vld [vmem:[#allocation2 + $0x120] sm:$0xff] }
 0x318   : > { %v16435_v8 = vpop.f32.mrb[179].mxu0  ;;  %8225 = vmatprep.mubr.bf16.mxu1 %v14884_v61  ;;  %v20702_v41 = vadd.f32 %v20233_v36, %v16136_v37  ;;  %v6800_v36 = vor.u32 %v6799_v20, %v6795_v12  ;;  %v22848_v61 = vld [vmem:[#allocation49_spill] sm:$0xff]  ;;  %v6805_v14 = vrot.slane %v6803_v29, 5  ;;  %v14886_v56 = vcombine.high %v20711_v10, %v20715_v5 }
 0x319   : > { %22843 = vst [vmem:[#allocation40_spill] sm:$0xff] %v20694_v25  ;;  %v20699_v23 = vadd.f32 %v16435_v8, %v16434_v3  ;;  %v20719_v0 = vadd.f32 %v22848_v61, %v22847_v54  ;;  %v6791_v20 = vrot.slane %v6790_v31, 4  ;;  %v6819_v22 = vrot.slane %v6817_v51, 5 }
 0x31a   : > { %8459 = vmatmul.mubr.bf16.gmra.mrb[28].mxu0 %v14949_v26  ;;  %v16137_v15 = vpop.f32.mrb[172].mxu1  ;;  %v14883_v26 = vcombine.low %v20668_v11, %v20681_v58  ;;  %v6823_v17 = vrot.slane %v6821_v27, 4  ;;  %v6801_v2 = vrot.slane %v6800_v36, 4  ;;  %v6574_v11 = vld [vmem:[#allocation2 + $0x128] sm:$0xff]  ;;  %v6835_v31 = vshll.u32 %v6573_v6, 16  ;;  %v22851_v27 = vld [vmem:[#allocation29_spill] sm:$0xff] }
 0x31b   : > { %22844 = vst [vmem:[#allocation71_spill] sm:$0xff] %v20699_v23  ;;  %v16138_v39 = vpop.f32.mrb[173].mxu1  ;;  %v6572_v23 = vld [vmem:[#allocation2 + $0x118] sm:$0x11] }
 0x31c   : > { %v16139_v37 = vadd.f32 %v16138_v39, %v16137_v15  ;;  %v16140_v3 = vpop.f32.mrb[174].mxu1  ;;  %v6814_v15 = vor.u32 %v6813_v62, %v6810_v50  ;;  %v6832_v39 = vshrl.u32 %v6573_v6, 16  ;;  %v6824_v36 = vor.u32 %v6823_v17, %v6819_v22 }
 0x31d   : > { %v16437_v21 = vpop.f32.mrb[180].mxu0  ;;  %v16141_v8 = vpop.f32.mrb[175].mxu1  ;;  %v20745_v50 = vsel %vm18841_vm2, %v6801_v2, %v6805_v14  ;;  %v6845_v62 = vshrl.u32 %v6574_v11, 16 }
 0x31e   : > { %v16438_v44 = vpop.f32.mrb[181].mxu0  ;;  %v16142_v54 = vadd.f32 %v16141_v8, %v16140_v3  ;;  %v20728_v58 = vadd.f32 %v20287_v9, %v16139_v37  ;;  %v22852_v3 = vld [vmem:[#allocation51_spill] sm:$0xff]  ;;  %v6827_v8 = vshll.u32 %v6572_v23, 16  ;;  %v22853_v37 = vld [vmem:[#allocation25_spill] sm:$0xff]  ;;  %v14885_v23 = vcombine.low %v20711_v10, %v20715_v5  ;;  %v6577_v5 = vld [vmem:[#allocation2 + $0x140] sm:$0xff] }
 0x31f   : > { %v20725_v61 = vadd.f32 %v16438_v44, %v16437_v21  ;;  %v16440_v16 = vpop.f32.mrb[182].mxu0  ;;  %8226 = vmatmul.mubr.bf16.gmra.mrb[24].mxu1 %v14883_v26  ;;  %v20737_v21 = vadd.f32 %v22852_v3, %v22851_v27  ;;  %v6841_v44 = vshll.u32 %v6574_v11, 16  ;;  %v20741_v26 = vsel %vm18841_vm2, %v6791_v20, %v6795_v12  ;;  %v6576_v3 = vld [vmem:[#allocation2 + $0x138] sm:$0xff] }
 0x320   : > { %v16441_v29 = vpop.f32.mrb[183].mxu0  ;;  %8233 = vmatprep.mubr.bf16.mxu1 %v14886_v56  ;;  %v20733_v51 = vadd.f32 %v20298_v55, %v16142_v54  ;;  %v22854_v55 = vld [vmem:[#allocation53_spill] sm:$0xff]  ;;  %v6815_v54 = vrot.slane %v6814_v15, 4  ;;  %v6834_v12 = vrot.slane %v6832_v39, 4  ;;  %v6837_v20 = vrot.slane %v6835_v31, 5 }
 0x321   : > { %22849 = vst [vmem:[#allocation72_spill] sm:$0xff] %v20725_v61  ;;  %v20730_v25 = vadd.f32 %v16441_v29, %v16440_v16  ;;  %v20749_v6 = vadd.f32 %v22854_v55, %v22853_v37  ;;  %v6575_v16 = vld [vmem:[#allocation2 + $0x130] sm:$0x11]  ;;  %v14888_v14 = vcombine.high %v20741_v26, %v20745_v50  ;;  %v6825_v11 = vrot.slane %v6824_v36, 4 }
 0x322   : > { %v16143_v9 = vpop.f32.mrb[176].mxu1  ;;  %v6829_v37 = vrot.slane %v6827_v8, 5  ;;  %v20755_v55 = vrot.slane %v6841_v44, 5  ;;  %v6847_v10 = vrot.slane %v6845_v62, 4  ;;  %v20764_v31 = vsel %vm18841_vm2, %v6815_v54, %v6819_v22  ;;  %v17693_v44 = vld [vmem:[%s22586_s7 + $0x80] sm:$0xff]  }
 0x323   : > { %22850 = vst [vmem:[#allocation69_spill] sm:$0xff] %v20730_v25  ;;  %22855 = vst [vmem:[#allocation43_spill] sm:$0xff] %v20749_v6  ;;  %v16144_v56 = vpop.f32.mrb[177].mxu1  ;;  %v6856_v36 = vshrl.u32 %v6576_v3, 16  ;;  %v6859_v54 = vshll.u32 %v6576_v3, 16  ;;  %17135 = vmatprep.subr.bf16.mxu0 %v17693_v44 }
 0x324   : > { %v16145_v17 = vadd.f32 %v16144_v56, %v16143_v9  ;;  %v16146_v29 = vpop.f32.mrb[178].mxu1  ;;  %v6851_v56 = vshll.u32 %v6575_v16, 16  ;;  %v20780_v22 = vsel %vm18841_vm2, %v6825_v11, %v6829_v37  ;;  %v6865_v16 = vshll.u32 %v6577_v5, 16  ;;  %17136 = vmatpush3.bf16.msra.mxu0 %v17693_v44 }
 0x325   : > { %v16443_v27 = vpop.f32.mrb[184].mxu0  ;;  %v16147_v25 = vpop.f32.mrb[179].mxu1  ;;  %v14890_v3 = vcombine.high %v20764_v31, %v20780_v22 }
 0x326   : > { %v16444_v2 = vpop.f32.mrb[185].mxu0  ;;  %v16148_v15 = vadd.f32 %v16147_v25, %v16146_v29  ;;  %v20760_v9 = vadd.f32 %v20344_v4, %v16145_v17  ;;  %v6838_v25 = vor.u32 %v6837_v20, %v6834_v12  ;;  %v22858_v4 = vld [vmem:[#allocation35_spill] sm:$0xff]  ;;  %v22862_v20 = vld [vmem:[#allocation56_spill] sm:$0xff] }
 0x327   : > { %v20757_v61 = vadd.f32 %v16444_v2, %v16443_v27  ;;  %v16446_v63 = vpop.f32.mrb[186].mxu0  ;;  %8234 = vmatmul.mubr.bf16.gmra.mrb[28].mxu1 %v14885_v23  ;;  %v22859_v23 = vld [vmem:[#allocation54_spill] sm:$0xff]  ;;  %v6848_v27 = vor.u32 %v6847_v10, %v20755_v55  ;;  %v22861_v12 = vld [vmem:[#allocation31_spill] sm:$0xff]  ;;  %v6579_v10 = vld [vmem:[#allocation2 + $0x150] sm:$0xff] }
 0x328   : > { %v16447_v39 = vpop.f32.mrb[187].mxu0  ;;  %8241 = vmatprep.mubr.bf16.mxu1 %v14888_v14  ;;  %v20772_v62 = vadd.f32 %v20353_v19, %v16148_v15  ;;  %v20776_v17 = vadd.f32 %v22859_v23, %v22858_v4  ;;  %v20785_v14 = vadd.f32 %v22862_v20, %v22861_v12  ;;  %v14887_v19 = vcombine.low %v20741_v26, %v20745_v50  ;;  %v6578_v15 = vld [vmem:[#allocation2 + $0x148] sm:$0x11] }
 0x329   : > { %22856 = vst [vmem:[#allocation70_spill] sm:$0xff] %v20757_v61  ;;  %v20766_v8 = vadd.f32 %v16447_v39, %v16446_v63  ;;  %v6869_v63 = vshrl.u32 %v6577_v5, 16  ;;  %v6853_v5 = vrot.slane %v6851_v56, 5  ;;  %v6858_v4 = vrot.slane %v6856_v36, 4 }
 0x32a   : > { %22860 = vst [vmem:[#allocation17_spill] sm:$0xff] %v20776_v17  ;;  %v16149_v29 = vpop.f32.mrb[180].mxu1  ;;  %22863 = vst [vmem:[#allocation45_spill] sm:$0xff] %v20785_v14  ;;  %v6839_v61 = vrot.slane %v6838_v25, 4  ;;  %v6861_v12 = vrot.slane %v6859_v54, 5  ;;  %v6867_v20 = vrot.slane %v6865_v16, 5 }
 0x32b   : > { %22857 = vst [vmem:[#allocation44_spill] sm:$0xff] %v20766_v8  ;;  %v16150_v2 = vpop.f32.mrb[181].mxu1  ;;  %v6871_v53 = vrot.slane %v6869_v63, 4  ;;  %v6849_v44 = vrot.slane %v6848_v27, 4  ;;  %v6875_v56 = vshll.u32 %v6578_v15, 16  ;;  %v6880_v36 = vshrl.u32 %v6579_v10, 16 }
 0x32c   : > { %v16151_v39 = vadd.f32 %v16150_v2, %v16149_v29  ;;  %v16152_v11 = vpop.f32.mrb[182].mxu1  ;;  %v6580_v29 = vld [vmem:[#allocation2 + $0x158] sm:$0xff]  ;;  %v6883_v25 = vshll.u32 %v6579_v10, 16  ;;  %v6862_v27 = vor.u32 %v6861_v12, %v6858_v4 }
 0x32d   : > { %v16449_v37 = vpop.f32.mrb[188].mxu0  ;;  %v16153_v23 = vpop.f32.mrb[183].mxu1  ;;  %v22866_v16 = vld [vmem:[#allocation37_spill] sm:$0xff]  ;;  %v6893_v15 = vshrl.u32 %v6580_v29, 16  ;;  %v6877_v12 = vrot.slane %v6875_v56, 5 }
 0x32e   : > { %v16450_v8 = vpop.f32.mrb[189].mxu0  ;;  %v16154_v14 = vadd.f32 %v16153_v23, %v16152_v11  ;;  %v20794_v2 = vadd.f32 %v20385_v47, %v16151_v39  ;;  %v6872_v11 = vor.u32 %v6871_v53, %v6867_v20 }
 0x32f   : > { %v20791_v26 = vadd.f32 %v16450_v8, %v16449_v37  ;;  %v16452_v50 = vpop.f32.mrb[190].mxu0  ;;  %8242 = vmatmul.mubr.bf16.gmra.mrb[32].mxu1 %v14887_v19  ;;  %v22867_v8 = vld [vmem:[#allocation57_spill] sm:$0xff]  ;;  %v6889_v37 = vshll.u32 %v6580_v29, 16  ;;  %v20808_v19 = vsel %vm18841_vm2, %v6839_v61, %v20755_v55  ;;  %v6885_v61 = vrot.slane %v6883_v25, 5 }
 0x330   : > { %v16453_v17 = vpop.f32.mrb[191].mxu0  ;;  %8249 = vmatprep.mubr.bf16.mxu1 %v14890_v3  ;;  %v20799_v54 = vadd.f32 %v20399_v1, %v16154_v14  ;;  %v20803_v63 = vadd.f32 %v22867_v8, %v22866_v16  ;;  %v22868_v1 = vld [vmem:[#allocation38_spill] sm:$0xff]  ;;  %v14889_v3 = vcombine.low %v20764_v31, %v20780_v22  ;;  %v6863_v29 = vrot.slane %v6862_v27, 4  ;;  %v17694_v27 = vld [vmem:[%s22586_s7 + $0x88] sm:$0xff]  }
 0x331   : > { %22864 = vst [vmem:[#allocation18_spill] sm:$0xff] %v20791_v26  ;;  %v20796_v6 = vadd.f32 %v16453_v17, %v16452_v50  ;;  %v20812_v17 = vsel %vm18841_vm2, %v6849_v44, %v6853_v5  ;;  %v22869_v14 = vld [vmem:[#allocation58_spill] sm:$0xff]  ;;  %v6882_v50 = vrot.slane %v6880_v36, 4  ;;  %v6873_v16 = vrot.slane %v6872_v11, 4  ;;  %v6583_v26 = vld [vmem:[#allocation2 + $0x170] sm:$0xff]  ;;  %17137 = vmatprep.subr.bf16.mxu0 %v17694_v27 }
 0x332   : > { %v16155_v47 = vpop.f32.mrb[184].mxu1  ;;  %v20816_v39 = vadd.f32 %v22869_v14, %v22868_v1  ;;  %v14892_v5 = vcombine.high %v20808_v19, %v20812_v17  ;;  %v6891_v8 = vrot.slane %v6889_v37, 5  ;;  %v6581_v31 = vld [vmem:[#allocation2 + $0x160] sm:$0x11]  ;;  %v6895_v22 = vrot.slane %v6893_v15, 4  ;;  %v22872_v37 = vld [vmem:[#allocation60_spill] sm:$0xff]  ;;  %17138 = vmatpush3.bf16.msra.mxu0 %v17694_v27 }
 0x333   : > { %22865 = vst [vmem:[#allocation46_spill] sm:$0xff] %v20796_v6  ;;  %v16156_v53 = vpop.f32.mrb[185].mxu1  ;;  %v6886_v25 = vor.u32 %v6885_v61, %v6882_v50  ;;  %v20837_v15 = vadd.f32 %v22872_v37, %v20171_v30  ;;  %v22873_v61 = vld [vmem:[#allocation62_spill] sm:$0xff]  ;;  %v6917_v30 = vshrl.u32 %v6583_v26, 16 }
 0x334   : > { %v16157_v4 = vadd.f32 %v16156_v53, %v16155_v47  ;;  %v16158_v10 = vpop.f32.mrb[186].mxu1  ;;  %v6582_v47 = vld [vmem:[#allocation2 + $0x168] sm:$0xff]  ;;  %v6896_v50 = vor.u32 %v6895_v22, %v6891_v8 }
 0x335   : > { %v16455_v23 = vpop.f32.mrb[192].mxu0  ;;  %v16159_v55 = vpop.f32.mrb[187].mxu1 }
 0x336   : > { %v16456_v44 = vpop.f32.mrb[193].mxu0  ;;  %v16160_v1 = vadd.f32 %v16159_v55, %v16158_v10  ;;  %v20825_v53 = vadd.f32 %v20429_v33, %v16157_v4  ;;  %v6899_v33 = vshll.u32 %v6581_v31, 16  ;;  %v6904_v4 = vshrl.u32 %v6582_v47, 16 }
 0x337   : > { %v20822_v14 = vadd.f32 %v16456_v44, %v16455_v23  ;;  %v16458_v6 = vpop.f32.mrb[194].mxu0  ;;  %8250 = vmatmul.mubr.bf16.gmra.mrb[36].mxu1 %v14889_v3  ;;  %v6907_v3 = vshll.u32 %v6582_v47, 16  ;;  %v6878_v23 = vsel %vm18841_vm2, %v6873_v16, %v6877_v12  ;;  %v14891_v44 = vcombine.low %v20808_v19, %v20812_v17 }
 0x338   : > { %v16459_v56 = vpop.f32.mrb[195].mxu0  ;;  %8257 = vmatprep.mubr.bf16.mxu1 %v14892_v5  ;;  %v20833_v11 = vadd.f32 %v20442_v59, %v16160_v1  ;;  %v20845_v59 = vadd.f32 %v22873_v61, %v20181_v32  ;;  %v6913_v5 = vshll.u32 %v6583_v26, 16  ;;  %v6901_v16 = vrot.slane %v6899_v33, 5  ;;  %v6584_v26 = vld [vmem:[#allocation2 + $0x178] sm:$0x11] }
 0x339   : > { %22870 = vst [vmem:[#allocation21_spill] sm:$0xff] %v20822_v14  ;;  %v20827_v36 = vadd.f32 %v16459_v56, %v16458_v6  ;;  %v6868_v6 = vsel %vm18841_vm2, %v6863_v29, %v6867_v20  ;;  %v6887_v20 = vrot.slane %v6886_v25, 4  ;;  %v6906_v22 = vrot.slane %v6904_v4, 4  ;;  %v6585_v25 = vld [vmem:[#allocation2 + $0x180] sm:$0xff] }
 0x33a   : > { %v16161_v10 = vpop.f32.mrb[188].mxu1  ;;  %22874 = vst [vmem:[#allocation24_spill] sm:$0xff] %v20845_v59  ;;  %v14894_v56 = vcombine.high %v6868_v6, %v6878_v23  ;;  %v6909_v37 = vrot.slane %v6907_v3, 5  ;;  %v6897_v14 = vrot.slane %v6896_v50, 4  ;;  %v6915_v17 = vrot.slane %v6913_v5, 5  ;;  %v22880_v59 = vld [vmem:[#allocation11_spill] sm:$0xff] }
 0x33b   : > { %22871 = vst [vmem:[#allocation47_spill] sm:$0xff] %v20827_v36  ;;  %v16162_v55 = vpop.f32.mrb[189].mxu1  ;;  %v6923_v3 = vshll.u32 %v6584_v26, 16  ;;  %v6892_v50 = vsel %vm18841_vm2, %v6887_v20, %v6891_v8  ;;  %v22878_v20 = vld [vmem:[#allocation13_spill] sm:$0xff] }
 0x33c   : > { %v16163_v1 = vadd.f32 %v16162_v55, %v16161_v10  ;;  %v16164_v31 = vpop.f32.mrb[190].mxu1  ;;  %v6919_v10 = vrot.slane %v6917_v30, 4  ;;  %v6910_v4 = vor.u32 %v6909_v37, %v6906_v22  ;;  %v6931_v30 = vshll.u32 %v6585_v25, 16 }
 0x33d   : > { %v16461_v47 = vpop.f32.mrb[196].mxu0  ;;  %v16165_v29 = vpop.f32.mrb[191].mxu1  ;;  %v6925_v8 = vrot.slane %v6923_v3, 5  ;;  %v6587_v3 = vld [vmem:[#allocation2 + $0x190] sm:$0x11] }
 0x33e   : > { %v16462_v12 = vpop.f32.mrb[197].mxu0  ;;  %v16166_v36 = vadd.f32 %v16165_v29, %v16164_v31  ;;  %v20852_v27 = vadd.f32 %v20484_v48, %v16163_v1  ;;  %v6902_v48 = vsel %vm18841_vm2, %v6897_v14, %v6901_v16  ;;  %v6920_v5 = vor.u32 %v6919_v10, %v6915_v17 }
 0x33f   : > { %v20849_v32 = vadd.f32 %v16462_v12, %v16461_v47  ;;  %v16464_v61 = vpop.f32.mrb[198].mxu0  ;;  %8258 = vmatmul.mubr.bf16.gmra.mrb[40].mxu1 %v14891_v44  ;;  %v6928_v44 = vshrl.u32 %v6585_v25, 16  ;;  %v6937_v47 = vshll.u32 %v20545_v28, 16  ;;  %v6941_v29 = vshrl.u32 %v20545_v28, 16 }
 0x340   : > { %v16465_v19 = vpop.f32.mrb[199].mxu0  ;;  %8265 = vmatprep.mubr.bf16.mxu1 %v14894_v56  ;;  %v20857_v33 = vadd.f32 %v20490_v18, %v16166_v36  ;;  %v14893_v12 = vcombine.low %v6868_v6, %v6878_v23  ;;  %v14896_v37 = vcombine.high %v6892_v50, %v6902_v48  ;;  %v6911_v26 = vrot.slane %v6910_v4, 4  ;;  %v22881_v23 = vld [vmem:[#allocation14_spill] sm:$0xff] }
 0x341   : > { %22875 = vst [vmem:[#allocation49_spill] sm:$0xff] %v20849_v32  ;;  %v20854_v55 = vadd.f32 %v16465_v19, %v16464_v61  ;;  %v6930_v25 = vrot.slane %v6928_v44, 4  ;;  %v6921_v32 = vrot.slane %v6920_v5, 4  ;;  %v6933_v28 = vrot.slane %v6931_v30, 5  ;;  %v22883_v44 = vld [vmem:[#allocation12_spill] sm:$0xff] }
 0x342   : > { %22877 = vst [vmem:[#allocation51_spill] sm:$0xff] %v20857_v33  ;;  %v16295_v31 = vpop.f32.mrb[192].mxu1  ;;  %v6916_v30 = vsel %vm18841_vm2, %v6911_v26, %v6915_v17 }
 0x343   : > { %22876 = vst [vmem:[#allocation29_spill] sm:$0xff] %v20854_v55  ;;  %v16296_v1 = vpop.f32.mrb[193].mxu1 }
 0x344   : > { %v16297_v56 = vadd.f32 %v16296_v1, %v16295_v31  ;;  %v16298_v18 = vpop.f32.mrb[194].mxu1  ;;  %v6939_v31 = vrot.slane %v6937_v47, 5  ;;  %v6943_v1 = vrot.slane %v6941_v29, 4  ;;  %v6934_v29 = vor.u32 %v6933_v28, %v6930_v25 }
 0x345   : > { %v16467_v36 = vpop.f32.mrb[200].mxu0  ;;  %v16299_v22 = vpop.f32.mrb[195].mxu1 }
 0x346   : > { %v16468_v61 = vpop.f32.mrb[201].mxu0  ;;  %v6096_v19 = vadd.f32 %v16297_v56, %v22878_v20  ;;  %v16300_v14 = vadd.f32 %v16299_v22, %v16298_v18  ;;  %v6952_v56 = vshrl.u32 %v20607_v49, 16  ;;  %v6955_v18 = vshll.u32 %v20607_v49, 16 }
 0x347   : > { %v20866_v16 = vadd.f32 %v16468_v61, %v16467_v36  ;;  %v16470_v10 = vpop.f32.mrb[202].mxu0  ;;  %8266 = vmatmul.mubr.bf16.gmra.mrb[44].mxu1 %v14893_v12  ;;  %v6944_v12 = vor.u32 %v6943_v1, %v6939_v31  ;;  %v14895_v20 = vcombine.low %v6892_v50, %v6902_v48  ;;  %v22886_v1 = vld [vmem:[#allocation41_spill] sm:$0xff] }
 0x348   : > { %v16471_v55 = vpop.f32.mrb[203].mxu0  ;;  %v20869_v6 = vadd.f32 %v6096_v19, %v22880_v59  ;;  %v6099_v33 = vadd.f32 %v16300_v14, %v22881_v23  ;;  %8273 = vmatprep.mubr.bf16.mxu1 %v14896_v37  ;;  %v6926_v59 = vsel %vm18841_vm2, %v6921_v32, %v6925_v8  ;;  %v6954_v14 = vrot.slane %v6952_v56, 4  ;;  %v22887_v50 = vld [vmem:[#allocation73_spill] sm:$0xff] }
 0x349   : > { %22879 = vst [vmem:[#allocation25_spill] sm:$0xff] %v20866_v16  ;;  %v20872_v4 = vadd.f32 %v16471_v55, %v16470_v10  ;;  %v6947_v55 = vshll.u32 %v6587_v3, 16  ;;  %v22884_v10 = vld [vmem:[#allocation48_spill] sm:$0xff]  ;;  %v6590_v16 = vld [vmem:[#allocation2 + $0x1a8] sm:$0x11]  ;;  %v6935_v8 = vrot.slane %v6934_v29, 4 }
 0x34a   : > { %v20877_v36 = vadd.f32 %v6099_v33, %v22883_v44  ;;  %v16301_v5 = vpop.f32.mrb[196].mxu1  ;;  %v6957_v33 = vrot.slane %v6955_v18, 5  ;;  %v6945_v25 = vrot.slane %v6944_v12, 4 }
 0x34b   : > { %22882 = vst [vmem:[#allocation53_spill] sm:$0xff] %v20872_v4  ;;  %v16302_v47 = vpop.f32.mrb[197].mxu1  ;;  %v14898_v4 = vcombine.high %v6916_v30, %v6926_v59  ;;  %v6949_v28 = vrot.slane %v6947_v55, 5  ;;  %v6940_v29 = vsel %vm18841_vm2, %v6935_v8, %v6939_v31  ;;  %v22891_v8 = vld [vmem:[#allocation50_spill] sm:$0xff] }
 0x34c   : > { %v16303_v22 = vadd.f32 %v16302_v47, %v16301_v5  ;;  %v16304_v37 = vpop.f32.mrb[198].mxu1  ;;  %v6958_v18 = vor.u32 %v6957_v33, %v6954_v14  ;;  %v6971_v5 = vshll.u32 %v6590_v16, 16  ;;  %v22889_v47 = vld [vmem:[#allocation42_spill] sm:$0xff] }
 0x34d   : > { %v16473_v61 = vpop.f32.mrb[204].mxu0  ;;  %v16305_v19 = vpop.f32.mrb[199].mxu1  ;;  %v6950_v12 = vsel %vm18841_vm2, %v6945_v25, %v6949_v28  ;;  %v22893_v28 = vld [vmem:[#allocation52_spill] sm:$0xff] }
 0x34e   : > { %v16474_v49 = vpop.f32.mrb[205].mxu0  ;;  %v6104_v23 = vadd.f32 %v16303_v22, %v22884_v10  ;;  %v16306_v44 = vadd.f32 %v16305_v19, %v16304_v37  ;;  %v6973_v14 = vrot.slane %v6971_v5, 5 }
 0x34f   : > { %v20884_v17 = vadd.f32 %v16474_v49, %v16473_v61  ;;  %v16476_v26 = vpop.f32.mrb[206].mxu0  ;;  %8274 = vmatmul.mubr.bf16.gmra.mrb[48].mxu1 %v14895_v20  ;;  %v14897_v49 = vcombine.low %v6916_v30, %v6926_v59 }
 0x350   : > { %v16477_v32 = vpop.f32.mrb[207].mxu0  ;;  %v20887_v3 = vadd.f32 %v6104_v23, %v22886_v1  ;;  %v6107_v48 = vadd.f32 %v16306_v44, %v22887_v50  ;;  %8281 = vmatprep.mubr.bf16.mxu1 %v14898_v4  ;;  %v6959_v23 = vrot.slane %v6958_v18, 4 }
 0x351   : > { %22885 = vst [vmem:[#allocation35_spill] sm:$0xff] %v20884_v17  ;;  %v20890_v56 = vadd.f32 %v16477_v32, %v16476_v26  ;;  %v14900_v26 = vcombine.high %v6940_v29, %v6950_v12  ;;  %v17716_v17 = vld [vmem:[%s22586_s7 + $0xb8] sm:$0xff]  }
 0x352   : > { %v20893_v22 = vadd.f32 %v6107_v48, %v22889_v47  ;;  %v16307_v37 = vpop.f32.mrb[200].mxu1  ;;  %v6964_v59 = vsel %vm18841_vm2, %v6959_v23, %v6957_v33  ;;  %v17695_v47 = vld [vmem:[%s22586_s7 + $0x90] sm:$0xff]   ;;  %v17696_v33 = vld [vmem:[%s22586_s7 + $0x40] sm:$0xff]  }
 0x353   : > { %22888 = vst [vmem:[#allocation54_spill] sm:$0xff] %v20890_v56  ;;  %v16308_v61 = vpop.f32.mrb[201].mxu1  ;;  %17139 = vmatprep.subr.bf16.mxu0 %v17695_v47  ;;  %16727 = vmatprep.subr.bf16.mxu1 %v17696_v33 }
 0x354   : > { %v16309_v55 = vadd.f32 %v16308_v61, %v16307_v37  ;;  %v16310_v20 = vpop.f32.mrb[202].mxu1  ;;  %17140 = vmatpush3.bf16.msra.mxu0 %v17695_v47 }
 0x355   : > { %v16479_v19 = vpop.f32.mrb[208].mxu0  ;;  %v16311_v4 = vpop.f32.mrb[203].mxu1 }
 0x356   : > { %v16480_v10 = vpop.f32.mrb[209].mxu0  ;;  %v6112_v16 = vadd.f32 %v16309_v55, %v20347_v60  ;;  %v16312_v44 = vadd.f32 %v16311_v4, %v16310_v20  ;;  %v6974_v60 = vsel %vm18841_vm2, %v6959_v23, %v6973_v14  ;;  %v14899_v20 = vcombine.low %v6940_v29, %v6950_v12  ;;  %v17697_v4 = vld [vmem:[%s22586_s7] sm:$0xff]  }
 0x357   : > { %v20900_v32 = vadd.f32 %v16480_v10, %v16479_v19  ;;  %v16482_v1 = vpop.f32.mrb[210].mxu0  ;;  %8282 = vmatmul.mubr.bf16.gmra.mrb[52].mxu1 %v14897_v49  ;;  %v14902_v55 = vcombine.high %v6964_v59, %v6974_v60  ;;  %v22894_v10 = vld [vmem:[#allocation10_spill] sm:$0xff] }
 0x358   : > { %v16483_v31 = vpop.f32.mrb[211].mxu0  ;;  %v20903_v50 = vadd.f32 %v6112_v16, %v22891_v8  ;;  %v6115_v25 = vadd.f32 %v16312_v44, %v20356_v43  ;;  %8289 = vmatprep.mubr.bf16.mxu1 %v14900_v26  ;;  %v22896_v12 = vld [vmem:[#allocation74_spill] sm:$0xff]  ;;  %16728 = vmatpush3.bf16.msra.mxu1 %v17697_v4  ;;  %v17699_v4 = vld [vmem:[%s22586_s7 + $0x8] sm:$0xff]  }
 0x359   : > { %22890 = vst [vmem:[#allocation31_spill] sm:$0xff] %v20900_v32  ;;  %v20906_v30 = vadd.f32 %v16483_v31, %v16482_v1  ;;  %v22898_v1 = vld [vmem:[#allocation75_spill] sm:$0xff] }
 0x35a   : > { %v20913_v48 = vadd.f32 %v6115_v25, %v22893_v28  ;;  %v16313_v18 = vpop.f32.mrb[204].mxu1  ;;  %v22900_v25 = vld [vmem:[#allocation55_spill] sm:$0xff] }
 0x35b   : > { %22892 = vst [vmem:[#allocation56_spill] sm:$0xff] %v20906_v30  ;;  %v16314_v5 = vpop.f32.mrb[205].mxu1  ;;  %v22927_v30 = vld [vmem:[#allocation66_spill] sm:$0xff] }
 0x35c   : > { %v16315_v37 = vadd.f32 %v16314_v5, %v16313_v18  ;;  %v16316_v43 = vpop.f32.mrb[206].mxu1 }
 0x35d   : > { %v16485_v61 = vpop.f32.mrb[212].mxu0  ;;  %v16317_v19 = vpop.f32.mrb[207].mxu1 }
 0x35e   : > { %v16486_v49 = vpop.f32.mrb[213].mxu0  ;;  %v6120_v23 = vadd.f32 %v16315_v37, %v22894_v10  ;;  %v16318_v14 = vadd.f32 %v16317_v19, %v16316_v43  ;;  %v14901_v37 = vcombine.low %v6964_v59, %v6974_v60  ;;  %v17700_v60 = vld [vmem:[%s22586_s7 + $0x50] sm:$0xff]  }
 0x35f   : > { %v20925_v16 = vadd.f32 %v16486_v49, %v16485_v61  ;;  %v16488_v44 = vpop.f32.mrb[214].mxu0  ;;  %8290 = vmatmul.mubr.bf16.gmra.mrb[56].mxu1 %v14899_v20  ;;  %v22902_v49 = vld [vmem:[#allocation78_spill] sm:$0xff] }
 0x360   : > { %v16489_v29 = vpop.f32.mrb[215].mxu0  ;;  %v20928_v26 = vadd.f32 %v6120_v23, %v22896_v12  ;;  %v6123_v31 = vadd.f32 %v16318_v14, %v22898_v1  ;;  %8297 = vmatprep.mubr.bf16.mxu1 %v14902_v55  ;;  %v17698_v55 = vld [vmem:[%s22586_s7 + $0x48] sm:$0xff]   ;;  %v22906_v12 = vld [vmem:[#allocation22_spill] sm:$0xff] }
 0x361   : > { %22895 = vst [vmem:[#allocation37_spill] sm:$0xff] %v20925_v16  ;;  %v20931_v8 = vadd.f32 %v16489_v29, %v16488_v44  ;;  %v22904_v44 = vld [vmem:[#allocation76_spill] sm:$0xff]  ;;  %16729 = vmatprep.subr.bf16.mxu1 %v17698_v55 }
 0x362   : > { %22897 = vst [vmem:[#allocation57_spill] sm:$0xff] %v20928_v26  ;;  %v20934_v28 = vadd.f32 %v6123_v31, %v22900_v25  ;;  %v16319_v18 = vpop.f32.mrb[208].mxu1  ;;  %16730 = vmatpush3.bf16.msra.mxu1 %v17699_v4  ;;  %v17701_v25 = vld [vmem:[%s22586_s7 + $0x10] sm:$0xff]  }
 0x363   : > { %22899 = vst [vmem:[#allocation38_spill] sm:$0xff] %v20931_v8  ;;  %v16320_v5 = vpop.f32.mrb[209].mxu1  ;;  %16731 = vmatprep.subr.bf16.mxu1 %v17700_v60  ;;  %v17703_v60 = vld [vmem:[%s22586_s7 + $0x58] sm:$0xff]  }
 0x364   : > { %22901 = vst [vmem:[#allocation58_spill] sm:$0xff] %v20934_v28  ;;  %v16321_v43 = vadd.f32 %v16320_v5, %v16319_v18  ;;  %v16322_v47 = vpop.f32.mrb[210].mxu1  ;;  %v22908_v18 = vld [vmem:[#allocation77_spill] sm:$0xff] }
 0x365   : > { %v16491_v61 = vpop.f32.mrb[216].mxu0  ;;  %v16323_v20 = vpop.f32.mrb[211].mxu1 }
 0x366   : > { %v16492_v19 = vpop.f32.mrb[217].mxu0  ;;  %v6128_v33 = vadd.f32 %v16321_v43, %v22902_v49  ;;  %v16324_v10 = vadd.f32 %v16323_v20, %v16322_v47  ;;  %16732 = vmatpush3.bf16.msra.mxu1 %v17701_v25  ;;  %v22914_v25 = vld [vmem:[#allocation61_spill] sm:$0xff] }
 0x367   : > { %v20937_v23 = vadd.f32 %v16492_v19, %v16491_v61  ;;  %v16494_v14 = vpop.f32.mrb[218].mxu0  ;;  %8298 = vmatmul.mubr.bf16.gmra.mrb[60].mxu1 %v14901_v37  ;;  %v17702_v19 = vld [vmem:[%s22586_s7 + $0x98] sm:$0xff]   ;;  %16733 = vmatprep.subr.bf16.mxu1 %v17703_v60  ;;  %v17707_v60 = vld [vmem:[%s22586_s7 + $0xa0] sm:$0xff]  }
 0x368   : > { %v16495_v59 = vpop.f32.mrb[219].mxu0  ;;  %v20949_v29 = vadd.f32 %v6128_v33, %v22904_v44  ;;  %v6131_v1 = vadd.f32 %v16324_v10, %v22906_v12  ;;  %v22910_v10 = vld [vmem:[#allocation16_spill] sm:$0xff]  ;;  %17141 = vmatprep.subr.bf16.mxu0 %v17702_v19  ;;  %v17704_v12 = vld [vmem:[%s22586_s7 + $0x18] sm:$0xff]  }
 0x369   : > { %22903 = vst [vmem:[#allocation60_spill] sm:$0xff] %v20937_v23  ;;  %v20952_v31 = vadd.f32 %v16495_v59, %v16494_v14  ;;  %17142 = vmatpush3.bf16.msra.mxu0 %v17702_v19  ;;  %v17712_v23 = vld [vmem:[%s22586_s7 + $0x30] sm:$0xff]  }
 0x36a   : > { %22905 = vst [vmem:[#allocation62_spill] sm:$0xff] %v20949_v29  ;;  %v20958_v5 = vadd.f32 %v6131_v1, %v22908_v18  ;;  %v16325_v37 = vpop.f32.mrb[212].mxu1  ;;  %v22912_v1 = vld [vmem:[#allocation15_spill] sm:$0xff]  ;;  %16734 = vmatpush3.bf16.msra.mxu1 %v17704_v12  ;;  %17143 = vmatprep.subr.bf16.mxu0 %v17707_v60 }
 0x36b   : > { %22907 = vst [vmem:[#allocation13_spill] sm:$0xff] %v20952_v31  ;;  %v16326_v43 = vpop.f32.mrb[213].mxu1 }
 0x36c   : > { %22909 = vst [vmem:[#allocation11_spill] sm:$0xff] %v20958_v5  ;;  %v16327_v47 = vadd.f32 %v16326_v43, %v16325_v37  ;;  %v16328_v61 = vpop.f32.mrb[214].mxu1 }
 0x36d   : > { %v16497_v20 = vpop.f32.mrb[220].mxu0  ;;  %v16329_v49 = vpop.f32.mrb[215].mxu1  ;;  %17144 = vmatpush3.bf16.msra.mxu0 %v17707_v60  ;;  %v17713_v60 = vld [vmem:[%s22586_s7 + $0xb0] sm:$0xff]  }
 0x36e   : > { %v16498_v33 = vpop.f32.mrb[221].mxu0  ;;  %v6136_v14 = vadd.f32 %v16327_v47, %v22910_v10  ;;  %v16330_v55 = vadd.f32 %v16329_v49, %v16328_v61  ;;  %v17705_v47 = vld [vmem:[%s22586_s7 + $0x60] sm:$0xff]   ;;  %v22916_v61 = vld [vmem:[#allocation59_spill] sm:$0xff] }
 0x36f   : > { %v20964_v4 = vadd.f32 %v16498_v33, %v16497_v20  ;;  %v16500_v59 = vpop.f32.mrb[222].mxu0  ;;  %v17706_v49 = vld [vmem:[%s22586_s7 + $0x20] sm:$0xff]   ;;  %16735 = vmatprep.subr.bf16.mxu1 %v17705_v47  ;;  %v17708_v47 = vld [vmem:[%s22586_s7 + $0x68] sm:$0xff]  }
 0x370   : > { %v16501_v44 = vpop.f32.mrb[223].mxu0  ;;  %v20973_v18 = vadd.f32 %v6136_v14, %v22912_v1  ;;  %v6139_v37 = vadd.f32 %v16330_v55, %v22914_v25  ;;  %v22918_v1 = vld [vmem:[#allocation63_spill] sm:$0xff]  ;;  %16736 = vmatpush3.bf16.msra.mxu1 %v17706_v49 }
 0x371   : > { %22911 = vst [vmem:[#allocation14_spill] sm:$0xff] %v20964_v4  ;;  %v20976_v43 = vadd.f32 %v16501_v44, %v16500_v59  ;;  %16737 = vmatprep.subr.bf16.mxu1 %v17708_v47  ;;  %v22924_v47 = vld [vmem:[#allocation65_spill] sm:$0xff] }
 0x372   : > { %22913 = vst [vmem:[#allocation12_spill] sm:$0xff] %v20973_v18  ;;  %v20982_v20 = vadd.f32 %v6139_v37, %v22916_v61  ;;  %v16331_v19 = vpop.f32.mrb[216].mxu1 }
 0x373   : > { %22915 = vst [vmem:[#allocation48_spill] sm:$0xff] %v20976_v43  ;;  %v16332_v33 = vpop.f32.mrb[217].mxu1  ;;  %v17710_v43 = vld [vmem:[%s22586_s7 + $0xa8] sm:$0xff]  }
 0x374   : > { %22917 = vst [vmem:[#allocation41_spill] sm:$0xff] %v20982_v20  ;;  %v16333_v10 = vadd.f32 %v16332_v33, %v16331_v19  ;;  %v16334_v14 = vpop.f32.mrb[218].mxu1  ;;  %v17709_v19 = vld [vmem:[%s22586_s7 + $0x28] sm:$0xff]   ;;  %17145 = vmatprep.subr.bf16.mxu0 %v17710_v43 }
 0x375   : > { %v16631_v55 = vpop.f32.mrb[224].mxu0  ;;  %v16335_v59 = vpop.f32.mrb[219].mxu1  ;;  %16738 = vmatpush3.bf16.msra.mxu1 %v17709_v19  ;;  %17146 = vmatpush3.bf16.msra.mxu0 %v17710_v43  ;;  %v22925_v43 = vld [vmem:[#allocation27_spill] sm:$0xff] }
 0x376   : > { %v16632_v44 = vpop.f32.mrb[225].mxu0  ;;  %v6144_v25 = vadd.f32 %v16333_v10, %v22918_v1  ;;  %v16336_v37 = vadd.f32 %v16335_v59, %v16334_v14  ;;  %v17711_v10 = vld [vmem:[%s22586_s7 + $0x70] sm:$0xff]   ;;  %v22922_v1 = vld [vmem:[#allocation23_spill] sm:$0xff]  ;;  %17147 = vmatprep.subr.bf16.mxu0 %v17713_v60 }
 0x377   : > { %v20991_v61 = vadd.f32 %v16632_v44, %v16631_v55  ;;  %v16634_v12 = vpop.f32.mrb[226].mxu0  ;;  %v22919_v14 = vld [vmem:[#allocation20_spill] sm:$0xff]  ;;  %16739 = vmatprep.subr.bf16.mxu1 %v17711_v10 }
 0x378   : > { %v16635_v33 = vpop.f32.mrb[227].mxu0  ;;  %v21006_v49 = vadd.f32 %v6144_v25, %v22919_v14  ;;  %v22921_v55 = vld [vmem:[#allocation64_spill] sm:$0xff] }
 0x379   : > { %v6147_v59 = vadd.f32 %v16336_v37, %v22921_v55  ;;  %v21009_v44 = vadd.f32 %v16635_v33, %v16634_v12  ;;  %16740 = vmatpush3.bf16.msra.mxu1 %v17712_v23  ;;  %17148 = vmatpush3.bf16.msra.mxu0 %v17713_v60  ;;  %v9379_v23 = vld [vmem:[#allocation3 + $0x4] sm:$0xf] }
 0x37a   : > { %22920 = vst [vmem:[#allocation73_spill] sm:$0xff] %v21006_v49  ;;  %v16337_v31 = vpop.f32.mrb[220].mxu1  ;;  %v9436_v32 = vshll.u32 %v9379_v23, 16  ;;  %v9440_v56 = vshrl.u32 %v9379_v23, 16  ;;  %17149 = vmatprep.subr.bf16.mxu0 %v17716_v17 }
 0x37b   : > { %v21012_v4 = vadd.f32 %v6147_v59, %v22922_v1  ;;  %v16338_v8 = vpop.f32.mrb[221].mxu1 }
 0x37c   : > { %v16339_v25 = vadd.f32 %v16338_v8, %v16337_v31  ;;  %v16340_v14 = vpop.f32.mrb[222].mxu1  ;;  %v17714_v8 = vld [vmem:[%s22586_s7 + $0x78] sm:$0xff]  }
 0x37d   : > { %22923 = vst [vmem:[#allocation42_spill] sm:$0xff] %v21012_v4  ;;  %v16637_v16 = vpop.f32.mrb[228].mxu0  ;;  %v16341_v37 = vpop.f32.mrb[223].mxu1  ;;  %v17715_v31 = vld [vmem:[%s22586_s7 + $0x38] sm:$0xff]   ;;  %16741 = vmatprep.subr.bf16.mxu1 %v17714_v8  ;;  %v22928_v4 = vld [vmem:[#allocation30_spill] sm:$0xff]  ;;  %17150 = vmatpush3.bf16.msra.mxu0 %v17716_v17 }
 0x37e   : > { %v16638_v12 = vpop.f32.mrb[229].mxu0  ;;  %v6152_v33 = vadd.f32 %v16339_v25, %v22924_v47  ;;  %v16342_v55 = vadd.f32 %v16341_v37, %v16340_v14  ;;  %v9380_v37 = vld [vmem:[#allocation3 + $0x8] sm:$0x1]  ;;  %16742 = vmatpush3.bf16.msra.mxu1 %v17715_v31 }
 0x37f   : > { %v21021_v19 = vadd.f32 %v16638_v12, %v16637_v16  ;;  %v16640_v59 = vpop.f32.mrb[230].mxu0  ;;  %v9378_v16 = vld [vmem:[#allocation3] sm:$0xf]  ;;  %v22930_v17 = vld [vmem:[#allocation33_spill] sm:$0xff] }
 0x380   : > { %v16641_v1 = vpop.f32.mrb[231].mxu0  ;;  %v21030_v10 = vadd.f32 %v6152_v33, %v22925_v43  ;;  %v6155_v25 = vadd.f32 %v16342_v55, %v22927_v30  ;;  %v9427_v12 = vshrl.u32 %v9378_v16, 16  ;;  %v9430_v47 = vshll.u32 %v9378_v16, 16 }
 0x381   : > { %v21033_v14 = vadd.f32 %v16641_v1, %v16640_v59  ;;  %v9446_v30 = vshll.u32 %v9380_v37, 16  ;;  %v9438_v1 = vrot.slane %v9436_v32, 5  ;;  %v9892_v32 = vld [vmem:[#allocation3 + $0x8] sm:$0x1] }
 0x382   : > { %22926 = vst [vmem:[#allocation50_spill] sm:$0xff] %v21030_v10  ;;  %v21039_v33 = vadd.f32 %v6155_v25, %v22928_v4  ;;  %v16343_v43 = vpop.f32.mrb[224].mxu1  ;;  %v9429_v60 = vrot.slane %v9427_v12, 4  ;;  %v9432_v59 = vrot.slane %v9430_v47, 5  ;;  %v9442_v10 = vrot.slane %v9440_v56, 4 }
 0x383   : > { %v16344_v55 = vpop.f32.mrb[225].mxu1  ;;  %v9448_v23 = vrot.slane %v9446_v30, 5  ;;  %v9890_v4 = vld [vmem:[#allocation3] sm:$0xe]  ;;  %v9891_v25 = vld [vmem:[#allocation3 + $0x4] sm:$0xf] }
 0x384   : > { %22929 = vst [vmem:[#allocation52_spill] sm:$0xff] %v21039_v33  ;;  %v16345_v8 = vadd.f32 %v16344_v55, %v16343_v43  ;;  %v16346_v16 = vpop.f32.mrb[226].mxu1  ;;  %v9433_v5 = vor.u32 %v9432_v59, %v9429_v60  ;;  %v9443_v29 = vor.u32 %v9442_v10, %v9438_v1  ;;  %v15161_v56 = vrot.slane %v9890_v4, 9 }
 0x385   : > { %v16643_v49 = vpop.f32.mrb[232].mxu0  ;;  %v16347_v20 = vpop.f32.mrb[227].mxu1  ;;  %v9988_v28 = vrot.slane %v9891_v25, 5  ;;  %v9991_v30 = vrot.slane %v9892_v32, 5 }
 0x386   : > { %v16644_v18 = vpop.f32.mrb[233].mxu0  ;;  %v6160_v31 = vadd.f32 %v16345_v8, %v20619_v40  ;;  %v16348_v37 = vadd.f32 %v16347_v20, %v16346_v16  ;;  %v9434_v43 = vrot.slane %v9433_v5, 4  ;;  %v9444_v55 = vrot.slane %v9443_v29, 4  ;;  %v17717_v20 = vld [vmem:[#allocation3] sm:$0xff]  }
 0x387   : > { %v21042_v33 = vadd.f32 %v16644_v18, %v16643_v49  ;;  %v16646_v12 = vpop.f32.mrb[234].mxu0  ;;  %v9989_v5 = vsel %vm18346_vm11, %v15161_v56, %v9988_v28  ;;  %v9990_v29 = vrot.slane %v9988_v28, 4  ;;  %v22931_v49 = vld [vmem:[#allocation36_spill] sm:$0xff] }
 0x388   : > { %v16647_v47 = vpop.f32.mrb[235].mxu0  ;;  %v21045_v26 = vadd.f32 %v6160_v31, %v22930_v17  ;;  %v6163_v10 = vadd.f32 %v16348_v37, %v20624_v34  ;;  %v9439_v40 = vsel %vm18841_vm2, %v9434_v43, %v9438_v1  ;;  %v9449_v18 = vsel %vm18841_vm2, %v9444_v55, %v9448_v23 }
 0x389   : > { %v21048_v60 = vadd.f32 %v16647_v47, %v16646_v12  ;;  %v15145_v16 = vcombine.low %v9439_v40, %v9449_v18  ;;  %v9992_v34 = vsel %vm18346_vm11, %v9990_v29, %v9991_v30 }
 0x38a   : > { %v21057_v59 = vadd.f32 %v6163_v10, %v22931_v49  ;;  %v16349_v8 = vpop.f32.mrb[228].mxu1  ;;  %v15177_v37 = vcombine.low %v9989_v5, %v9992_v34 }
 0x38b   : > { %v16350_v4 = vpop.f32.mrb[229].mxu1  ;;  %10450 = vmatprep.mubr.bf16.mxu1 %v15145_v16 }
 0x38c   : > { %v16351_v25 = vadd.f32 %v16350_v4, %v16349_v8  ;;  %v16352_v31 = vpop.f32.mrb[230].mxu1  ;;  %10451 = vmatmul.mubr.bf16.vlgmr.msra.gmra.mrb[64].mxu1 %v17717_v20  ;;  %17151 = vmatprep.mubr.bf16.mxu0 %v15177_v37 }
 0x38d   : > { %v16649_v1 = vpop.f32.mrb[236].mxu0  ;;  %v16353_v23 = vpop.f32.mrb[231].mxu1 }
 0x38e   : > { %v16650_v12 = vpop.f32.mrb[237].mxu0  ;;  %v6168_v32 = vadd.f32 %v16351_v25, %v20662_v57  ;;  %v16354_v28 = vadd.f32 %v16353_v23, %v16352_v31 }
 0x38f   : > { %v21062_v56 = vadd.f32 %v16650_v12, %v16649_v1  ;;  %v16652_v47 = vpop.f32.mrb[238].mxu0 }
 0x390   : > { %v16653_v43 = vpop.f32.mrb[239].mxu0  ;;  %v21065_v55 = vadd.f32 %v6168_v32, %v20628_v24  ;;  %v6171_v30 = vadd.f32 %v16354_v28, %v20673_v35 }
 0x391   : > { %v21068_v17 = vadd.f32 %v16653_v43, %v16652_v47 }
 0x392   : > { %v21071_v10 = vadd.f32 %v6171_v30, %v20641_v52  ;;  %v16355_v40 = vpop.f32.mrb[232].mxu1 }
 0x393   : > { %v16356_v18 = vpop.f32.mrb[233].mxu1 }
 0x394   : > { %v16357_v20 = vadd.f32 %v16356_v18, %v16355_v40  ;;  %v16358_v57 = vpop.f32.mrb[234].mxu1 }
 0x395   : > { %v16655_v5 = vpop.f32.mrb[240].mxu0  ;;  %v16359_v29 = vpop.f32.mrb[235].mxu1 }
 0x396   : > { %v16656_v49 = vpop.f32.mrb[241].mxu0  ;;  %v6176_v8 = vadd.f32 %v16357_v20, %v20697_v13  ;;  %v16360_v16 = vadd.f32 %v16359_v29, %v16358_v57 }
 0x397   : > { %v21074_v4 = vadd.f32 %v16656_v49, %v16655_v5  ;;  %v16658_v24 = vpop.f32.mrb[242].mxu0 }
 0x398   : > { %v16659_v34 = vpop.f32.mrb[243].mxu0  ;;  %v21077_v35 = vadd.f32 %v6176_v8, %v20677_v46  ;;  %v6179_v52 = vadd.f32 %v16360_v16, %v20702_v41 }
 0x399   : > { %v21080_v25 = vadd.f32 %v16659_v34, %v16658_v24 }
 0x39a   : > { %v21083_v31 = vadd.f32 %v6179_v52, %v20686_v45  ;;  %v16361_v1 = vpop.f32.mrb[236].mxu1 }
 0x39b   : > { %v16362_v37 = vpop.f32.mrb[237].mxu1 }
 0x39c   : > { %v16363_v23 = vadd.f32 %v16362_v37, %v16361_v1  ;;  %v16364_v12 = vpop.f32.mrb[238].mxu1 }
 0x39d   : > { %v16661_v13 = vpop.f32.mrb[244].mxu0  ;;  %v16365_v32 = vpop.f32.mrb[239].mxu1 }
 0x39e   : > { %v16662_v28 = vpop.f32.mrb[245].mxu0  ;;  %v6184_v47 = vadd.f32 %v16363_v23, %v20728_v58  ;;  %v16366_v43 = vadd.f32 %v16365_v32, %v16364_v12  ;;  %v22933_v23 = vld [vmem:[#allocation43_spill] sm:$0xff] }
 0x39f   : > { %v21086_v30 = vadd.f32 %v16662_v28, %v16661_v13  ;;  %v16664_v46 = vpop.f32.mrb[246].mxu0 }
 0x3a0   : > { %v16665_v40 = vpop.f32.mrb[247].mxu0  ;;  %v21089_v41 = vadd.f32 %v6184_v47, %v20706_v38  ;;  %v6187_v45 = vadd.f32 %v16366_v43, %v20733_v51 }
 0x3a1   : > { %v21092_v18 = vadd.f32 %v16665_v40, %v16664_v46 }
 0x3a2   : > { %v21095_v20 = vadd.f32 %v6187_v45, %v20719_v0  ;;  %v16367_v57 = vpop.f32.mrb[240].mxu1 }
 0x3a3   : > { %v16368_v5 = vpop.f32.mrb[241].mxu1 }
 0x3a4   : > { %v16369_v29 = vadd.f32 %v16368_v5, %v16367_v57  ;;  %v16370_v49 = vpop.f32.mrb[242].mxu1 }
 0x3a5   : > { %v16667_v58 = vpop.f32.mrb[248].mxu0  ;;  %v16371_v8 = vpop.f32.mrb[243].mxu1 }
 0x3a6   : > { %v16668_v16 = vpop.f32.mrb[249].mxu0  ;;  %v6192_v24 = vadd.f32 %v16369_v29, %v20760_v9  ;;  %v16372_v34 = vadd.f32 %v16371_v8, %v16370_v49  ;;  %v22937_v8 = vld [vmem:[#allocation45_spill] sm:$0xff] }
 0x3a7   : > { %v21098_v52 = vadd.f32 %v16668_v16, %v16667_v58  ;;  %v16670_v38 = vpop.f32.mrb[250].mxu0 }
 0x3a8   : > { %v16671_v1 = vpop.f32.mrb[251].mxu0  ;;  %v21101_v51 = vadd.f32 %v6192_v24, %v20737_v21  ;;  %v6195_v0 = vadd.f32 %v16372_v34, %v20772_v62  ;;  %v22935_v62 = vld [vmem:[#allocation17_spill] sm:$0xff] }
 0x3a9   : > { %v21104_v37 = vadd.f32 %v16671_v1, %v16670_v38 }
 0x3aa   : > { %22932 = vst [vmem:[#allocation10_spill] sm:$0xff] %v21101_v51  ;;  %v21107_v12 = vadd.f32 %v6195_v0, %v22933_v23  ;;  %v16373_v13 = vpop.f32.mrb[244].mxu1 }
 0x3ab   : > { %v16374_v32 = vpop.f32.mrb[245].mxu1 }
 0x3ac   : > { %22934 = vst [vmem:[#allocation74_spill] sm:$0xff] %v21107_v12  ;;  %v16375_v28 = vadd.f32 %v16374_v32, %v16373_v13  ;;  %v16376_v47 = vpop.f32.mrb[246].mxu1 }
 0x3ad   : > { %v16673_v9 = vpop.f32.mrb[252].mxu0  ;;  %v16377_v43 = vpop.f32.mrb[247].mxu1 }
 0x3ae   : > { %v16674_v46 = vpop.f32.mrb[253].mxu0  ;;  %v6200_v40 = vadd.f32 %v16375_v28, %v20794_v2  ;;  %v16378_v45 = vadd.f32 %v16377_v43, %v16376_v47 }
 0x3af   : > { %v21110_v57 = vadd.f32 %v16674_v46, %v16673_v9  ;;  %v16676_v21 = vpop.f32.mrb[254].mxu0 }
 0x3b0   : > { %v16677_v5 = vpop.f32.mrb[255].mxu0  ;;  %v21113_v29 = vadd.f32 %v6200_v40, %v22935_v62  ;;  %v6203_v49 = vadd.f32 %v16378_v45, %v20799_v54 }
 0x3b1   : > { %v21116_v58 = vadd.f32 %v16677_v5, %v16676_v21 }
 0x3b2   : > { %22936 = vst [vmem:[#allocation75_spill] sm:$0xff] %v21113_v29  ;;  %v21119_v16 = vadd.f32 %v6203_v49, %v22937_v8  ;;  %v16379_v24 = vpop.f32.mrb[248].mxu1 }
 0x3b3   : > { %v16380_v34 = vpop.f32.mrb[249].mxu1 }
 0x3b4   : > { %22938 = vst [vmem:[#allocation55_spill] sm:$0xff] %v21119_v16  ;;  %v16381_v38 = vadd.f32 %v16380_v34, %v16379_v24  ;;  %v16382_v1 = vpop.f32.mrb[250].mxu1 }
 0x3b5   : > { %v16679_v2 = vpop.f32.mrb[0].mxu0  ;;  %v16383_v0 = vpop.f32.mrb[251].mxu1 }
 0x3b6   : > { %v16680_v23 = vpop.f32.mrb[1].mxu0  ;;  %v6208_v13 = vadd.f32 %v16381_v38, %v20825_v53  ;;  %v16384_v32 = vadd.f32 %v16383_v0, %v16382_v1 }
 0x3b7   : > { %v21122_v28 = vadd.f32 %v16680_v23, %v16679_v2  ;;  %v16682_v47 = vpop.f32.mrb[2].mxu0  ;;  %v22942_v2 = vld [vmem:[#allocation51_spill] sm:$0xff]  ;;  %v22943_v23 = vld [vmem:[#allocation24_spill] sm:$0xff] }
 0x3b8   : > { %v16683_v9 = vpop.f32.mrb[3].mxu0  ;;  %v21125_v54 = vadd.f32 %v6208_v13, %v20803_v63  ;;  %v6211_v43 = vadd.f32 %v16384_v32, %v20833_v11 }
 0x3b9   : > { %v21128_v46 = vadd.f32 %v16683_v9, %v16682_v47 }
 0x3ba   : > { %22939 = vst [vmem:[#allocation78_spill] sm:$0xff] %v21125_v54  ;;  %v21131_v40 = vadd.f32 %v6211_v43, %v20816_v39  ;;  %v16385_v45 = vpop.f32.mrb[252].mxu1 }
 0x3bb   : > { %v16386_v21 = vpop.f32.mrb[253].mxu1 }
 0x3bc   : > { %22940 = vst [vmem:[#allocation76_spill] sm:$0xff] %v21131_v40  ;;  %v16387_v5 = vadd.f32 %v16386_v21, %v16385_v45  ;;  %v16388_v62 = vpop.f32.mrb[254].mxu1 }
 0x3bd   : > { %v16685_v53 = vpop.f32.mrb[4].mxu0  ;;  %v16389_v49 = vpop.f32.mrb[255].mxu1 }
 0x3be   : > { %v16686_v8 = vpop.f32.mrb[5].mxu0  ;;  %v6216_v24 = vadd.f32 %v16387_v5, %v20852_v27  ;;  %v16390_v34 = vadd.f32 %v16389_v49, %v16388_v62  ;;  %v22945_v5 = vld [vmem:[#allocation19_spill] sm:$0xff] }
 0x3bf   : > { %v21134_v38 = vadd.f32 %v16686_v8, %v16685_v53  ;;  %v16688_v63 = vpop.f32.mrb[6].mxu0 }
 0x3c0   : > { %v16689_v1 = vpop.f32.mrb[7].mxu0  ;;  %v21137_v11 = vadd.f32 %v6216_v24, %v20837_v15  ;;  %v6219_v39 = vadd.f32 %v16390_v34, %v22942_v2  ;;  %v22946_v34 = vld [vmem:[#allocation26_spill] sm:$0xff] }
 0x3c1   : > { %v21140_v0 = vadd.f32 %v16689_v1, %v16688_v63  ;;  %v21155_v2 = vld [vmem:[%s22584_s5] ss:$0 sm:$0xff] }
 0x3c2   : > { %22941 = vst [vmem:[#allocation22_spill] sm:$0xff] %v21137_v11  ;;  %v21143_v13 = vadd.f32 %v6219_v39, %v22943_v23  ;;  %v16519_v32 = vpop.f32.mrb[0].mxu1 }
 0x3c3   : > { %v16520_v47 = vpop.f32.mrb[1].mxu1 }
 0x3c4   : > { %22944 = vst [vmem:[#allocation77_spill] sm:$0xff] %v21143_v13  ;;  %v16521_v9 = vadd.f32 %v16520_v47, %v16519_v32  ;;  %v16522_v43 = vpop.f32.mrb[2].mxu1  ;;  %v21162_v47 = vld [vmem:[%s22585_s6] ss:$0 sm:$0xff] }
 0x3c5   : > { %v16691_v27 = vpop.f32.mrb[8].mxu0  ;;  %v16523_v45 = vpop.f32.mrb[3].mxu1 }
 0x3c6   : > { %v16692_v21 = vpop.f32.mrb[9].mxu0  ;;  %v8180_v62 = vadd.f32 %v16521_v9, %v22945_v5  ;;  %v16524_v53 = vadd.f32 %v16523_v45, %v16522_v43 }
 0x3c7   : > { %v21146_v49 = vadd.f32 %v16692_v21, %v16691_v27  ;;  %v16694_v15 = vpop.f32.mrb[10].mxu0 }
 0x3c8   : > { %v16695_v8 = vpop.f32.mrb[11].mxu0  ;;  %v8341_v24 = vadd.f32 %v20991_v61, %v8180_v62  ;;  %v8183_v63 = vadd.f32 %v16524_v53, %v22946_v34  ;;  %v22947_v53 = vld [vmem:[#allocation28_spill] sm:$0xff] }
 0x3c9   : > { %v21150_v1 = vadd.f32 %v16695_v8, %v16694_v15 }
 0x3ca   : > { %v8499_v39 = vadd.f32 %v8341_v24, %v20869_v6  ;;  %v8344_v23 = vadd.f32 %v21009_v44, %v8183_v63  ;;  %v16525_v32 = vpop.f32.mrb[4].mxu1 }
 0x3cb   : > { %v16526_v61 = vpop.f32.mrb[5].mxu1 }
 0x3cc   : > { %v8602_v9 = vmul.f32 %v21155_v2, %v8499_v39  ;;  %v8500_v43 = vadd.f32 %v8344_v23, %v20877_v36  ;;  %v16527_v27 = vadd.f32 %v16526_v61, %v16525_v32  ;;  %v16528_v45 = vpop.f32.mrb[6].mxu1  ;;  %v22948_v23 = vld [vmem:[#allocation32_spill] sm:$0xff] }
 0x3cd   : > { %v16697_v21 = vpop.f32.mrb[12].mxu0  ;;  %v16529_v5 = vpop.f32.mrb[7].mxu1 }
 0x3ce   : > { %v16698_v62 = vpop.f32.mrb[13].mxu0  ;;  %v8641_v6 = vadd.f32 %v21162_v47, %v8602_v9  ;;  %v8603_v44 = vmul.f32 %v21155_v2, %v8500_v43  ;;  %v8188_v15 = vadd.f32 %v16527_v27, %v22947_v53  ;;  %v16530_v8 = vadd.f32 %v16529_v5, %v16528_v45 }
 0x3cf   : > { %v16700_v24 = vpop.f32.mrb[14].mxu0  ;;  %v21169_v34 = vadd.f32 %v16698_v62, %v16697_v21 }
 0x3d0   : > { %v16701_v63 = vpop.f32.mrb[15].mxu0  ;;  %v8673_v13 = vmax.f32 %v8641_v6, 0.0  ;;  %v8642_v39 = vadd.f32 %v21162_v47, %v8603_v44  ;;  %v8349_v36 = vadd.f32 %v21021_v19, %v8188_v15  ;;  %v8191_v32 = vadd.f32 %v16530_v8, %v22948_v23 }
 0x3d1   : > { %v21174_v61 = vadd.f32 %v16701_v63, %v16700_v24 }
 0x3d2   : > { %v15544_v11 = vpack.c.bf16 %v8673_v13, %v8673_v13  ;;  %v8674_v9 = vmax.f32 %v8642_v39, 0.0  ;;  %v8501_v43 = vadd.f32 %v8349_v36, %v20887_v3  ;;  %v8352_v27 = vadd.f32 %v21033_v14, %v8191_v32  ;;  %v16531_v45 = vpop.f32.mrb[8].mxu1  ;;  %v9122_v36 = vld [vmem:[#allocation3 + $0xc] sm:$0xf]  ;;  %v22949_v32 = vld [vmem:[#allocation34_spill] sm:$0xff] }
 0x3d3   : > { %v16532_v5 = vpop.f32.mrb[9].mxu1 }
 0x3d4   : > { %v8802_v21 = vshrl.u32 %v15544_v11, 16  ;;  %v15545_v62 = vpack.c.bf16 %v8674_v9, %v8674_v9  ;;  %v8604_v6 = vmul.f32 %v21155_v2, %v8501_v43  ;;  %v16534_v53 = vpop.f32.mrb[10].mxu1  ;;  %v8805_v40 = vshll.u32 %v15544_v11, 16 }
 0x3d5   : > { %v16703_v44 = vpop.f32.mrb[16].mxu0  ;;  %v8502_v19 = vadd.f32 %v8352_v27, %v20893_v22  ;;  %v16533_v15 = vadd.f32 %v16532_v5, %v16531_v45  ;;  %v16535_v8 = vpop.f32.mrb[11].mxu1  ;;  %v9126_v5 = vld [vmem:[#allocation3 + $0x14] sm:$0x1] }
 0x3d6   : > { %v16704_v24 = vpop.f32.mrb[17].mxu0  ;;  %v8804_v13 = vrot.slane %v8802_v21, 7  ;;  %v8810_v63 = vshrl.u32 %v15545_v62, 16  ;;  %v8813_v39 = vshll.u32 %v15545_v62, 16  ;;  %v8643_v3 = vadd.f32 %v21162_v47, %v8604_v6  ;;  %v22950_v6 = vld [vmem:[#allocation67_spill] sm:$0xff] }
 0x3d7   : > { %v16706_v14 = vpop.f32.mrb[18].mxu0  ;;  %v8605_v23 = vmul.f32 %v21155_v2, %v8502_v19  ;;  %v8196_v9 = vadd.f32 %v16533_v15, %v22949_v32  ;;  %v16536_v43 = vadd.f32 %v16535_v8, %v16534_v53  ;;  %v21183_v54 = vadd.f32 %v16704_v24, %v16703_v44 }
 0x3d8   : > { %v16707_v11 = vpop.f32.mrb[19].mxu0  ;;  %v8807_v16 = vor.u32 %v8805_v40, %v8804_v13  ;;  %v8808_v22 = vrot.slane %v8804_v13, 4  ;;  %v8812_v27 = vrot.slane %v8810_v63, 7  ;;  %v8675_v45 = vmax.f32 %v8643_v3, 0.0 }
 0x3d9   : > { %v8644_v21 = vadd.f32 %v21162_v47, %v8605_v23  ;;  %v8357_v62 = vadd.f32 %v21042_v33, %v8196_v9  ;;  %v8199_v29 = vadd.f32 %v16536_v43, %v22950_v6  ;;  %v21188_v12 = vadd.f32 %v16707_v11, %v16706_v14 }
 0x3da   : > { %v9123_v15 = vsel %vm18381_vm14, %v8807_v16, %v9122_v36  ;;  %v8815_v53 = vor.u32 %v8813_v39, %v8812_v27  ;;  %v8817_v44 = vrot.slane %v8812_v27, 4  ;;  %v15546_v8 = vpack.c.bf16 %v8675_v45, %v8675_v45  ;;  %v16537_v24 = vpop.f32.mrb[12].mxu1 }
 0x3db   : > { %22951 = vst [vmem:[#allocation16_spill] sm:$0xff] %v21188_v12  ;;  %9124 = vst [vmem:[#allocation3 + $0xc] sm:$0xf] %v9123_v15  ;;  %v8676_v40 = vmax.f32 %v8644_v21, 0.0  ;;  %v8503_v13 = vadd.f32 %v8357_v62, %v20903_v50  ;;  %v8360_v63 = vadd.f32 %v21048_v60, %v8199_v29  ;;  %v16538_v3 = vpop.f32.mrb[13].mxu1 }
 0x3dc   : > { %v8816_v33 = vsel %vm18093_vm3, %v8808_v22, %v8815_v53  ;;  %v9127_v14 = vsel %vm18391_vm15, %v8817_v44, %v9126_v5  ;;  %v8819_v9 = vshrl.u32 %v15546_v8, 16  ;;  %v16540_v43 = vpop.f32.mrb[14].mxu1  ;;  %v16539_v50 = vadd.f32 %v16538_v3, %v16537_v24  ;;  %v9129_v5 = vld [vmem:[#allocation3 + $0x18] sm:$0xf]  ;;  %v22957_v24 = vld [vmem:[#allocation68_spill] sm:$0xff] }
 0x3dd   : > { %v16709_v16 = vpop.f32.mrb[20].mxu0  ;;  %9125 = vst [vmem:[#allocation3 + $0x10] sm:$0xf] %v8816_v33  ;;  %9128 = vst [vmem:[#allocation3 + $0x14] sm:$0x1] %v9127_v14  ;;  %v15547_v39 = vpack.c.bf16 %v8676_v40, %v8676_v40  ;;  %v8606_v36 = vmul.f32 %v21155_v2, %v8503_v13  ;;  %v8504_v11 = vadd.f32 %v8360_v63, %v20913_v48  ;;  %v16541_v27 = vpop.f32.mrb[15].mxu1 }
 0x3de   : > { %v16710_v60 = vpop.f32.mrb[21].mxu0  ;;  %v8821_v29 = vrot.slane %v8819_v9, 7  ;;  %v8822_v45 = vshll.u32 %v15546_v8, 16  ;;  %v16542_v21 = vadd.f32 %v16541_v27, %v16540_v43  ;;  %v22956_v33 = vld [vmem:[#allocation39_spill] sm:$0xff] }
 0x3df   : > { %v21200_v22 = vadd.f32 %v16710_v60, %v16709_v16  ;;  %v16712_v62 = vpop.f32.mrb[22].mxu0  ;;  %v8827_v6 = vshrl.u32 %v15547_v39, 16  ;;  %v8645_v15 = vadd.f32 %v21162_v47, %v8606_v36  ;;  %v8607_v53 = vmul.f32 %v21155_v2, %v8504_v11  ;;  %v9133_v36 = vld [vmem:[#allocation3 + $0x20] sm:$0x1] }
 0x3e0   : > { %v16713_v44 = vpop.f32.mrb[23].mxu0  ;;  %v8824_v40 = vor.u32 %v8822_v45, %v8821_v29  ;;  %v8830_v13 = vshll.u32 %v15547_v39, 16  ;;  %v8204_v48 = vadd.f32 %v16539_v50, %v22956_v33  ;;  %v8207_v63 = vadd.f32 %v16542_v21, %v22957_v24 }
 0x3e1   : > { %22955 = vst [vmem:[#allocation15_spill] sm:$0xff] %v21200_v22  ;;  %v8829_v3 = vrot.slane %v8827_v6, 7  ;;  %v8677_v14 = vmax.f32 %v8645_v15, 0.0  ;;  %v8646_v8 = vadd.f32 %v21162_v47, %v8607_v53  ;;  %v21207_v9 = vadd.f32 %v16713_v44, %v16712_v62  ;;  %v21216_v62 = vld [vmem:[%s22586_s7 + $0x140] sm:$0xff]   ;;  %v22963_v22 = vld [vmem:[#allocation71_spill] sm:$0xff] }
 0x3e2   : > { %v8825_v43 = vrot.slane %v8821_v29, 4  ;;  %v9130_v16 = vsel %vm18381_vm14, %v8824_v40, %v9129_v5  ;;  %v8365_v11 = vadd.f32 %v21062_v56, %v8204_v48  ;;  %v8368_v27 = vadd.f32 %v21068_v17, %v8207_v63  ;;  %v16543_v39 = vpop.f32.mrb[16].mxu1  ;;  %v22959_v29 = vld [vmem:[#allocation57_spill] sm:$0xff]  ;;  %v22960_v5 = vld [vmem:[#allocation58_spill] sm:$0xff]  ;;  %17183 = vmatprep.subr.bf16.mxu0 %v21216_v62 }
 0x3e3   : > { %22958 = vst [vmem:[#allocation61_spill] sm:$0xff] %v21207_v9  ;;  %9131 = vst [vmem:[#allocation3 + $0x18] sm:$0xf] %v9130_v16  ;;  %v8832_v50 = vor.u32 %v8830_v13, %v8829_v3  ;;  %v8834_v60 = vrot.slane %v8829_v3, 4  ;;  %v15548_v45 = vpack.c.bf16 %v8677_v14, %v8677_v14  ;;  %v8678_v21 = vmax.f32 %v8646_v8, 0.0  ;;  %v16544_v6 = vpop.f32.mrb[17].mxu1 }
 0x3e4   : > { %v8505_v15 = vadd.f32 %v8365_v11, %v22959_v29  ;;  %v8506_v53 = vadd.f32 %v8368_v27, %v22960_v5  ;;  %v16545_v44 = vadd.f32 %v16544_v6, %v16543_v39  ;;  %v16546_v56 = vpop.f32.mrb[18].mxu1  ;;  %v9893_v17 = vld [vmem:[#allocation3 + $0xc] sm:$0xe]  ;;  %v9136_v14 = vld [vmem:[#allocation3 + $0x24] sm:$0xf] }
 0x3e5   : > { %v16715_v40 = vpop.f32.mrb[24].mxu0  ;;  %v8833_v13 = vsel %vm18093_vm3, %v8825_v43, %v8832_v50  ;;  %v9134_v33 = vsel %vm18391_vm15, %v8834_v60, %v9133_v36  ;;  %v8836_v48 = vshrl.u32 %v15548_v45, 16  ;;  %v8839_v24 = vshll.u32 %v15548_v45, 16  ;;  %v16547_v63 = vpop.f32.mrb[19].mxu1  ;;  %v22961_v27 = vld [vmem:[#allocation40_spill] sm:$0xff] }
 0x3e6   : > { %v16716_v3 = vpop.f32.mrb[25].mxu0  ;;  %9132 = vst [vmem:[#allocation3 + $0x1c] sm:$0xf] %v8833_v13  ;;  %9135 = vst [vmem:[#allocation3 + $0x20] sm:$0x1] %v9134_v33  ;;  %v15549_v8 = vpack.c.bf16 %v8678_v21, %v8678_v21  ;;  %v8608_v16 = vmul.f32 %v21155_v2, %v8505_v15  ;;  %v8609_v11 = vmul.f32 %v21155_v2, %v8506_v53  ;;  %v15162_v45 = vrot.slane %v9893_v17, 9 }
 0x3e7   : > { %v8212_v39 = vadd.f32 %v16545_v44, %v22961_v27  ;;  %v16718_v43 = vpop.f32.mrb[26].mxu0  ;;  %v8838_v50 = vrot.slane %v8836_v48, 7  ;;  %v16548_v6 = vadd.f32 %v16547_v63, %v16546_v56  ;;  %v21228_v36 = vadd.f32 %v16716_v3, %v16715_v40  ;;  %v9894_v21 = vld [vmem:[#allocation3 + $0x10] sm:$0xf]  ;;  %v9140_v3 = vld [vmem:[#allocation3 + $0x2c] sm:$0x1] }
 0x3e8   : > { %v16719_v60 = vpop.f32.mrb[27].mxu0  ;;  %v8844_v29 = vshrl.u32 %v15549_v8, 16  ;;  %v8847_v5 = vshll.u32 %v15549_v8, 16  ;;  %v8647_v13 = vadd.f32 %v21162_v47, %v8608_v16  ;;  %v8648_v33 = vadd.f32 %v21162_v47, %v8609_v11  ;;  %v22965_v8 = vld [vmem:[#allocation62_spill] sm:$0xff] }
 0x3e9   : > { %22962 = vst [vmem:[#allocation59_spill] sm:$0xff] %v21228_v36  ;;  %v8841_v9 = vor.u32 %v8839_v24, %v8838_v50  ;;  %v8842_v15 = vrot.slane %v8838_v50, 4  ;;  %v8373_v53 = vadd.f32 %v21074_v4, %v8212_v39  ;;  %v8215_v44 = vadd.f32 %v16548_v6, %v22963_v22 }
 0x3ea   : > { %v8846_v27 = vrot.slane %v8844_v29, 7  ;;  %v8679_v48 = vmax.f32 %v8647_v13, 0.0  ;;  %v8680_v56 = vmax.f32 %v8648_v33, 0.0  ;;  %v16549_v40 = vpop.f32.mrb[20].mxu1  ;;  %v21234_v63 = vadd.f32 %v16719_v60, %v16718_v43  ;;  %v22966_v43 = vld [vmem:[#allocation11_spill] sm:$0xff] }
 0x3eb   : > { %v9137_v17 = vsel %vm18381_vm14, %v8841_v9, %v9136_v14  ;;  %v8507_v16 = vadd.f32 %v8373_v53, %v22965_v8  ;;  %v8376_v11 = vadd.f32 %v21080_v25, %v8215_v44  ;;  %v16550_v24 = vpop.f32.mrb[21].mxu1  ;;  %v9995_v50 = vrot.slane %v9894_v21, 5 }
 0x3ec   : > { %22964 = vst [vmem:[#allocation63_spill] sm:$0xff] %v21234_v63  ;;  %9138 = vst [vmem:[#allocation3 + $0x24] sm:$0xf] %v9137_v17  ;;  %v8849_v4 = vor.u32 %v8847_v5, %v8846_v27  ;;  %v8851_v39 = vrot.slane %v8846_v27, 4  ;;  %v15550_v22 = vpack.c.bf16 %v8679_v48, %v8679_v48  ;;  %v15551_v6 = vpack.c.bf16 %v8680_v56, %v8680_v56  ;;  %v16552_v29 = vpop.f32.mrb[22].mxu1  ;;  %v22967_v17 = vld [vmem:[#allocation72_spill] sm:$0xff] }
 0x3ed   : > { %v8610_v13 = vmul.f32 %v21155_v2, %v8507_v16  ;;  %v8508_v60 = vadd.f32 %v8376_v11, %v22966_v43  ;;  %v16551_v33 = vadd.f32 %v16550_v24, %v16549_v40  ;;  %v9895_v63 = vld [vmem:[#allocation3 + $0x14] sm:$0x1]  ;;  %v9996_v9 = vsel %vm18346_vm11, %v15162_v45, %v9995_v50  ;;  %v16553_v14 = vpop.f32.mrb[23].mxu1  ;;  %v9143_v11 = vld [vmem:[#allocation3 + $0x30] sm:$0xf] }
 0x3ee   : > { %v8850_v25 = vsel %vm18093_vm3, %v8842_v15, %v8849_v4  ;;  %v9141_v5 = vsel %vm18391_vm15, %v8851_v39, %v9140_v3  ;;  %v8853_v21 = vshrl.u32 %v15550_v22, 16  ;;  %v8856_v53 = vshll.u32 %v15550_v22, 16  ;;  %v9147_v43 = vld [vmem:[#allocation3 + $0x38] sm:$0x1]  ;;  %v9385_v12 = vld [vmem:[#allocation3 + $0x1c] sm:$0xf] }
 0x3ef   : > { %9139 = vst [vmem:[#allocation3 + $0x28] sm:$0xf] %v8850_v25  ;;  %9142 = vst [vmem:[#allocation3 + $0x2c] sm:$0x1] %v9141_v5  ;;  %v8861_v44 = vshrl.u32 %v15551_v6, 16  ;;  %v8864_v27 = vshll.u32 %v15551_v6, 16  ;;  %v8649_v48 = vadd.f32 %v21162_v47, %v8610_v13  ;;  %v8611_v56 = vmul.f32 %v21155_v2, %v8508_v60 }
 0x3f0   : > { %v8855_v40 = vrot.slane %v8853_v21, 7  ;;  %v8220_v45 = vadd.f32 %v16551_v33, %v22967_v17  ;;  %v9997_v8 = vrot.slane %v9995_v50, 4  ;;  %v9998_v16 = vrot.slane %v9895_v63, 5  ;;  %v9381_v5 = vld [vmem:[#allocation3 + $0xc] sm:$0xf] }
 0x3f1   : > { %v8863_v15 = vrot.slane %v8861_v44, 7  ;;  %v8681_v24 = vmax.f32 %v8649_v48, 0.0  ;;  %v8650_v3 = vadd.f32 %v21162_v47, %v8611_v56  ;;  %v16554_v4 = vadd.f32 %v16553_v14, %v16552_v29  ;;  %v22968_v29 = vld [vmem:[#allocation12_spill] sm:$0xff]  ;;  %v22969_v48 = vld [vmem:[#allocation69_spill] sm:$0xff] }
 0x3f2   : > { %v8858_v39 = vor.u32 %v8856_v53, %v8855_v40  ;;  %v8859_v22 = vrot.slane %v8855_v40, 4  ;;  %v8381_v6 = vadd.f32 %v21086_v30, %v8220_v45  ;;  %v9999_v13 = vsel %vm18346_vm11, %v9997_v8, %v9998_v16  ;;  %v21255_v60 = vpop.f32.mrb[24].mxu1  ;;  %v9382_v30 = vld [vmem:[#allocation3 + $0x10] sm:$0xf] }
 0x3f3   : > { %v8866_v25 = vor.u32 %v8864_v27, %v8863_v15  ;;  %v8868_v33 = vrot.slane %v8863_v15, 4  ;;  %v15552_v50 = vpack.c.bf16 %v8681_v24, %v8681_v24  ;;  %v8682_v63 = vmax.f32 %v8650_v3, 0.0  ;;  %v16556_v21 = vpop.f32.mrb[25].mxu1  ;;  %v17727_v27 = vld [vmem:[%s22586_s7 + $0x148] sm:$0xff]  }
 0x3f4   : > { %v9144_v44 = vsel %vm18381_vm14, %v8858_v39, %v9143_v11  ;;  %v8509_v14 = vadd.f32 %v8381_v6, %v22968_v29  ;;  %v15178_v53 = vcombine.low %v9996_v9, %v9999_v13  ;;  %v8223_v56 = vadd.f32 %v16554_v4, %v22969_v48  ;;  %v21261_v40 = vpop.f32.mrb[26].mxu1  ;;  %v9150_v39 = vld [vmem:[#allocation3 + $0x3c] sm:$0xf] }
 0x3f5   : > { %9145 = vst [vmem:[#allocation3 + $0x30] sm:$0xf] %v9144_v44  ;;  %v8867_v17 = vsel %vm18093_vm3, %v8859_v22, %v8866_v25  ;;  %v9148_v45 = vsel %vm18391_vm15, %v8868_v33, %v9147_v43  ;;  %v8870_v8 = vshrl.u32 %v15552_v50, 16  ;;  %v8873_v16 = vshll.u32 %v15552_v50, 16  ;;  %v21270_v11 = vpop.f32.mrb[27].mxu1  ;;  %v22970_v50 = vld [vmem:[#allocation41_spill] sm:$0xff] }
 0x3f6   : > { %9146 = vst [vmem:[#allocation3 + $0x34] sm:$0xf] %v8867_v17  ;;  %9149 = vst [vmem:[#allocation3 + $0x38] sm:$0x1] %v9148_v45  ;;  %v15553_v9 = vpack.c.bf16 %v8682_v63, %v8682_v63  ;;  %v8612_v15 = vmul.f32 %v21155_v2, %v8509_v14  ;;  %17152 = vmatmul.mubr.bf16.vlgmr.msra.gmra.mrb[32].mxu0 %v15178_v53  ;;  %v8384_v24 = vadd.f32 %v21092_v18, %v8223_v56  ;;  %v9383_v63 = vld [vmem:[#allocation3 + $0x14] sm:$0x1] }
 0x3f7   : > { %v9451_v3 = vshrl.u32 %v9381_v5, 16  ;;  %v8872_v4 = vrot.slane %v8870_v8, 7  ;;  %v9454_v6 = vshll.u32 %v9381_v5, 16  ;;  %v9460_v22 = vshll.u32 %v9382_v30, 16  ;;  %17184 = vmatpush3.bf16.msra.mxu0 %v21216_v62  ;;  %v9154_v56 = vld [vmem:[#allocation3 + $0x44] sm:$0x1] }
 0x3f8   : > { %v9464_v13 = vshrl.u32 %v9382_v30, 16  ;;  %v8878_v43 = vshrl.u32 %v15553_v9, 16  ;;  %v8881_v25 = vshll.u32 %v15553_v9, 16  ;;  %v8651_v33 = vadd.f32 %v21162_v47, %v8612_v15  ;;  %17185 = vmatprep.subr.bf16.mxu0 %v17727_v27 }
 0x3f9   : > { %v8510_v44 = vadd.f32 %v8384_v24, %v22970_v50  ;;  %v8875_v29 = vor.u32 %v8873_v16, %v8872_v4  ;;  %v8876_v14 = vrot.slane %v8872_v4, 4  ;;  %v9453_v53 = vrot.slane %v9451_v3, 4  ;;  %v17729_v16 = vld [vmem:[%s22586_s7 + $0x150] sm:$0xff]  }
 0x3fa   : > { %v9456_v18 = vrot.slane %v9454_v6, 5  ;;  %v8880_v48 = vrot.slane %v8878_v43, 7  ;;  %v8683_v17 = vmax.f32 %v8651_v33, 0.0  ;;  %v9462_v30 = vrot.slane %v9460_v22, 5  ;;  %v21278_v45 = vpop.f32.mrb[28].mxu1 }
 0x3fb   : > { %v8613_v5 = vmul.f32 %v21155_v2, %v8510_v44  ;;  %v9151_v62 = vsel %vm18381_vm14, %v8875_v29, %v9150_v39  ;;  %v9466_v9 = vrot.slane %v9464_v13, 4  ;;  %v9470_v15 = vshll.u32 %v9383_v63, 16  ;;  %v21282_v24 = vpop.f32.mrb[29].mxu1  ;;  %17186 = vmatpush3.bf16.msra.mxu0 %v17727_v27  ;;  %v9896_v43 = vld [vmem:[#allocation3 + $0x18] sm:$0xe] }
 0x3fc   : > { %v9457_v8 = vor.u32 %v9456_v18, %v9453_v53  ;;  %9152 = vst [vmem:[#allocation3 + $0x3c] sm:$0xf] %v9151_v62  ;;  %v8883_v3 = vor.u32 %v8881_v25, %v8880_v48  ;;  %v8885_v4 = vrot.slane %v8880_v48, 4  ;;  %v15554_v6 = vpack.c.bf16 %v8683_v17, %v8683_v17  ;;  %v9897_v33 = vld [vmem:[#allocation3 + $0x1c] sm:$0xf]  ;;  %v21288_v50 = vpop.f32.mrb[30].mxu1  ;;  %17187 = vmatprep.subr.bf16.mxu0 %v17729_v16 }
 0x3fd   : > { %v8652_v22 = vadd.f32 %v21162_v47, %v8613_v5  ;;  %v9467_v13 = vor.u32 %v9466_v9, %v9462_v30  ;;  %v9472_v44 = vrot.slane %v9470_v15, 5  ;;  %v16557_v63 = vadd.f32 %v16556_v21, %v21255_v60  ;;  %v9898_v27 = vld [vmem:[#allocation3 + $0x20] sm:$0x1]  ;;  %v21291_v29 = vpop.f32.mrb[31].mxu1  ;;  %v9157_v17 = vld [vmem:[#allocation3 + $0x48] sm:$0xf] }
 0x3fe   : > { %v9458_v39 = vrot.slane %v9457_v8, 4  ;;  %v8884_v25 = vsel %vm18093_vm3, %v8876_v14, %v8883_v3  ;;  %v9155_v53 = vsel %vm18391_vm15, %v8885_v4, %v9154_v56  ;;  %v8887_v18 = vshrl.u32 %v15554_v6, 16  ;;  %v22971_v21 = vld [vmem:[#allocation70_spill] sm:$0xff]  ;;  %v9384_v9 = vld [vmem:[#allocation3 + $0x18] sm:$0xf] }
 0x3ff   : > { %v8890_v48 = vshll.u32 %v15554_v6, 16  ;;  %9153 = vst [vmem:[#allocation3 + $0x40] sm:$0xf] %v8884_v25  ;;  %9156 = vst [vmem:[#allocation3 + $0x44] sm:$0x1] %v9155_v53  ;;  %v8684_v5 = vmax.f32 %v8652_v22, 0.0  ;;  %v8228_v8 = vadd.f32 %v16557_v63, %v22971_v21  ;;  %17188 = vmatpush3.bf16.msra.mxu0 %v17729_v16  ;;  %v16560_v22 = vadd.f32 %v21270_v11, %v21261_v40 }
 0x400   : > { %v9463_v62 = vsel %vm18841_vm2, %v9458_v39, %v9462_v30  ;;  %v9468_v60 = vrot.slane %v9467_v13, 4  ;;  %v8889_v15 = vrot.slane %v8887_v18, 7  ;;  %v15163_v36 = vrot.slane %v9896_v43, 9  ;;  %v22972_v25 = vld [vmem:[#allocation73_spill] sm:$0xff]  ;;  %v22973_v40 = vld [vmem:[#allocation44_spill] sm:$0xff] }
 0x401   : > { %v10002_v14 = vrot.slane %v9897_v33, 5  ;;  %v10005_v3 = vrot.slane %v9898_v27, 5  ;;  %v15555_v56 = vpack.c.bf16 %v8684_v5, %v8684_v5  ;;  %v8389_v6 = vadd.f32 %v21098_v52, %v8228_v8  ;;  %v17718_v27 = vld [vmem:[#allocation3 + $0xc] sm:$0xff]  }
 0x402   : > { %v9473_v4 = vsel %vm18841_vm2, %v9468_v60, %v9472_v44  ;;  %v8892_v30 = vor.u32 %v8890_v48, %v8889_v15  ;;  %v8893_v39 = vrot.slane %v8889_v15, 4  ;;  %v21307_v63 = vpop.f32.mrb[32].mxu1  ;;  %v8231_v11 = vadd.f32 %v16560_v22, %v22973_v40  ;;  %v9386_v48 = vld [vmem:[#allocation3 + $0x20] sm:$0x1]  ;;  %v17731_v60 = vld [vmem:[%s22586_s7 + $0x158] sm:$0xff]  }
 0x403   : > { %v15146_v13 = vcombine.low %v9463_v62, %v9473_v4  ;;  %v10003_v16 = vsel %vm18346_vm11, %v15163_v36, %v10002_v14  ;;  %v8895_v43 = vshrl.u32 %v15555_v56, 16  ;;  %v8898_v33 = vshll.u32 %v15555_v56, 16  ;;  %v21310_v44 = vpop.f32.mrb[33].mxu1  ;;  %v21325_v56 = vpop.f32.mrb[28].mxu0  ;;  %17189 = vmatprep.subr.bf16.mxu0 %v17731_v60 }
 0x404   : > { %v8511_v53 = vadd.f32 %v8389_v6, %v22972_v25  ;;  %v10004_v18 = vrot.slane %v10002_v14, 4  ;;  %v9158_v52 = vsel %vm18381_vm14, %v8892_v30, %v9157_v17  ;;  %v9475_v5 = vshrl.u32 %v9384_v9, 16  ;;  %v21315_v36 = vpop.f32.mrb[34].mxu1  ;;  %22974 = vst [vmem:[#allocation20_spill] sm:$0xff] %v21325_v56  ;;  %17190 = vmatpush3.bf16.msra.mxu0 %v17731_v60 }
 0x405   : > { %10458 = vmatprep.mubr.bf16.mxu1 %v15146_v13  ;;  %v9478_v62 = vshll.u32 %v9384_v9, 16  ;;  %9159 = vst [vmem:[#allocation3 + $0x48] sm:$0xf] %v9158_v52  ;;  %v8897_v21 = vrot.slane %v8895_v43, 7  ;;  %v9484_v15 = vshll.u32 %v9385_v12, 16  ;;  %v21323_v14 = vpop.f32.mrb[35].mxu1  ;;  %v8392_v6 = vadd.f32 %v21104_v37, %v8231_v11 }
 0x406   : > { %10459 = vmatmul.mubr.bf16.gmra.mrb[68].mxu1 %v17718_v27  ;;  %v8614_v8 = vmul.f32 %v21155_v2, %v8511_v53  ;;  %v10006_v17 = vsel %vm18346_vm11, %v10004_v18, %v10005_v3  ;;  %v9161_v9 = vld [vmem:[#allocation3 + $0x50] sm:$0x1]  ;;  %v9477_v22 = vrot.slane %v9475_v5, 4  ;;  %v9899_v53 = vld [vmem:[#allocation3 + $0x24] sm:$0xe]  ;;  %v9488_v56 = vshrl.u32 %v9385_v12, 16 }
 0x407   : > { %v15179_v4 = vcombine.low %v10003_v16, %v10006_v17  ;;  %v9480_v30 = vrot.slane %v9478_v62, 5  ;;  %v8900_v13 = vor.u32 %v8898_v33, %v8897_v21  ;;  %v8902_v43 = vrot.slane %v8897_v21, 4  ;;  %v9900_v52 = vld [vmem:[#allocation3 + $0x28] sm:$0xf]  ;;  %v22975_v3 = vld [vmem:[#allocation42_spill] sm:$0xff]  ;;  %v21330_v16 = vpop.f32.mrb[29].mxu0 }
 0x408   : > { %v8653_v27 = vadd.f32 %v21162_v47, %v8614_v8  ;;  %v9486_v25 = vrot.slane %v9484_v15, 5  ;;  %v8512_v18 = vadd.f32 %v8392_v6, %v22975_v3  ;;  %v9494_v51 = vshll.u32 %v9386_v48, 16  ;;  %v9901_v62 = vld [vmem:[#allocation3 + $0x2c] sm:$0x1]  ;;  %v22976_v15 = vld [vmem:[#allocation18_spill] sm:$0xff] }
 0x409   : > { %17155 = vmatprep.mubr.bf16.mxu0 %v15179_v4  ;;  %v9481_v40 = vor.u32 %v9480_v30, %v9477_v22  ;;  %v8901_v37 = vsel %vm18093_vm3, %v8893_v39, %v8900_v13  ;;  %v9162_v33 = vsel %vm18391_vm15, %v8902_v43, %v9161_v9  ;;  %v16563_v5 = vadd.f32 %v21282_v24, %v21278_v45  ;;  %v9387_v13 = vld [vmem:[#allocation3 + $0x24] sm:$0xf] }
 0x40a   : > { %v8685_v11 = vmax.f32 %v8653_v27, 0.0  ;;  %9160 = vst [vmem:[#allocation3 + $0x4c] sm:$0xf] %v8901_v37  ;;  %9163 = vst [vmem:[#allocation3 + $0x50] sm:$0x1] %v9162_v33  ;;  %v8615_v60 = vmul.f32 %v21155_v2, %v8512_v18  ;;  %v9490_v12 = vrot.slane %v9488_v56, 4  ;;  %v16566_v37 = vadd.f32 %v21291_v29, %v21288_v50 }
 0x40b   : > { %v9482_v21 = vrot.slane %v9481_v40, 4  ;;  %v9496_v48 = vrot.slane %v9494_v51, 5  ;;  %v21339_v8 = vpop.f32.mrb[36].mxu1  ;;  %v8236_v39 = vadd.f32 %v16563_v5, %v22976_v15  ;;  %v15164_v4 = vrot.slane %v9899_v53, 9  ;;  %v22977_v33 = vld [vmem:[#allocation50_spill] sm:$0xff] }
 0x40c   : > { %v15556_v17 = vpack.c.bf16 %v8685_v11, %v8685_v11  ;;  %v10009_v6 = vrot.slane %v9900_v52, 5  ;;  %v21342_v9 = vpop.f32.mrb[37].mxu1  ;;  %v8654_v22 = vadd.f32 %v21162_v47, %v8615_v60  ;;  %v9491_v24 = vor.u32 %v9490_v12, %v9486_v25  ;;  %v21359_v60 = vpop.f32.mrb[30].mxu0  ;;  %v22979_v15 = vld [vmem:[#allocation46_spill] sm:$0xff] }
 0x40d   : > { %v9487_v45 = vsel %vm18841_vm2, %v9482_v21, %v9486_v25  ;;  %v10012_v30 = vrot.slane %v9901_v62, 5  ;;  %v21347_v43 = vpop.f32.mrb[38].mxu1  ;;  %v8397_v27 = vadd.f32 %v21110_v57, %v8236_v39  ;;  %v9499_v5 = vshrl.u32 %v9387_v13, 16  ;;  %22978 = vst [vmem:[#allocation64_spill] sm:$0xff] %v21359_v60  ;;  %v9164_v57 = vld [vmem:[#allocation3 + $0x54] sm:$0xf] }
 0x40e   : > { %v8904_v51 = vshrl.u32 %v15556_v17, 16  ;;  %v8907_v56 = vshll.u32 %v15556_v17, 16  ;;  %v10010_v53 = vsel %vm18346_vm11, %v15164_v4, %v10009_v6  ;;  %v21352_v52 = vpop.f32.mrb[39].mxu1  ;;  %v8686_v3 = vmax.f32 %v8654_v22, 0.0  ;;  %v21366_v4 = vpop.f32.mrb[31].mxu0  ;;  %v17733_v50 = vld [vmem:[%s22586_s7 + $0x160] sm:$0xff]  }
 0x40f   : > { %v9492_v18 = vrot.slane %v9491_v24, 4  ;;  %v10011_v40 = vrot.slane %v10009_v6, 4  ;;  %v8513_v11 = vadd.f32 %v8397_v27, %v22977_v33  ;;  %v9502_v62 = vshll.u32 %v9387_v13, 16  ;;  %22980 = vst [vmem:[#allocation23_spill] sm:$0xff] %v21366_v4  ;;  %v17719_v24 = vld [vmem:[#allocation3 + $0x18] sm:$0xff]   ;;  %17191 = vmatprep.subr.bf16.mxu0 %v17733_v50 }
 0x410   : > { %v21356_v25 = vrot.slane %v8904_v51, 7  ;;  %v15557_v21 = vpack.c.bf16 %v8686_v3, %v8686_v3  ;;  %v8239_v39 = vadd.f32 %v16566_v37, %v22979_v15  ;;  %v9168_v37 = vld [vmem:[#allocation3 + $0x5c] sm:$0x1]  ;;  %v9501_v33 = vrot.slane %v9499_v5, 4  ;;  %17192 = vmatpush3.bf16.msra.mxu0 %v17733_v50  ;;  %v9904_v60 = vld [vmem:[#allocation3 + $0x38] sm:$0x1] }
 0x411   : > { %v9497_v12 = vsel %vm18841_vm2, %v9492_v18, %v9496_v48  ;;  %v10013_v17 = vsel %vm18346_vm11, %v10011_v40, %v10012_v30  ;;  %v8616_v13 = vmul.f32 %v21155_v2, %v8513_v11  ;;  %v9388_v48 = vld [vmem:[#allocation3 + $0x28] sm:$0xf]  ;;  %v9389_v18 = vld [vmem:[#allocation3 + $0x2c] sm:$0x1]  ;;  %v9504_v11 = vrot.slane %v9502_v62, 5 }
 0x412   : > { %v8909_v29 = vor.u32 %v8907_v56, %v21356_v25  ;;  %v8910_v6 = vrot.slane %v21356_v25, 4  ;;  %v15147_v22 = vcombine.low %v9487_v45, %v9497_v12  ;;  %v8912_v51 = vshrl.u32 %v15557_v21, 16  ;;  %v21375_v40 = vpop.f32.mrb[40].mxu1  ;;  %v17735_v56 = vld [vmem:[%s22586_s7 + $0x100] sm:$0xff]   ;;  %v22981_v12 = vld [vmem:[#allocation52_spill] sm:$0xff] }
 0x413   : > { %v8915_v27 = vshll.u32 %v15557_v21, 16  ;;  %v15180_v30 = vcombine.low %v10010_v53, %v10013_v17  ;;  %v8400_v3 = vadd.f32 %v21116_v58, %v8239_v39  ;;  %v8655_v25 = vadd.f32 %v21162_v47, %v8616_v13  ;;  %v21383_v53 = vpop.f32.mrb[41].mxu1  ;;  %v17736_v58 = vld [vmem:[%s22586_s7 + $0xc0] sm:$0xff]   ;;  %16863 = vmatprep.subr.bf16.mxu1 %v17735_v56 }
 0x414   : > { %v9165_v45 = vsel %vm18381_vm14, %v8909_v29, %v9164_v57  ;;  %10466 = vmatprep.mubr.bf16.mxu1 %v15147_v22  ;;  %v8914_v21 = vrot.slane %v8912_v51, 7  ;;  %v9508_v57 = vshll.u32 %v9388_v48, 16  ;;  %v9512_v15 = vshrl.u32 %v9388_v48, 16  ;;  %v21389_v39 = vpop.f32.mrb[42].mxu1  ;;  %v9902_v22 = vld [vmem:[#allocation3 + $0x30] sm:$0xe]  ;;  %16864 = vmatpush3.bf16.msra.mxu1 %v17736_v58 }
 0x415   : > { %9166 = vst [vmem:[#allocation3 + $0x54] sm:$0xf] %v9165_v45  ;;  %10467 = vmatmul.mubr.bf16.gmra.mrb[72].mxu1 %v17719_v24  ;;  %17156 = vmatmul.mubr.bf16.gmra.mrb[36].mxu0 %v15180_v30  ;;  %v8514_v17 = vadd.f32 %v8400_v3, %v22981_v12  ;;  %v8687_v29 = vmax.f32 %v8655_v25, 0.0  ;;  %v9505_v5 = vor.u32 %v9504_v11, %v9501_v33  ;;  %v9518_v62 = vshll.u32 %v9389_v18, 16  ;;  %v9903_v13 = vld [vmem:[#allocation3 + $0x34] sm:$0xf] }
 0x416   : > { %v16569_v50 = vadd.f32 %v21310_v44, %v21307_v63  ;;  %v21393_v4 = vpop.f32.mrb[43].mxu1  ;;  %v17737_v24 = vld [vmem:[%s22586_s7 + $0x168] sm:$0xff]   ;;  %v8917_v30 = vor.u32 %v8915_v27, %v8914_v21  ;;  %v8919_v3 = vrot.slane %v8914_v21, 4  ;;  %v9510_v44 = vrot.slane %v9508_v57, 5  ;;  %v22982_v27 = vld [vmem:[#allocation21_spill] sm:$0xff] }
 0x417   : > { %v17738_v48 = vld [vmem:[%s22586_s7 + $0x108] sm:$0xff]   ;;  %v8617_v63 = vmul.f32 %v21155_v2, %v8514_v17  ;;  %v15558_v18 = vpack.c.bf16 %v8687_v29, %v8687_v29  ;;  %v9506_v56 = vrot.slane %v9505_v5, 4  ;;  %v9514_v45 = vrot.slane %v9512_v15, 4  ;;  %17193 = vmatprep.subr.bf16.mxu0 %v17737_v24  ;;  %v9171_v29 = vld [vmem:[#allocation3 + $0x60] sm:$0xf] }
 0x418   : > { %v17739_v51 = vld [vmem:[%s22586_s7 + $0xc8] sm:$0xff]   ;;  %v9520_v25 = vrot.slane %v9518_v62, 5  ;;  %16865 = vmatprep.subr.bf16.mxu1 %v17738_v48  ;;  %v8918_v33 = vsel %vm18093_vm3, %v8910_v6, %v8917_v30  ;;  %v9169_v11 = vsel %vm18391_vm15, %v8919_v3, %v9168_v37  ;;  %v8244_v21 = vadd.f32 %v16569_v50, %v22982_v27  ;;  %17194 = vmatpush3.bf16.msra.mxu0 %v17737_v24  ;;  %v9390_v3 = vld [vmem:[#allocation3 + $0x30] sm:$0xf] }
 0x419   : > { %v8656_v12 = vadd.f32 %v21162_v47, %v8617_v63  ;;  %9167 = vst [vmem:[#allocation3 + $0x58] sm:$0xf] %v8918_v33  ;;  %9170 = vst [vmem:[#allocation3 + $0x5c] sm:$0x1] %v9169_v11  ;;  %v8921_v58 = vshrl.u32 %v15558_v18, 16  ;;  %v8924_v17 = vshll.u32 %v15558_v18, 16  ;;  %v9511_v57 = vsel %vm18841_vm2, %v9506_v56, %v9510_v44  ;;  %16866 = vmatpush3.bf16.msra.mxu1 %v17739_v51 }
 0x41a   : > { %v9515_v15 = vor.u32 %v9514_v45, %v9510_v44  ;;  %v8405_v6 = vadd.f32 %v21122_v28, %v8244_v21  ;;  %v15165_v62 = vrot.slane %v9902_v22, 9  ;;  %v10016_v37 = vrot.slane %v9903_v13, 5  ;;  %v21414_v48 = vpop.f32.mrb[44].mxu1  ;;  %v9391_v13 = vld [vmem:[#allocation3 + $0x34] sm:$0xf]  ;;  %v17742_v11 = vld [vmem:[%s22586_s7 + $0xd0] sm:$0xff]  }
 0x41b   : > { %v8688_v5 = vmax.f32 %v8656_v12, 0.0  ;;  %v21416_v47 = vrot.slane %v8921_v58, 7  ;;  %v10019_v24 = vrot.slane %v9904_v60, 5  ;;  %v16572_v30 = vadd.f32 %v21323_v14, %v21315_v36  ;;  %v21420_v63 = vpop.f32.mrb[45].mxu1  ;;  %v22983_v14 = vld [vmem:[#allocation47_spill] sm:$0xff]  ;;  %v17743_v12 = vld [vmem:[%s22586_s7 + $0x170] sm:$0xff]  }
 0x41c   : > { %v9516_v50 = vrot.slane %v9515_v15, 4  ;;  %v8515_v18 = vadd.f32 %v8405_v6, %v21045_v26  ;;  %v10017_v28 = vsel %vm18346_vm11, %v15165_v62, %v10016_v37  ;;  %v10018_v22 = vrot.slane %v10016_v37, 4  ;;  %v21425_v56 = vpop.f32.mrb[46].mxu1  ;;  %v17741_v26 = vld [vmem:[%s22586_s7 + $0x110] sm:$0xff]   ;;  %17195 = vmatprep.subr.bf16.mxu0 %v17743_v12 }
 0x41d   : > { %v15559_v44 = vpack.c.bf16 %v8688_v5, %v8688_v5  ;;  %v8926_v51 = vor.u32 %v8924_v17, %v21416_v47  ;;  %v8927_v60 = vrot.slane %v21416_v47, 4  ;;  %v8247_v45 = vadd.f32 %v16572_v30, %v22983_v14  ;;  %v21432_v33 = vpop.f32.mrb[47].mxu1  ;;  %v17744_v17 = vld [vmem:[%s22586_s7 + $0x118] sm:$0xff]   ;;  %16867 = vmatprep.subr.bf16.mxu1 %v17741_v26  ;;  %v9392_v30 = vld [vmem:[#allocation3 + $0x38] sm:$0x1]  ;;  %17196 = vmatpush3.bf16.msra.mxu0 %v17743_v12 }
 0x41e   : > { %v9521_v36 = vsel %vm18841_vm2, %v9516_v50, %v9520_v25  ;;  %v8618_v25 = vmul.f32 %v21155_v2, %v8515_v18  ;;  %v9175_v5 = vld [vmem:[#allocation3 + $0x68] sm:$0x1]  ;;  %v10020_v62 = vsel %vm18346_vm11, %v10018_v22, %v10019_v24  ;;  %v9523_v47 = vshrl.u32 %v9390_v3, 16  ;;  %v21455_v2 = vld [vmem:[%s22585_s6] ss:$0 sm:$0xff]  ;;  %16868 = vmatpush3.bf16.msra.mxu1 %v17742_v11 }
 0x41f   : > { %v8929_v27 = vshrl.u32 %v15559_v44, 16  ;;  %v8932_v21 = vshll.u32 %v15559_v44, 16  ;;  %v15148_v58 = vcombine.low %v9511_v57, %v9521_v36  ;;  %v9172_v15 = vsel %vm18381_vm14, %v8926_v51, %v9171_v29  ;;  %v17720_v6 = vld [vmem:[#allocation3 + $0x24] sm:$0xff]   ;;  %v9905_v36 = vld [vmem:[#allocation3 + $0x3c] sm:$0xe]  ;;  %16869 = vmatprep.subr.bf16.mxu1 %v17744_v17 }
 0x420   : > { %v8408_v37 = vadd.f32 %v21128_v46, %v8247_v45  ;;  %9173 = vst [vmem:[#allocation3 + $0x60] sm:$0xf] %v9172_v15  ;;  %v8657_v29 = vadd.f32 %v21455_v2, %v8618_v25  ;;  %v15181_v50 = vcombine.low %v10017_v28, %v10020_v62  ;;  %v9526_v44 = vshll.u32 %v9390_v3, 16  ;;  %v17745_v46 = vld [vmem:[%s22586_s7 + $0xd8] sm:$0xff]   ;;  %v21467_v11 = vld [vmem:[%s22584_s5] ss:$0 sm:$0xff] }
 0x421   : > { %v8931_v57 = vrot.slane %v8929_v27, 7  ;;  %10474 = vmatprep.mubr.bf16.mxu1 %v15148_v58  ;;  %v9525_v18 = vrot.slane %v9523_v47, 4  ;;  %v9532_v22 = vshll.u32 %v9391_v13, 16  ;;  %v9536_v51 = vshrl.u32 %v9391_v13, 16  ;;  %v9906_v27 = vld [vmem:[#allocation3 + $0x40] sm:$0xf] }
 0x422   : > { %10475 = vmatmul.mubr.bf16.gmra.mrb[76].mxu1 %v17720_v6  ;;  %v8516_v24 = vadd.f32 %v8408_v37, %v21057_v59  ;;  %v8689_v26 = vmax.f32 %v8657_v29, 0.0  ;;  %17159 = vmatprep.mubr.bf16.mxu0 %v15181_v50  ;;  %v9528_v28 = vrot.slane %v9526_v44, 5  ;;  %v21462_v3 = vpop.f32.mrb[48].mxu1  ;;  %v9542_v25 = vshll.u32 %v9392_v30, 16  ;;  %v9907_v12 = vld [vmem:[#allocation3 + $0x44] sm:$0x1] }
 0x423   : > { %v8934_v14 = vor.u32 %v8932_v21, %v8931_v57  ;;  %v8936_v45 = vrot.slane %v8931_v57, 4  ;;  %v9534_v58 = vrot.slane %v9532_v22, 5  ;;  %v9538_v13 = vrot.slane %v9536_v51, 4  ;;  %v21470_v21 = vpop.f32.mrb[49].mxu1  ;;  %16870 = vmatpush3.bf16.msra.mxu1 %v17745_v46  ;;  %v17749_v44 = vld [vmem:[%s22586_s7 + $0x178] sm:$0xff]  }
 0x424   : > { %v8619_v59 = vmul.f32 %v21467_v11, %v8516_v24  ;;  %v15560_v17 = vpack.c.bf16 %v8689_v26, %v8689_v26  ;;  %v9529_v62 = vor.u32 %v9528_v28, %v9525_v18  ;;  %v21476_v37 = vpop.f32.mrb[50].mxu1  ;;  %v9544_v29 = vrot.slane %v9542_v25, 5  ;;  %17197 = vmatprep.subr.bf16.mxu0 %v17749_v44 }
 0x425   : > { %v8935_v15 = vsel %vm18093_vm3, %v8927_v60, %v8934_v14  ;;  %v9176_v6 = vsel %vm18391_vm15, %v8936_v45, %v9175_v5  ;;  %v9539_v57 = vor.u32 %v9538_v13, %v9534_v58  ;;  %v16575_v50 = vadd.f32 %v21342_v9, %v21339_v8  ;;  %v21481_v30 = vpop.f32.mrb[51].mxu1  ;;  %v17747_v60 = vld [vmem:[%s22586_s7 + $0x120] sm:$0xff]   ;;  %v17750_v8 = vld [vmem:[%s22586_s7 + $0x128] sm:$0xff]   ;;  %v22984_v14 = vld [vmem:[#allocation49_spill] sm:$0xff]  ;;  %17198 = vmatpush3.bf16.msra.mxu0 %v17749_v44 }
 0x426   : > { %9174 = vst [vmem:[#allocation3 + $0x64] sm:$0xf] %v8935_v15  ;;  %9177 = vst [vmem:[#allocation3 + $0x68] sm:$0x1] %v9176_v6  ;;  %v8658_v47 = vadd.f32 %v21455_v2, %v8619_v59  ;;  %v17748_v5 = vld [vmem:[%s22586_s7 + $0xe0] sm:$0xff]   ;;  %v8938_v46 = vshrl.u32 %v15560_v17, 16  ;;  %16871 = vmatprep.subr.bf16.mxu1 %v17747_v60  ;;  %v16578_v25 = vadd.f32 %v21352_v52, %v21347_v43 }
 0x427   : > { %v8941_v24 = vshll.u32 %v15560_v17, 16  ;;  %v9530_v18 = vrot.slane %v9529_v62, 4  ;;  %v15166_v22 = vrot.slane %v9905_v36, 9  ;;  %v9540_v51 = vrot.slane %v9539_v57, 4  ;;  %16872 = vmatpush3.bf16.msra.mxu1 %v17748_v5  ;;  %v17751_v36 = vld [vmem:[%s22586_s7 + $0xe8] sm:$0xff]   ;;  %v17721_v44 = vld [vmem:[#allocation3 + $0x30] sm:$0xff]  }
 0x428   : > { %v8690_v9 = vmax.f32 %v8658_v47, 0.0  ;;  %v8252_v45 = vadd.f32 %v16575_v50, %v22984_v14  ;;  %v10023_v26 = vrot.slane %v9906_v27, 5  ;;  %v8940_v28 = vrot.slane %v8938_v46, 7  ;;  %v9178_v15 = vld [vmem:[#allocation3 + $0x6c] sm:$0xf]  ;;  %16873 = vmatprep.subr.bf16.mxu1 %v17750_v8 }
 0x429   : > { %v9535_v59 = vsel %vm18841_vm2, %v9530_v18, %v9534_v58  ;;  %v10026_v13 = vrot.slane %v9907_v12, 5  ;;  %v9545_v27 = vsel %vm18841_vm2, %v9540_v51, %v9544_v29  ;;  %v9393_v12 = vld [vmem:[#allocation3 + $0x3c] sm:$0xf]  ;;  %v9394_v62 = vld [vmem:[#allocation3 + $0x40] sm:$0xf]  ;;  %v22985_v29 = vld [vmem:[#allocation29_spill] sm:$0xff] }
 0x42a   : > { %v15561_v6 = vpack.c.bf16 %v8690_v9, %v8690_v9  ;;  %v8413_v17 = vadd.f32 %v21134_v38, %v8252_v45  ;;  %v10024_v58 = vsel %vm18346_vm11, %v15166_v22, %v10023_v26  ;;  %v8943_v43 = vor.u32 %v8941_v24, %v8940_v28  ;;  %v21508_v50 = vpop.f32.mrb[52].mxu1  ;;  %v9182_v14 = vld [vmem:[#allocation3 + $0x74] sm:$0x1] }
 0x42b   : > { %v8944_v52 = vrot.slane %v8940_v28, 4  ;;  %v15149_v47 = vcombine.low %v9535_v59, %v9545_v27  ;;  %v10025_v57 = vrot.slane %v10023_v26, 4  ;;  %v8255_v18 = vadd.f32 %v16578_v25, %v22985_v29  ;;  %v21512_v38 = vpop.f32.mrb[53].mxu1  ;;  %16874 = vmatpush3.bf16.msra.mxu1 %v17751_v36  ;;  %v9395_v28 = vld [vmem:[#allocation3 + $0x44] sm:$0x1] }
 0x42c   : > { %v8946_v60 = vshrl.u32 %v15561_v6, 16  ;;  %v8949_v5 = vshll.u32 %v15561_v6, 16  ;;  %v8517_v46 = vadd.f32 %v8413_v17, %v21065_v55  ;;  %v9179_v22 = vsel %vm18381_vm14, %v8943_v43, %v9178_v15  ;;  %v21522_v43 = vpop.f32.mrb[54].mxu1 }
 0x42d   : > { %10482 = vmatprep.mubr.bf16.mxu1 %v15149_v47  ;;  %v10027_v24 = vsel %vm18346_vm11, %v10025_v57, %v10026_v13  ;;  %v9547_v8 = vshrl.u32 %v9393_v12, 16  ;;  %v9550_v9 = vshll.u32 %v9393_v12, 16  ;;  %9180 = vst [vmem:[#allocation3 + $0x6c] sm:$0xf] %v9179_v22  ;;  %v8416_v26 = vadd.f32 %v21140_v0, %v8255_v18  ;;  %v9908_v12 = vld [vmem:[#allocation3 + $0x48] sm:$0xe] }
 0x42e   : > { %v8948_v51 = vrot.slane %v8946_v60, 7  ;;  %10483 = vmatmul.mubr.bf16.gmra.mrb[80].mxu1 %v17721_v44  ;;  %v8620_v55 = vmul.f32 %v21467_v11, %v8517_v46  ;;  %v15182_v45 = vcombine.low %v10024_v58, %v10027_v24  ;;  %v9556_v15 = vshll.u32 %v9394_v62, 16  ;;  %v17753_v58 = vld [vmem:[%s22586_s7 + $0x130] sm:$0xff]   ;;  %v21530_v44 = vpop.f32.mrb[55].mxu1  ;;  %v9910_v22 = vld [vmem:[#allocation3 + $0x50] sm:$0x1] }
 0x42f   : > { %v9549_v59 = vrot.slane %v9547_v8, 4  ;;  %v9552_v25 = vrot.slane %v9550_v9, 5  ;;  %v9560_v6 = vshrl.u32 %v9394_v62, 16  ;;  %v8518_v36 = vadd.f32 %v8416_v26, %v21071_v10  ;;  %v17754_v0 = vld [vmem:[%s22586_s7 + $0xf0] sm:$0xff]   ;;  %16875 = vmatprep.subr.bf16.mxu1 %v17753_v58  ;;  %v17755_v24 = vld [vmem:[%s22586_s7 + $0x1c0] sm:$0xff]  }
 0x430   : > { %v8951_v27 = vor.u32 %v8949_v5, %v8948_v51  ;;  %v8953_v17 = vrot.slane %v8948_v51, 4  ;;  %v8659_v13 = vadd.f32 %v21455_v2, %v8620_v55  ;;  %17160 = vmatmul.mubr.bf16.gmra.mrb[40].mxu0 %v15182_v45  ;;  %v9558_v62 = vrot.slane %v9556_v15, 5  ;;  %v9909_v5 = vld [vmem:[#allocation3 + $0x4c] sm:$0xf]  ;;  %16876 = vmatpush3.bf16.msra.mxu1 %v17754_v0 }
 0x431   : > { %v9553_v47 = vor.u32 %v9552_v25, %v9549_v59  ;;  %v9562_v57 = vrot.slane %v9560_v6, 4  ;;  %v9566_v60 = vshll.u32 %v9395_v28, 16  ;;  %v8621_v18 = vmul.f32 %v21467_v11, %v8518_v36  ;;  %16999 = vmatprep.subr.bf16.mxu0 %v17755_v24  ;;  %v17757_v25 = vld [vmem:[%s22586_s7 + $0x138] sm:$0xff]   ;;  %v9185_v24 = vld [vmem:[#allocation3 + $0x78] sm:$0xf] }
 0x432   : > { %v8952_v10 = vsel %vm18093_vm3, %v8944_v52, %v8951_v27  ;;  %v9183_v46 = vsel %vm18391_vm15, %v8953_v17, %v9182_v14  ;;  %v8691_v29 = vmax.f32 %v8659_v13, 0.0  ;;  %v16581_v52 = vadd.f32 %v21383_v53, %v21375_v40  ;;  %v21542_v55 = vpop.f32.mrb[56].mxu1  ;;  %v22986_v40 = vld [vmem:[#allocation25_spill] sm:$0xff]  ;;  %16877 = vmatprep.subr.bf16.mxu1 %v17757_v25  ;;  %v9398_v25 = vld [vmem:[#allocation3 + $0x50] sm:$0x1] }
 0x433   : > { %9181 = vst [vmem:[#allocation3 + $0x70] sm:$0xf] %v8952_v10  ;;  %9184 = vst [vmem:[#allocation3 + $0x74] sm:$0x1] %v9183_v46  ;;  %v9554_v8 = vrot.slane %v9553_v47, 4  ;;  %v9563_v9 = vor.u32 %v9562_v57, %v9558_v62  ;;  %v9568_v51 = vrot.slane %v9566_v60, 5  ;;  %v8660_v45 = vadd.f32 %v21455_v2, %v8621_v18 }
 0x434   : > { %v15562_v14 = vpack.c.bf16 %v8691_v29, %v8691_v29  ;;  %v15167_v26 = vrot.slane %v9908_v12, 9  ;;  %v10030_v28 = vrot.slane %v9909_v5, 5  ;;  %v21545_v59 = vpop.f32.mrb[57].mxu1  ;;  %v8260_v53 = vadd.f32 %v16581_v52, %v22986_v40  ;;  %v9396_v17 = vld [vmem:[#allocation3 + $0x48] sm:$0xf] }
 0x435   : > { %v9559_v15 = vsel %vm18841_vm2, %v9554_v8, %v9558_v62  ;;  %v9564_v6 = vrot.slane %v9563_v9, 4  ;;  %v10033_v27 = vrot.slane %v9910_v22, 5  ;;  %v8692_v58 = vmax.f32 %v8660_v45, 0.0  ;;  %v21555_v0 = vpop.f32.mrb[58].mxu1  ;;  %v17758_v22 = vld [vmem:[%s22586_s7 + $0xf8] sm:$0xff]   ;;  %v17722_v8 = vld [vmem:[#allocation3 + $0x3c] sm:$0xff]  }
 0x436   : > { %v8955_v13 = vshrl.u32 %v15562_v14, 16  ;;  %v8958_v36 = vshll.u32 %v15562_v14, 16  ;;  %v10031_v12 = vsel %vm18346_vm11, %v15167_v26, %v10030_v28  ;;  %v8421_v57 = vadd.f32 %v21146_v49, %v8260_v53  ;;  %v21562_v5 = vpop.f32.mrb[59].mxu1  ;;  %16878 = vmatpush3.bf16.msra.mxu1 %v17758_v22 }
 0x437   : > { %v9569_v47 = vsel %vm18841_vm2, %v9564_v6, %v9568_v51  ;;  %v10032_v62 = vrot.slane %v10030_v28, 4  ;;  %v16584_v60 = vadd.f32 %v21393_v4, %v21389_v39  ;;  %v15563_v46 = vpack.c.bf16 %v8692_v58, %v8692_v58  ;;  %v22987_v51 = vld [vmem:[#allocation53_spill] sm:$0xff] }
 0x438   : > { %v8957_v10 = vrot.slane %v8955_v13, 7  ;;  %v15150_v29 = vcombine.low %v9559_v15, %v9569_v47  ;;  %v9571_v18 = vshrl.u32 %v9396_v17, 16  ;;  %v8519_v9 = vadd.f32 %v8421_v57, %v21077_v35  ;;  %v9397_v4 = vld [vmem:[#allocation3 + $0x4c] sm:$0xf]  ;;  %v9189_v15 = vld [vmem:[#allocation3 + $0x80] sm:$0x1] }
 0x439   : > { %v10034_v49 = vsel %vm18346_vm11, %v10032_v62, %v10033_v27  ;;  %v8263_v52 = vadd.f32 %v16584_v60, %v22987_v51  ;;  %v9574_v39 = vshll.u32 %v9396_v17, 16  ;;  %v8963_v26 = vshrl.u32 %v15563_v46, 16  ;;  %v9911_v47 = vld [vmem:[#allocation3 + $0x54] sm:$0xe] }
 0x43a   : > { %v8960_v14 = vor.u32 %v8958_v36, %v8957_v10  ;;  %v8961_v45 = vrot.slane %v8957_v10, 4  ;;  %v8966_v28 = vshll.u32 %v15563_v46, 16  ;;  %10490 = vmatprep.mubr.bf16.mxu1 %v15150_v29  ;;  %v8622_v6 = vmul.f32 %v21467_v11, %v8519_v9  ;;  %v21573_v27 = vpop.f32.mrb[60].mxu1 }
 0x43b   : > { %10491 = vmatmul.mubr.bf16.gmra.mrb[84].mxu1 %v17722_v8  ;;  %v15183_v40 = vcombine.low %v10031_v12, %v10034_v49  ;;  %v8424_v35 = vadd.f32 %v21150_v1, %v8263_v52  ;;  %v9573_v53 = vrot.slane %v9571_v18, 4  ;;  %v8965_v13 = vrot.slane %v8963_v26, 7  ;;  %v21577_v57 = vpop.f32.mrb[61].mxu1 }
 0x43c   : > { %v9186_v17 = vsel %vm18381_vm14, %v8960_v14, %v9185_v24  ;;  %v9576_v36 = vrot.slane %v9574_v39, 5  ;;  %v9580_v58 = vshll.u32 %v9397_v4, 16  ;;  %v8661_v62 = vadd.f32 %v21455_v2, %v8622_v6  ;;  %v21581_v10 = vpop.f32.mrb[62].mxu1  ;;  %v9912_v24 = vld [vmem:[#allocation3 + $0x58] sm:$0xf] }
 0x43d   : > { %9187 = vst [vmem:[#allocation3 + $0x78] sm:$0xf] %v9186_v17  ;;  %17163 = vmatprep.mubr.bf16.mxu0 %v15183_v40  ;;  %v8520_v12 = vadd.f32 %v8424_v35, %v21083_v31  ;;  %v9584_v60 = vshrl.u32 %v9397_v4, 16  ;;  %v9590_v1 = vshll.u32 %v9398_v25, 16  ;;  %v8968_v46 = vor.u32 %v8966_v28, %v8965_v13  ;;  %v21583_v8 = vpop.f32.mrb[63].mxu1 }
 0x43e   : > { %v8970_v29 = vrot.slane %v8965_v13, 4  ;;  %v9577_v18 = vor.u32 %v9576_v36, %v9573_v53  ;;  %v9582_v22 = vrot.slane %v9580_v58, 5  ;;  %v8693_v9 = vmax.f32 %v8661_v62, 0.0  ;;  %v9913_v39 = vld [vmem:[#allocation3 + $0x5c] sm:$0x1] }
 0x43f   : > { %v8623_v49 = vmul.f32 %v21467_v11, %v8520_v12  ;;  %v9586_v51 = vrot.slane %v9584_v60, 4  ;;  %v9592_v52 = vrot.slane %v9590_v1, 5  ;;  %v8969_v31 = vsel %vm18093_vm3, %v8961_v45, %v8968_v46  ;;  %v22988_v53 = vld [vmem:[#allocation35_spill] sm:$0xff]  ;;  %v9399_v36 = vld [vmem:[#allocation3 + $0x54] sm:$0xf] }
 0x440   : > { %v9190_v4 = vsel %vm18391_vm15, %v8970_v29, %v9189_v15  ;;  %v9578_v14 = vrot.slane %v9577_v18, 4  ;;  %v16587_v26 = vadd.f32 %v21420_v63, %v21414_v48  ;;  %9188 = vst [vmem:[#allocation3 + $0x7c] sm:$0xf] %v8969_v31  ;;  %v15564_v28 = vpack.c.bf16 %v8693_v9, %v8693_v9 }
 0x441   : > { %9191 = vst [vmem:[#allocation3 + $0x80] sm:$0x1] %v9190_v4  ;;  %v8662_v25 = vadd.f32 %v21455_v2, %v8623_v49  ;;  %v9587_v6 = vor.u32 %v9586_v51, %v9582_v22  ;;  %v15168_v40 = vrot.slane %v9911_v47, 9  ;;  %v10037_v45 = vrot.slane %v9912_v24, 5  ;;  %v22989_v49 = vld [vmem:[#allocation54_spill] sm:$0xff] }
 0x442   : > { %v9583_v35 = vsel %vm18841_vm2, %v9578_v14, %v9582_v22  ;;  %v8268_v17 = vadd.f32 %v16587_v26, %v22988_v53  ;;  %v10040_v13 = vrot.slane %v9913_v39, 5  ;;  %v8972_v15 = vshrl.u32 %v15564_v28, 16  ;;  %v9192_v22 = vld [vmem:[#allocation3 + $0x84] sm:$0xf]  ;;  %v9400_v39 = vld [vmem:[#allocation3 + $0x58] sm:$0xf] }
 0x443   : > { %v8975_v58 = vshll.u32 %v15564_v28, 16  ;;  %v8694_v62 = vmax.f32 %v8662_v25, 0.0  ;;  %v9588_v12 = vrot.slane %v9587_v6, 4  ;;  %v10038_v63 = vsel %vm18346_vm11, %v15168_v40, %v10037_v45  ;;  %v9401_v26 = vld [vmem:[#allocation3 + $0x5c] sm:$0x1] }
 0x444   : > { %v8429_v48 = vadd.f32 %v21169_v34, %v8268_v17  ;;  %v10039_v60 = vrot.slane %v10037_v45, 4  ;;  %v16590_v47 = vadd.f32 %v21432_v33, %v21425_v56  ;;  %v8974_v1 = vrot.slane %v8972_v15, 7  ;;  %v17723_v33 = vld [vmem:[#allocation3 + $0x48] sm:$0xff]  }
 0x445   : > { %v15565_v46 = vpack.c.bf16 %v8694_v62, %v8694_v62  ;;  %v9593_v29 = vsel %vm18841_vm2, %v9588_v12, %v9592_v52  ;;  %v9595_v18 = vshrl.u32 %v9399_v36, 16  ;;  %v9598_v53 = vshll.u32 %v9399_v36, 16  ;;  %v9914_v62 = vld [vmem:[#allocation3 + $0x60] sm:$0xe] }
 0x446   : > { %v15151_v24 = vcombine.low %v9583_v35, %v9593_v29  ;;  %v8521_v9 = vadd.f32 %v8429_v48, %v21089_v41  ;;  %v10041_v34 = vsel %vm18346_vm11, %v10039_v60, %v10040_v13  ;;  %v8271_v51 = vadd.f32 %v16590_v47, %v22989_v49  ;;  %v9196_v35 = vld [vmem:[#allocation3 + $0x8c] sm:$0x1]  ;;  %v9915_v60 = vld [vmem:[#allocation3 + $0x64] sm:$0xf]  ;;  %v9916_v29 = vld [vmem:[#allocation3 + $0x68] sm:$0x1] }
 0x447   : > { %v8977_v31 = vor.u32 %v8975_v58, %v8974_v1  ;;  %v8978_v4 = vrot.slane %v8974_v1, 4  ;;  %v8980_v14 = vshrl.u32 %v15565_v46, 16  ;;  %v8983_v56 = vshll.u32 %v15565_v46, 16 }
 0x448   : > { %10498 = vmatprep.mubr.bf16.mxu1 %v15151_v24  ;;  %v8624_v52 = vmul.f32 %v21467_v11, %v8521_v9  ;;  %v15184_v28 = vcombine.low %v10038_v63, %v10041_v34  ;;  %v8432_v25 = vadd.f32 %v21174_v61, %v8271_v51  ;;  %v9597_v6 = vrot.slane %v9595_v18, 4 }
 0x449   : > { %v9193_v41 = vsel %vm18381_vm14, %v8977_v31, %v9192_v22  ;;  %v8982_v40 = vrot.slane %v8980_v14, 7  ;;  %10499 = vmatmul.mubr.bf16.gmra.mrb[88].mxu1 %v17723_v33  ;;  %v9604_v17 = vshll.u32 %v9400_v39, 16  ;;  %v9608_v15 = vshrl.u32 %v9400_v39, 16  ;;  %v22990_v31 = vld [vmem:[#allocation31_spill] sm:$0xff] }
 0x44a   : > { %9194 = vst [vmem:[#allocation3 + $0x84] sm:$0xf] %v9193_v41  ;;  %v8663_v45 = vadd.f32 %v21455_v2, %v8624_v52  ;;  %17164 = vmatmul.mubr.bf16.gmra.mrb[44].mxu0 %v15184_v28  ;;  %v8522_v13 = vadd.f32 %v8432_v25, %v21095_v20  ;;  %v9614_v58 = vshll.u32 %v9401_v26, 16  ;;  %v9600_v48 = vrot.slane %v9598_v53, 5  ;;  %v9402_v25 = vld [vmem:[#allocation3 + $0x60] sm:$0xf] }
 0x44b   : > { %v8985_v12 = vor.u32 %v8983_v56, %v8982_v40  ;;  %v8987_v61 = vrot.slane %v8982_v40, 4  ;;  %v9606_v63 = vrot.slane %v9604_v17, 5  ;;  %v9610_v46 = vrot.slane %v9608_v15, 4  ;;  %v22991_v15 = vld [vmem:[#allocation10_spill] sm:$0xff] }
 0x44c   : > { %v8695_v47 = vmax.f32 %v8663_v45, 0.0  ;;  %v8625_v1 = vmul.f32 %v21467_v11, %v8522_v13  ;;  %v9616_v36 = vrot.slane %v9614_v58, 5  ;;  %v9601_v22 = vor.u32 %v9600_v48, %v9597_v6  ;;  %v9199_v45 = vld [vmem:[#allocation3 + $0x90] sm:$0xf] }
 0x44d   : > { %v8986_v18 = vsel %vm18093_vm3, %v8978_v4, %v8985_v12  ;;  %v9197_v20 = vsel %vm18391_vm15, %v8987_v61, %v9196_v35  ;;  %v16593_v24 = vadd.f32 %v21470_v21, %v21462_v3  ;;  %v9611_v49 = vor.u32 %v9610_v46, %v9606_v63 }
 0x44e   : > { %9195 = vst [vmem:[#allocation3 + $0x88] sm:$0xf] %v8986_v18  ;;  %9198 = vst [vmem:[#allocation3 + $0x8c] sm:$0x1] %v9197_v20  ;;  %v15566_v9 = vpack.c.bf16 %v8695_v47, %v8695_v47  ;;  %v8664_v34 = vadd.f32 %v21455_v2, %v8625_v1  ;;  %v15169_v51 = vrot.slane %v9914_v62, 9  ;;  %v9602_v39 = vrot.slane %v9601_v22, 4 }
 0x44f   : > { %v8276_v14 = vadd.f32 %v16593_v24, %v22990_v31  ;;  %v10044_v56 = vrot.slane %v9915_v60, 5  ;;  %v10047_v33 = vrot.slane %v9916_v29, 5  ;;  %v9612_v28 = vrot.slane %v9611_v49, 4  ;;  %v17724_v47 = vld [vmem:[#allocation3 + $0x54] sm:$0xff]   ;;  %v9404_v1 = vld [vmem:[#allocation3 + $0x68] sm:$0x1] }
 0x450   : > { %v8989_v4 = vshrl.u32 %v15566_v9, 16  ;;  %v8992_v26 = vshll.u32 %v15566_v9, 16  ;;  %v8696_v52 = vmax.f32 %v8664_v34, 0.0  ;;  %v9607_v3 = vsel %vm18841_vm2, %v9602_v39, %v9606_v63  ;;  %v9203_v22 = vld [vmem:[#allocation3 + $0x98] sm:$0x1]  ;;  %v22993_v49 = vld [vmem:[#allocation16_spill] sm:$0xff] }
 0x451   : > { %v8437_v21 = vadd.f32 %v21183_v54, %v8276_v14  ;;  %v10045_v6 = vsel %vm18346_vm11, %v15169_v51, %v10044_v56  ;;  %v10046_v41 = vrot.slane %v10044_v56, 4  ;;  %v9617_v53 = vsel %vm18841_vm2, %v9612_v28, %v9616_v36  ;;  %v9403_v54 = vld [vmem:[#allocation3 + $0x64] sm:$0xf]  ;;  %v9917_v14 = vld [vmem:[#allocation3 + $0x6c] sm:$0xe] }
 0x452   : > { %v8991_v40 = vrot.slane %v8989_v4, 7  ;;  %v15567_v35 = vpack.c.bf16 %v8696_v52, %v8696_v52  ;;  %v16596_v17 = vadd.f32 %v21481_v30, %v21476_v37  ;;  %v15152_v13 = vcombine.low %v9607_v3, %v9617_v53  ;;  %v22992_v37 = vld [vmem:[#allocation56_spill] sm:$0xff]  ;;  %v9918_v52 = vld [vmem:[#allocation3 + $0x70] sm:$0xf] }
 0x453   : > { %v8523_v58 = vadd.f32 %v8437_v21, %v22991_v15  ;;  %v10048_v62 = vsel %vm18346_vm11, %v10046_v41, %v10047_v33  ;;  %v9619_v12 = vshrl.u32 %v9402_v25, 16  ;;  %v9622_v24 = vshll.u32 %v9402_v25, 16  ;;  %v22994_v3 = vld [vmem:[#allocation74_spill] sm:$0xff] }
 0x454   : > { %v8994_v61 = vor.u32 %v8992_v26, %v8991_v40  ;;  %v8995_v48 = vrot.slane %v8991_v40, 4  ;;  %v8997_v63 = vshrl.u32 %v15567_v35, 16  ;;  %v9000_v60 = vshll.u32 %v15567_v35, 16  ;;  %10506 = vmatprep.mubr.bf16.mxu1 %v15152_v13  ;;  %v9919_v41 = vld [vmem:[#allocation3 + $0x74] sm:$0x1] }
 0x455   : > { %v8626_v46 = vmul.f32 %v21467_v11, %v8523_v58  ;;  %v15185_v36 = vcombine.low %v10045_v6, %v10048_v62  ;;  %v8279_v30 = vadd.f32 %v16596_v17, %v22992_v37  ;;  %v9621_v29 = vrot.slane %v9619_v12, 4  ;;  %10507 = vmatmul.mubr.bf16.gmra.mrb[92].mxu1 %v17724_v47 }
 0x456   : > { %v9200_v18 = vsel %vm18381_vm14, %v8994_v61, %v9199_v45  ;;  %v8999_v20 = vrot.slane %v8997_v63, 7  ;;  %v9628_v9 = vshll.u32 %v9403_v54, 16  ;;  %v9632_v39 = vshrl.u32 %v9403_v54, 16  ;;  %v22995_v54 = vld [vmem:[#allocation37_spill] sm:$0xff] }
 0x457   : > { %9201 = vst [vmem:[#allocation3 + $0x90] sm:$0xf] %v9200_v18  ;;  %v8665_v34 = vadd.f32 %v21455_v2, %v8626_v46  ;;  %17167 = vmatprep.mubr.bf16.mxu0 %v15185_v36  ;;  %v8440_v51 = vadd.f32 %v22993_v49, %v8279_v30  ;;  %v9638_v31 = vshll.u32 %v9404_v1, 16  ;;  %v9624_v4 = vrot.slane %v9622_v24, 5  ;;  %v9405_v46 = vld [vmem:[#allocation3 + $0x6c] sm:$0xf] }
 0x458   : > { %v9002_v56 = vor.u32 %v9000_v60, %v8999_v20  ;;  %v9004_v33 = vrot.slane %v8999_v20, 4  ;;  %v9630_v26 = vrot.slane %v9628_v9, 5  ;;  %v9634_v6 = vrot.slane %v9632_v39, 4  ;;  %v9206_v24 = vld [vmem:[#allocation3 + $0x9c] sm:$0xf] }
 0x459   : > { %v8697_v28 = vmax.f32 %v8665_v34, 0.0  ;;  %v8524_v21 = vadd.f32 %v8440_v51, %v22994_v3  ;;  %v9640_v25 = vrot.slane %v9638_v31, 5  ;;  %v9625_v53 = vor.u32 %v9624_v4, %v9621_v29  ;;  %v22997_v34 = vld [vmem:[#allocation75_spill] sm:$0xff]  ;;  %v9406_v39 = vld [vmem:[#allocation3 + $0x70] sm:$0xf]  ;;  %v17726_v4 = vld [vmem:[#allocation3 + $0x60] sm:$0xff]  }
 0x45a   : > { %v9003_v40 = vsel %vm18093_vm3, %v8995_v48, %v9002_v56  ;;  %v9204_v35 = vsel %vm18391_vm15, %v9004_v33, %v9203_v22  ;;  %v16599_v17 = vadd.f32 %v21512_v38, %v21508_v50  ;;  %v9635_v15 = vor.u32 %v9634_v6, %v9630_v26  ;;  %v22996_v38 = vld [vmem:[#allocation15_spill] sm:$0xff] }
 0x45b   : > { %9202 = vst [vmem:[#allocation3 + $0x94] sm:$0xf] %v9003_v40  ;;  %9205 = vst [vmem:[#allocation3 + $0x98] sm:$0x1] %v9204_v35  ;;  %v15568_v45 = vpack.c.bf16 %v8697_v28, %v8697_v28  ;;  %v8627_v13 = vmul.f32 %v21467_v11, %v8524_v21  ;;  %v15170_v58 = vrot.slane %v9917_v14, 9  ;;  %v9626_v62 = vrot.slane %v9625_v53, 4 }
 0x45c   : > { %v8284_v12 = vadd.f32 %v16599_v17, %v22995_v54  ;;  %v10051_v61 = vrot.slane %v9918_v52, 5  ;;  %v10054_v63 = vrot.slane %v9919_v41, 5  ;;  %v9636_v1 = vrot.slane %v9635_v15, 4  ;;  %v22998_v28 = vld [vmem:[#allocation38_spill] sm:$0xff]  ;;  %v22999_v53 = vld [vmem:[#allocation61_spill] sm:$0xff] }
 0x45d   : > { %v9006_v48 = vshrl.u32 %v15568_v45, 16  ;;  %v9009_v60 = vshll.u32 %v15568_v45, 16  ;;  %v8666_v47 = vadd.f32 %v21455_v2, %v8627_v13  ;;  %v9631_v50 = vsel %vm18841_vm2, %v9626_v62, %v9630_v26 }
 0x45e   : > { %v8445_v36 = vadd.f32 %v22996_v38, %v8284_v12  ;;  %v10052_v37 = vsel %vm18346_vm11, %v15170_v58, %v10051_v61  ;;  %v10053_v30 = vrot.slane %v10051_v61, 4  ;;  %v9641_v20 = vsel %vm18841_vm2, %v9636_v1, %v9640_v25  ;;  %v9210_v12 = vld [vmem:[#allocation3 + $0xa4] sm:$0x1]  ;;  %v9920_v1 = vld [vmem:[#allocation3 + $0x78] sm:$0xe] }
 0x45f   : > { %v9008_v29 = vrot.slane %v9006_v48, 7  ;;  %v8698_v18 = vmax.f32 %v8666_v47, 0.0  ;;  %v16602_v22 = vadd.f32 %v21530_v44, %v21522_v43  ;;  %v15153_v9 = vcombine.low %v9631_v50, %v9641_v20  ;;  %v9407_v43 = vld [vmem:[#allocation3 + $0x74] sm:$0x1] }
 0x460   : > { %v8525_v49 = vadd.f32 %v8445_v36, %v22997_v34  ;;  %v10055_v51 = vsel %vm18346_vm11, %v10053_v30, %v10054_v63  ;;  %v9643_v31 = vshrl.u32 %v9405_v46, 16  ;;  %v9646_v21 = vshll.u32 %v9405_v46, 16  ;;  %v23000_v63 = vld [vmem:[#allocation55_spill] sm:$0xff]  ;;  %v23001_v36 = vld [vmem:[#allocation60_spill] sm:$0xff] }
 0x461   : > { %v9011_v14 = vor.u32 %v9009_v60, %v9008_v29  ;;  %v9012_v56 = vrot.slane %v9008_v29, 4  ;;  %v15569_v33 = vpack.c.bf16 %v8698_v18, %v8698_v18  ;;  %v15186_v26 = vcombine.low %v10052_v37, %v10055_v51  ;;  %10514 = vmatprep.mubr.bf16.mxu1 %v15153_v9  ;;  %v23002_v9 = vld [vmem:[#allocation59_spill] sm:$0xff] }
 0x462   : > { %v8628_v52 = vmul.f32 %v21467_v11, %v8525_v49  ;;  %v8287_v3 = vadd.f32 %v16602_v22, %v22998_v28  ;;  %v9645_v44 = vrot.slane %v9643_v31, 4  ;;  %10515 = vmatmul.mubr.bf16.gmra.mrb[96].mxu1 %v17726_v4  ;;  %v9652_v40 = vshll.u32 %v9406_v39, 16  ;;  %v9921_v22 = vld [vmem:[#allocation3 + $0x7c] sm:$0xf]  ;;  %v9408_v51 = vld [vmem:[#allocation3 + $0x78] sm:$0xf] }
 0x463   : > { %v9207_v6 = vsel %vm18381_vm14, %v9011_v14, %v9206_v24  ;;  %v9014_v25 = vshrl.u32 %v15569_v33, 16  ;;  %v9017_v41 = vshll.u32 %v15569_v33, 16  ;;  %17168 = vmatmul.mubr.bf16.gmra.mrb[48].mxu0 %v15186_v26  ;;  %v9648_v45 = vrot.slane %v9646_v21, 5  ;;  %v9922_v24 = vld [vmem:[#allocation3 + $0x80] sm:$0x1]  ;;  %v23003_v26 = vld [vmem:[#allocation78_spill] sm:$0xff] }
 0x464   : > { %9208 = vst [vmem:[#allocation3 + $0x9c] sm:$0xf] %v9207_v6  ;;  %v8667_v35 = vadd.f32 %v21455_v2, %v8628_v52  ;;  %v8448_v17 = vadd.f32 %v22999_v53, %v8287_v3  ;;  %v9656_v13 = vshrl.u32 %v9406_v39, 16  ;;  %v9654_v58 = vrot.slane %v9652_v40, 5  ;;  %v9213_v6 = vld [vmem:[#allocation3 + $0xa8] sm:$0xf] }
 0x465   : > { %v9016_v15 = vrot.slane %v9014_v25, 7  ;;  %v9662_v62 = vshll.u32 %v9407_v43, 16  ;;  %v16605_v54 = vadd.f32 %v21545_v59, %v21542_v55  ;;  %v9649_v60 = vor.u32 %v9648_v45, %v9645_v44 }
 0x466   : > { %v8699_v61 = vmax.f32 %v8667_v35, 0.0  ;;  %v8526_v48 = vadd.f32 %v8448_v17, %v23000_v63  ;;  %v9658_v47 = vrot.slane %v9656_v13, 4  ;;  %v15171_v49 = vrot.slane %v9920_v1, 9 }
 0x467   : > { %v9019_v46 = vor.u32 %v9017_v41, %v9016_v15  ;;  %v9021_v50 = vrot.slane %v9016_v15, 4  ;;  %v9664_v38 = vrot.slane %v9662_v62, 5  ;;  %v8292_v37 = vadd.f32 %v16605_v54, %v23001_v36  ;;  %v9409_v15 = vld [vmem:[#allocation3 + $0x7c] sm:$0xf] }
 0x468   : > { %v15570_v30 = vpack.c.bf16 %v8699_v61, %v8699_v61  ;;  %v8629_v29 = vmul.f32 %v21467_v11, %v8526_v48  ;;  %v9650_v18 = vrot.slane %v9649_v60, 4  ;;  %v9659_v20 = vor.u32 %v9658_v47, %v9654_v58 }
 0x469   : > { %v9020_v55 = vsel %vm18093_vm3, %v9012_v56, %v9019_v46  ;;  %v9211_v59 = vsel %vm18391_vm15, %v9021_v50, %v9210_v12  ;;  %v8453_v34 = vadd.f32 %v23002_v9, %v8292_v37  ;;  %v10058_v56 = vrot.slane %v9921_v22, 5  ;;  %v9410_v12 = vld [vmem:[#allocation3 + $0x80] sm:$0x1]  ;;  %v23005_v46 = vld [vmem:[#allocation63_spill] sm:$0xff] }
 0x46a   : > { %9209 = vst [vmem:[#allocation3 + $0xa0] sm:$0xf] %v9020_v55  ;;  %9212 = vst [vmem:[#allocation3 + $0xa4] sm:$0x1] %v9211_v59  ;;  %v9023_v39 = vshrl.u32 %v15570_v30, 16  ;;  %v9026_v31 = vshll.u32 %v15570_v30, 16  ;;  %v8668_v14 = vadd.f32 %v21455_v2, %v8629_v29  ;;  %v9655_v33 = vsel %vm18841_vm2, %v9650_v18, %v9654_v58 }
 0x46b   : > { %v9660_v4 = vrot.slane %v9659_v20, 4  ;;  %v8527_v52 = vadd.f32 %v8453_v34, %v23003_v26  ;;  %v10061_v28 = vrot.slane %v9922_v24, 5  ;;  %v16608_v44 = vadd.f32 %v21562_v5, %v21555_v0  ;;  %v17728_v58 = vld [vmem:[#allocation3 + $0x6c] sm:$0xff]   ;;  %v23006_v24 = vld [vmem:[#allocation76_spill] sm:$0xff] }
 0x46c   : > { %v9025_v3 = vrot.slane %v9023_v39, 7  ;;  %v8700_v43 = vmax.f32 %v8668_v14, 0.0  ;;  %v9667_v21 = vshrl.u32 %v9408_v51, 16  ;;  %v10059_v40 = vsel %vm18346_vm11, %v15171_v49, %v10058_v56  ;;  %v23004_v5 = vld [vmem:[#allocation13_spill] sm:$0xff]  ;;  %v9217_v20 = vld [vmem:[#allocation3 + $0xb0] sm:$0x1] }
 0x46d   : > { %v9665_v25 = vsel %vm18841_vm2, %v9660_v4, %v9664_v38  ;;  %v8630_v41 = vmul.f32 %v21467_v11, %v8527_v52  ;;  %v10060_v35 = vrot.slane %v10058_v56, 4  ;;  %v8295_v54 = vadd.f32 %v16608_v44, %v23004_v5  ;;  %v9923_v34 = vld [vmem:[#allocation3 + $0x84] sm:$0xe]  ;;  %v9924_v52 = vld [vmem:[#allocation3 + $0x88] sm:$0xf] }
 0x46e   : > { %v9028_v53 = vor.u32 %v9026_v31, %v9025_v3  ;;  %v9029_v17 = vrot.slane %v9025_v3, 4  ;;  %v15571_v45 = vpack.c.bf16 %v8700_v43, %v8700_v43  ;;  %v15154_v13 = vcombine.low %v9655_v33, %v9665_v25  ;;  %v9925_v56 = vld [vmem:[#allocation3 + $0x8c] sm:$0x1]  ;;  %v23007_v3 = vld [vmem:[#allocation14_spill] sm:$0xff]  ;;  %v23008_v5 = vld [vmem:[#allocation48_spill] sm:$0xff] }
 0x46f   : > { %v8669_v62 = vadd.f32 %v21455_v2, %v8630_v41  ;;  %v10062_v0 = vsel %vm18346_vm11, %v10060_v35, %v10061_v28  ;;  %v9669_v61 = vrot.slane %v9667_v21, 4  ;;  %v8456_v50 = vadd.f32 %v23005_v46, %v8295_v54  ;;  %v9220_v25 = vld [vmem:[#allocation3 + $0xb4] sm:$0xf]  ;;  %v23010_v46 = vld [vmem:[#allocation64_spill] sm:$0xff] }
 0x470   : > { %v9214_v63 = vsel %vm18381_vm14, %v9028_v53, %v9213_v6  ;;  %v9031_v48 = vshrl.u32 %v15571_v45, 16  ;;  %v9034_v60 = vshll.u32 %v15571_v45, 16  ;;  %10522 = vmatprep.mubr.bf16.mxu1 %v15154_v13  ;;  %v15187_v47 = vcombine.low %v10059_v40, %v10062_v0 }
 0x471   : > { %9215 = vst [vmem:[#allocation3 + $0xa8] sm:$0xf] %v9214_v63  ;;  %10523 = vmatmul.mubr.bf16.gmra.mrb[100].mxu1 %v17728_v58  ;;  %v8701_v1 = vmax.f32 %v8669_v62, 0.0  ;;  %v9670_v38 = vshll.u32 %v9408_v51, 16  ;;  %v9676_v36 = vshll.u32 %v9409_v15, 16  ;;  %v9680_v30 = vshrl.u32 %v9409_v15, 16 }
 0x472   : > { %v9033_v37 = vrot.slane %v9031_v48, 7  ;;  %17171 = vmatprep.mubr.bf16.mxu0 %v15187_v47  ;;  %v9686_v29 = vshll.u32 %v9410_v12, 16  ;;  %v16611_v18 = vadd.f32 %v21577_v57, %v21573_v27  ;;  %v8528_v55 = vadd.f32 %v8456_v50, %v23006_v24  ;;  %v9411_v58 = vld [vmem:[#allocation3 + $0x84] sm:$0xf]  ;;  %v9413_v47 = vld [vmem:[#allocation3 + $0x8c] sm:$0x1] }
 0x473   : > { %v15572_v22 = vpack.c.bf16 %v8701_v1, %v8701_v1  ;;  %v9672_v59 = vrot.slane %v9670_v38, 5  ;;  %v9678_v9 = vrot.slane %v9676_v36, 5  ;;  %v9682_v31 = vrot.slane %v9680_v30, 4  ;;  %v23009_v63 = vld [vmem:[#allocation20_spill] sm:$0xff]  ;;  %v23011_v50 = vld [vmem:[#allocation23_spill] sm:$0xff] }
 0x474   : > { %v9036_v49 = vor.u32 %v9034_v60, %v9033_v37  ;;  %v9038_v39 = vrot.slane %v9033_v37, 4  ;;  %v9688_v14 = vrot.slane %v9686_v29, 5  ;;  %v8631_v4 = vmul.f32 %v21467_v11, %v8528_v55  ;;  %v9412_v60 = vld [vmem:[#allocation3 + $0x88] sm:$0xf] }
 0x475   : > { %v9040_v51 = vshrl.u32 %v15572_v22, 16  ;;  %v9043_v33 = vshll.u32 %v15572_v22, 16  ;;  %v9673_v26 = vor.u32 %v9672_v59, %v9669_v61  ;;  %v9683_v28 = vor.u32 %v9682_v31, %v9678_v9  ;;  %v17730_v61 = vld [vmem:[#allocation3 + $0x78] sm:$0xff]   ;;  %v9926_v22 = vld [vmem:[#allocation3 + $0x90] sm:$0xe] }
 0x476   : > { %v9037_v27 = vsel %vm18093_vm3, %v9029_v17, %v9036_v49  ;;  %v9218_v57 = vsel %vm18391_vm15, %v9038_v39, %v9217_v20  ;;  %v8300_v43 = vadd.f32 %v16611_v18, %v23007_v3  ;;  %v8670_v21 = vadd.f32 %v21455_v2, %v8631_v4 }
 0x477   : > { %9216 = vst [vmem:[#allocation3 + $0xac] sm:$0xf] %v9037_v27  ;;  %9219 = vst [vmem:[#allocation3 + $0xb0] sm:$0x1] %v9218_v57  ;;  %v21705_v44 = vrot.slane %v9040_v51, 7  ;;  %v9674_v6 = vrot.slane %v9673_v26, 4  ;;  %v16614_v53 = vadd.f32 %v21583_v8, %v21581_v10  ;;  %v16723_v48 = vadd.f32 %v21330_v16, %v23009_v63 }
 0x478   : > { %v15172_v11 = vrot.slane %v9923_v34, 9  ;;  %v9684_v41 = vrot.slane %v9683_v28, 4  ;;  %v10065_v40 = vrot.slane %v9924_v52, 5  ;;  %v10068_v35 = vrot.slane %v9925_v56, 5  ;;  %v23012_v34 = vld [vmem:[#allocation22_spill] sm:$0xff] }
 0x479   : > { %v9045_v17 = vor.u32 %v9043_v33, %v21705_v44  ;;  %v9046_v45 = vrot.slane %v21705_v44, 4  ;;  %v8702_v13 = vmax.f32 %v8670_v21, 0.0  ;;  %v9679_v15 = vsel %vm18841_vm2, %v9674_v6, %v9678_v9  ;;  %v9224_v51 = vld [vmem:[#allocation3 + $0xbc] sm:$0x1]  ;;  %v23013_v33 = vld [vmem:[#allocation77_spill] sm:$0xff] }
 0x47a   : > { %v9689_v2 = vsel %vm18841_vm2, %v9684_v41, %v9688_v14  ;;  %v10066_v62 = vsel %vm18346_vm11, %v15172_v11, %v10065_v40  ;;  %v10067_v0 = vrot.slane %v10065_v40, 4  ;;  %v8303_v54 = vadd.f32 %v16614_v53, %v23008_v5  ;;  %v9927_v14 = vld [vmem:[#allocation3 + $0x94] sm:$0xf]  ;;  %v17819_v28 = vld [vmem:[%s22584_s5] ss:$0 sm:$0xff] }
 0x47b   : > { %v9221_v10 = vsel %vm18381_vm14, %v9045_v17, %v9220_v25  ;;  %v15573_v8 = vpack.c.bf16 %v8702_v13, %v8702_v13  ;;  %v15155_v12 = vcombine.low %v9679_v15, %v9689_v2  ;;  %v16726_v38 = vadd.f32 %v23011_v50, %v23010_v46  ;;  %v9414_v44 = vld [vmem:[#allocation3 + $0x90] sm:$0xf]  ;;  %v9928_v25 = vld [vmem:[#allocation3 + $0x98] sm:$0x1]  ;;  %v9415_v15 = vld [vmem:[#allocation3 + $0x94] sm:$0xf] }
 0x47c   : > { %9222 = vst [vmem:[#allocation3 + $0xb4] sm:$0xf] %v9221_v10  ;;  %v10069_v1 = vsel %vm18346_vm11, %v10067_v0, %v10068_v35  ;;  %v9691_v36 = vshrl.u32 %v9411_v58, 16  ;;  %v9694_v37 = vshll.u32 %v9411_v58, 16  ;;  %v8461_v20 = vadd.f32 %v16723_v48, %v8300_v43  ;;  %v17820_v53 = vld [vmem:[%s22585_s6] ss:$0 sm:$0xff] }
 0x47d   : > { %v9048_v30 = vshrl.u32 %v15573_v8, 16  ;;  %v9051_v29 = vshll.u32 %v15573_v8, 16  ;;  %10530 = vmatprep.mubr.bf16.mxu1 %v15155_v12  ;;  %v15188_v18 = vcombine.low %v10066_v62, %v10069_v1  ;;  %v8464_v24 = vadd.f32 %v16726_v38, %v8303_v54  ;;  %v9416_v12 = vld [vmem:[#allocation3 + $0x98] sm:$0x1]  ;;  %v9929_v50 = vld [vmem:[#allocation3 + $0x9c] sm:$0xe] }
 0x47e   : > { %10531 = vmatmul.mubr.bf16.gmra.mrb[104].mxu1 %v17730_v61  ;;  %v9693_v16 = vrot.slane %v9691_v36, 4  ;;  %v9696_v55 = vrot.slane %v9694_v37, 5  ;;  %v9700_v59 = vshll.u32 %v9412_v60, 16  ;;  %v8529_v49 = vadd.f32 %v8461_v20, %v23012_v34  ;;  %v17732_v37 = vld [vmem:[#allocation3 + $0x84] sm:$0xff]  }
 0x47f   : > { %v9050_v9 = vrot.slane %v9048_v30, 7  ;;  %17172 = vmatmul.mubr.bf16.gmra.mrb[52].mxu0 %v15188_v18  ;;  %v9704_v39 = vshrl.u32 %v9412_v60, 16  ;;  %v9710_v31 = vshll.u32 %v9413_v47, 16  ;;  %v8530_v4 = vadd.f32 %v8464_v24, %v23013_v33  ;;  %v9930_v18 = vld [vmem:[#allocation3 + $0xa0] sm:$0xf] }
 0x480   : > { %v9697_v26 = vor.u32 %v9696_v55, %v9693_v16  ;;  %v9702_v52 = vrot.slane %v9700_v59, 5  ;;  %v15173_v56 = vrot.slane %v9926_v22, 9  ;;  %v8632_v3 = vmul.f32 %v17819_v28, %v8529_v49  ;;  %v9931_v55 = vld [vmem:[#allocation3 + $0xa4] sm:$0x1]  ;;  %v9227_v59 = vld [vmem:[#allocation3 + $0xc0] sm:$0xf] }
 0x481   : > { %v9053_v27 = vor.u32 %v9051_v29, %v9050_v9  ;;  %v9055_v57 = vrot.slane %v9050_v9, 4  ;;  %v9706_v43 = vrot.slane %v9704_v39, 4  ;;  %v8633_v21 = vmul.f32 %v17819_v28, %v8530_v4 }
 0x482   : > { %v9698_v6 = vrot.slane %v9697_v26, 4  ;;  %v9712_v11 = vrot.slane %v9710_v31, 5  ;;  %v10072_v41 = vrot.slane %v9927_v14, 5  ;;  %v8671_v17 = vadd.f32 %v17820_v53, %v8632_v3  ;;  %v9231_v14 = vld [vmem:[#allocation3 + $0xc8] sm:$0x1] }
 0x483   : > { %v9054_v40 = vsel %vm18093_vm3, %v9046_v45, %v9053_v27  ;;  %v9225_v35 = vsel %vm18391_vm15, %v9055_v57, %v9224_v51  ;;  %v9707_v13 = vor.u32 %v9706_v43, %v9702_v52  ;;  %v8672_v58 = vadd.f32 %v17820_v53, %v8633_v21  ;;  %v9417_v57 = vld [vmem:[#allocation3 + $0x9c] sm:$0xf]  ;;  %v9418_v21 = vld [vmem:[#allocation3 + $0xa0] sm:$0xf] }
 0x484   : > { %9223 = vst [vmem:[#allocation3 + $0xb8] sm:$0xf] %v9054_v40  ;;  %9226 = vst [vmem:[#allocation3 + $0xbc] sm:$0x1] %v9225_v35  ;;  %v9703_v2 = vsel %vm18841_vm2, %v9698_v6, %v9702_v52  ;;  %v10073_v62 = vsel %vm18346_vm11, %v15173_v56, %v10072_v41  ;;  %v10074_v45 = vrot.slane %v10072_v41, 4  ;;  %v8703_v0 = vmax.f32 %v8671_v17, 0.0 }
 0x485   : > { %v9708_v5 = vrot.slane %v9707_v13, 4  ;;  %v10075_v54 = vrot.slane %v9928_v25, 5  ;;  %v9715_v10 = vshrl.u32 %v9414_v44, 16  ;;  %v8704_v8 = vmax.f32 %v8672_v58, 0.0  ;;  %v9419_v6 = vld [vmem:[#allocation3 + $0xa4] sm:$0x1] }
 0x486   : > { %v9718_v61 = vshll.u32 %v9414_v44, 16  ;;  %v9724_v63 = vshll.u32 %v9415_v15, 16  ;;  %v9728_v48 = vshrl.u32 %v9415_v15, 16  ;;  %v15574_v60 = vpack.c.bf16 %v8703_v0, %v8703_v0  ;;  %v9932_v35 = vld [vmem:[#allocation3 + $0xa8] sm:$0xe] }
 0x487   : > { %v9713_v47 = vsel %vm18841_vm2, %v9708_v5, %v9712_v11  ;;  %v10076_v1 = vsel %vm18346_vm11, %v10074_v45, %v10075_v54  ;;  %v9717_v46 = vrot.slane %v9715_v10, 4  ;;  %v15575_v38 = vpack.c.bf16 %v8704_v8, %v8704_v8  ;;  %v9933_v58 = vld [vmem:[#allocation3 + $0xac] sm:$0xf]  ;;  %v17734_v5 = vld [vmem:[#allocation3 + $0x90] sm:$0xff]   ;;  %v21761_v8 = vpop.f32.mrb[64].mxu1 }
 0x488   : > { %v15156_v36 = vcombine.low %v9703_v2, %v9713_v47  ;;  %v15189_v30 = vcombine.low %v10073_v62, %v10076_v1  ;;  %v9720_v29 = vrot.slane %v9718_v61, 5  ;;  %v9057_v20 = vshrl.u32 %v15574_v60, 16  ;;  %v9420_v2 = vld [vmem:[#allocation3 + $0xa8] sm:$0xf]  ;;  %v9934_v54 = vld [vmem:[#allocation3 + $0xb0] sm:$0x1] }
 0x489   : > { %v9060_v22 = vshll.u32 %v15574_v60, 16  ;;  %v9726_v24 = vrot.slane %v9724_v63, 5  ;;  %v9730_v16 = vrot.slane %v9728_v48, 4  ;;  %v9065_v9 = vshrl.u32 %v15575_v38, 16  ;;  %v9421_v10 = vld [vmem:[#allocation3 + $0xac] sm:$0xf] }
 0x48a   : > { %v9068_v34 = vshll.u32 %v15575_v38, 16  ;;  %10538 = vmatprep.mubr.bf16.mxu1 %v15156_v36  ;;  %17175 = vmatprep.mubr.bf16.mxu0 %v15189_v30  ;;  %v9721_v49 = vor.u32 %v9720_v29, %v9717_v46  ;;  %v9734_v39 = vshll.u32 %v9416_v12, 16  ;;  %v9059_v31 = vrot.slane %v9057_v20, 7  ;;  %v21763_v23 = vpop.f32.mrb[65].mxu1  ;;  %v9422_v36 = vld [vmem:[#allocation3 + $0xb0] sm:$0x1] }
 0x48b   : > { %10539 = vmatmul.mubr.bf16.gmra.mrb[108].mxu1 %v17732_v37  ;;  %v9731_v51 = vor.u32 %v9730_v16, %v9726_v24  ;;  %v15174_v33 = vrot.slane %v9929_v50, 9  ;;  %v10079_v4 = vrot.slane %v9930_v18, 5  ;;  %v9067_v26 = vrot.slane %v9065_v9, 7  ;;  %v21765_v30 = vpop.f32.mrb[66].mxu1 }
 0x48c   : > { %v9722_v52 = vrot.slane %v9721_v49, 4  ;;  %v9736_v56 = vrot.slane %v9734_v39, 5  ;;  %v10082_v27 = vrot.slane %v9931_v55, 5  ;;  %v9062_v28 = vor.u32 %v9060_v22, %v9059_v31  ;;  %v21769_v16 = vpop.f32.mrb[67].mxu1  ;;  %v9935_v49 = vld [vmem:[#allocation3 + $0xb4] sm:$0xe] }
 0x48d   : > { %v9063_v3 = vrot.slane %v9059_v31, 4  ;;  %v9732_v43 = vrot.slane %v9731_v51, 4  ;;  %v10080_v44 = vsel %vm18346_vm11, %v15174_v33, %v10079_v4  ;;  %v9070_v11 = vor.u32 %v9068_v34, %v9067_v26  ;;  %v9936_v33 = vld [vmem:[#allocation3 + $0xb8] sm:$0xf] }
 0x48e   : > { %v9072_v25 = vrot.slane %v9067_v26, 4  ;;  %v9727_v41 = vsel %vm18841_vm2, %v9722_v52, %v9726_v24  ;;  %v10081_v40 = vrot.slane %v10079_v4, 4  ;;  %v9228_v53 = vsel %vm18381_vm14, %v9062_v28, %v9227_v59  ;;  %v11428_v24 = vld [vmem:[#allocation3 + $0xc] sm:$0xe]  ;;  %v9937_v4 = vld [vmem:[#allocation3 + $0xbc] sm:$0x1] }
 0x48f   : > { %v9737_v17 = vsel %vm18841_vm2, %v9732_v43, %v9736_v56  ;;  %v9739_v13 = vshrl.u32 %v9417_v57, 16  ;;  %v9742_v15 = vshll.u32 %v9417_v57, 16  ;;  %9229 = vst [vmem:[#allocation3 + $0xc0] sm:$0xf] %v9228_v53  ;;  %v9071_v62 = vsel %vm18093_vm3, %v9063_v3, %v9070_v11  ;;  %v11429_v57 = vld [vmem:[#allocation3 + $0x10] sm:$0xf] }
 0x490   : > { %v9232_v45 = vsel %vm18391_vm15, %v9072_v25, %v9231_v14  ;;  %v15157_v0 = vcombine.low %v9727_v41, %v9737_v17  ;;  %v10083_v19 = vsel %vm18346_vm11, %v10081_v40, %v10082_v27  ;;  %9230 = vst [vmem:[#allocation3 + $0xc4] sm:$0xf] %v9071_v62  ;;  %v9748_v48 = vshll.u32 %v9418_v21, 16  ;;  %v11430_v28 = vld [vmem:[#allocation3 + $0x14] sm:$0x1] }
 0x491   : > { %9233 = vst [vmem:[#allocation3 + $0xc8] sm:$0x1] %v9232_v45  ;;  %v15190_v12 = vcombine.low %v10080_v44, %v10083_v19  ;;  %v9741_v61 = vrot.slane %v9739_v13, 4  ;;  %v9744_v63 = vrot.slane %v9742_v15, 5  ;;  %v9752_v32 = vshrl.u32 %v9418_v21, 16 }
 0x492   : > { %10546 = vmatprep.mubr.bf16.mxu1 %v15157_v0  ;;  %v9758_v60 = vshll.u32 %v9419_v6, 16  ;;  %v15175_v47 = vrot.slane %v9932_v35, 9  ;;  %v10086_v1 = vrot.slane %v9933_v58, 5  ;;  %v9750_v50 = vrot.slane %v9748_v48, 5  ;;  %v9423_v40 = vld [vmem:[#allocation3 + $0xb4] sm:$0xf] }
 0x493   : > { %10547 = vmatmul.mubr.bf16.gmra.mrb[112].mxu1 %v17734_v5  ;;  %17176 = vmatmul.mubr.bf16.gmra.mrb[56].mxu0 %v15190_v12  ;;  %v9745_v46 = vor.u32 %v9744_v63, %v9741_v61  ;;  %v10089_v38 = vrot.slane %v9934_v54, 5  ;;  %v9763_v37 = vshrl.u32 %v9420_v2, 16  ;;  %v9754_v29 = vrot.slane %v9752_v32, 4  ;;  %v9424_v15 = vld [vmem:[#allocation3 + $0xb8] sm:$0xf]  ;;  %v17740_v0 = vld [vmem:[#allocation3 + $0x9c] sm:$0xff]  }
 0x494   : > { %v9760_v18 = vrot.slane %v9758_v60, 5  ;;  %v10087_v20 = vsel %vm18346_vm11, %v15175_v47, %v10086_v1  ;;  %v10088_v22 = vrot.slane %v10086_v1, 4  ;;  %v9766_v9 = vshll.u32 %v9420_v2, 16  ;;  %v9425_v63 = vld [vmem:[#allocation3 + $0xbc] sm:$0x1] }
 0x495   : > { %v9746_v55 = vrot.slane %v9745_v46, 4  ;;  %v9765_v59 = vrot.slane %v9763_v37, 4  ;;  %v9772_v34 = vshll.u32 %v9421_v10, 16  ;;  %v9755_v39 = vor.u32 %v9754_v29, %v9750_v50  ;;  %v10916_v60 = vld [vmem:[#allocation3 + $0xc] sm:$0xf] }
 0x496   : > { %v10090_v31 = vsel %vm18346_vm11, %v10088_v22, %v10089_v38  ;;  %v9776_v14 = vshrl.u32 %v9421_v10, 16  ;;  %v9782_v51 = vshll.u32 %v9422_v36, 16  ;;  %v9768_v56 = vrot.slane %v9766_v9, 5  ;;  %v10917_v38 = vld [vmem:[#allocation3 + $0x10] sm:$0xf] }
 0x497   : > { %v9751_v26 = vsel %vm18841_vm2, %v9746_v55, %v9750_v50  ;;  %v15191_v52 = vcombine.low %v10087_v20, %v10090_v31  ;;  %v9774_v27 = vrot.slane %v9772_v34, 5  ;;  %v9756_v3 = vrot.slane %v9755_v39, 4  ;;  %v10918_v36 = vld [vmem:[#allocation3 + $0x14] sm:$0x1]  ;;  %v11431_v22 = vld [vmem:[#allocation3 + $0x18] sm:$0xe] }
 0x498   : > { %v9778_v43 = vrot.slane %v9776_v14, 4  ;;  %v9784_v44 = vrot.slane %v9782_v51, 5  ;;  %v15176_v21 = vrot.slane %v9935_v49, 9  ;;  %v9769_v6 = vor.u32 %v9768_v56, %v9765_v59  ;;  %v11433_v49 = vld [vmem:[#allocation3 + $0x20] sm:$0x1] }
 0x499   : > { %17179 = vmatprep.mubr.bf16.mxu0 %v15191_v52  ;;  %v10093_v11 = vrot.slane %v9936_v33, 5  ;;  %v10096_v25 = vrot.slane %v9937_v4, 5  ;;  %v15249_v41 = vrot.slane %v11428_v24, 9  ;;  %v9761_v35 = vsel %vm18841_vm2, %v9756_v3, %v9760_v18  ;;  %v11432_v24 = vld [vmem:[#allocation3 + $0x1c] sm:$0xf] }
 0x49a   : > { %v9779_v53 = vor.u32 %v9778_v43, %v9774_v27  ;;  %v11526_v17 = vrot.slane %v11429_v57, 5  ;;  %v11529_v13 = vrot.slane %v11430_v28, 5  ;;  %v15158_v58 = vcombine.low %v9751_v26, %v9761_v35  ;;  %v11434_v33 = vld [vmem:[#allocation3 + $0x24] sm:$0xe]  ;;  %v11436_v57 = vld [vmem:[#allocation3 + $0x2c] sm:$0x1] }
 0x49b   : > { %v9770_v2 = vrot.slane %v9769_v6, 4  ;;  %v10094_v62 = vsel %vm18346_vm11, %v15176_v21, %v10093_v11  ;;  %v10095_v45 = vrot.slane %v10093_v11, 4  ;;  %v9787_v10 = vshrl.u32 %v9423_v40, 16  ;;  %v10919_v21 = vld [vmem:[#allocation3 + $0x18] sm:$0xf]  ;;  %v17746_v6 = vld [vmem:[#allocation3 + $0xa8] sm:$0xff]  }
 0x49c   : > { %v9780_v5 = vrot.slane %v9779_v53, 4  ;;  %v11527_v19 = vsel %vm18346_vm11, %v15249_v41, %v11526_v17  ;;  %v11528_v54 = vrot.slane %v11526_v17, 4  ;;  %10554 = vmatprep.mubr.bf16.mxu1 %v15158_v58  ;;  %v9790_v48 = vshll.u32 %v9423_v40, 16 }
 0x49d   : > { %v9775_v12 = vsel %vm18841_vm2, %v9770_v2, %v9774_v27  ;;  %v10097_v61 = vsel %vm18346_vm11, %v10095_v45, %v10096_v25  ;;  %v9796_v32 = vshll.u32 %v9424_v15, 16  ;;  %10555 = vmatmul.mubr.bf16.gmra.mrb[116].mxu1 %v17740_v0  ;;  %v9789_v50 = vrot.slane %v9787_v10, 4  ;;  %v11435_v27 = vld [vmem:[#allocation3 + $0x28] sm:$0xf]  ;;  %v17756_v45 = vld [vmem:[%s22586_s7 + $0x180] sm:$0xff]  }
 0x49e   : > { %v9785_v47 = vsel %vm18841_vm2, %v9780_v5, %v9784_v44  ;;  %v15192_v1 = vcombine.low %v10094_v62, %v10097_v61  ;;  %v11530_v46 = vsel %vm18346_vm11, %v11528_v54, %v11529_v13  ;;  %v9792_v18 = vrot.slane %v9790_v48, 5  ;;  %v10920_v0 = vld [vmem:[#allocation3 + $0x1c] sm:$0xf]  ;;  %v10921_v5 = vld [vmem:[#allocation3 + $0x20] sm:$0x1] }
 0x49f   : > { %v15159_v37 = vcombine.low %v9775_v12, %v9785_v47  ;;  %v15265_v29 = vcombine.low %v11527_v19, %v11530_v46  ;;  %v9798_v20 = vrot.slane %v9796_v32, 5  ;;  %v9800_v55 = vshrl.u32 %v9424_v15, 16  ;;  %v11437_v19 = vld [vmem:[#allocation3 + $0x30] sm:$0xe]  ;;  %v17760_v47 = vld [vmem:[%s22586_s7 + $0x1c8] sm:$0xff]  }
 0x4a0   : > { %17180 = vmatmul.mubr.bf16.gmra.mrb[60].mxu0 %v15192_v1  ;;  %v9806_v59 = vshll.u32 %v9425_v63, 16  ;;  %v10965_v9 = vshrl.u32 %v10916_v60, 16  ;;  %v10968_v34 = vshll.u32 %v10916_v60, 16  ;;  %v9793_v39 = vor.u32 %v9792_v18, %v9789_v50  ;;  %v11438_v1 = vld [vmem:[#allocation3 + $0x34] sm:$0xf] }
 0x4a1   : > { %10562 = vmatprep.mubr.bf16.mxu1 %v15159_v37  ;;  %17199 = vmatprep.mubr.bf16.mxu0 %v15265_v29  ;;  %v10974_v31 = vshll.u32 %v10917_v38, 16  ;;  %v10978_v14 = vshrl.u32 %v10917_v38, 16  ;;  %v10984_v51 = vshll.u32 %v10918_v36, 16  ;;  %v9802_v4 = vrot.slane %v9800_v55, 4  ;;  %v11439_v46 = vld [vmem:[#allocation3 + $0x38] sm:$0x1] }
 0x4a2   : > { %v9808_v26 = vrot.slane %v9806_v59, 5  ;;  %v10967_v52 = vrot.slane %v10965_v9, 4  ;;  %v10970_v56 = vrot.slane %v10968_v34, 5  ;;  %v9794_v28 = vrot.slane %v9793_v39, 4  ;;  %v11440_v29 = vld [vmem:[#allocation3 + $0x3c] sm:$0xe] }
 0x4a3   : > { %v10976_v3 = vrot.slane %v10974_v31, 5  ;;  %v10980_v43 = vrot.slane %v10978_v14, 4  ;;  %v10986_v44 = vrot.slane %v10984_v51, 5  ;;  %v9803_v11 = vor.u32 %v9802_v4, %v9798_v20  ;;  %v11441_v55 = vld [vmem:[#allocation3 + $0x40] sm:$0xf]  ;;  %v17752_v51 = vld [vmem:[#allocation3 + $0xb4] sm:$0xff]  }
 0x4a4   : > { %v10971_v25 = vor.u32 %v10970_v56, %v10967_v52  ;;  %v15250_v41 = vrot.slane %v11431_v22, 9  ;;  %v11533_v40 = vrot.slane %v11432_v24, 5  ;;  %v9799_v35 = vsel %vm18841_vm2, %v9794_v28, %v9798_v20  ;;  %v11442_v59 = vld [vmem:[#allocation3 + $0x44] sm:$0x1]  ;;  %v10923_v14 = vld [vmem:[#allocation3 + $0x28] sm:$0xf] }
 0x4a5   : > { %v10981_v53 = vor.u32 %v10980_v43, %v10976_v3  ;;  %v11536_v17 = vrot.slane %v11433_v49, 5  ;;  %v15251_v13 = vrot.slane %v11434_v33, 9  ;;  %10563 = vmatmul.mubr.bf16.gmra.mrb[120].mxu1 %v17746_v6  ;;  %v9804_v15 = vrot.slane %v9803_v11, 4  ;;  %v10922_v9 = vld [vmem:[#allocation3 + $0x24] sm:$0xf]  ;;  %v17761_v56 = vld [vmem:[%s22586_s7 + $0x188] sm:$0xff]  }
 0x4a6   : > { %v10972_v58 = vrot.slane %v10971_v25, 4  ;;  %v11534_v2 = vsel %vm18346_vm11, %v15250_v41, %v11533_v40  ;;  %v11535_v62 = vrot.slane %v11533_v40, 4  ;;  %v11540_v10 = vrot.slane %v11435_v27, 5  ;;  %v17763_v43 = vld [vmem:[%s22586_s7 + $0x1d0] sm:$0xff]   ;;  %v10924_v25 = vld [vmem:[#allocation3 + $0x2c] sm:$0x1] }
 0x4a7   : > { %v10982_v54 = vrot.slane %v10981_v53, 4  ;;  %v11543_v12 = vrot.slane %v11436_v57, 5  ;;  %v10989_v61 = vshrl.u32 %v10919_v21, 16  ;;  %v9809_v63 = vsel %vm18841_vm2, %v9804_v15, %v9808_v26 }
 0x4a8   : > { %v10977_v48 = vsel %vm18841_vm2, %v10972_v58, %v10976_v3  ;;  %v11537_v32 = vsel %vm18346_vm11, %v11535_v62, %v11536_v17  ;;  %v10992_v60 = vshll.u32 %v10919_v21, 16  ;;  %v15160_v50 = vcombine.low %v9799_v35, %v9809_v63  ;;  %v11443_v17 = vld [vmem:[#allocation3 + $0x48] sm:$0xe]  ;;  %v11444_v62 = vld [vmem:[#allocation3 + $0x4c] sm:$0xf] }
 0x4a9   : > { %v10987_v38 = vsel %vm18841_vm2, %v10982_v54, %v10986_v44  ;;  %v15266_v36 = vcombine.low %v11534_v2, %v11537_v32  ;;  %v11541_v37 = vsel %vm18346_vm11, %v15251_v13, %v11540_v10  ;;  %v11542_v20 = vrot.slane %v11540_v10, 4  ;;  %v11447_v63 = vld [vmem:[#allocation3 + $0x58] sm:$0xf]  ;;  %v17759_v32 = vld [vmem:[#allocation3 + $0xc] sm:$0xff]  }
 0x4aa   : > { %v15233_v18 = vcombine.low %v10977_v48, %v10987_v38  ;;  %v10991_v22 = vrot.slane %v10989_v61, 4  ;;  %v10994_v24 = vrot.slane %v10992_v60, 5  ;;  %10570 = vmatprep.mubr.bf16.mxu1 %v15160_v50  ;;  %v10998_v34 = vshll.u32 %v10920_v0, 16  ;;  %v11448_v48 = vld [vmem:[#allocation3 + $0x5c] sm:$0x1] }
 0x4ab   : > { %17200 = vmatmul.mubr.bf16.vlgmr.msra.gmra.mrb[32].mxu0 %v15266_v36  ;;  %v11002_v49 = vshrl.u32 %v10920_v0, 16  ;;  %v11008_v39 = vshll.u32 %v10921_v5, 16  ;;  %v15252_v31 = vrot.slane %v11437_v19, 9  ;;  %v11544_v33 = vsel %vm18346_vm11, %v11542_v20, %v11543_v12  ;;  %v17764_v0 = vld [vmem:[%s22586_s7 + $0x190] sm:$0xff]   ;;  %v11446_v5 = vld [vmem:[#allocation3 + $0x54] sm:$0xe] }
 0x4ac   : > { %17000 = vmatpush3.bf16.msra.mxu0 %v17756_v45  ;;  %v10995_v4 = vor.u32 %v10994_v24, %v10991_v22  ;;  %v11547_v26 = vrot.slane %v11438_v1, 5  ;;  %v11550_v52 = vrot.slane %v11439_v46, 5  ;;  %v15267_v27 = vcombine.low %v11541_v37, %v11544_v33  ;;  %v11445_v45 = vld [vmem:[#allocation3 + $0x50] sm:$0x1]  ;;  %v17766_v19 = vld [vmem:[%s22586_s7 + $0x1d8] sm:$0xff]  }
 0x4ad   : > { %v11000_v57 = vrot.slane %v10998_v34, 5  ;;  %v11004_v28 = vrot.slane %v11002_v49, 4  ;;  %v11010_v3 = vrot.slane %v11008_v39, 5  ;;  %17001 = vmatprep.subr.bf16.mxu0 %v17760_v47  ;;  %10571 = vmatmul.mubr.bf16.gmra.mrb[124].mxu1 %v17752_v51  ;;  %v15253_v11 = vrot.slane %v11440_v29, 9  ;;  %v10925_v29 = vld [vmem:[#allocation3 + $0x30] sm:$0xf] }
 0x4ae   : > { %v10996_v44 = vrot.slane %v10995_v4, 4  ;;  %v11548_v21 = vsel %vm18346_vm11, %v15252_v31, %v11547_v26  ;;  %v11549_v6 = vrot.slane %v11547_v26, 4  ;;  %11989 = vmatprep.mubr.bf16.mxu1 %v15233_v18  ;;  %17203 = vmatprep.mubr.bf16.mxu0 %v15267_v27  ;;  %v11554_v40 = vrot.slane %v11441_v55, 5  ;;  %v17767_v55 = vld [vmem:[%s22586_s7 + $0x198] sm:$0xff]   ;;  %v17769_v39 = vld [vmem:[%s22586_s7 + $0x1e0] sm:$0xff]  }
 0x4af   : > { %v11005_v41 = vor.u32 %v11004_v28, %v11000_v57  ;;  %v11557_v35 = vrot.slane %v11442_v59, 5  ;;  %v11013_v53 = vshrl.u32 %v10922_v9, 16  ;;  %v11016_v58 = vshll.u32 %v10922_v9, 16  ;;  %v10926_v4 = vld [vmem:[#allocation3 + $0x34] sm:$0xf] }
 0x4b0   : > { %v11001_v13 = vsel %vm18841_vm2, %v10996_v44, %v11000_v57  ;;  %v11551_v15 = vsel %vm18346_vm11, %v11549_v6, %v11550_v52  ;;  %17002 = vmatpush3.bf16.msra.mxu0 %v17761_v56  ;;  %v11022_v2 = vshll.u32 %v10923_v14, 16  ;;  %v11555_v12 = vsel %vm18346_vm11, %v15253_v11, %v11554_v40  ;;  %v10927_v56 = vld [vmem:[#allocation3 + $0x38] sm:$0x1]  ;;  %v11449_v28 = vld [vmem:[#allocation3 + $0x60] sm:$0xe] }
 0x4b1   : > { %v11006_v54 = vrot.slane %v11005_v41, 4  ;;  %v15268_v10 = vcombine.low %v11548_v21, %v11551_v15  ;;  %v11556_v61 = vrot.slane %v11554_v40, 4  ;;  %17003 = vmatprep.subr.bf16.mxu0 %v17763_v43  ;;  %v11015_v60 = vrot.slane %v11013_v53, 4  ;;  %v11451_v11 = vld [vmem:[#allocation3 + $0x68] sm:$0x1] }
 0x4b2   : > { %v11018_v47 = vrot.slane %v11016_v58, 5  ;;  %v11024_v1 = vrot.slane %v11022_v2, 5  ;;  %v11026_v46 = vshrl.u32 %v10923_v14, 16  ;;  %v11032_v36 = vshll.u32 %v10924_v25, 16  ;;  %v11452_v25 = vld [vmem:[#allocation3 + $0x6c] sm:$0xe] }
 0x4b3   : > { %v11011_v50 = vsel %vm18841_vm2, %v11006_v54, %v11010_v3  ;;  %17204 = vmatmul.mubr.bf16.gmra.mrb[36].mxu0 %v15268_v10  ;;  %v11558_v38 = vsel %vm18346_vm11, %v11556_v61, %v11557_v35  ;;  %v15254_v37 = vrot.slane %v11443_v17, 9  ;;  %v11561_v9 = vrot.slane %v11444_v62, 5  ;;  %v11450_v3 = vld [vmem:[#allocation3 + $0x64] sm:$0xf]  ;;  %v11453_v41 = vld [vmem:[#allocation3 + $0x70] sm:$0xf] }
 0x4b4   : > { %v15234_v18 = vcombine.low %v11001_v13, %v11011_v50  ;;  %v15269_v20 = vcombine.low %v11555_v12, %v11558_v38  ;;  %v11019_v22 = vor.u32 %v11018_v47, %v11015_v60  ;;  %v11028_v24 = vrot.slane %v11026_v46, 4  ;;  %17004 = vmatpush3.bf16.msra.mxu0 %v17764_v0  ;;  %v17770_v13 = vld [vmem:[%s22586_s7 + $0x1a0] sm:$0xff]   ;;  %v17772_v0 = vld [vmem:[%s22586_s7 + $0x1e8] sm:$0xff]   ;;  %v10929_v47 = vld [vmem:[#allocation3 + $0x40] sm:$0xf] }
 0x4b5   : > { %v11034_v59 = vrot.slane %v11032_v36, 5  ;;  %v11564_v34 = vrot.slane %v11445_v45, 5  ;;  %v15255_v49 = vrot.slane %v11446_v5, 9  ;;  %17005 = vmatprep.subr.bf16.mxu0 %v17766_v19  ;;  %11990 = vmatmul.mubr.bf16.vlgmr.msra.gmra.mrb[128].mxu1 %v17759_v32  ;;  %v11568_v51 = vrot.slane %v11447_v63, 5  ;;  %v11454_v45 = vld [vmem:[#allocation3 + $0x74] sm:$0x1] }
 0x4b6   : > { %17207 = vmatprep.mubr.bf16.mxu0 %v15269_v20  ;;  %v11020_v31 = vrot.slane %v11019_v22, 4  ;;  %v11029_v14 = vor.u32 %v11028_v24, %v11024_v1  ;;  %v11571_v33 = vrot.slane %v11448_v48, 5  ;;  %11997 = vmatprep.mubr.bf16.mxu1 %v15234_v18  ;;  %v11562_v26 = vsel %vm18346_vm11, %v15254_v37, %v11561_v9  ;;  %v17762_v5 = vld [vmem:[#allocation3 + $0x18] sm:$0xff]   ;;  %v10930_v22 = vld [vmem:[#allocation3 + $0x44] sm:$0x1] }
 0x4b7   : > { %v11563_v52 = vrot.slane %v11561_v9, 4  ;;  %v11037_v27 = vshrl.u32 %v10925_v29, 16  ;;  %v11040_v57 = vshll.u32 %v10925_v29, 16  ;;  %v11569_v21 = vsel %vm18346_vm11, %v15255_v49, %v11568_v51  ;;  %v10928_v61 = vld [vmem:[#allocation3 + $0x3c] sm:$0xf]  ;;  %v17775_v24 = vld [vmem:[%s22586_s7 + $0x1f0] sm:$0xff]  }
 0x4b8   : > { %v11025_v43 = vsel %vm18841_vm2, %v11020_v31, %v11024_v1  ;;  %v11030_v44 = vrot.slane %v11029_v14, 4  ;;  %v11570_v6 = vrot.slane %v11568_v51, 4  ;;  %17006 = vmatpush3.bf16.msra.mxu0 %v17767_v55  ;;  %v11046_v17 = vshll.u32 %v10926_v4, 16  ;;  %v17773_v36 = vld [vmem:[%s22586_s7 + $0x1a8] sm:$0xff]  }
 0x4b9   : > { %v11565_v40 = vsel %vm18346_vm11, %v11563_v52, %v11564_v34  ;;  %v11039_v35 = vrot.slane %v11037_v27, 4  ;;  %v11042_v53 = vrot.slane %v11040_v57, 5  ;;  %17007 = vmatprep.subr.bf16.mxu0 %v17769_v39  ;;  %v11050_v62 = vshrl.u32 %v10926_v4, 16  ;;  %v11455_v49 = vld [vmem:[#allocation3 + $0x78] sm:$0xe] }
 0x4ba   : > { %v11035_v15 = vsel %vm18841_vm2, %v11030_v44, %v11034_v59  ;;  %v15270_v58 = vcombine.low %v11562_v26, %v11565_v40  ;;  %v11572_v2 = vsel %vm18346_vm11, %v11570_v6, %v11571_v33  ;;  %v11048_v12 = vrot.slane %v11046_v17, 5  ;;  %v11456_v39 = vld [vmem:[#allocation3 + $0x7c] sm:$0xf]  ;;  %v11457_v4 = vld [vmem:[#allocation3 + $0x80] sm:$0x1]  ;;  %v17765_v17 = vld [vmem:[#allocation3 + $0x24] sm:$0xff]  }
 0x4bb   : > { %v15235_v19 = vcombine.low %v11025_v43, %v11035_v15  ;;  %v15271_v54 = vcombine.low %v11569_v21, %v11572_v2  ;;  %v11043_v10 = vor.u32 %v11042_v53, %v11039_v35  ;;  %v11052_v63 = vrot.slane %v11050_v62, 4  ;;  %v11458_v57 = vld [vmem:[#allocation3 + $0x84] sm:$0xe]  ;;  %v11459_v6 = vld [vmem:[#allocation3 + $0x88] sm:$0xf] }
 0x4bc   : > { %17208 = vmatmul.mubr.bf16.gmra.mrb[40].mxu0 %v15270_v58  ;;  %v11056_v48 = vshll.u32 %v10927_v56, 16  ;;  %v15256_v32 = vrot.slane %v11449_v28, 9  ;;  %v11575_v60 = vrot.slane %v11450_v3, 5  ;;  %v11578_v46 = vrot.slane %v11451_v11, 5  ;;  %v17776_v28 = vld [vmem:[%s22586_s7 + $0x1b0] sm:$0xff]   ;;  %v17778_v11 = vld [vmem:[%s22586_s7 + $0x1f8] sm:$0xff]  }
 0x4bd   : > { %17211 = vmatprep.mubr.bf16.mxu0 %v15271_v54  ;;  %v11044_v1 = vrot.slane %v11043_v10, 4  ;;  %v15257_v50 = vrot.slane %v11452_v25, 9  ;;  %v11582_v38 = vrot.slane %v11453_v41, 5  ;;  %17008 = vmatpush3.bf16.msra.mxu0 %v17770_v13  ;;  %v11053_v37 = vor.u32 %v11052_v63, %v11048_v12  ;;  %v11460_v53 = vld [vmem:[#allocation3 + $0x8c] sm:$0x1] }
 0x4be   : > { %11998 = vmatmul.mubr.bf16.gmra.mrb[132].mxu1 %v17762_v5  ;;  %v11058_v29 = vrot.slane %v11056_v48, 5  ;;  %v11576_v18 = vsel %vm18346_vm11, %v15256_v32, %v11575_v60  ;;  %v11577_v20 = vrot.slane %v11575_v60, 4  ;;  %17009 = vmatprep.subr.bf16.mxu0 %v17772_v0  ;;  %v11585_v34 = vrot.slane %v11454_v45, 5  ;;  %v10931_v62 = vld [vmem:[#allocation3 + $0x48] sm:$0xf]  ;;  %v21891_v60 = vld [vmem:[%s22586_s7 + $0x200] sm:$0xff]  }
 0x4bf   : > { %12005 = vmatprep.mubr.bf16.mxu1 %v15235_v19  ;;  %v11049_v55 = vsel %vm18841_vm2, %v11044_v1, %v11048_v12  ;;  %v11583_v59 = vsel %vm18346_vm11, %v15257_v50, %v11582_v38  ;;  %v11584_v9 = vrot.slane %v11582_v38, 4  ;;  %v11054_v31 = vrot.slane %v11053_v37, 4  ;;  %v10932_v54 = vld [vmem:[#allocation3 + $0x4c] sm:$0xf]  ;;  %v10933_v32 = vld [vmem:[#allocation3 + $0x50] sm:$0x1] }
 0x4c0   : > { %v11579_v14 = vsel %vm18346_vm11, %v11577_v20, %v11578_v46  ;;  %v11061_v51 = vshrl.u32 %v10928_v61, 16  ;;  %v11064_v33 = vshll.u32 %v10928_v61, 16  ;;  %v11070_v56 = vshll.u32 %v10929_v47, 16  ;;  %v17779_v10 = vld [vmem:[%s22586_s7 + $0x1b8] sm:$0xff]   ;;  %v11461_v38 = vld [vmem:[#allocation3 + $0x90] sm:$0xe] }
 0x4c1   : > { %v15272_v26 = vcombine.low %v11576_v18, %v11579_v14  ;;  %v11586_v52 = vsel %vm18346_vm11, %v11584_v9, %v11585_v34  ;;  %v11074_v27 = vshrl.u32 %v10929_v47, 16  ;;  %17010 = vmatpush3.bf16.msra.mxu0 %v17773_v36  ;;  %v11059_v3 = vsel %vm18841_vm2, %v11054_v31, %v11058_v29  ;;  %v11462_v20 = vld [vmem:[#allocation3 + $0x94] sm:$0xf]  ;;  %v11464_v34 = vld [vmem:[#allocation3 + $0x9c] sm:$0xe] }
 0x4c2   : > { %v15273_v43 = vcombine.low %v11583_v59, %v11586_v52  ;;  %v11063_v44 = vrot.slane %v11061_v51, 4  ;;  %v11066_v21 = vrot.slane %v11064_v33, 5  ;;  %17011 = vmatprep.subr.bf16.mxu0 %v17775_v24  ;;  %v15236_v25 = vcombine.low %v11049_v55, %v11059_v3 }
 0x4c3   : > { %v11072_v41 = vrot.slane %v11070_v56, 5  ;;  %v11076_v40 = vrot.slane %v11074_v27, 4  ;;  %v11080_v35 = vshll.u32 %v10930_v22, 16  ;;  %v15258_v15 = vrot.slane %v11455_v49, 9  ;;  %v11463_v22 = vld [vmem:[#allocation3 + $0x98] sm:$0x1] }
 0x4c4   : > { %17212 = vmatmul.mubr.bf16.gmra.mrb[44].mxu0 %v15272_v26  ;;  %v11067_v13 = vor.u32 %v11066_v21, %v11063_v44  ;;  %v11589_v58 = vrot.slane %v11456_v39, 5  ;;  %v11592_v2 = vrot.slane %v11457_v4, 5  ;;  %v15259_v5 = vrot.slane %v11458_v57, 9  ;;  %v11465_v49 = vld [vmem:[#allocation3 + $0xa0] sm:$0xf]  ;;  %v17768_v27 = vld [vmem:[#allocation3 + $0x30] sm:$0xff]  }
 0x4c5   : > { %17215 = vmatprep.mubr.bf16.mxu0 %v15273_v43  ;;  %v11077_v45 = vor.u32 %v11076_v40, %v11072_v41  ;;  %v11082_v0 = vrot.slane %v11080_v35, 5  ;;  %v11596_v19 = vrot.slane %v11459_v6, 5  ;;  %17012 = vmatpush3.bf16.msra.mxu0 %v17776_v28  ;;  %v11599_v48 = vrot.slane %v11460_v53, 5  ;;  %v11466_v56 = vld [vmem:[#allocation3 + $0xa4] sm:$0x1] }
 0x4c6   : > { %12006 = vmatmul.mubr.bf16.gmra.mrb[136].mxu1 %v17765_v17  ;;  %v11068_v12 = vrot.slane %v11067_v13, 4  ;;  %v11590_v61 = vsel %vm18346_vm11, %v15258_v15, %v11589_v58  ;;  %v11591_v63 = vrot.slane %v11589_v58, 4  ;;  %17013 = vmatprep.subr.bf16.mxu0 %v17778_v11  ;;  %v11085_v50 = vshrl.u32 %v10931_v62, 16  ;;  %v10934_v44 = vld [vmem:[#allocation3 + $0x54] sm:$0xf] }
 0x4c7   : > { %12013 = vmatprep.mubr.bf16.mxu1 %v15236_v25  ;;  %v11078_v47 = vrot.slane %v11077_v45, 4  ;;  %v11597_v1 = vsel %vm18346_vm11, %v15259_v5, %v11596_v19  ;;  %v11598_v46 = vrot.slane %v11596_v19, 4  ;;  %v11088_v29 = vshll.u32 %v10931_v62, 16  ;;  %v10936_v58 = vld [vmem:[#allocation3 + $0x5c] sm:$0x1] }
 0x4c8   : > { %v11073_v36 = vsel %vm18841_vm2, %v11068_v12, %v11072_v41  ;;  %v11593_v37 = vsel %vm18346_vm11, %v11591_v63, %v11592_v2  ;;  %v11094_v18 = vshll.u32 %v10932_v54, 16  ;;  %v11087_v9 = vrot.slane %v11085_v50, 4  ;;  %v10935_v41 = vld [vmem:[#allocation3 + $0x58] sm:$0xf]  ;;  %v11467_v45 = vld [vmem:[#allocation3 + $0xa8] sm:$0xe] }
 0x4c9   : > { %v11083_v24 = vsel %vm18841_vm2, %v11078_v47, %v11082_v0  ;;  %v15274_v55 = vcombine.low %v11590_v61, %v11593_v37  ;;  %v11600_v59 = vsel %vm18346_vm11, %v11598_v46, %v11599_v48  ;;  %17014 = vmatpush3.bf16.msra.mxu0 %v17779_v10  ;;  %v11090_v14 = vrot.slane %v11088_v29, 5  ;;  %v11468_v10 = vld [vmem:[#allocation3 + $0xac] sm:$0xf]  ;;  %v11469_v12 = vld [vmem:[#allocation3 + $0xb0] sm:$0x1] }
 0x4ca   : > { %v15237_v39 = vcombine.low %v11073_v36, %v11083_v24  ;;  %v15275_v31 = vcombine.low %v11597_v1, %v11600_v59  ;;  %v11096_v51 = vrot.slane %v11094_v18, 5  ;;  %17231 = vmatprep.subr.bf16.mxu0 %v21891_v60  ;;  %v11098_v33 = vshrl.u32 %v10932_v54, 16  ;;  %v11470_v47 = vld [vmem:[#allocation3 + $0xb4] sm:$0xe]  ;;  %v11471_v36 = vld [vmem:[#allocation3 + $0xb8] sm:$0xf] }
 0x4cb   : > { %v11104_v4 = vshll.u32 %v10933_v32, 16  ;;  %v15260_v26 = vrot.slane %v11461_v38, 9  ;;  %v11603_v52 = vrot.slane %v11462_v20, 5  ;;  %v11091_v57 = vor.u32 %v11090_v14, %v11087_v9  ;;  %v10937_v24 = vld [vmem:[#allocation3 + $0x60] sm:$0xf] }
 0x4cc   : > { %17216 = vmatmul.mubr.bf16.gmra.mrb[48].mxu0 %v15274_v55  ;;  %v11606_v28 = vrot.slane %v11463_v22, 5  ;;  %v15261_v3 = vrot.slane %v11464_v34, 9  ;;  %v11610_v43 = vrot.slane %v11465_v49, 5  ;;  %v11100_v21 = vrot.slane %v11098_v33, 4  ;;  %v11472_v22 = vld [vmem:[#allocation3 + $0xbc] sm:$0x1] }
 0x4cd   : > { %17219 = vmatprep.mubr.bf16.mxu0 %v15275_v31  ;;  %v11106_v6 = vrot.slane %v11104_v4, 5  ;;  %v11604_v11 = vsel %vm18346_vm11, %v15260_v26, %v11603_v52  ;;  %v11605_v25 = vrot.slane %v11603_v52, 4  ;;  %v11092_v40 = vrot.slane %v11091_v57, 4  ;;  %v17771_v55 = vld [vmem:[#allocation3 + $0x3c] sm:$0xff]   ;;  %v10938_v33 = vld [vmem:[#allocation3 + $0x64] sm:$0xf] }
 0x4ce   : > { %12014 = vmatmul.mubr.bf16.gmra.mrb[140].mxu1 %v17768_v27  ;;  %v11611_v35 = vsel %vm18346_vm11, %v15261_v3, %v11610_v43  ;;  %v11612_v53 = vrot.slane %v11610_v43, 4  ;;  %v11613_v17 = vrot.slane %v11466_v56, 5  ;;  %v11101_v13 = vor.u32 %v11100_v21, %v11096_v51  ;;  %v10939_v52 = vld [vmem:[#allocation3 + $0x68] sm:$0x1]  ;;  %v12520_v21 = vld [vmem:[#allocation3 + $0x18] sm:$0xf] }
 0x4cf   : > { %12021 = vmatprep.mubr.bf16.mxu1 %v15237_v39  ;;  %v11607_v15 = vsel %vm18346_vm11, %v11605_v25, %v11606_v28  ;;  %v11109_v2 = vshrl.u32 %v10934_v44, 16  ;;  %v11112_v62 = vshll.u32 %v10934_v44, 16  ;;  %v11097_v0 = vsel %vm18841_vm2, %v11092_v40, %v11096_v51  ;;  %v11473_v44 = vld [vmem:[#allocation3 + $0xc0] sm:$0xe]  ;;  %v11474_v40 = vld [vmem:[#allocation3 + $0xc4] sm:$0xf] }
 0x4d0   : > { %v15276_v5 = vcombine.low %v11604_v11, %v11607_v15  ;;  %v11614_v19 = vsel %vm18346_vm11, %v11612_v53, %v11613_v17  ;;  %v11118_v54 = vshll.u32 %v10935_v41, 16  ;;  %v11102_v61 = vrot.slane %v11101_v13, 4  ;;  %v11475_v15 = vld [vmem:[#allocation3 + $0xc8] sm:$0x1] }
 0x4d1   : > { %v15277_v63 = vcombine.low %v11611_v35, %v11614_v19  ;;  %v11111_v48 = vrot.slane %v11109_v2, 4  ;;  %v11114_v32 = vrot.slane %v11112_v62, 5  ;;  %v11122_v46 = vshrl.u32 %v10935_v41, 16 }
 0x4d2   : > { %v11120_v1 = vrot.slane %v11118_v54, 5  ;;  %v11128_v50 = vshll.u32 %v10936_v58, 16  ;;  %v15262_v38 = vrot.slane %v11467_v45, 9  ;;  %v11107_v37 = vsel %vm18841_vm2, %v11102_v61, %v11106_v6 }
 0x4d3   : > { %v11115_v29 = vor.u32 %v11114_v32, %v11111_v48  ;;  %v11617_v18 = vrot.slane %v11468_v10, 5  ;;  %v11620_v20 = vrot.slane %v11469_v12, 5  ;;  %v15238_v59 = vcombine.low %v11097_v0, %v11107_v37  ;;  %v17774_v32 = vld [vmem:[#allocation3 + $0x48] sm:$0xff]  }
 0x4d4   : > { %17220 = vmatmul.mubr.bf16.gmra.mrb[52].mxu0 %v15276_v5  ;;  %v11124_v9 = vrot.slane %v11122_v46, 4  ;;  %v11130_v34 = vrot.slane %v11128_v50, 5  ;;  %v15263_v49 = vrot.slane %v11470_v47, 9  ;;  %v11624_v51 = vrot.slane %v11471_v36, 5  ;;  %v12521_v5 = vld [vmem:[#allocation3 + $0x1c] sm:$0xf] }
 0x4d5   : > { %17223 = vmatprep.mubr.bf16.mxu0 %v15277_v63  ;;  %v11116_v39 = vrot.slane %v11115_v29, 4  ;;  %v11618_v31 = vsel %vm18346_vm11, %v15262_v38, %v11617_v18  ;;  %v11619_v14 = vrot.slane %v11617_v18, 4  ;;  %v11627_v26 = vrot.slane %v11472_v22, 5  ;;  %v12522_v63 = vld [vmem:[#allocation3 + $0x20] sm:$0x1] }
 0x4d6   : > { %12022 = vmatmul.mubr.bf16.gmra.mrb[144].mxu1 %v17771_v55  ;;  %v11125_v4 = vor.u32 %v11124_v9, %v11120_v1  ;;  %v11133_v56 = vshrl.u32 %v10937_v24, 16  ;;  %v11136_v27 = vshll.u32 %v10937_v24, 16  ;;  %v11625_v3 = vsel %vm18346_vm11, %v15263_v49, %v11624_v51 }
 0x4d7   : > { %12029 = vmatprep.mubr.bf16.mxu1 %v15238_v59  ;;  %v11121_v57 = vsel %vm18841_vm2, %v11116_v39, %v11120_v1  ;;  %v11621_v28 = vsel %vm18346_vm11, %v11619_v14, %v11620_v20  ;;  %v11626_v43 = vrot.slane %v11624_v51, 4  ;;  %v11142_v53 = vshll.u32 %v10938_v33, 16  ;;  %v10940_v20 = vld [vmem:[#allocation3 + $0x6c] sm:$0xf]  ;;  %v10941_v51 = vld [vmem:[#allocation3 + $0x70] sm:$0xf] }
 0x4d8   : > { %v11126_v6 = vrot.slane %v11125_v4, 4  ;;  %v15278_v11 = vcombine.low %v11618_v31, %v11621_v28  ;;  %v11135_v25 = vrot.slane %v11133_v56, 4  ;;  %v11138_v41 = vrot.slane %v11136_v27, 5  ;;  %v12523_v28 = vld [vmem:[#allocation3 + $0x24] sm:$0xf] }
 0x4d9   : > { %v11628_v35 = vsel %vm18346_vm11, %v11626_v43, %v11627_v26  ;;  %v11146_v17 = vshrl.u32 %v10938_v33, 16  ;;  %v11152_v13 = vshll.u32 %v10939_v52, 16  ;;  %v21926_v58 = vpop.f32.mrb[68].mxu1  ;;  %v15264_v0 = vrot.slane %v11473_v44, 9 }
 0x4da   : > { %v11131_v2 = vsel %vm18841_vm2, %v11126_v6, %v11130_v34  ;;  %v15279_v62 = vcombine.low %v11625_v3, %v11628_v35  ;;  %v11139_v45 = vor.u32 %v11138_v41, %v11135_v25  ;;  %v21930_v19 = vpop.f32.mrb[69].mxu1  ;;  %v11144_v10 = vrot.slane %v11142_v53, 5 }
 0x4db   : > { %v15239_v54 = vcombine.low %v11121_v57, %v11131_v2  ;;  %v11148_v12 = vrot.slane %v11146_v17, 4  ;;  %v11154_v61 = vrot.slane %v11152_v13, 5  ;;  %v21932_v48 = vpop.f32.mrb[70].mxu1  ;;  %v11631_v1 = vrot.slane %v11474_v40, 5  ;;  %v10942_v57 = vld [vmem:[#allocation3 + $0x74] sm:$0x1] }
 0x4dc   : > { %17224 = vmatmul.mubr.bf16.gmra.mrb[56].mxu0 %v15278_v11  ;;  %v11140_v47 = vrot.slane %v11139_v45, 4  ;;  %v11634_v46 = vrot.slane %v11475_v15, 5  ;;  %v12569_v50 = vshrl.u32 %v12520_v21, 16  ;;  %v21934_v38 = vpop.f32.mrb[71].mxu1  ;;  %v12572_v37 = vshll.u32 %v12520_v21, 16  ;;  %v17777_v40 = vld [vmem:[#allocation3 + $0x54] sm:$0xff]  }
 0x4dd   : > { %17227 = vmatprep.mubr.bf16.mxu0 %v15279_v62  ;;  %v11149_v36 = vor.u32 %v11148_v12, %v11144_v10  ;;  %v12578_v29 = vshll.u32 %v12521_v5, 16  ;;  %v12582_v18 = vshrl.u32 %v12521_v5, 16  ;;  %v11632_v24 = vsel %vm18346_vm11, %v15264_v0, %v11631_v1  ;;  %v12524_v17 = vld [vmem:[#allocation3 + $0x28] sm:$0xf]  ;;  %v12525_v5 = vld [vmem:[#allocation3 + $0x2c] sm:$0x1] }
 0x4de   : > { %12030 = vmatmul.mubr.bf16.gmra.mrb[148].mxu1 %v17774_v32  ;;  %v11145_v22 = vsel %vm18841_vm2, %v11140_v47, %v11144_v10  ;;  %v11633_v55 = vrot.slane %v11631_v1, 4  ;;  %v12571_v59 = vrot.slane %v12569_v50, 4  ;;  %v12574_v34 = vrot.slane %v12572_v37, 5  ;;  %v10944_v50 = vld [vmem:[#allocation3 + $0x7c] sm:$0xf] }
 0x4df   : > { %12037 = vmatprep.mubr.bf16.mxu1 %v15239_v54  ;;  %v11150_v9 = vrot.slane %v11149_v36, 4  ;;  %v12580_v49 = vrot.slane %v12578_v29, 5  ;;  %v12584_v39 = vrot.slane %v12582_v18, 4  ;;  %v12588_v14 = vshll.u32 %v12522_v63, 16  ;;  %v10943_v54 = vld [vmem:[#allocation3 + $0x78] sm:$0xf] }
 0x4e0   : > { %v11635_v31 = vsel %vm18346_vm11, %v11633_v55, %v11634_v46  ;;  %v11157_v33 = vshrl.u32 %v10940_v20, 16  ;;  %v11160_v4 = vshll.u32 %v10940_v20, 16  ;;  %v12575_v56 = vor.u32 %v12574_v34, %v12571_v59  ;;  %v17782_v37 = vld [vmem:[#allocation3 + $0x18] sm:$0xff]   ;;  %v10945_v18 = vld [vmem:[#allocation3 + $0x80] sm:$0x1] }
 0x4e1   : > { %v11155_v26 = vsel %vm18841_vm2, %v11150_v9, %v11154_v61  ;;  %v15280_v52 = vcombine.low %v11632_v24, %v11635_v31  ;;  %v12585_v27 = vor.u32 %v12584_v39, %v12580_v49  ;;  %v12590_v43 = vrot.slane %v12588_v14, 5 }
 0x4e2   : > { %v15240_v3 = vcombine.low %v11145_v22, %v11155_v26  ;;  %v11159_v44 = vrot.slane %v11157_v33, 4  ;;  %v11162_v21 = vrot.slane %v11160_v4, 5  ;;  %v12576_v6 = vrot.slane %v12575_v56, 4  ;;  %v17786_v4 = vld [vmem:[%s22586_s7 + $0x208] sm:$0xff]  }
 0x4e3   : > { %v12586_v11 = vrot.slane %v12585_v27, 4  ;;  %v11166_v25 = vshll.u32 %v10941_v51, 16  ;;  %v11170_v41 = vshrl.u32 %v10941_v51, 16  ;;  %v11176_v53 = vshll.u32 %v10942_v57, 16 }
 0x4e4   : > { %17228 = vmatmul.mubr.bf16.gmra.mrb[60].mxu0 %v15280_v52  ;;  %v11163_v35 = vor.u32 %v11162_v21, %v11159_v44  ;;  %v12593_v13 = vshrl.u32 %v12523_v28, 16  ;;  %v12596_v15 = vshll.u32 %v12523_v28, 16  ;;  %v12581_v2 = vsel %vm18841_vm2, %v12576_v6, %v12580_v49  ;;  %v12526_v49 = vld [vmem:[#allocation3 + $0x30] sm:$0xf]  ;;  %v12527_v28 = vld [vmem:[#allocation3 + $0x34] sm:$0xf] }
 0x4e5   : > { %v12591_v62 = vsel %vm18841_vm2, %v12586_v11, %v12590_v43  ;;  %v11168_v45 = vrot.slane %v11166_v25, 5  ;;  %v11172_v0 = vrot.slane %v11170_v41, 4  ;;  %v11178_v61 = vrot.slane %v11176_v53, 5  ;;  %v17780_v43 = vld [vmem:[#allocation3 + $0x60] sm:$0xff]   ;;  %v12528_v25 = vld [vmem:[#allocation3 + $0x38] sm:$0x1] }
 0x4e6   : > { %12038 = vmatmul.mubr.bf16.gmra.mrb[152].mxu1 %v17777_v40  ;;  %v15369_v10 = vcombine.low %v12581_v2, %v12591_v62  ;;  %v11164_v12 = vrot.slane %v11163_v35, 4  ;;  %v12595_v63 = vrot.slane %v12593_v13, 4  ;;  %v12598_v47 = vrot.slane %v12596_v15, 5 }
 0x4e7   : > { %12045 = vmatprep.mubr.bf16.mxu1 %v15240_v3  ;;  %v11173_v32 = vor.u32 %v11172_v0, %v11168_v45  ;;  %v12602_v1 = vshll.u32 %v12524_v17, 16  ;;  %v12606_v46 = vshrl.u32 %v12524_v17, 16  ;;  %v12612_v29 = vshll.u32 %v12525_v5, 16  ;;  %v10946_v17 = vld [vmem:[#allocation3 + $0x84] sm:$0xf] }
 0x4e8   : > { %13593 = vmatprep.mubr.bf16.mxu0 %v15369_v10  ;;  %v11169_v36 = vsel %vm18841_vm2, %v11164_v12, %v11168_v45  ;;  %v11181_v20 = vshrl.u32 %v10943_v54, 16  ;;  %v11184_v22 = vshll.u32 %v10943_v54, 16  ;;  %v21950_v24 = vpop.f32.mrb[72].mxu1  ;;  %v12599_v59 = vor.u32 %v12598_v47, %v12595_v63  ;;  %v17791_v45 = vld [vmem:[%s22586_s7 + $0x210] sm:$0xff]   ;;  %v10947_v10 = vld [vmem:[#allocation3 + $0x88] sm:$0xf] }
 0x4e9   : > { %v11174_v55 = vrot.slane %v11173_v32, 4  ;;  %v12604_v9 = vrot.slane %v12602_v1, 5  ;;  %v12608_v34 = vrot.slane %v12606_v46, 4  ;;  %v21952_v39 = vpop.f32.mrb[73].mxu1  ;;  %v12614_v31 = vrot.slane %v12612_v29, 5  ;;  %v17784_v63 = vld [vmem:[#allocation3 + $0x24] sm:$0xff]  }
 0x4ea   : > { %v11183_v14 = vrot.slane %v11181_v20, 4  ;;  %v11186_v51 = vrot.slane %v11184_v22, 5  ;;  %v11190_v33 = vshll.u32 %v10944_v50, 16  ;;  %v21957_v26 = vpop.f32.mrb[74].mxu1  ;;  %v12600_v56 = vrot.slane %v12599_v59, 4  ;;  %v17796_v59 = vld [vmem:[%s22586_s7 + $0x218] sm:$0xff]  }
 0x4eb   : > { %v11179_v52 = vsel %vm18841_vm2, %v11174_v55, %v11178_v61  ;;  %v12609_v27 = vor.u32 %v12608_v34, %v12604_v9  ;;  %v11194_v57 = vshrl.u32 %v10944_v50, 16  ;;  %v21961_v3 = vpop.f32.mrb[75].mxu1  ;;  %v11200_v11 = vshll.u32 %v10945_v18, 16  ;;  %v10948_v18 = vld [vmem:[#allocation3 + $0x8c] sm:$0x1] }
 0x4ec   : > { %v15241_v44 = vcombine.low %v11169_v36, %v11179_v52  ;;  %13594 = vmatmul.mubr.bf16.vlgmr.msra.gmra.mrb[64].mxu0 %v17782_v37  ;;  %v11187_v21 = vor.u32 %v11186_v51, %v11183_v14  ;;  %v11192_v6 = vrot.slane %v11190_v33, 5  ;;  %v12605_v41 = vsel %vm18841_vm2, %v12600_v56, %v12604_v9  ;;  %v12529_v37 = vld [vmem:[#allocation3 + $0x3c] sm:$0xf]  ;;  %v12530_v14 = vld [vmem:[#allocation3 + $0x40] sm:$0xf]  ;;  %v17783_v51 = vld [vmem:[#allocation3 + $0x6c] sm:$0xff]  }
 0x4ed   : > { %17232 = vmatpush3.bf16.msra.mxu0 %v21891_v60  ;;  %v12610_v40 = vrot.slane %v12609_v27, 4  ;;  %v11196_v35 = vrot.slane %v11194_v57, 4  ;;  %v12617_v53 = vshrl.u32 %v12526_v49, 16  ;;  %v11202_v15 = vrot.slane %v11200_v11, 5  ;;  %v12531_v27 = vld [vmem:[#allocation3 + $0x44] sm:$0x1] }
 0x4ee   : > { %12046 = vmatmul.mubr.bf16.gmra.mrb[156].mxu1 %v17780_v43  ;;  %v11188_v13 = vrot.slane %v11187_v21, 4  ;;  %v12620_v2 = vshll.u32 %v12526_v49, 16  ;;  %v12626_v62 = vshll.u32 %v12527_v28, 16  ;;  %17233 = vmatprep.subr.bf16.mxu0 %v17786_v4  ;;  %v12630_v54 = vshrl.u32 %v12527_v28, 16 }
 0x4ef   : > { %12053 = vmatprep.mubr.bf16.mxu1 %v15241_v44  ;;  %v12615_v60 = vsel %vm18841_vm2, %v12610_v40, %v12614_v31  ;;  %v11197_v0 = vor.u32 %v11196_v35, %v11192_v6  ;;  %v12619_v5 = vrot.slane %v12617_v53, 4  ;;  %v12636_v50 = vshll.u32 %v12528_v25, 16  ;;  %v10949_v40 = vld [vmem:[#allocation3 + $0x90] sm:$0xf] }
 0x4f0   : > { %v15370_v12 = vcombine.low %v12605_v41, %v12615_v60  ;;  %v11193_v61 = vsel %vm18841_vm2, %v11188_v13, %v11192_v6  ;;  %v12622_v32 = vrot.slane %v12620_v2, 5  ;;  %v12628_v47 = vrot.slane %v12626_v62, 5  ;;  %v17801_v53 = vld [vmem:[%s22586_s7 + $0x220] sm:$0xff]  }
 0x4f1   : > { %v11198_v1 = vrot.slane %v11197_v0, 4  ;;  %v12632_v46 = vrot.slane %v12630_v54, 4  ;;  %v11205_v36 = vshrl.u32 %v10946_v17, 16  ;;  %17234 = vmatpush3.bf16.msra.mxu0 %v17786_v4  ;;  %v11208_v20 = vshll.u32 %v10946_v17, 16  ;;  %v10950_v62 = vld [vmem:[#allocation3 + $0x94] sm:$0xf] }
 0x4f2   : > { %13601 = vmatprep.mubr.bf16.mxu0 %v15370_v12  ;;  %v12623_v29 = vor.u32 %v12622_v32, %v12619_v5  ;;  %v11214_v22 = vshll.u32 %v10947_v10, 16  ;;  %v11218_v55 = vshrl.u32 %v10947_v10, 16  ;;  %17235 = vmatprep.subr.bf16.mxu0 %v17791_v45  ;;  %v12638_v49 = vrot.slane %v12636_v50, 5  ;;  %v10951_v32 = vld [vmem:[#allocation3 + $0x98] sm:$0x1] }
 0x4f3   : > { %v11203_v9 = vsel %vm18841_vm2, %v11198_v1, %v11202_v15  ;;  %v12633_v34 = vor.u32 %v12632_v46, %v12628_v47  ;;  %v11207_v31 = vrot.slane %v11205_v36, 4  ;;  %v11210_v52 = vrot.slane %v11208_v20, 5  ;;  %v17787_v46 = vld [vmem:[#allocation3 + $0x30] sm:$0xff]  }
 0x4f4   : > { %v15242_v33 = vcombine.low %v11193_v61, %v11203_v9  ;;  %13602 = vmatmul.mubr.bf16.gmra.mrb[68].mxu0 %v17784_v63  ;;  %v12624_v4 = vrot.slane %v12623_v29, 4  ;;  %v11216_v56 = vrot.slane %v11214_v22, 5  ;;  %v11220_v28 = vrot.slane %v11218_v55, 4  ;;  %v12532_v29 = vld [vmem:[#allocation3 + $0x48] sm:$0xf] }
 0x4f5   : > { %v12634_v57 = vrot.slane %v12633_v34, 4  ;;  %v11224_v43 = vshll.u32 %v10948_v18, 16  ;;  %v12641_v44 = vshrl.u32 %v12529_v37, 16  ;;  %17236 = vmatpush3.bf16.msra.mxu0 %v17791_v45  ;;  %v21978_v21 = vpop.f32.mrb[76].mxu1  ;;  %v11211_v11 = vor.u32 %v11210_v52, %v11207_v31  ;;  %v17804_v18 = vld [vmem:[%s22586_s7 + $0x228] sm:$0xff]  }
 0x4f6   : > { %12054 = vmatmul.mubr.bf16.gmra.mrb[160].mxu1 %v17783_v51  ;;  %v12629_v6 = vsel %vm18841_vm2, %v12624_v4, %v12628_v47  ;;  %v12644_v25 = vshll.u32 %v12529_v37, 16  ;;  %v12650_v41 = vshll.u32 %v12530_v14, 16  ;;  %17237 = vmatprep.subr.bf16.mxu0 %v17796_v59  ;;  %v21982_v35 = vpop.f32.mrb[77].mxu1  ;;  %v11221_v13 = vor.u32 %v11220_v28, %v11216_v56  ;;  %v12533_v9 = vld [vmem:[#allocation3 + $0x4c] sm:$0xf]  ;;  %v17785_v34 = vld [vmem:[#allocation3 + $0x78] sm:$0xff]  }
 0x4f7   : > { %12061 = vmatprep.mubr.bf16.mxu1 %v15242_v33  ;;  %v12639_v17 = vsel %vm18841_vm2, %v12634_v57, %v12638_v49  ;;  %v11226_v15 = vrot.slane %v11224_v43, 5  ;;  %v12643_v2 = vrot.slane %v12641_v44, 4  ;;  %v21989_v45 = vpop.f32.mrb[78].mxu1  ;;  %v11212_v0 = vrot.slane %v11211_v11, 4  ;;  %v12534_v28 = vld [vmem:[#allocation3 + $0x50] sm:$0x1] }
 0x4f8   : > { %v15371_v60 = vcombine.low %v12629_v6, %v12639_v17  ;;  %v12646_v5 = vrot.slane %v12644_v25, 5  ;;  %v12652_v54 = vrot.slane %v12650_v41, 5  ;;  %v21991_v10 = vpop.f32.mrb[79].mxu1  ;;  %v11222_v12 = vrot.slane %v11221_v13, 4  ;;  %v17807_v6 = vld [vmem:[%s22586_s7 + $0x230] sm:$0xff]  }
 0x4f9   : > { %v12654_v61 = vshrl.u32 %v12530_v14, 16  ;;  %v12660_v63 = vshll.u32 %v12531_v27, 16  ;;  %v11229_v47 = vshrl.u32 %v10949_v40, 16  ;;  %17238 = vmatpush3.bf16.msra.mxu0 %v17796_v59  ;;  %v11217_v1 = vsel %vm18841_vm2, %v11212_v0, %v11216_v56 }
 0x4fa   : > { %13609 = vmatprep.mubr.bf16.mxu0 %v15371_v60  ;;  %v12647_v50 = vor.u32 %v12646_v5, %v12643_v2  ;;  %v11232_v36 = vshll.u32 %v10949_v40, 16  ;;  %v11238_v37 = vshll.u32 %v10950_v62, 16  ;;  %17239 = vmatprep.subr.bf16.mxu0 %v17801_v53  ;;  %v11227_v20 = vsel %vm18841_vm2, %v11222_v12, %v11226_v15  ;;  %v10952_v2 = vld [vmem:[#allocation3 + $0x9c] sm:$0xf] }
 0x4fb   : > { %v12656_v22 = vrot.slane %v12654_v61, 4  ;;  %v12662_v55 = vrot.slane %v12660_v63, 5  ;;  %v11231_v59 = vrot.slane %v11229_v47, 4  ;;  %v15243_v49 = vcombine.low %v11217_v1, %v11227_v20  ;;  %v17788_v20 = vld [vmem:[#allocation3 + $0x84] sm:$0xff]  }
 0x4fc   : > { %13610 = vmatmul.mubr.bf16.gmra.mrb[72].mxu0 %v17787_v46  ;;  %v12648_v31 = vrot.slane %v12647_v50, 4  ;;  %v11234_v14 = vrot.slane %v11232_v36, 5  ;;  %v11240_v51 = vrot.slane %v11238_v37, 5  ;;  %v11242_v4 = vshrl.u32 %v10950_v62, 16  ;;  %v10954_v46 = vld [vmem:[#allocation3 + $0xa4] sm:$0x1] }
 0x4fd   : > { %v12657_v33 = vor.u32 %v12656_v22, %v12652_v54  ;;  %v11248_v52 = vshll.u32 %v10951_v32, 16  ;;  %v12665_v56 = vshrl.u32 %v12532_v29, 16  ;;  %17240 = vmatpush3.bf16.msra.mxu0 %v17801_v53  ;;  %v12668_v43 = vshll.u32 %v12532_v29, 16  ;;  %v17789_v32 = vld [vmem:[#allocation3 + $0x3c] sm:$0xff]  }
 0x4fe   : > { %12062 = vmatmul.mubr.bf16.gmra.mrb[164].mxu1 %v17785_v34  ;;  %v12653_v27 = vsel %vm18841_vm2, %v12648_v31, %v12652_v54  ;;  %v11235_v57 = vor.u32 %v11234_v14, %v11231_v59  ;;  %v12674_v44 = vshll.u32 %v12533_v9, 16  ;;  %17241 = vmatprep.subr.bf16.mxu0 %v17804_v18  ;;  %v11244_v25 = vrot.slane %v11242_v4, 4  ;;  %v10953_v54 = vld [vmem:[#allocation3 + $0xa0] sm:$0xf] }
 0x4ff   : > { %12069 = vmatprep.mubr.bf16.mxu1 %v15243_v49  ;;  %v12658_v11 = vrot.slane %v12657_v33, 4  ;;  %v11250_v41 = vrot.slane %v11248_v52, 5  ;;  %v12667_v40 = vrot.slane %v12665_v56, 4  ;;  %v12670_v53 = vrot.slane %v12668_v43, 5  ;;  %v12535_v33 = vld [vmem:[#allocation3 + $0x54] sm:$0xf] }
 0x500   : > { %v11236_v17 = vrot.slane %v11235_v57, 4  ;;  %v12676_v13 = vrot.slane %v12674_v44, 5  ;;  %v12678_v15 = vshrl.u32 %v12533_v9, 16  ;;  %v11245_v60 = vor.u32 %v11244_v25, %v11240_v51  ;;  %v12536_v57 = vld [vmem:[#allocation3 + $0x58] sm:$0xf] }
 0x501   : > { %v12663_v62 = vsel %vm18841_vm2, %v12658_v11, %v12662_v55  ;;  %v12684_v0 = vshll.u32 %v12534_v28, 16  ;;  %v22009_v5 = vadd.f32 %v21763_v23, %v21761_v8  ;;  %v22011_v12 = vpop.f32.mrb[80].mxu1  ;;  %17242 = vmatpush3.bf16.msra.mxu0 %v17804_v18  ;;  %v12671_v47 = vor.u32 %v12670_v53, %v12667_v40  ;;  %v17810_v18 = vld [vmem:[%s22586_s7 + $0x238] sm:$0xff]   ;;  %v12537_v25 = vld [vmem:[#allocation3 + $0x5c] sm:$0x1] }
 0x502   : > { %v15372_v61 = vcombine.low %v12653_v27, %v12663_v62  ;;  %v11241_v63 = vsel %vm18841_vm2, %v11236_v17, %v11240_v51  ;;  %v12680_v1 = vrot.slane %v12678_v15, 4  ;;  %v22015_v50 = vpop.f32.mrb[81].mxu1  ;;  %17243 = vmatprep.subr.bf16.mxu0 %v17807_v6  ;;  %v11246_v36 = vrot.slane %v11245_v60, 4  ;;  %v10955_v62 = vld [vmem:[#allocation3 + $0xa8] sm:$0xf] }
 0x503   : > { %v12686_v37 = vrot.slane %v12684_v0, 5  ;;  %v11253_v29 = vshrl.u32 %v10952_v2, 16  ;;  %v11256_v8 = vshll.u32 %v10952_v2, 16  ;;  %v22017_v23 = vpop.f32.mrb[82].mxu1  ;;  %v12672_v22 = vrot.slane %v12671_v47, 4  ;;  %v17790_v47 = vld [vmem:[#allocation3 + $0x90] sm:$0xff]  }
 0x504   : > { %13617 = vmatprep.mubr.bf16.mxu0 %v15372_v61  ;;  %v12681_v55 = vor.u32 %v12680_v1, %v12676_v13  ;;  %v11262_v59 = vshll.u32 %v10953_v54, 16  ;;  %v11266_v9 = vshrl.u32 %v10953_v54, 16  ;;  %v22022_v34 = vpop.f32.mrb[83].mxu1  ;;  %v11251_v49 = vsel %vm18841_vm2, %v11246_v36, %v11250_v41  ;;  %v10956_v54 = vld [vmem:[#allocation3 + $0xac] sm:$0xf] }
 0x505   : > { %13618 = vmatmul.mubr.bf16.gmra.mrb[76].mxu0 %v17789_v32  ;;  %v11255_v31 = vrot.slane %v11253_v29, 4  ;;  %v11258_v14 = vrot.slane %v11256_v8, 5  ;;  %v11272_v51 = vshll.u32 %v10954_v46, 16  ;;  %v15244_v4 = vcombine.low %v11241_v63, %v11251_v49 }
 0x506   : > { %12070 = vmatmul.mubr.bf16.gmra.mrb[168].mxu1 %v17788_v20  ;;  %v12677_v52 = vsel %vm18841_vm2, %v12672_v22, %v12676_v13  ;;  %v12682_v56 = vrot.slane %v12681_v55, 4  ;;  %v11264_v27 = vrot.slane %v11262_v59, 5  ;;  %17244 = vmatpush3.bf16.msra.mxu0 %v17807_v6  ;;  %v11268_v43 = vrot.slane %v11266_v9, 4  ;;  %v12538_v55 = vld [vmem:[#allocation3 + $0x60] sm:$0xf] }
 0x507   : > { %v11259_v28 = vor.u32 %v11258_v14, %v11255_v31  ;;  %v11274_v44 = vrot.slane %v11272_v51, 5  ;;  %v22030_v11 = vadd.f32 %v21769_v16, %v21765_v30  ;;  %17245 = vmatprep.subr.bf16.mxu0 %v17810_v18  ;;  %12077 = vmatprep.mubr.bf16.mxu1 %v15244_v4  ;;  %v22036_v40 = vadd.f32 %v21930_v19, %v21926_v58  ;;  %v17792_v58 = vld [vmem:[#allocation3 + $0x48] sm:$0xff]  }
 0x508   : > { %v12687_v41 = vsel %vm18841_vm2, %v12682_v56, %v12686_v37  ;;  %v12689_v17 = vshrl.u32 %v12535_v33, 16  ;;  %v12692_v53 = vshll.u32 %v12535_v33, 16  ;;  %v11269_v15 = vor.u32 %v11268_v43, %v11264_v27  ;;  %v10957_v37 = vld [vmem:[#allocation3 + $0xb0] sm:$0x1] }
 0x509   : > { %v15373_v6 = vcombine.low %v12677_v52, %v12687_v41  ;;  %v11260_v13 = vrot.slane %v11259_v28, 4  ;;  %v12698_v2 = vshll.u32 %v12536_v57, 16  ;;  %v12702_v16 = vshrl.u32 %v12536_v57, 16 }
 0x50a   : > { %v12691_v60 = vrot.slane %v12689_v17, 4  ;;  %v12694_v30 = vrot.slane %v12692_v53, 5  ;;  %v12708_v0 = vshll.u32 %v12537_v25, 16  ;;  %17246 = vmatpush3.bf16.msra.mxu0 %v17810_v18  ;;  %v11270_v63 = vrot.slane %v11269_v15, 4  ;;  %v12540_v17 = vld [vmem:[#allocation3 + $0x68] sm:$0x1] }
 0x50b   : > { %13625 = vmatprep.mubr.bf16.mxu0 %v15373_v6  ;;  %v11265_v61 = vsel %vm18841_vm2, %v11260_v13, %v11264_v27  ;;  %v12700_v19 = vrot.slane %v12698_v2, 5  ;;  %v22042_v32 = vadd.f32 %v21934_v38, %v21932_v48  ;;  %v12704_v46 = vrot.slane %v12702_v16, 4  ;;  %v12539_v38 = vld [vmem:[#allocation3 + $0x64] sm:$0xf] }
 0x50c   : > { %v12695_v1 = vor.u32 %v12694_v30, %v12691_v60  ;;  %v12710_v36 = vrot.slane %v12708_v0, 5  ;;  %v11277_v29 = vshrl.u32 %v10955_v62, 16  ;;  %v11275_v8 = vsel %vm18841_vm2, %v11270_v63, %v11274_v44  ;;  %v10958_v60 = vld [vmem:[#allocation3 + $0xb4] sm:$0xf] }
 0x50d   : > { %13626 = vmatmul.mubr.bf16.gmra.mrb[80].mxu0 %v17792_v58  ;;  %v11280_v18 = vshll.u32 %v10955_v62, 16  ;;  %v11286_v20 = vshll.u32 %v10956_v54, 16  ;;  %v11290_v22 = vshrl.u32 %v10956_v54, 16  ;;  %v15245_v59 = vcombine.low %v11265_v61, %v11275_v8  ;;  %v17794_v54 = vld [vmem:[#allocation3 + $0x54] sm:$0xff]  }
 0x50e   : > { %12078 = vmatmul.mubr.bf16.gmra.mrb[172].mxu1 %v17790_v47  ;;  %v12696_v9 = vrot.slane %v12695_v1, 4  ;;  %v12705_v49 = vor.u32 %v12704_v46, %v12700_v19  ;;  %v11279_v48 = vrot.slane %v11277_v29, 4  ;;  %v22046_v31 = vpop.f32.mrb[84].mxu1  ;;  %v11296_v4 = vshll.u32 %v10957_v37, 16  ;;  %v10959_v47 = vld [vmem:[#allocation3 + $0xb8] sm:$0xf] }
 0x50f   : > { %v11282_v14 = vrot.slane %v11280_v18, 5  ;;  %v11288_v51 = vrot.slane %v11286_v20, 5  ;;  %v11292_v33 = vrot.slane %v11290_v22, 4  ;;  %v22048_v52 = vpop.f32.mrb[85].mxu1  ;;  %12085 = vmatprep.mubr.bf16.mxu1 %v15245_v59  ;;  %v22054_v57 = vadd.f32 %v21952_v39, %v21950_v24  ;;  %v17793_v24 = vld [vmem:[#allocation3 + $0x9c] sm:$0xff]  }
 0x510   : > { %v12701_v56 = vsel %vm18841_vm2, %v12696_v9, %v12700_v19  ;;  %v12706_v27 = vrot.slane %v12705_v49, 4  ;;  %v12713_v28 = vshrl.u32 %v12538_v55, 16  ;;  %v22056_v43 = vpop.f32.mrb[86].mxu1  ;;  %v11298_v41 = vrot.slane %v11296_v4, 5  ;;  %v10960_v37 = vld [vmem:[#allocation3 + $0xbc] sm:$0x1] }
 0x511   : > { %v11283_v44 = vor.u32 %v11282_v14, %v11279_v48  ;;  %v11293_v25 = vor.u32 %v11292_v33, %v11288_v51  ;;  %v12716_v53 = vshll.u32 %v12538_v55, 16  ;;  %v22058_v6 = vpop.f32.mrb[87].mxu1  ;;  %v12722_v2 = vshll.u32 %v12539_v38, 16  ;;  %v12541_v55 = vld [vmem:[#allocation3 + $0x6c] sm:$0xf] }
 0x512   : > { %v12711_v13 = vsel %vm18841_vm2, %v12706_v27, %v12710_v36  ;;  %v12715_v15 = vrot.slane %v12713_v28, 4  ;;  %v12726_v62 = vshrl.u32 %v12539_v38, 16  ;;  %v12732_v58 = vshll.u32 %v12540_v17, 16  ;;  %v12543_v27 = vld [vmem:[#allocation3 + $0x74] sm:$0x1] }
 0x513   : > { %v15374_v30 = vcombine.low %v12701_v56, %v12711_v13  ;;  %v11284_v39 = vrot.slane %v11283_v44, 4  ;;  %v11294_v16 = vrot.slane %v11293_v25, 4  ;;  %v12718_v0 = vrot.slane %v12716_v53, 5  ;;  %v10961_v53 = vld [vmem:[#allocation3 + $0xc0] sm:$0xf] }
 0x514   : > { %v12724_v61 = vrot.slane %v12722_v2, 5  ;;  %v12728_v63 = vrot.slane %v12726_v62, 4  ;;  %v22064_v19 = vadd.f32 %v21961_v3, %v21957_v26  ;;  %v11301_v29 = vshrl.u32 %v10958_v60, 16  ;;  %v17797_v2 = vld [vmem:[#allocation3 + $0x60] sm:$0xff]  }
 0x515   : > { %13633 = vmatprep.mubr.bf16.mxu0 %v15374_v30  ;;  %v11289_v1 = vsel %vm18841_vm2, %v11284_v39, %v11288_v51  ;;  %v11299_v46 = vsel %vm18841_vm2, %v11294_v16, %v11298_v41  ;;  %v12719_v36 = vor.u32 %v12718_v0, %v12715_v15  ;;  %v12734_v20 = vrot.slane %v12732_v58, 5  ;;  %v12542_v51 = vld [vmem:[#allocation3 + $0x70] sm:$0xf]  ;;  %v10962_v62 = vld [vmem:[#allocation3 + $0xc4] sm:$0xf] }
 0x516   : > { %12086 = vmatmul.mubr.bf16.gmra.mrb[176].mxu1 %v17793_v24  ;;  %v15246_v8 = vcombine.low %v11289_v1, %v11299_v46  ;;  %13634 = vmatmul.mubr.bf16.gmra.mrb[84].mxu0 %v17794_v54  ;;  %v12729_v18 = vor.u32 %v12728_v63, %v12724_v61  ;;  %v11304_v22 = vshll.u32 %v10958_v60, 16  ;;  %v11303_v3 = vrot.slane %v11301_v29, 4  ;;  %v17795_v60 = vld [vmem:[#allocation3 + $0xa8] sm:$0xff]  }
 0x517   : > { %v12720_v26 = vrot.slane %v12719_v36, 4  ;;  %v11310_v59 = vshll.u32 %v10959_v47, 16  ;;  %v11314_v9 = vshrl.u32 %v10959_v47, 16  ;;  %v11320_v38 = vshll.u32 %v10960_v37, 16  ;;  %v10963_v29 = vld [vmem:[#allocation3 + $0xc8] sm:$0x1] }
 0x518   : > { %12093 = vmatprep.mubr.bf16.mxu1 %v15246_v8  ;;  %v12730_v49 = vrot.slane %v12729_v18, 4  ;;  %v11306_v48 = vrot.slane %v11304_v22, 5  ;;  %v22072_v14 = vadd.f32 %v21982_v35, %v21978_v21  ;;  %v12737_v28 = vshrl.u32 %v12541_v55, 16  ;;  %v12544_v22 = vld [vmem:[#allocation3 + $0x78] sm:$0xf] }
 0x519   : > { %v12725_v33 = vsel %vm18841_vm2, %v12720_v26, %v12724_v61  ;;  %v11312_v4 = vrot.slane %v11310_v59, 5  ;;  %v11316_v56 = vrot.slane %v11314_v9, 4  ;;  %v11322_v41 = vrot.slane %v11320_v38, 5 }
 0x51a   : > { %v12735_v44 = vsel %vm18841_vm2, %v12730_v49, %v12734_v20  ;;  %v11307_v25 = vor.u32 %v11306_v48, %v11303_v3  ;;  %v12740_v17 = vshll.u32 %v12541_v55, 16  ;;  %v12739_v21 = vrot.slane %v12737_v28, 4  ;;  %v12545_v49 = vld [vmem:[#allocation3 + $0x7c] sm:$0xf] }
 0x51b   : > { %v15375_v13 = vcombine.low %v12725_v33, %v12735_v44  ;;  %v11317_v15 = vor.u32 %v11316_v56, %v11312_v4  ;;  %v12746_v35 = vshll.u32 %v12542_v51, 16  ;;  %v12750_v39 = vshrl.u32 %v12542_v51, 16 }
 0x51c   : > { %v11308_v30 = vrot.slane %v11307_v25, 4  ;;  %v12742_v24 = vrot.slane %v12740_v17, 5  ;;  %v12756_v16 = vshll.u32 %v12543_v27, 16  ;;  %v22078_v0 = vpop.f32.mrb[88].mxu1  ;;  %v22082_v63 = vadd.f32 %v21991_v10, %v21989_v45 }
 0x51d   : > { %13641 = vmatprep.mubr.bf16.mxu0 %v15375_v13  ;;  %v11318_v54 = vrot.slane %v11317_v15, 4  ;;  %v12748_v61 = vrot.slane %v12746_v35, 5  ;;  %v11325_v58 = vshrl.u32 %v10961_v53, 16  ;;  %v22084_v47 = vpop.f32.mrb[89].mxu1  ;;  %v12752_v36 = vrot.slane %v12750_v39, 4  ;;  %v17798_v15 = vld [vmem:[#allocation3 + $0xb4] sm:$0xff]  }
 0x51e   : > { %12094 = vmatmul.mubr.bf16.gmra.mrb[180].mxu1 %v17795_v60  ;;  %v11313_v1 = vsel %vm18841_vm2, %v11308_v30, %v11312_v4  ;;  %13642 = vmatmul.mubr.bf16.gmra.mrb[88].mxu0 %v17797_v2  ;;  %v12743_v46 = vor.u32 %v12742_v24, %v12739_v21  ;;  %v12758_v37 = vrot.slane %v12756_v16, 5  ;;  %v22088_v8 = vpop.f32.mrb[90].mxu1  ;;  %v11328_v45 = vshll.u32 %v10961_v53, 16  ;;  %v17799_v39 = vld [vmem:[#allocation3 + $0x6c] sm:$0xff]  }
 0x51f   : > { %v11323_v18 = vsel %vm18841_vm2, %v11318_v54, %v11322_v41  ;;  %v11327_v20 = vrot.slane %v11325_v58, 4  ;;  %v11334_v10 = vshll.u32 %v10962_v62, 16  ;;  %v22092_v55 = vpop.f32.mrb[91].mxu1  ;;  %v12753_v59 = vor.u32 %v12752_v36, %v12748_v61  ;;  %v12546_v41 = vld [vmem:[#allocation3 + $0x80] sm:$0x1] }
 0x520   : > { %v15247_v26 = vcombine.low %v11313_v1, %v11323_v18  ;;  %v12744_v3 = vrot.slane %v12743_v46, 4  ;;  %v11338_v9 = vshrl.u32 %v10962_v62, 16  ;;  %v11330_v48 = vrot.slane %v11328_v45, 5  ;;  %v12548_v58 = vld [vmem:[#allocation3 + $0x88] sm:$0xf] }
 0x521   : > { %v11336_v38 = vrot.slane %v11334_v10, 5  ;;  %v11344_v51 = vshll.u32 %v10963_v29, 16  ;;  %v22096_v33 = vadd.f32 %v22015_v50, %v22011_v12  ;;  %v12754_v56 = vrot.slane %v12753_v59, 4  ;;  %v12547_v50 = vld [vmem:[#allocation3 + $0x84] sm:$0xf] }
 0x522   : > { %12101 = vmatprep.mubr.bf16.mxu1 %v15247_v26  ;;  %v12749_v4 = vsel %vm18841_vm2, %v12744_v3, %v12748_v61  ;;  %v11340_v27 = vrot.slane %v11338_v9, 4  ;;  %v12761_v28 = vshrl.u32 %v12544_v22, 16  ;;  %v11331_v44 = vor.u32 %v11330_v48, %v11327_v20  ;;  %v12551_v59 = vld [vmem:[#allocation3 + $0x94] sm:$0xf] }
 0x523   : > { %v11346_v25 = vrot.slane %v11344_v51, 5  ;;  %v12764_v17 = vshll.u32 %v12544_v22, 16  ;;  %v12770_v53 = vshll.u32 %v12545_v49, 16  ;;  %v12759_v13 = vsel %vm18841_vm2, %v12754_v56, %v12758_v37  ;;  %v12549_v37 = vld [vmem:[#allocation3 + $0x8c] sm:$0x1] }
 0x524   : > { %v11341_v2 = vor.u32 %v11340_v27, %v11336_v38  ;;  %v12763_v21 = vrot.slane %v12761_v28, 4  ;;  %v12774_v12 = vshrl.u32 %v12545_v49, 16  ;;  %v15376_v35 = vcombine.low %v12749_v4, %v12759_v13 }
 0x525   : > { %v11332_v62 = vrot.slane %v11331_v44, 4  ;;  %v12766_v60 = vrot.slane %v12764_v17, 5  ;;  %v12772_v30 = vrot.slane %v12770_v53, 5  ;;  %v12780_v54 = vshll.u32 %v12546_v41, 16 }
 0x526   : > { %12102 = vmatmul.mubr.bf16.gmra.mrb[184].mxu1 %v17798_v15  ;;  %v11342_v24 = vrot.slane %v11341_v2, 4  ;;  %v12776_v16 = vrot.slane %v12774_v12, 4  ;;  %v22104_v61 = vadd.f32 %v22022_v34, %v22017_v23  ;;  %13649 = vmatprep.mubr.bf16.mxu0 %v15376_v35  ;;  %v22110_v36 = vadd.f32 %v22048_v52, %v22046_v31  ;;  %v12550_v34 = vld [vmem:[#allocation3 + $0x90] sm:$0xf]  ;;  %v12552_v15 = vld [vmem:[#allocation3 + $0x98] sm:$0x1] }
 0x527   : > { %v11337_v1 = vsel %vm18841_vm2, %v11332_v62, %v11336_v38  ;;  %v12767_v46 = vor.u32 %v12766_v60, %v12763_v21  ;;  %v12785_v29 = vshrl.u32 %v12547_v50, 16  ;;  %13650 = vmatmul.mubr.bf16.gmra.mrb[92].mxu0 %v17799_v39  ;;  %v12782_v45 = vrot.slane %v12780_v54, 5  ;;  %v17802_v21 = vld [vmem:[#allocation3 + $0x78] sm:$0xff]   ;;  %v12554_v39 = vld [vmem:[#allocation3 + $0xa0] sm:$0xf] }
 0x528   : > { %v11347_v18 = vsel %vm18841_vm2, %v11342_v24, %v11346_v25  ;;  %v12777_v20 = vor.u32 %v12776_v16, %v12772_v30  ;;  %v12788_v23 = vshll.u32 %v12547_v50, 16  ;;  %v12794_v3 = vshll.u32 %v12548_v58, 16  ;;  %v16785_v9 = vpop.f32.mrb[92].mxu1  ;;  %v17800_v25 = vld [vmem:[#allocation3 + $0xc0] sm:$0xff]   ;;  %v12553_v35 = vld [vmem:[#allocation3 + $0x9c] sm:$0xf] }
 0x529   : > { %v15248_v10 = vcombine.low %v11337_v1, %v11347_v18  ;;  %v12768_v22 = vrot.slane %v12767_v46, 4  ;;  %v12787_v26 = vrot.slane %v12785_v29, 4  ;;  %v12798_v31 = vshrl.u32 %v12548_v58, 16  ;;  %v16786_v38 = vpop.f32.mrb[93].mxu1 }
 0x52a   : > { %v12778_v49 = vrot.slane %v12777_v20, 4  ;;  %v12790_v48 = vrot.slane %v12788_v23, 5  ;;  %v12804_v52 = vshll.u32 %v12549_v37, 16  ;;  %v12796_v51 = vrot.slane %v12794_v3, 5  ;;  %v16788_v27 = vpop.f32.mrb[94].mxu1 }
 0x52b   : > { %12109 = vmatprep.mubr.bf16.mxu1 %v15248_v10  ;;  %v22116_v4 = vadd.f32 %v22058_v6, %v22056_v43  ;;  %v22120_v56 = vadd.f32 %v22084_v47, %v22078_v0  ;;  %v12773_v28 = vsel %vm18841_vm2, %v12768_v22, %v12772_v30  ;;  %v12800_v17 = vrot.slane %v12798_v31, 4  ;;  %v16789_v53 = vpop.f32.mrb[95].mxu1  ;;  %v12555_v23 = vld [vmem:[#allocation3 + $0xa4] sm:$0x1]  ;;  %v12556_v3 = vld [vmem:[#allocation3 + $0xa8] sm:$0xf] }
 0x52c   : > { %v12783_v44 = vsel %vm18841_vm2, %v12778_v49, %v12782_v45  ;;  %v12791_v41 = vor.u32 %v12790_v48, %v12787_v26  ;;  %v12809_v2 = vshrl.u32 %v12550_v34, 16  ;;  %v12812_v43 = vshll.u32 %v12550_v34, 16 }
 0x52d   : > { %v15377_v13 = vcombine.low %v12773_v28, %v12783_v44  ;;  %v12818_v6 = vshll.u32 %v12551_v59, 16  ;;  %v12801_v47 = vor.u32 %v12800_v17, %v12796_v51  ;;  %v12806_v12 = vrot.slane %v12804_v52, 5  ;;  %v17803_v44 = vld [vmem:[#allocation3 + $0x84] sm:$0xff]  }
 0x52e   : > { %12110 = vmatmul.mubr.bf16.gmra.mrb[188].mxu1 %v17800_v25  ;;  %v12792_v0 = vrot.slane %v12791_v41, 4  ;;  %v12822_v50 = vshrl.u32 %v12551_v59, 16  ;;  %v12811_v62 = vrot.slane %v12809_v2, 4  ;;  %v12814_v60 = vrot.slane %v12812_v43, 5 }
 0x52f   : > { %13657 = vmatprep.mubr.bf16.mxu0 %v15377_v13  ;;  %v12820_v30 = vrot.slane %v12818_v6, 5  ;;  %v22128_v24 = vadd.f32 %v22092_v55, %v22088_v8  ;;  %v12802_v54 = vrot.slane %v12801_v47, 4  ;;  %v12828_v1 = vshll.u32 %v12552_v15, 16 }
 0x530   : > { %13658 = vmatmul.mubr.bf16.gmra.mrb[96].mxu0 %v17802_v21  ;;  %v12797_v16 = vsel %vm18841_vm2, %v12792_v0, %v12796_v51  ;;  %v12824_v58 = vrot.slane %v12822_v50, 4  ;;  %v12815_v46 = vor.u32 %v12814_v60, %v12811_v62  ;;  %v22132_v37 = vadd.f32 %v16786_v38, %v16785_v9  ;;  %v12557_v9 = vld [vmem:[#allocation3 + $0xac] sm:$0xf]  ;;  %v12560_v62 = vld [vmem:[#allocation3 + $0xb8] sm:$0xf] }
 0x531   : > { %v12833_v29 = vshrl.u32 %v12553_v35, 16  ;;  %v12836_v18 = vshll.u32 %v12553_v35, 16  ;;  %v12807_v20 = vsel %vm18841_vm2, %v12802_v54, %v12806_v12  ;;  %v12842_v8 = vshll.u32 %v12554_v39, 16  ;;  %v12559_v54 = vld [vmem:[#allocation3 + $0xb4] sm:$0xf] }
 0x532   : > { %v12825_v45 = vor.u32 %v12824_v58, %v12820_v30  ;;  %v12846_v55 = vshrl.u32 %v12554_v39, 16  ;;  %v15378_v34 = vcombine.low %v12797_v16, %v12807_v20  ;;  %v12816_v10 = vrot.slane %v12815_v46, 4  ;;  %v12558_v58 = vld [vmem:[#allocation3 + $0xb0] sm:$0x1] }
 0x533   : > { %v12835_v22 = vrot.slane %v12833_v29, 4  ;;  %v12838_v26 = vrot.slane %v12836_v18, 5  ;;  %v12830_v49 = vrot.slane %v12828_v1, 5  ;;  %v12844_v48 = vrot.slane %v12842_v8, 5 }
 0x534   : > { %v12826_v59 = vrot.slane %v12825_v45, 4  ;;  %v12848_v31 = vrot.slane %v12846_v55, 4  ;;  %13665 = vmatprep.mubr.bf16.mxu0 %v15378_v34  ;;  %v12821_v52 = vsel %vm18841_vm2, %v12816_v10, %v12820_v30  ;;  %v12852_v51 = vshll.u32 %v12555_v23, 16  ;;  %v17805_v23 = vld [vmem:[#allocation3 + $0x90] sm:$0xff]  }
 0x535   : > { %v12839_v38 = vor.u32 %v12838_v26, %v12835_v22  ;;  %v22138_v28 = vadd.f32 %v16789_v53, %v16788_v27  ;;  %v16791_v17 = vpop.f32.mrb[96].mxu1  ;;  %v12857_v13 = vshrl.u32 %v12556_v3, 16  ;;  %v12860_v15 = vshll.u32 %v12556_v3, 16 }
 0x536   : > { %v12831_v25 = vsel %vm18841_vm2, %v12826_v59, %v12830_v49  ;;  %v12849_v41 = vor.u32 %v12848_v31, %v12844_v48  ;;  %v16792_v43 = vpop.f32.mrb[97].mxu1  ;;  %v12866_v6 = vshll.u32 %v12557_v9, 16  ;;  %v12870_v47 = vshrl.u32 %v12557_v9, 16  ;;  %v12563_v31 = vld [vmem:[#allocation3 + $0xc4] sm:$0xf] }
 0x537   : > { %v15379_v2 = vcombine.low %v12821_v52, %v12831_v25  ;;  %v22142_v0 = vadd.f32 %v16792_v43, %v16791_v17  ;;  %v16794_v12 = vpop.f32.mrb[98].mxu1  ;;  %v12840_v27 = vrot.slane %v12839_v38, 4  ;;  %v12854_v53 = vrot.slane %v12852_v51, 5  ;;  %v12561_v38 = vld [vmem:[#allocation3 + $0xbc] sm:$0x1] }
 0x538   : > { %13666 = vmatmul.mubr.bf16.gmra.mrb[100].mxu0 %v17803_v44  ;;  %v12850_v21 = vrot.slane %v12849_v41, 4  ;;  %v12868_v50 = vrot.slane %v12866_v6, 5  ;;  %v16795_v35 = vpop.f32.mrb[99].mxu1  ;;  %v12859_v60 = vrot.slane %v12857_v13, 4  ;;  %v12862_v30 = vrot.slane %v12860_v15, 5 }
 0x539   : > { %13673 = vmatprep.mubr.bf16.mxu0 %v15379_v2  ;;  %v12872_v39 = vrot.slane %v12870_v47, 4  ;;  %v22144_v16 = vadd.f32 %v16795_v35, %v16794_v12  ;;  %v12890_v29 = vshll.u32 %v12560_v62, 16  ;;  %v12894_v18 = vshrl.u32 %v12560_v62, 16  ;;  %v12562_v51 = vld [vmem:[#allocation3 + $0xc0] sm:$0xf] }
 0x53a   : > { %v12855_v1 = vsel %vm18841_vm2, %v12850_v21, %v12854_v53  ;;  %v12881_v20 = vshrl.u32 %v12559_v54, 16  ;;  %v12884_v45 = vshll.u32 %v12559_v54, 16  ;;  %v12845_v8 = vsel %vm18841_vm2, %v12840_v27, %v12844_v48  ;;  %v17806_v21 = vld [vmem:[#allocation3 + $0x9c] sm:$0xff]   ;;  %v12565_v62 = vld [vmem:[#allocation3 + $0xcc] sm:$0xf] }
 0x53b   : > { %v12873_v46 = vor.u32 %v12872_v39, %v12868_v50  ;;  %v12863_v55 = vor.u32 %v12862_v30, %v12859_v60  ;;  %v12876_v34 = vshll.u32 %v12558_v58, 16  ;;  %v15380_v10 = vcombine.low %v12845_v8, %v12855_v1  ;;  %v12566_v60 = vld [vmem:[#allocation3 + $0xd0] sm:$0xf] }
 0x53c   : > { %v12892_v26 = vrot.slane %v12890_v29, 5  ;;  %v12896_v3 = vrot.slane %v12894_v18, 4  ;;  %v12883_v59 = vrot.slane %v12881_v20, 4  ;;  %v12886_v49 = vrot.slane %v12884_v45, 5  ;;  %v12564_v20 = vld [vmem:[#allocation3 + $0xc8] sm:$0x1] }
 0x53d   : > { %v12874_v22 = vrot.slane %v12873_v46, 4  ;;  %v12864_v9 = vrot.slane %v12863_v55, 4  ;;  %v12878_v52 = vrot.slane %v12876_v34, 5  ;;  %v12914_v41 = vshll.u32 %v12563_v31, 16 }
 0x53e   : > { %v12897_v48 = vor.u32 %v12896_v3, %v12892_v26  ;;  %v12918_v17 = vshrl.u32 %v12563_v31, 16  ;;  %v12887_v15 = vor.u32 %v12886_v49, %v12883_v59  ;;  %v12900_v2 = vshll.u32 %v12561_v38, 16  ;;  %v17808_v59 = vld [vmem:[#allocation3 + $0xa8] sm:$0xff]  }
 0x53f   : > { %v12879_v44 = vsel %vm18841_vm2, %v12874_v22, %v12878_v52  ;;  %v12905_v43 = vshrl.u32 %v12562_v51, 16  ;;  %v12908_v6 = vshll.u32 %v12562_v51, 16  ;;  %v12869_v47 = vsel %vm18841_vm2, %v12864_v9, %v12868_v50  ;;  %v12567_v51 = vld [vmem:[#allocation3 + $0xd4] sm:$0x1] }
 0x540   : > { %13674 = vmatmul.mubr.bf16.gmra.mrb[104].mxu0 %v17805_v23  ;;  %v15381_v53 = vcombine.low %v12869_v47, %v12879_v44  ;;  %v12898_v30 = vrot.slane %v12897_v48, 4  ;;  %v12916_v54 = vrot.slane %v12914_v41, 5  ;;  %v12920_v58 = vrot.slane %v12918_v17, 4 }
 0x541   : > { %13681 = vmatprep.mubr.bf16.mxu0 %v15380_v10  ;;  %v12888_v1 = vrot.slane %v12887_v15, 4  ;;  %v12902_v46 = vrot.slane %v12900_v2, 5  ;;  %v12907_v29 = vrot.slane %v12905_v43, 4  ;;  %v12910_v18 = vrot.slane %v12908_v6, 5 }
 0x542   : > { %v12929_v50 = vshrl.u32 %v12565_v62, 16  ;;  %v12932_v45 = vshll.u32 %v12565_v62, 16  ;;  %v12938_v23 = vshll.u32 %v12566_v60, 16  ;;  %v12942_v8 = vshrl.u32 %v12566_v60, 16 }
 0x543   : > { %v12903_v55 = vsel %vm18841_vm2, %v12898_v30, %v12902_v46  ;;  %v12921_v34 = vor.u32 %v12920_v58, %v12916_v54  ;;  %v12893_v10 = vsel %vm18841_vm2, %v12888_v1, %v12892_v26  ;;  %v12911_v22 = vor.u32 %v12910_v18, %v12907_v29  ;;  %v13033_v58 = vld [vmem:[#allocation3 + $0x1c] sm:$0xf] }
 0x544   : > { %v16797_v25 = vpop.f32.mrb[100].mxu1  ;;  %v12924_v3 = vshll.u32 %v12564_v20, 16  ;;  %v12931_v49 = vrot.slane %v12929_v50, 4  ;;  %v12934_v31 = vrot.slane %v12932_v45, 5  ;;  %v12940_v9 = vrot.slane %v12938_v23, 5  ;;  %v17811_v50 = vld [vmem:[#allocation3 + $0xc0] sm:$0xff]  }
 0x545   : > { %v16798_v13 = vpop.f32.mrb[101].mxu1  ;;  %v12944_v52 = vrot.slane %v12942_v8, 4  ;;  %v15382_v38 = vcombine.low %v12893_v10, %v12903_v55  ;;  %v12922_v44 = vrot.slane %v12921_v34, 4  ;;  %v12912_v48 = vrot.slane %v12911_v22, 4  ;;  %v13034_v23 = vld [vmem:[#allocation3 + $0x20] sm:$0x1] }
 0x546   : > { %v22154_v12 = vadd.f32 %v16798_v13, %v16797_v25  ;;  %v16800_v27 = vpop.f32.mrb[102].mxu1  ;;  %v12926_v17 = vrot.slane %v12924_v3, 5  ;;  %v12935_v13 = vor.u32 %v12934_v31, %v12931_v49  ;;  %v12948_v2 = vshll.u32 %v12567_v51, 16  ;;  %v13036_v34 = vld [vmem:[#allocation3 + $0x28] sm:$0xf]  ;;  %v17812_v31 = vld [vmem:[#allocation3 + $0xcc] sm:$0xff]  }
 0x547   : > { %v16801_v35 = vpop.f32.mrb[103].mxu1  ;;  %v12945_v15 = vor.u32 %v12944_v52, %v12940_v9  ;;  %v13130_v29 = vrot.slane %v13033_v58, 5  ;;  %v13032_v22 = vld [vmem:[#allocation3 + $0x18] sm:$0xe]  ;;  %v13039_v3 = vld [vmem:[#allocation3 + $0x34] sm:$0xf] }
 0x548   : > { %13682 = vmatmul.mubr.bf16.gmra.mrb[108].mxu0 %v17806_v21  ;;  %v22156_v39 = vadd.f32 %v16801_v35, %v16800_v27  ;;  %v12927_v6 = vsel %vm18841_vm2, %v12922_v44, %v12926_v17  ;;  %v17809_v27 = vld [vmem:[#allocation3 + $0xb4] sm:$0xff]   ;;  %v12936_v35 = vrot.slane %v12935_v13, 4  ;;  %v12950_v60 = vrot.slane %v12948_v2, 5 }
 0x549   : > { %13689 = vmatprep.mubr.bf16.mxu0 %v15381_v53  ;;  %v12917_v53 = vsel %vm18841_vm2, %v12912_v48, %v12916_v54  ;;  %v12946_v62 = vrot.slane %v12945_v15, 4  ;;  %v13132_v55 = vrot.slane %v13130_v29, 4  ;;  %v13133_v7 = vrot.slane %v13034_v23, 5  ;;  %v13040_v13 = vld [vmem:[#allocation3 + $0x38] sm:$0x1] }
 0x54a   : > { %v15383_v30 = vcombine.low %v12917_v53, %v12927_v6  ;;  %v12941_v1 = vsel %vm18841_vm2, %v12936_v35, %v12940_v9  ;;  %v13137_v49 = vrot.slane %v13036_v34, 5  ;;  %v15385_v9 = vrot.slane %v13032_v22, 9  ;;  %v13038_v35 = vld [vmem:[#allocation3 + $0x30] sm:$0xe]  ;;  %v13041_v22 = vld [vmem:[#allocation3 + $0x3c] sm:$0xe] }
 0x54b   : > { %v12951_v46 = vsel %vm18841_vm2, %v12946_v62, %v12950_v60  ;;  %v13134_v52 = vsel %vm18346_vm11, %v13132_v55, %v13133_v7  ;;  %v13045_v62 = vld [vmem:[#allocation3 + $0x4c] sm:$0xf]  ;;  %v13048_v7 = vld [vmem:[#allocation3 + $0x58] sm:$0xf] }
 0x54c   : > { %v15384_v18 = vcombine.low %v12941_v1, %v12951_v46  ;;  %v13131_v44 = vsel %vm18346_vm11, %v15385_v9, %v13130_v29  ;;  %v13139_v17 = vrot.slane %v13137_v49, 4  ;;  %v15387_v29 = vrot.slane %v13038_v35, 9 }
 0x550   : > { %13690 = vmatmul.mubr.bf16.gmra.mrb[112].mxu0 %v17808_v59 }
 0x551   : > { %13697 = vmatprep.mubr.bf16.mxu0 %v15382_v38  ;;  %v16803_v25 = vpop.f32.mrb[104].mxu1  ;;  %v13144_v38 = vrot.slane %v13039_v3, 5 }
 0x552   : > { %v16804_v41 = vpop.f32.mrb[105].mxu1 }
 0x553   : > { %v22162_v26 = vadd.f32 %v16804_v41, %v16803_v25  ;;  %v16806_v43 = vpop.f32.mrb[106].mxu1  ;;  %v13037_v25 = vld [vmem:[#allocation3 + $0x2c] sm:$0x1]  ;;  %v15401_v41 = vcombine.low %v13131_v44, %v13134_v52  ;;  %v13146_v6 = vrot.slane %v13144_v38, 4  ;;  %v13145_v23 = vsel %vm18346_vm11, %v15387_v29, %v13144_v38  ;;  %v13044_v52 = vld [vmem:[#allocation3 + $0x48] sm:$0xe] }
 0x554   : > { %v16807_v21 = vpop.f32.mrb[107].mxu1  ;;  %v13140_v53 = vrot.slane %v13037_v25, 5  ;;  %v13047_v29 = vld [vmem:[#allocation3 + $0x54] sm:$0xe] }
 0x555   : > { %v22166_v47 = vadd.f32 %v16807_v21, %v16806_v43  ;;  %v13035_v43 = vld [vmem:[#allocation3 + $0x24] sm:$0xe]  ;;  %v13042_v21 = vld [vmem:[#allocation3 + $0x40] sm:$0xf] }
 0x556   : > { %v15386_v58 = vrot.slane %v13035_v43, 9  ;;  %v13141_v1 = vsel %vm18346_vm11, %v13139_v17, %v13140_v53  ;;  %v13151_v46 = vrot.slane %v13042_v21, 5  ;;  %v13165_v17 = vrot.slane %v13048_v7, 5 }
 0x558   : > { %13698 = vmatmul.mubr.bf16.gmra.mrb[116].mxu0 %v17809_v27  ;;  %v13153_v34 = vrot.slane %v13151_v46, 4 }
 0x559   : > { %13705 = vmatprep.mubr.bf16.mxu0 %v15383_v30  ;;  %v13147_v30 = vrot.slane %v13040_v13, 5 }
 0x55e   : > { %v16809_v20 = vpop.f32.mrb[108].mxu1 }
 0x55f   : > { %v16810_v45 = vpop.f32.mrb[109].mxu1 }
 0x560   : > { %13706 = vmatmul.mubr.bf16.gmra.mrb[120].mxu0 %v17811_v50  ;;  %v22174_v54 = vadd.f32 %v16810_v45, %v16809_v20  ;;  %v16812_v8 = vpop.f32.mrb[110].mxu1  ;;  %v13158_v20 = vrot.slane %v13045_v62, 5  ;;  %v13138_v50 = vsel %vm18346_vm11, %v15386_v58, %v13137_v49  ;;  %v13049_v62 = vld [vmem:[#allocation3 + $0x5c] sm:$0x1]  ;;  %v13167_v58 = vrot.slane %v13165_v17, 4 }
 0x561   : > { %v16813_v10 = vpop.f32.mrb[111].mxu1  ;;  %13713 = vmatprep.mubr.bf16.mxu0 %v15384_v18  ;;  %v13148_v18 = vsel %vm18346_vm11, %v13146_v6, %v13147_v30  ;;  %v15402_v45 = vcombine.low %v13138_v50, %v13141_v1  ;;  %v13052_v1 = vld [vmem:[#allocation3 + $0x68] sm:$0x1]  ;;  %v13054_v50 = vld [vmem:[#allocation3 + $0x70] sm:$0xf] }
 0x562   : > { %v22176_v59 = vadd.f32 %v16813_v10, %v16812_v8  ;;  %v13043_v8 = vld [vmem:[#allocation3 + $0x44] sm:$0x1]  ;;  %v15403_v55 = vcombine.low %v13145_v23, %v13148_v18  ;;  %v13046_v10 = vld [vmem:[#allocation3 + $0x50] sm:$0x1]  ;;  %v13160_v3 = vrot.slane %v13158_v20, 4  ;;  %v13168_v23 = vrot.slane %v13049_v62, 5 }
 0x563   : > { %v13154_v9 = vrot.slane %v13043_v8, 5  ;;  %v13161_v25 = vrot.slane %v13046_v10, 5  ;;  %v13050_v8 = vld [vmem:[#allocation3 + $0x60] sm:$0xe]  ;;  %v13175_v10 = vrot.slane %v13052_v1, 5  ;;  %v13179_v7 = vrot.slane %v13054_v50, 5 }
 0x564   : > { %v13063_v1 = vld [vmem:[#allocation3 + $0x94] sm:$0xf] }
 0x565   : > { %v13155_v38 = vsel %vm18346_vm11, %v13153_v34, %v13154_v9  ;;  %v13162_v43 = vsel %vm18346_vm11, %v13160_v3, %v13161_v25  ;;  %v15390_v3 = vrot.slane %v13047_v29, 9  ;;  %v15391_v9 = vrot.slane %v13050_v8, 9 }
 0x566   : > { %v16815_v51 = vpop.f32.mrb[112].mxu1 }
 0x567   : > { %v16816_v48 = vpop.f32.mrb[113].mxu1  ;;  %v13166_v25 = vsel %vm18346_vm11, %v15390_v3, %v13165_v17 }
 0x568   : > { %13714 = vmatmul.mubr.bf16.gmra.mrb[124].mxu0 %v17812_v31  ;;  %v22182_v15 = vadd.f32 %v16816_v48, %v16815_v51  ;;  %v16818_v2 = vpop.f32.mrb[114].mxu1  ;;  %v13051_v51 = vld [vmem:[#allocation3 + $0x64] sm:$0xf] }
 0x569   : > { %17247 = vmatprep.mubr.bf16.mxu0 %v15401_v41  ;;  %v16819_v27 = vpop.f32.mrb[115].mxu1  ;;  %v15388_v41 = vrot.slane %v13041_v22, 9  ;;  %v13172_v6 = vrot.slane %v13051_v51, 5 }
 0x56a   : > { %v22184_v60 = vadd.f32 %v16819_v27, %v16818_v2  ;;  %v15389_v2 = vrot.slane %v13044_v52, 9 }
 0x56b   : > { %v13152_v27 = vsel %vm18346_vm11, %v15388_v41, %v13151_v46  ;;  %v13174_v18 = vrot.slane %v13172_v6, 4  ;;  %v13173_v41 = vsel %vm18346_vm11, %v15391_v9, %v13172_v6  ;;  %v13061_v9 = vld [vmem:[#allocation3 + $0x8c] sm:$0x1] }
 0x56c   : > { %v15404_v53 = vcombine.low %v13152_v27, %v13155_v38  ;;  %v13159_v35 = vsel %vm18346_vm11, %v15389_v2, %v13158_v20  ;;  %v13169_v20 = vsel %vm18346_vm11, %v13167_v58, %v13168_v23  ;;  %v13055_v38 = vld [vmem:[#allocation3 + $0x74] sm:$0x1]  ;;  %v13181_v2 = vrot.slane %v13179_v7, 4  ;;  %v13053_v27 = vld [vmem:[#allocation3 + $0x6c] sm:$0xe] }
 0x56d   : > { %v15405_v30 = vcombine.low %v13159_v35, %v13162_v43  ;;  %v13176_v52 = vsel %vm18346_vm11, %v13174_v18, %v13175_v10  ;;  %v13058_v43 = vld [vmem:[#allocation3 + $0x80] sm:$0x1]  ;;  %v13060_v35 = vld [vmem:[#allocation3 + $0x88] sm:$0xf]  ;;  %v13056_v58 = vld [vmem:[#allocation3 + $0x78] sm:$0xe] }
 0x56e   : > { %v13189_v18 = vrot.slane %v13058_v43, 5  ;;  %v13193_v23 = vrot.slane %v13060_v35, 5  ;;  %v13200_v10 = vrot.slane %v13063_v1, 5  ;;  %v13196_v43 = vrot.slane %v13061_v9, 5 }
 0x570   : > { %17248 = vmatmul.mubr.bf16.vlgmr.msra.gmra.mrb[32].mxu0 %v15402_v45  ;;  %v16821_v31 = vpop.f32.mrb[116].mxu1 }
 0x571   : > { %17251 = vmatprep.mubr.bf16.mxu0 %v15403_v55  ;;  %v16822_v44 = vpop.f32.mrb[117].mxu1  ;;  %v13057_v55 = vld [vmem:[#allocation3 + $0x7c] sm:$0xf] }
 0x572   : > { %v22194_v49 = vadd.f32 %v16822_v44, %v16821_v31  ;;  %v16824_v48 = vpop.f32.mrb[118].mxu1  ;;  %v13186_v51 = vrot.slane %v13057_v55, 5  ;;  %v15393_v55 = vrot.slane %v13056_v58, 9 }
 0x573   : > { %v16825_v13 = vpop.f32.mrb[119].mxu1 }
 0x574   : > { %v22200_v21 = vadd.f32 %v16825_v13, %v16824_v48  ;;  %v15406_v48 = vcombine.low %v13166_v25, %v13169_v20  ;;  %v15407_v13 = vcombine.low %v13173_v41, %v13176_v52  ;;  %v13195_v25 = vrot.slane %v13193_v23, 4  ;;  %v13059_v41 = vld [vmem:[#allocation3 + $0x84] sm:$0xe] }
 0x575   : > { %v15394_v58 = vrot.slane %v13059_v41, 9 }
 0x578   : > { %17252 = vmatmul.mubr.bf16.gmra.mrb[36].mxu0 %v15404_v53  ;;  %v16827_v45 = vpop.f32.mrb[120].mxu1  ;;  %v13188_v53 = vrot.slane %v13186_v51, 4 }
 0x579   : > { %17255 = vmatprep.mubr.bf16.mxu0 %v15405_v30  ;;  %v16828_v34 = vpop.f32.mrb[121].mxu1  ;;  %v13182_v30 = vrot.slane %v13055_v38, 5  ;;  %v13202_v38 = vrot.slane %v13200_v10, 4 }
 0x57a   : > { %v22206_v46 = vadd.f32 %v16828_v34, %v16827_v45  ;;  %v16830_v22 = vpop.f32.mrb[122].mxu1  ;;  %v15392_v45 = vrot.slane %v13053_v27, 9  ;;  %v13190_v34 = vsel %vm18346_vm11, %v13188_v53, %v13189_v18  ;;  %v13062_v27 = vld [vmem:[#allocation3 + $0x90] sm:$0xe]  ;;  %v13069_v53 = vld [vmem:[#allocation3 + $0xac] sm:$0xf] }
 0x57b   : > { %v16831_v31 = vpop.f32.mrb[123].mxu1  ;;  %v13183_v6 = vsel %vm18346_vm11, %v13181_v2, %v13182_v30  ;;  %v15395_v18 = vrot.slane %v13062_v27, 9 }
 0x57c   : > { %v22212_v44 = vadd.f32 %v16831_v31, %v16830_v22  ;;  %v13180_v3 = vsel %vm18346_vm11, %v15392_v45, %v13179_v7  ;;  %v13187_v31 = vsel %vm18346_vm11, %v15393_v55, %v13186_v51  ;;  %v13197_v51 = vsel %vm18346_vm11, %v13195_v25, %v13196_v43  ;;  %v13070_v25 = vld [vmem:[#allocation3 + $0xb0] sm:$0x1] }
 0x57d   : > { %v15408_v20 = vcombine.low %v13180_v3, %v13183_v6  ;;  %v15409_v52 = vcombine.low %v13187_v31, %v13190_v34  ;;  %v13214_v45 = vrot.slane %v13069_v53, 5  ;;  %v13194_v55 = vsel %vm18346_vm11, %v15394_v58, %v13193_v23  ;;  %v13075_v23 = vld [vmem:[#allocation3 + $0xc4] sm:$0xf] }
 0x57e   : > { %v15410_v34 = vcombine.low %v13194_v55, %v13197_v51  ;;  %v13201_v3 = vsel %vm18346_vm11, %v15395_v18, %v13200_v10  ;;  %v13217_v27 = vrot.slane %v13070_v25, 5  ;;  %v13228_v51 = vrot.slane %v13075_v23, 5 }
 0x57f   : > { %v13216_v41 = vrot.slane %v13214_v45, 4 }
 0x580   : > { %17256 = vmatmul.mubr.bf16.gmra.mrb[40].mxu0 %v15406_v48  ;;  %v16833_v62 = vpop.f32.mrb[124].mxu1  ;;  %v13064_v48 = vld [vmem:[#allocation3 + $0x98] sm:$0x1] }
 0x581   : > { %17259 = vmatprep.mubr.bf16.mxu0 %v15407_v13  ;;  %v16834_v29 = vpop.f32.mrb[125].mxu1  ;;  %v13066_v13 = vld [vmem:[#allocation3 + $0xa0] sm:$0xf]  ;;  %v13218_v58 = vsel %vm18346_vm11, %v13216_v41, %v13217_v27  ;;  %v13230_v41 = vrot.slane %v13228_v51, 4 }
 0x582   : > { %v22218_v17 = vadd.f32 %v16834_v29, %v16833_v62  ;;  %v16836_v50 = vpop.f32.mrb[126].mxu1  ;;  %v13203_v62 = vrot.slane %v13064_v48, 5  ;;  %v13207_v1 = vrot.slane %v13066_v13, 5  ;;  %v13065_v48 = vld [vmem:[#allocation3 + $0x9c] sm:$0xe] }
 0x583   : > { %v16837_v8 = vpop.f32.mrb[127].mxu1 }
 0x584   : > { %v22224_v22 = vadd.f32 %v16837_v8, %v16836_v50  ;;  %v13204_v50 = vsel %vm18346_vm11, %v13202_v38, %v13203_v62 }
 0x585   : > { %v15411_v9 = vcombine.low %v13201_v3, %v13204_v50  ;;  %v13078_v3 = vld [vmem:[#allocation3 + $0xd0] sm:$0xf] }
 0x588   : > { %17260 = vmatmul.mubr.bf16.gmra.mrb[44].mxu0 %v15408_v20  ;;  %v16879_v2 = vpop.f32.mrb[128].mxu1  ;;  %v13067_v20 = vld [vmem:[#allocation3 + $0xa4] sm:$0x1] }
 0x589   : > { %17263 = vmatprep.mubr.bf16.mxu0 %v15409_v52  ;;  %v16880_v35 = vpop.f32.mrb[129].mxu1  ;;  %v13209_v52 = vrot.slane %v13207_v1, 4  ;;  %v13210_v13 = vrot.slane %v13067_v20, 5 }
 0x58a   : > { %v16881_v7 = vadd.f32 %v16880_v35, %v16879_v2  ;;  %v16882_v30 = vpop.f32.mrb[130].mxu1  ;;  %v13068_v2 = vld [vmem:[#allocation3 + $0xa8] sm:$0xe]  ;;  %v15396_v35 = vrot.slane %v13065_v48, 9  ;;  %v13076_v48 = vld [vmem:[#allocation3 + $0xc8] sm:$0x1] }
 0x58b   : > { %v16883_v29 = vpop.f32.mrb[131].mxu1 }
 0x58c   : > { %v22235_v6 = vadd.f32 %v16881_v7, %v22009_v5  ;;  %v16884_v8 = vadd.f32 %v16883_v29, %v16882_v30  ;;  %v13072_v5 = vld [vmem:[#allocation3 + $0xb8] sm:$0xf]  ;;  %v15397_v30 = vrot.slane %v13068_v2, 9  ;;  %v13208_v50 = vsel %vm18346_vm11, %v15396_v35, %v13207_v1  ;;  %v13077_v1 = vld [vmem:[#allocation3 + $0xcc] sm:$0xe] }
 0x58d   : > { %v13221_v62 = vrot.slane %v13072_v5, 5 }
 0x58e   : > { %v22242_v31 = vadd.f32 %v16884_v8, %v22030_v11  ;;  %v13211_v11 = vsel %vm18346_vm11, %v13209_v52, %v13210_v13  ;;  %v13215_v55 = vsel %vm18346_vm11, %v15397_v30, %v13214_v45  ;;  %v13071_v52 = vld [vmem:[#allocation3 + $0xb4] sm:$0xe]  ;;  %v13235_v13 = vrot.slane %v13078_v3, 5 }
 0x58f   : > { %v15412_v8 = vcombine.low %v13208_v50, %v13211_v11  ;;  %v13223_v25 = vrot.slane %v13221_v62, 4  ;;  %v15398_v23 = vrot.slane %v13071_v52, 9  ;;  %v13231_v45 = vrot.slane %v13076_v48, 5 }
 0x590   : > { %17264 = vmatmul.mubr.bf16.gmra.mrb[48].mxu0 %v15410_v34  ;;  %v13073_v34 = vld [vmem:[#allocation3 + $0xbc] sm:$0x1]  ;;  %v15400_v30 = vrot.slane %v13077_v1, 9  ;;  %v13237_v50 = vrot.slane %v13235_v13, 4 }
 0x591   : > { %v16885_v38 = vpop.f32.mrb[132].mxu1  ;;  %17267 = vmatprep.mubr.bf16.mxu0 %v15411_v9  ;;  %v15413_v9 = vcombine.low %v13215_v55, %v13218_v58  ;;  %v13222_v35 = vsel %vm18346_vm11, %v15398_v23, %v13221_v62 }
 0x592   : > { %v16886_v43 = vpop.f32.mrb[133].mxu1  ;;  %v13236_v52 = vsel %vm18346_vm11, %v15400_v30, %v13235_v13 }
 0x593   : > { %v16887_v53 = vadd.f32 %v16886_v43, %v16885_v38  ;;  %v16888_v10 = vpop.f32.mrb[134].mxu1  ;;  %v13224_v38 = vrot.slane %v13073_v34, 5  ;;  %v13079_v43 = vld [vmem:[#allocation3 + $0xd4] sm:$0x1] }
 0x594   : > { %v16889_v7 = vpop.f32.mrb[135].mxu1 }
 0x595   : > { %v22249_v29 = vadd.f32 %v16887_v53, %v22036_v40  ;;  %v16890_v18 = vadd.f32 %v16889_v7, %v16888_v10  ;;  %v13074_v40 = vld [vmem:[#allocation3 + $0xc0] sm:$0xe]  ;;  %v13232_v7 = vsel %vm18346_vm11, %v13230_v41, %v13231_v45 }
 0x596   : > { %v15399_v11 = vrot.slane %v13074_v40, 9 }
 0x597   : > { %v22256_v20 = vadd.f32 %v16890_v18, %v22042_v32  ;;  %v13225_v32 = vsel %vm18346_vm11, %v13223_v25, %v13224_v38 }
 0x598   : > { %17268 = vmatmul.mubr.bf16.gmra.mrb[52].mxu0 %v15412_v8  ;;  %v13238_v8 = vrot.slane %v13079_v43, 5  ;;  %v15414_v55 = vcombine.low %v13222_v35, %v13225_v32  ;;  %v13229_v34 = vsel %vm18346_vm11, %v15399_v11, %v13228_v51 }
 0x599   : > { %v16891_v5 = vpop.f32.mrb[136].mxu1  ;;  %17271 = vmatprep.mubr.bf16.mxu0 %v15413_v9  ;;  %v15415_v9 = vcombine.low %v13229_v34, %v13232_v7 }
 0x59a   : > { %v16892_v2 = vpop.f32.mrb[137].mxu1 }
 0x59b   : > { %v16893_v27 = vadd.f32 %v16892_v2, %v16891_v5  ;;  %v16894_v53 = vpop.f32.mrb[138].mxu1 }
 0x59c   : > { %v16895_v10 = vpop.f32.mrb[139].mxu1 }
 0x59d   : > { %v22265_v58 = vadd.f32 %v16893_v27, %v22054_v57  ;;  %v16896_v18 = vadd.f32 %v16895_v10, %v16894_v53  ;;  %v13239_v57 = vsel %vm18346_vm11, %v13237_v50, %v13238_v8 }
 0x59e   : > { %v15416_v5 = vcombine.low %v13236_v52, %v13239_v57 }
 0x59f   : > { %v22270_v3 = vadd.f32 %v16896_v18, %v22064_v19 }
 0x5a0   : > { %17272 = vmatmul.mubr.bf16.gmra.mrb[56].mxu0 %v15414_v55 }
 0x5a1   : > { %v16897_v62 = vpop.f32.mrb[140].mxu1  ;;  %17275 = vmatprep.mubr.bf16.mxu0 %v15415_v9 }
 0x5a2   : > { %v16898_v25 = vpop.f32.mrb[141].mxu1 }
 0x5a3   : > { %v16899_v48 = vadd.f32 %v16898_v25, %v16897_v62  ;;  %v16900_v40 = vpop.f32.mrb[142].mxu1 }
 0x5a4   : > { %v16901_v41 = vpop.f32.mrb[143].mxu1 }
 0x5a5   : > { %v22277_v51 = vadd.f32 %v16899_v48, %v22072_v14  ;;  %v16902_v19 = vadd.f32 %v16901_v41, %v16900_v40 }
 0x5a7   : > { %v22280_v38 = vadd.f32 %v16902_v19, %v22082_v63 }
 0x5a8   : > { %17276 = vmatmul.mubr.bf16.gmra.mrb[60].mxu0 %v15416_v5 }
 0x5a9   : > { %v16903_v1 = vpop.f32.mrb[144].mxu1 }
 0x5aa   : > { %v16904_v2 = vpop.f32.mrb[145].mxu1 }
 0x5ab   : > { %v16905_v23 = vadd.f32 %v16904_v2, %v16903_v1  ;;  %v16906_v13 = vpop.f32.mrb[146].mxu1 }
 0x5ac   : > { %v16907_v45 = vpop.f32.mrb[147].mxu1 }
 0x5ad   : > { %v22283_v42 = vadd.f32 %v16905_v23, %v22096_v33  ;;  %v16908_v43 = vadd.f32 %v16907_v45, %v16906_v13 }
 0x5af   : > { %v22286_v27 = vadd.f32 %v16908_v43, %v22104_v61 }
 0x5b1   : > { %v16909_v53 = vpop.f32.mrb[148].mxu1 }
 0x5b2   : > { %v16910_v14 = vpop.f32.mrb[149].mxu1 }
 0x5b3   : > { %v16911_v32 = vadd.f32 %v16910_v14, %v16909_v53  ;;  %v16912_v10 = vpop.f32.mrb[150].mxu1 }
 0x5b4   : > { %v16913_v35 = vpop.f32.mrb[151].mxu1 }
 0x5b5   : > { %v22289_v63 = vadd.f32 %v16911_v32, %v22110_v36  ;;  %v16914_v11 = vadd.f32 %v16913_v35, %v16912_v10 }
 0x5b7   : > { %v22292_v7 = vadd.f32 %v16914_v11, %v22116_v4 }
 0x5b9   : > { %v16915_v30 = vpop.f32.mrb[152].mxu1 }
 0x5ba   : > { %v16916_v18 = vpop.f32.mrb[153].mxu1 }
 0x5bb   : > { %v16917_v33 = vadd.f32 %v16916_v18, %v16915_v30  ;;  %v16918_v50 = vpop.f32.mrb[154].mxu1 }
 0x5bc   : > { %v16919_v8 = vpop.f32.mrb[155].mxu1 }
 0x5bd   : > { %v22295_v61 = vadd.f32 %v16917_v33, %v22120_v56  ;;  %v16920_v55 = vadd.f32 %v16919_v8, %v16918_v50 }
 0x5bf   : > { %v22298_v34 = vadd.f32 %v16920_v55, %v22128_v24  ;;  %v17015_v9 = vpop.f32.mrb[64].mxu0 }
 0x5c0   : > { %v17016_v62 = vpop.f32.mrb[65].mxu0 }
 0x5c1   : > { %v16921_v36 = vpop.f32.mrb[156].mxu1  ;;  %v17017_v52 = vadd.f32 %v17016_v62, %v17015_v9  ;;  %v17018_v57 = vpop.f32.mrb[66].mxu0 }
 0x5c2   : > { %v16922_v25 = vpop.f32.mrb[157].mxu1  ;;  %v17019_v4 = vpop.f32.mrb[67].mxu0 }
 0x5c3   : > { %v16923_v48 = vadd.f32 %v16922_v25, %v16921_v36  ;;  %v16924_v40 = vpop.f32.mrb[158].mxu1  ;;  %v17020_v41 = vadd.f32 %v17019_v4, %v17018_v57  ;;  %v22307_v14 = vadd.f32 %v22235_v6, %v17017_v52 }
 0x5c4   : > { %v16925_v5 = vpop.f32.mrb[159].mxu1 }
 0x5c5   : > { %v22301_v19 = vadd.f32 %v16923_v48, %v22132_v37  ;;  %v16926_v56 = vadd.f32 %v16925_v5, %v16924_v40  ;;  %v22322_v8 = vadd.f32 %v22242_v31, %v17020_v41 }
 0x5c7   : > { %v22304_v1 = vadd.f32 %v16926_v56, %v22138_v28  ;;  %v17021_v24 = vpop.f32.mrb[68].mxu0 }
 0x5c8   : > { %v17022_v2 = vpop.f32.mrb[69].mxu0 }
 0x5c9   : > { %v16927_v23 = vpop.f32.mrb[160].mxu1  ;;  %v17023_v13 = vadd.f32 %v17022_v2, %v17021_v24  ;;  %v17024_v45 = vpop.f32.mrb[70].mxu0 }
 0x5ca   : > { %v16928_v43 = vpop.f32.mrb[161].mxu1  ;;  %v17025_v53 = vpop.f32.mrb[71].mxu0 }
 0x5cb   : > { %v16929_v32 = vadd.f32 %v16928_v43, %v16927_v23  ;;  %v16930_v10 = vpop.f32.mrb[162].mxu1  ;;  %v17026_v35 = vadd.f32 %v17025_v53, %v17024_v45  ;;  %v22310_v37 = vadd.f32 %v22249_v29, %v17023_v13 }
 0x5cc   : > { %v16931_v11 = vpop.f32.mrb[163].mxu1 }
 0x5cd   : > { %v22313_v28 = vadd.f32 %v16929_v32, %v22142_v0  ;;  %v16932_v30 = vadd.f32 %v16931_v11, %v16930_v10  ;;  %v22316_v18 = vadd.f32 %v22256_v20, %v17026_v35 }
 0x5cf   : > { %v22319_v33 = vadd.f32 %v16932_v30, %v22144_v16  ;;  %v17027_v50 = vpop.f32.mrb[72].mxu0 }
 0x5d0   : > { %v17028_v6 = vpop.f32.mrb[73].mxu0 }
 0x5d1   : > { %v16933_v55 = vpop.f32.mrb[164].mxu1  ;;  %v17029_v9 = vadd.f32 %v17028_v6, %v17027_v50  ;;  %v17030_v29 = vpop.f32.mrb[74].mxu0 }
 0x5d2   : > { %v16934_v62 = vpop.f32.mrb[165].mxu1  ;;  %v17031_v36 = vpop.f32.mrb[75].mxu0 }
 0x5d3   : > { %v16935_v52 = vadd.f32 %v16934_v62, %v16933_v55  ;;  %v16936_v0 = vpop.f32.mrb[166].mxu1  ;;  %v17032_v57 = vadd.f32 %v17031_v36, %v17030_v29  ;;  %v22325_v25 = vadd.f32 %v22265_v58, %v17029_v9 }
 0x5d4   : > { %v16937_v20 = vpop.f32.mrb[167].mxu1 }
 0x5d5   : > { %v22328_v16 = vadd.f32 %v16935_v52, %v22154_v12  ;;  %v16938_v4 = vadd.f32 %v16937_v20, %v16936_v0  ;;  %v22334_v40 = vadd.f32 %v22270_v3, %v17032_v57 }
 0x5d7   : > { %v22331_v48 = vadd.f32 %v16938_v4, %v22156_v39 }
 0x5d8   : > { %v17033_v31 = vpop.f32.mrb[76].mxu0 }
 0x5d9   : > { %v16939_v41 = vpop.f32.mrb[168].mxu1  ;;  %v17034_v5 = vpop.f32.mrb[77].mxu0 }
 0x5da   : > { %v16940_v56 = vpop.f32.mrb[169].mxu1  ;;  %v17035_v24 = vadd.f32 %v17034_v5, %v17033_v31  ;;  %v17036_v2 = vpop.f32.mrb[78].mxu0 }
 0x5db   : > { %v16941_v23 = vadd.f32 %v16940_v56, %v16939_v41  ;;  %v16942_v58 = vpop.f32.mrb[170].mxu1  ;;  %v17037_v13 = vpop.f32.mrb[79].mxu0 }
 0x5dc   : > { %v16943_v45 = vpop.f32.mrb[171].mxu1  ;;  %v17038_v43 = vadd.f32 %v17037_v13, %v17036_v2  ;;  %v22337_v12 = vadd.f32 %v22277_v51, %v17035_v24 }
 0x5dd   : > { %v22340_v39 = vadd.f32 %v16941_v23, %v22162_v26  ;;  %v16944_v53 = vadd.f32 %v16943_v45, %v16942_v58 }
 0x5de   : > { %v22343_v3 = vadd.f32 %v22280_v38, %v17038_v43 }
 0x5df   : > { %v22346_v32 = vadd.f32 %v16944_v53, %v22166_v47 }
 0x5e0   : > { %v17039_v10 = vpop.f32.mrb[80].mxu0 }
 0x5e1   : > { %v16945_v35 = vpop.f32.mrb[172].mxu1  ;;  %v17040_v11 = vpop.f32.mrb[81].mxu0 }
 0x5e2   : > { %v16946_v30 = vpop.f32.mrb[173].mxu1  ;;  %v17041_v50 = vadd.f32 %v17040_v11, %v17039_v10  ;;  %v17042_v6 = vpop.f32.mrb[82].mxu0 }
 0x5e3   : > { %v16947_v55 = vadd.f32 %v16946_v30, %v16945_v35  ;;  %v16948_v9 = vpop.f32.mrb[174].mxu1  ;;  %v17043_v51 = vpop.f32.mrb[83].mxu0 }
 0x5e4   : > { %v16949_v29 = vpop.f32.mrb[175].mxu1  ;;  %v17044_v62 = vadd.f32 %v17043_v51, %v17042_v6  ;;  %v22349_v26 = vadd.f32 %v22283_v42, %v17041_v50 }
 0x5e5   : > { %v22352_v38 = vadd.f32 %v16947_v55, %v22174_v54  ;;  %v16950_v36 = vadd.f32 %v16949_v29, %v16948_v9 }
 0x5e6   : > { %v22355_v47 = vadd.f32 %v22286_v27, %v17044_v62 }
 0x5e7   : > { %v22358_v52 = vadd.f32 %v16950_v36, %v22176_v59 }
 0x5e9   : > { %v16951_v0 = vpop.f32.mrb[176].mxu1  ;;  %v17045_v57 = vpop.f32.mrb[84].mxu0 }
 0x5ea   : > { %v16952_v20 = vpop.f32.mrb[177].mxu1  ;;  %v17046_v4 = vpop.f32.mrb[85].mxu0 }
 0x5eb   : > { %v16953_v31 = vadd.f32 %v16952_v20, %v16951_v0  ;;  %v16954_v41 = vpop.f32.mrb[178].mxu1  ;;  %v17047_v5 = vadd.f32 %v17046_v4, %v17045_v57  ;;  %v17048_v56 = vpop.f32.mrb[86].mxu0 }
 0x5ec   : > { %v16955_v42 = vpop.f32.mrb[179].mxu1  ;;  %v17049_v24 = vpop.f32.mrb[87].mxu0 }
 0x5ed   : > { %v22361_v54 = vadd.f32 %v16953_v31, %v22182_v15  ;;  %v16956_v2 = vadd.f32 %v16955_v42, %v16954_v41  ;;  %v17050_v23 = vadd.f32 %v17049_v24, %v17048_v56  ;;  %v22364_v27 = vadd.f32 %v22289_v63, %v17047_v5 }
 0x5ef   : > { %v22367_v59 = vadd.f32 %v16956_v2, %v22184_v60  ;;  %v22370_v58 = vadd.f32 %v22292_v7, %v17050_v23 }
 0x5f1   : > { %v16957_v13 = vpop.f32.mrb[180].mxu1  ;;  %v17051_v45 = vpop.f32.mrb[88].mxu0 }
 0x5f2   : > { %v16958_v43 = vpop.f32.mrb[181].mxu1  ;;  %v17052_v53 = vpop.f32.mrb[89].mxu0 }
 0x5f3   : > { %v16959_v10 = vadd.f32 %v16958_v43, %v16957_v13  ;;  %v16960_v35 = vpop.f32.mrb[182].mxu1  ;;  %v17053_v11 = vadd.f32 %v17052_v53, %v17051_v45  ;;  %v17054_v15 = vpop.f32.mrb[90].mxu0 }
 0x5f4   : > { %v16961_v30 = vpop.f32.mrb[183].mxu1  ;;  %v17055_v50 = vpop.f32.mrb[91].mxu0 }
 0x5f5   : > { %v22373_v6 = vadd.f32 %v16959_v10, %v22194_v49  ;;  %v16962_v63 = vadd.f32 %v16961_v30, %v16960_v35  ;;  %v17056_v55 = vadd.f32 %v17055_v50, %v17054_v15  ;;  %v22376_v60 = vadd.f32 %v22295_v61, %v17053_v11 }
 0x5f7   : > { %v22379_v7 = vadd.f32 %v16962_v63, %v22200_v21  ;;  %v22382_v9 = vadd.f32 %v22298_v34, %v17056_v55 }
 0x5f9   : > { %v16963_v51 = vpop.f32.mrb[184].mxu1 }
 0x5fa   : > { %v16964_v29 = vpop.f32.mrb[185].mxu1  ;;  %v17057_v0 = vpop.f32.mrb[92].mxu0 }
 0x5fb   : > { %v16965_v62 = vadd.f32 %v16964_v29, %v16963_v51  ;;  %v16966_v36 = vpop.f32.mrb[186].mxu1  ;;  %v17058_v20 = vpop.f32.mrb[93].mxu0 }
 0x5fc   : > { %v16967_v57 = vpop.f32.mrb[187].mxu1  ;;  %v17059_v31 = vadd.f32 %v17058_v20, %v17057_v0  ;;  %v17060_v61 = vpop.f32.mrb[94].mxu0 }
 0x5fd   : > { %v22385_v49 = vadd.f32 %v16965_v62, %v22206_v46  ;;  %v16968_v4 = vadd.f32 %v16967_v57, %v16966_v36  ;;  %v17061_v41 = vpop.f32.mrb[95].mxu0 }
 0x5fe   : > { %v17062_v5 = vadd.f32 %v17061_v41, %v17060_v61  ;;  %v22391_v34 = vadd.f32 %v22301_v19, %v17059_v31 }
 0x5ff   : > { %v22388_v21 = vadd.f32 %v16968_v4, %v22212_v44 }
 0x600   : > { %v22394_v42 = vadd.f32 %v22304_v1, %v17062_v5 }
 0x601   : > { %v16969_v56 = vpop.f32.mrb[188].mxu1 }
 0x602   : > { %v16970_v24 = vpop.f32.mrb[189].mxu1 }
 0x603   : > { %v16971_v2 = vadd.f32 %v16970_v24, %v16969_v56  ;;  %v16972_v23 = vpop.f32.mrb[190].mxu1  ;;  %v17063_v46 = vpop.f32.mrb[96].mxu0 }
 0x604   : > { %v16973_v13 = vpop.f32.mrb[191].mxu1  ;;  %v17064_v45 = vpop.f32.mrb[97].mxu0 }
 0x605   : > { %v22397_v43 = vadd.f32 %v16971_v2, %v22218_v17  ;;  %v16974_v53 = vadd.f32 %v16973_v13, %v16972_v23  ;;  %v17065_v44 = vadd.f32 %v17064_v45, %v17063_v46  ;;  %v17066_v10 = vpop.f32.mrb[98].mxu0 }
 0x606   : > { %v17067_v35 = vpop.f32.mrb[99].mxu0 }
 0x607   : > { %v17385_v19 = vadd.f32 %v16974_v53, %v22224_v22  ;;  %v17068_v11 = vadd.f32 %v17067_v35, %v17066_v10  ;;  %v22401_v15 = vadd.f32 %v22313_v28, %v17065_v44 }
 0x609   : > { %v22404_v1 = vadd.f32 %v22319_v33, %v17068_v11 }
 0x60b   : > { %v17069_v30 = vpop.f32.mrb[100].mxu0 }
 0x60c   : > { %v17070_v50 = vpop.f32.mrb[101].mxu0 }
 0x60d   : > { %v17071_v63 = vadd.f32 %v17070_v50, %v17069_v30  ;;  %v17072_v55 = vpop.f32.mrb[102].mxu0 }
 0x60e   : > { %v17073_v51 = vpop.f32.mrb[103].mxu0 }
 0x60f   : > { %v17074_v17 = vadd.f32 %v17073_v51, %v17072_v55  ;;  %v22407_v29 = vadd.f32 %v22328_v16, %v17071_v63 }
 0x611   : > { %v22410_v62 = vadd.f32 %v22331_v48, %v17074_v17 }
 0x613   : > { %v17075_v22 = vpop.f32.mrb[104].mxu0 }
 0x614   : > { %v17076_v36 = vpop.f32.mrb[105].mxu0 }
 0x615   : > { %v17077_v0 = vadd.f32 %v17076_v36, %v17075_v22  ;;  %v17078_v28 = vpop.f32.mrb[106].mxu0 }
 0x616   : > { %v17079_v57 = vpop.f32.mrb[107].mxu0 }
 0x617   : > { %v17080_v20 = vadd.f32 %v17079_v57, %v17078_v28  ;;  %v22413_v33 = vadd.f32 %v22340_v39, %v17077_v0 }
 0x619   : > { %v22416_v4 = vadd.f32 %v22346_v32, %v17080_v20 }
 0x61b   : > { %v17081_v31 = vpop.f32.mrb[108].mxu0 }
 0x61c   : > { %v17082_v61 = vpop.f32.mrb[109].mxu0 }
 0x61d   : > { %v17083_v41 = vadd.f32 %v17082_v61, %v17081_v31  ;;  %v17084_v16 = vpop.f32.mrb[110].mxu0 }
 0x61e   : > { %v17085_v5 = vpop.f32.mrb[111].mxu0 }
 0x61f   : > { %v17086_v56 = vadd.f32 %v17085_v5, %v17084_v16  ;;  %v22419_v48 = vadd.f32 %v22352_v38, %v17083_v41  ;;  %v22456_v5 = vld [vmem:[%s22588_s9] ss:$0 sm:$0xff] }
 0x621   : > { %v22422_v24 = vadd.f32 %v22358_v52, %v17086_v56 }
 0x623   : > { %v17087_v2 = vpop.f32.mrb[112].mxu0 }
 0x624   : > { %v17088_v23 = vpop.f32.mrb[113].mxu0 }
 0x625   : > { %v17089_v46 = vadd.f32 %v17088_v23, %v17087_v2  ;;  %v17090_v39 = vpop.f32.mrb[114].mxu0 }
 0x626   : > { %v17091_v13 = vpop.f32.mrb[115].mxu0 }
 0x627   : > { %v17092_v45 = vadd.f32 %v17091_v13, %v17090_v39  ;;  %v22425_v32 = vadd.f32 %v22361_v54, %v17089_v46 }
 0x629   : > { %v22428_v53 = vadd.f32 %v22367_v59, %v17092_v45 }
 0x62b   : > { %v17093_v44 = vpop.f32.mrb[116].mxu0 }
 0x62c   : > { %v17094_v10 = vpop.f32.mrb[117].mxu0 }
 0x62d   : > { %v17095_v35 = vadd.f32 %v17094_v10, %v17093_v44  ;;  %v17096_v38 = vpop.f32.mrb[118].mxu0 }
 0x62e   : > { %v17097_v11 = vpop.f32.mrb[119].mxu0 }
 0x62f   : > { %v17098_v30 = vadd.f32 %v17097_v11, %v17096_v38  ;;  %v22431_v52 = vadd.f32 %v22373_v6, %v17095_v35 }
 0x631   : > { %v22434_v50 = vadd.f32 %v22379_v7, %v17098_v30 }
 0x633   : > { %v17099_v63 = vpop.f32.mrb[120].mxu0 }
 0x634   : > { %v17100_v55 = vpop.f32.mrb[121].mxu0 }
 0x635   : > { %v17101_v51 = vadd.f32 %v17100_v55, %v17099_v63  ;;  %v17102_v54 = vpop.f32.mrb[122].mxu0 }
 0x636   : > { %v17103_v17 = vpop.f32.mrb[123].mxu0 }
 0x637   : > { %v17104_v22 = vadd.f32 %v17103_v17, %v17102_v54  ;;  %v22437_v59 = vadd.f32 %v22385_v49, %v17101_v51  ;;  %v22450_v49 = vld [vmem:[%s22587_s8] ss:$0 sm:$0xff] }
 0x639   : > { %v22440_v36 = vadd.f32 %v22388_v21, %v17104_v22 }
 0x63b   : > { %v17105_v0 = vpop.f32.mrb[124].mxu0 }
 0x63c   : > { %v17106_v28 = vpop.f32.mrb[125].mxu0 }
 0x63d   : > { %v17107_v57 = vadd.f32 %v17106_v28, %v17105_v0  ;;  %v17108_v6 = vpop.f32.mrb[126].mxu0 }
 0x63e   : > { %v17109_v20 = vpop.f32.mrb[127].mxu0 }
 0x63f   : > { %v17110_v31 = vadd.f32 %v17109_v20, %v17108_v6  ;;  %v22443_v7 = vadd.f32 %v22397_v43, %v17107_v57 }
 0x641   : > { %v22445_v61 = vadd.f32 %v17385_v19, %v17110_v31 }
 0x643   : > { %v17249_v41 = vpop.f32.mrb[32].mxu0 }
 0x644   : > { %v17297_v21 = vadd.f32 %v22310_v37, %v17249_v41  ;;  %v13756_v16 = vpop.f32.mrb[33].mxu0 }
 0x645   : > { %v17300_v56 = vadd.f32 %v22307_v14, %v13756_v16  ;;  %v17250_v43 = vpop.f32.mrb[34].mxu0 }
 0x646   : > { %v14020_v19 = vmul.f32 %v17297_v21, %v22450_v49  ;;  %v17303_v2 = vadd.f32 %v22316_v18, %v17250_v43  ;;  %v13759_v23 = vpop.f32.mrb[35].mxu0 }
 0x647   : > { %v14018_v46 = vmul.f32 %v17300_v56, %v22450_v49  ;;  %v17306_v39 = vadd.f32 %v22322_v8, %v13759_v23 }
 0x648   : > { %v14059_v37 = vadd.f32 %v22456_v5, %v14020_v19  ;;  %v14021_v13 = vmul.f32 %v17303_v2, %v22450_v49 }
 0x649   : > { %v14057_v45 = vadd.f32 %v22456_v5, %v14018_v46  ;;  %v14019_v44 = vmul.f32 %v17306_v39, %v22450_v49 }
 0x64a   : > { %v14060_v14 = vadd.f32 %v22456_v5, %v14021_v13  ;;  %v14091_v38 = vmax.f32 %v14059_v37, 0.0 }
 0x64b   : > { %v14058_v10 = vadd.f32 %v22456_v5, %v14019_v44  ;;  %v17253_v35 = vpop.f32.mrb[36].mxu0  ;;  %v14089_v8 = vmax.f32 %v14057_v45, 0.0 }
 0x64c   : > { %v14092_v18 = vmax.f32 %v14060_v14, 0.0  ;;  %v17309_v11 = vadd.f32 %v22337_v12, %v17253_v35  ;;  %v13772_v30 = vpop.f32.mrb[37].mxu0 }
 0x64d   : > { %v14090_v63 = vmax.f32 %v14058_v10, 0.0  ;;  %v17312_v55 = vadd.f32 %v22325_v25, %v13772_v30  ;;  %v17254_v51 = vpop.f32.mrb[38].mxu0 }
 0x64e   : > { %v15616_v54 = vpack.c.bf16 %v14092_v18, %v14091_v38  ;;  %v14024_v17 = vmul.f32 %v17309_v11, %v22450_v49  ;;  %v17315_v22 = vadd.f32 %v22343_v3, %v17254_v51  ;;  %v13775_v12 = vpop.f32.mrb[39].mxu0 }
 0x64f   : > { %v15611_v0 = vpack.c.bf16 %v14090_v63, %v14089_v8  ;;  %v14022_v28 = vmul.f32 %v17312_v55, %v22450_v49  ;;  %v17318_v57 = vadd.f32 %v22334_v40, %v13775_v12 }
 0x650   : > { %15688 = vst [vmem:[%s22475_s26 + $0x8] sm:$0xff] %v15616_v54   ;;  %v14063_v6 = vadd.f32 %v22456_v5, %v14024_v17  ;;  %v14025_v20 = vmul.f32 %v17315_v22, %v22450_v49 }
 0x651   : > { %15612 = vst [vmem:[%s22475_s26] sm:$0xff] %v15611_v0   ;;  %v14061_v25 = vadd.f32 %v22456_v5, %v14022_v28  ;;  %v14023_v31 = vmul.f32 %v17318_v57, %v22450_v49 }
 0x652   : > { %v14064_v41 = vadd.f32 %v22456_v5, %v14025_v20  ;;  %v14095_v16 = vmax.f32 %v14063_v6, 0.0 }
 0x653   : > { %v14062_v3 = vadd.f32 %v22456_v5, %v14023_v31  ;;  %v17257_v21 = vpop.f32.mrb[40].mxu0  ;;  %v14093_v19 = vmax.f32 %v14061_v25, 0.0 }
 0x654   : > { %v14096_v56 = vmax.f32 %v14064_v41, 0.0  ;;  %v17321_v40 = vadd.f32 %v22364_v27, %v17257_v21  ;;  %v13788_v43 = vpop.f32.mrb[41].mxu0 }
 0x655   : > { %v14094_v2 = vmax.f32 %v14062_v3, 0.0  ;;  %v17324_v23 = vadd.f32 %v22349_v26, %v13788_v43  ;;  %v17258_v46 = vpop.f32.mrb[42].mxu0 }
 0x656   : > { %v15626_v39 = vpack.c.bf16 %v14096_v56, %v14095_v16  ;;  %v14028_v37 = vmul.f32 %v17321_v40, %v22450_v49  ;;  %v17327_v13 = vadd.f32 %v22370_v58, %v17258_v46  ;;  %v13791_v45 = vpop.f32.mrb[43].mxu0 }
 0x657   : > { %v15621_v44 = vpack.c.bf16 %v14094_v2, %v14093_v19  ;;  %v14026_v14 = vmul.f32 %v17324_v23, %v22450_v49  ;;  %v17330_v10 = vadd.f32 %v22355_v47, %v13791_v45 }
 0x658   : > { %15690 = vst [vmem:[%s22475_s26 + $0x18] sm:$0xff] %v15626_v39   ;;  %v14067_v27 = vadd.f32 %v22456_v5, %v14028_v37  ;;  %v14029_v35 = vmul.f32 %v17327_v13, %v22450_v49 }
 0x659   : > { %15689 = vst [vmem:[%s22475_s26 + $0x10] sm:$0xff] %v15621_v44   ;;  %v14065_v26 = vadd.f32 %v22456_v5, %v14026_v14  ;;  %v14027_v38 = vmul.f32 %v17330_v10, %v22450_v49 }
 0x65a   : > { %v14068_v18 = vadd.f32 %v22456_v5, %v14029_v35  ;;  %v14099_v30 = vmax.f32 %v14067_v27, 0.0 }
 0x65b   : > { %v14066_v58 = vadd.f32 %v22456_v5, %v14027_v38  ;;  %v17261_v11 = vpop.f32.mrb[44].mxu0  ;;  %v14097_v55 = vmax.f32 %v14065_v26, 0.0 }
 0x65c   : > { %v14100_v8 = vmax.f32 %v14068_v18, 0.0  ;;  %v17333_v47 = vadd.f32 %v22391_v34, %v17261_v11  ;;  %v13804_v63 = vpop.f32.mrb[45].mxu0 }
 0x65d   : > { %v14098_v51 = vmax.f32 %v14066_v58, 0.0  ;;  %v17336_v54 = vadd.f32 %v22376_v60, %v13804_v63  ;;  %v17262_v17 = vpop.f32.mrb[46].mxu0 }
 0x65e   : > { %v15636_v22 = vpack.c.bf16 %v14100_v8, %v14099_v30  ;;  %v14032_v12 = vmul.f32 %v17333_v47, %v22450_v49  ;;  %v17339_v0 = vadd.f32 %v22394_v42, %v17262_v17  ;;  %v13807_v28 = vpop.f32.mrb[47].mxu0 }
 0x65f   : > { %v15631_v57 = vpack.c.bf16 %v14098_v51, %v14097_v55  ;;  %v14030_v6 = vmul.f32 %v17336_v54, %v22450_v49  ;;  %v17342_v20 = vadd.f32 %v22382_v9, %v13807_v28 }
 0x660   : > { %15692 = vst [vmem:[%s22475_s26 + $0x28] sm:$0xff] %v15636_v22   ;;  %v14071_v34 = vadd.f32 %v22456_v5, %v14032_v12  ;;  %v14033_v25 = vmul.f32 %v17339_v0, %v22450_v49 }
 0x661   : > { %15691 = vst [vmem:[%s22475_s26 + $0x20] sm:$0xff] %v15631_v57   ;;  %v14069_v60 = vadd.f32 %v22456_v5, %v14030_v6  ;;  %v14031_v31 = vmul.f32 %v17342_v20, %v22450_v49 }
 0x662   : > { %v14072_v41 = vadd.f32 %v22456_v5, %v14033_v25  ;;  %v14103_v21 = vmax.f32 %v14071_v34, 0.0 }
 0x663   : > { %v14070_v42 = vadd.f32 %v22456_v5, %v14031_v31  ;;  %v17265_v3 = vpop.f32.mrb[48].mxu0  ;;  %v14101_v40 = vmax.f32 %v14069_v60, 0.0 }
 0x664   : > { %v14104_v16 = vmax.f32 %v14072_v41, 0.0  ;;  %v17345_v9 = vadd.f32 %v22407_v29, %v17265_v3  ;;  %v13820_v56 = vpop.f32.mrb[49].mxu0 }
 0x665   : > { %v14102_v43 = vmax.f32 %v14070_v42, 0.0  ;;  %v17348_v19 = vadd.f32 %v22401_v15, %v13820_v56  ;;  %v17266_v2 = vpop.f32.mrb[50].mxu0 }
 0x666   : > { %v15646_v23 = vpack.c.bf16 %v14104_v16, %v14103_v21  ;;  %v14036_v46 = vmul.f32 %v17345_v9, %v22450_v49  ;;  %v17351_v39 = vadd.f32 %v22410_v62, %v17266_v2  ;;  %v13823_v37 = vpop.f32.mrb[51].mxu0 }
 0x667   : > { %v15641_v13 = vpack.c.bf16 %v14102_v43, %v14101_v40  ;;  %v14034_v45 = vmul.f32 %v17348_v19, %v22450_v49  ;;  %v17354_v44 = vadd.f32 %v22404_v1, %v13823_v37 }
 0x668   : > { %15694 = vst [vmem:[%s22475_s26 + $0x38] sm:$0xff] %v15646_v23   ;;  %v14075_v29 = vadd.f32 %v22456_v5, %v14036_v46  ;;  %v14037_v14 = vmul.f32 %v17351_v39, %v22450_v49 }
 0x669   : > { %15693 = vst [vmem:[%s22475_s26 + $0x30] sm:$0xff] %v15641_v13   ;;  %v14073_v15 = vadd.f32 %v22456_v5, %v14034_v45  ;;  %v14035_v10 = vmul.f32 %v17354_v44, %v22450_v49 }
 0x66a   : > { %v14076_v27 = vadd.f32 %v22456_v5, %v14037_v14  ;;  %v14107_v26 = vmax.f32 %v14075_v29, 0.0 }
 0x66b   : > { %v14074_v62 = vadd.f32 %v22456_v5, %v14035_v10  ;;  %v17269_v35 = vpop.f32.mrb[52].mxu0  ;;  %v14105_v58 = vmax.f32 %v14073_v15, 0.0 }
 0x66c   : > { %v14108_v38 = vmax.f32 %v14076_v27, 0.0  ;;  %v17357_v1 = vadd.f32 %v22419_v48, %v17269_v35  ;;  %v13836_v18 = vpop.f32.mrb[53].mxu0 }
 0x66d   : > { %v14106_v11 = vmax.f32 %v14074_v62, 0.0  ;;  %v17360_v30 = vadd.f32 %v22413_v33, %v13836_v18  ;;  %v17270_v8 = vpop.f32.mrb[54].mxu0 }
 0x66e   : > { %v15656_v47 = vpack.c.bf16 %v14108_v38, %v14107_v26  ;;  %v14040_v63 = vmul.f32 %v17357_v1, %v22450_v49  ;;  %v17363_v55 = vadd.f32 %v22422_v24, %v17270_v8  ;;  %v13839_v51 = vpop.f32.mrb[55].mxu0 }
 0x66f   : > { %v15651_v54 = vpack.c.bf16 %v14106_v11, %v14105_v58  ;;  %v14038_v17 = vmul.f32 %v17360_v30, %v22450_v49  ;;  %v17366_v22 = vadd.f32 %v22416_v4, %v13839_v51 }
 0x670   : > { %15696 = vst [vmem:[%s22475_s26 + $0x48] sm:$0xff] %v15656_v47   ;;  %v14079_v48 = vadd.f32 %v22456_v5, %v14040_v63  ;;  %v14041_v12 = vmul.f32 %v17363_v55, %v22450_v49 }
 0x671   : > { %15695 = vst [vmem:[%s22475_s26 + $0x40] sm:$0xff] %v15651_v54   ;;  %v14077_v33 = vadd.f32 %v22456_v5, %v14038_v17  ;;  %v14039_v0 = vmul.f32 %v17366_v22, %v22450_v49 }
 0x672   : > { %v14080_v28 = vadd.f32 %v22456_v5, %v14041_v12  ;;  %v14111_v6 = vmax.f32 %v14079_v48, 0.0 }
 0x673   : > { %v14078_v24 = vadd.f32 %v22456_v5, %v14039_v0  ;;  %v17273_v57 = vpop.f32.mrb[56].mxu0  ;;  %v14109_v25 = vmax.f32 %v14077_v33, 0.0 }
 0x674   : > { %v14112_v20 = vmax.f32 %v14080_v28, 0.0  ;;  %v17369_v4 = vadd.f32 %v22431_v52, %v17273_v57  ;;  %v13852_v34 = vpop.f32.mrb[57].mxu0 }
 0x675   : > { %v14110_v60 = vmax.f32 %v14078_v24, 0.0  ;;  %v17372_v31 = vadd.f32 %v22425_v32, %v13852_v34  ;;  %v17274_v41 = vpop.f32.mrb[58].mxu0 }
 0x676   : > { %v15666_v42 = vpack.c.bf16 %v14112_v20, %v14111_v6  ;;  %v14044_v3 = vmul.f32 %v17369_v4, %v22450_v49  ;;  %v17375_v21 = vadd.f32 %v22434_v50, %v17274_v41  ;;  %v13855_v16 = vpop.f32.mrb[59].mxu0 }
 0x677   : > { %v15661_v9 = vpack.c.bf16 %v14110_v60, %v14109_v25  ;;  %v14042_v56 = vmul.f32 %v17372_v31, %v22450_v49  ;;  %v17378_v40 = vadd.f32 %v22428_v53, %v13855_v16 }
 0x678   : > { %15698 = vst [vmem:[%s22475_s26 + $0x58] sm:$0xff] %v15666_v42   ;;  %v14083_v52 = vadd.f32 %v22456_v5, %v14044_v3  ;;  %v14045_v43 = vmul.f32 %v17375_v21, %v22450_v49 }
 0x679   : > { %15697 = vst [vmem:[%s22475_s26 + $0x50] sm:$0xff] %v15661_v9   ;;  %v14081_v32 = vadd.f32 %v22456_v5, %v14042_v56  ;;  %v14043_v19 = vmul.f32 %v17378_v40, %v22450_v49 }
 0x67a   : > { %v14084_v2 = vadd.f32 %v22456_v5, %v14045_v43  ;;  %v14115_v46 = vmax.f32 %v14083_v52, 0.0 }
 0x67b   : > { %v14082_v50 = vadd.f32 %v22456_v5, %v14043_v19  ;;  %v17277_v23 = vpop.f32.mrb[60].mxu0  ;;  %v14113_v13 = vmax.f32 %v14081_v32, 0.0 }
 0x67c   : > { %v14116_v39 = vmax.f32 %v14084_v2, 0.0  ;;  %v17381_v53 = vadd.f32 %v22443_v7, %v17277_v23  ;;  %v13868_v37 = vpop.f32.mrb[61].mxu0 }
 0x67d   : > { %v14114_v45 = vmax.f32 %v14082_v50, 0.0  ;;  %v17384_v44 = vadd.f32 %v22437_v59, %v13868_v37  ;;  %v17278_v29 = vpop.f32.mrb[62].mxu0 }
 0x67e   : > { %v15676_v14 = vpack.c.bf16 %v14116_v39, %v14115_v46  ;;  %v14048_v15 = vmul.f32 %v17381_v53, %v22450_v49  ;;  %v17387_v10 = vadd.f32 %v22445_v61, %v17278_v29  ;;  %v13871_v27 = vpop.f32.mrb[63].mxu0 }
 0x67f   : > { %v15671_v62 = vpack.c.bf16 %v14114_v45, %v14113_v13  ;;  %v14046_v35 = vmul.f32 %v17384_v44, %v22450_v49  ;;  %v17390_v26 = vadd.f32 %v22440_v36, %v13871_v27 }
 0x680   : > { %15700 = vst [vmem:[%s22475_s26 + $0x68] sm:$0xff] %v15676_v14   ;;  %v14087_v7 = vadd.f32 %v22456_v5, %v14048_v15  ;;  %v14049_v38 = vmul.f32 %v17387_v10, %v22450_v49 }
 0x681   : > { %15699 = vst [vmem:[%s22475_s26 + $0x60] sm:$0xff] %v15671_v62   ;;  %v14085_v59 = vadd.f32 %v22456_v5, %v14046_v35  ;;  %v14047_v1 = vmul.f32 %v17390_v26, %v22450_v49 }
 0x682   : > { %v14088_v61 = vadd.f32 %v22456_v5, %v14049_v38  ;;  %v14119_v58 = vmax.f32 %v14087_v7, 0.0 }
 0x683   : > { %v14086_v18 = vadd.f32 %v22456_v5, %v14047_v1  ;;  %v14117_v30 = vmax.f32 %v14085_v59, 0.0 }
 0x684   : > { %v14120_v11 = vmax.f32 %v14088_v61, 0.0 }
 0x685   : > { %v14118_v8 = vmax.f32 %v14086_v18, 0.0 }
 0x686   : > { %v15686_v36 = vpack.c.bf16 %v14120_v11, %v14119_v58 }
 0x687   : > { %v15681_v47 = vpack.c.bf16 %v14118_v8, %v14117_v30 }
 0x688   : > { %15702 = vst [vmem:[%s22475_s26 + $0x78] sm:$0xff] %v15686_v36  }
 0x689   : > { %15701 = vst [vmem:[%s22475_s26 + $0x70] sm:$0xff] %v15681_v47  }
 0x68a PF: > { %s20_s13 = sadd.s32 1, %s17827_s13  }
 0x68b   : > { %p17_p4 = scmp.ge.s32.totalorder %s20_s13, 4  }
 0x68d   :  { %19 = sbr.rel (!%p17_p4) target bundleno = 1 (0x1), region = 102 }

</bundles_post_ra>
